<compile_context>
chip_gen: v5e
topology: v5e:2x2
jax: 0.10.0
libtpu: 0.0.40
codegen_flags: <defaults>
</compile_context>

<pallas_src>
import functools

import numpy as np

import jax
import jax.numpy as jnp
from jax import lax
from jax.experimental import pallas as pl
from jax.experimental.pallas import tpu as pltpu

_LANE = 128  # padded width of the final output (z_dim=50 -> 128 lanes)


# ------------------------------ Pallas kernel ------------------------------ #

def _encoder_kernel(p1_ref, shift_ref, w1_ref, b1_ref, w2_ref, b2_ref,
                    w3_ref, b3_ref, w4_ref, b4_ref, o_ref, h1_ref, h2_ref,
                    *, batch):
    """Whole encoder in one kernel.  All intermediates live in VMEM scratch."""
    f32 = jnp.float32
    n2 = 49 * batch  # rows per conv1-output phase block == conv2 output rows

    # ---- conv1: one GEMM + bias + ReLU --------------------------------------
    # p1 rows are ordered (phase=(p,q), i, j, b) where the conv1 output
    # position is (2*i + p, 2*j + q); columns are (cin, kh, kw).
    h1 = jnp.dot(p1_ref[...], w1_ref[...], preferred_element_type=f32)
    h1_ref[...] = jnp.maximum(h1 + b1_ref[...], 0.0)            # [4*n2, 32]

    # ---- conv2: 16-tap accumulation -----------------------------------------
    # Tap (kh, kw) needs conv1's output at (2*ho + kh - 1, 2*wo + kw - 1),
    # i.e. phase (p', q') shifted by (dh, dw); the shift-with-zero-padding is
    # a precomputed 0/1 matrix, so the "gather" is just a matmul.
    acc2 = jnp.zeros((n2, 32), f32)
    for kh in range(4):
        dh = (kh - 1) // 2          # -1, 0, 0, +1
        ph = (kh + 1) % 2           # row parity of the needed conv1 output
        for kw in range(4):
            dw = (kw - 1) // 2
            pw = (kw + 1) % 2
            tap = kh * 4 + kw
            phase = ph * 2 + pw
            x_phase = h1_ref[phase * n2:(phase + 1) * n2, :]     # [n2, 32]
            gathered = jnp.dot(shift_ref[(dh + 1) * 3 + (dw + 1)], x_phase,
                               preferred_element_type=f32)       # [n2, 32]
            acc2 = acc2 + jnp.dot(gathered, w2_ref[tap],
                                  preferred_element_type=f32)    # [n2, 32]
    h2_ref[...] = jnp.maximum(acc2 + b2_ref[...], 0.0)           # rows (s, b)

    # ---- Linear1 with the NCHW flatten folded into the permuted weight ------
    # y3[b, n] = sum_s sum_c h2[s*B + b, c] * w3[s, c, n]
    y3 = jnp.zeros((batch, 256), f32)
    for s in range(49):
        y3 = y3 + jnp.dot(h2_ref[s * batch:(s + 1) * batch, :], w3_ref[s],
                          preferred_element_type=f32)
    y3 = jnp.maximum(y3 + b3_ref[...], 0.0)                      # [B, 256]

    # ---- Linear2 (z_dim zero-padded to 128 -> lane-dense output store) ------
    o_ref[...] = (jnp.dot(y3, w4_ref[...], preferred_element_type=f32)
                  + b4_ref[...]).astype(o_ref.dtype)


def _full_spec(shape):
    zeros = (0,) * len(shape)
    return pl.BlockSpec(shape, lambda i: zeros)


# --------------------------- one-time preparation --------------------------- #

def _make_shift_mats(batch):
    """9 shift matrices T[(dh+1)*3+(dw+1)] of shape [49*B, 49*B].

    Rows/cols enumerate (spatial s = i*7 + j, batch b) with batch innermost.
    T[r, r'] = 1 iff same batch and (i', j') == (i + dh, j + dw) (else 0, which
    also implements conv2's zero padding).
    """
    n = 49 * batch
    r = np.arange(n)
    b_o = r % batch
    s_o = r // batch
    i_o, j_o = s_o // 7, s_o % 7
    mats = np.zeros((9, n, n), np.float32)
    for dh in (-1, 0, 1):
        for dw in (-1, 0, 1):
            idx = (dh + 1) * 3 + (dw + 1)
            ii, jj = i_o + dh, j_o + dw
            valid = (ii >= 0) & (ii < 7) & (jj >= 0) & (jj < 7)
            src = (ii * 7 + jj) * batch + b_o
            mats[idx, r[valid], src[valid]] = 1.0
    return jnp.asarray(mats)


def kaiming_normal(key, shape, fan_in):
    return jax.random.normal(key, shape, dtype=jnp.float32) * jnp.sqrt(2.0 / fan_in)


def init_params(key, z_dim=50, nc=3):
    """Canonical (PyTorch-layout) parameters of the encoder."""
    ks = jax.random.split(key, 4)
    return {
        "w_c1": kaiming_normal(ks[0], (32, nc, 4, 4), nc * 16),   # Conv2d(nc,32,4,2,1)
        "b_c1": jnp.zeros((32,), jnp.float32),
        "w_c2": kaiming_normal(ks[1], (32, 32, 4, 4), 32 * 16),   # Conv2d(32,32,4,2,1)
        "b_c2": jnp.zeros((32,), jnp.float32),
        "w_l1": kaiming_normal(ks[2], (32 * 7 * 7, 256), 32 * 7 * 7),  # Linear(1568,256)
        "b_l1": jnp.zeros((256,), jnp.float32),
        "w_l2": kaiming_normal(ks[3], (256, z_dim), 256),          # Linear(256,z_dim)
        "b_l2": jnp.zeros((z_dim,), jnp.float32),
    }


def prepare_params(params, batch):
    """Hoisted, kernel-ready parameter layouts (done ONCE, not per forward)."""
    nc = params["w_c1"].shape[1]
    z = params["w_l2"].shape[1]
    kp = {}
    kp["shift"] = _make_shift_mats(batch)                                  # [9,49B,49B]
    kp["w1"] = params["w_c1"].reshape(32, nc * 16).T.astype(jnp.float32)   # [nc*16,32]
    kp["b1"] = params["b_c1"].reshape(1, 32).astype(jnp.float32)
    # conv2 per-tap weights: w2[t, ci, co] = w_c2[co, ci, kh, kw], t = kh*4 + kw
    kp["w2"] = jnp.transpose(params["w_c2"], (2, 3, 1, 0)).reshape(16, 32, 32) \
                  .astype(jnp.float32)
    kp["b2"] = params["b_c2"].reshape(1, 32).astype(jnp.float32)
    # Linear1 weight permuted so the kernel never has to flatten activations:
    # kernel wants w3[s, c, n] = w_l1[c*49 + s, n]  (PyTorch NCHW flatten order)
    kp["w3"] = params["w_l1"].reshape(32, 49, 256).transpose(1, 0, 2) \
                  .astype(jnp.float32)                                      # [49,32,256]
    kp["b3"] = params["b_l1"].reshape(1, 256).astype(jnp.float32)
    # Linear2 padded to 128 output lanes (lane-dense final store).
    kp["w4"] = jnp.pad(params["w_l2"], ((0, 0), (0, _LANE - z))).astype(jnp.float32)
    kp["b4"] = jnp.pad(params["b_l2"], (0, _LANE - z)).reshape(1, _LANE) \
                  .astype(jnp.float32)
    return kp


# --------------------------- input glue (tiny, XLA) ------------------------- #

def _conv1_patches(x):
    """im2col of the 28x28 network input, rows ordered (phase, i, j, b)."""
    B, C, H, W = x.shape
    Ho, Wo = H // 2, W // 2                       # 14, 14
    xp = jnp.pad(x, ((0, 0), (0, 0), (1, 1), (1, 1)))
    cols = [xp[:, :, kh:kh + 2 * Ho:2, kw:kw + 2 * Wo:2]
            for kh in range(4) for kw in range(4)]        # each [B, C, 14, 14]
    p = jnp.stack(cols, axis=2)                            # [B, C, 16, 14, 14]
    p = p.reshape(B, C, 16, Ho // 2, 2, Wo // 2, 2)        # ho = 2*i + pp
    p = p.transpose(4, 6, 3, 5, 0, 1, 2)                   # [pp, qq, i, j, B, C, 16]
    return p.reshape(4 * (Ho // 2) * (Wo // 2) * B, C * 16).astype(jnp.float32)


# ------------------------------- forward pass ------------------------------- #

def encode(kparams, x, *, z_dim):
    """Simplified_AutoEncoder.forward == encoder(x): [B, nc, 28, 28] -> [B, z_dim]."""
    B = x.shape[0]
    n2 = 49 * B
    assert kparams["shift"].shape == (9, n2, n2), "prepare_params batch mismatch"

    p1 = _conv1_patches(x)                                 # [4*49*B, nc*16]
    operands = (p1, kparams["shift"], kparams["w1"], kparams["b1"],
                kparams["w2"], kparams["b2"], kparams["w3"], kparams["b3"],
                kparams["w4"], kparams["b4"])

    out = pl.pallas_call(
        functools.partial(_encoder_kernel, batch=B),
        out_shape=jax.ShapeDtypeStruct((B, _LANE), jnp.float32),
        grid=(1,),
        in_specs=[_full_spec(op.shape) for op in operands],
        out_specs=_full_spec((B, _LANE)),
        scratch_shapes=[pltpu.VMEM((4 * n2, 32), jnp.float32),   # conv1 output
                        pltpu.VMEM((n2, 32), jnp.float32)],      # conv2 output
    )(*operands)
    return out[:, :z_dim]


# -------------------------------- reference --------------------------------- #

def encode_ref(params, x_nchw):
    """Pure-JAX reference (lax.conv, canonical params) for correctness only."""
    def conv(x, w, b):
        y = lax.conv_general_dilated(
            x, w, window_strides=(2, 2), padding=((1, 1), (1, 1)),
            dimension_numbers=("NCHW", "OIHW", "NCHW"))
        return jnp.maximum(y + b[None, :, None, None], 0.0)

    h = conv(x_nchw, params["w_c1"], params["b_c1"])
    h = conv(h, params["w_c2"], params["b_c2"])
    B = h.shape[0]
    h = h.reshape(B, 32 * 7 * 7)                     # NCHW flatten (c, i, j)
    h = jnp.maximum(h @ params["w_l1"] + params["b_l1"], 0.0)
    return h @ params["w_l2"] + params["b_l2"]


# ----------------------------------- main ----------------------------------- #

if __name__ == "__main__":
    key = jax.random.PRNGKey(0)
    k_x, k_p = jax.random.split(key)

    B, nc, z_dim = 2, 3, 50
    # View((-1, 32*7*7)) in the encoder implies a 28x28 spatial input.
    x = jax.random.normal(k_x, (B, nc, 28, 28), dtype=jnp.float32)

    params = init_params(k_p, z_dim=z_dim, nc=nc)
    kparams = prepare_params(params, batch=B)        # one-time weight prep

    encode_jit = jax.jit(functools.partial(encode, z_dim=z_dim))
    z = jax.block_until_ready(encode_jit(kparams, x))
    assert z.shape == (B, z_dim), z.shape

    z_ref = jax.block_until_ready(encode_ref(params, x))
    assert jnp.allclose(z, z_ref, atol=1e-4, rtol=1e-4), \
        float(jnp.max(jnp.abs(z - z_ref)))

    print("KERNEL_OK")
</pallas_src>

<mosaic_0001>
module attributes {stable_mosaic.version = 11 : i64} {
  func.func @_encoder_kernel(%arg0: i32, %arg1: memref<392x48xf32, #tpu.memory_space<vmem>>, %arg2: memref<9x98x98xf32, #tpu.memory_space<vmem>>, %arg3: memref<48x32xf32, #tpu.memory_space<vmem>>, %arg4: memref<1x32xf32, #tpu.memory_space<vmem>>, %arg5: memref<16x32x32xf32, #tpu.memory_space<vmem>>, %arg6: memref<1x32xf32, #tpu.memory_space<vmem>>, %arg7: memref<49x32x256xf32, #tpu.memory_space<vmem>>, %arg8: memref<1x256xf32, #tpu.memory_space<vmem>>, %arg9: memref<256x128xf32, #tpu.memory_space<vmem>>, %arg10: memref<1x128xf32, #tpu.memory_space<vmem>>, %arg11: memref<2x128xf32, #tpu.memory_space<vmem>>, %arg12: memref<392x32xf32, #tpu.memory_space<vmem>>, %arg13: memref<98x32xf32, #tpu.memory_space<vmem>>) attributes {dimension_semantics = [#tpu.dimension_semantics<arbitrary>], iteration_bounds = array<i64: 1>, scalar_prefetch = 0 : i64, scratch_operands = 2 : i64, tpu.core_type = #tpu.core_type<tc>, window_params = [{pipeline_mode = #tpu.pipeline_mode<synchronous>, transform_indices = @transform_0, window_bounds = array<i64: 392, 48>}, {pipeline_mode = #tpu.pipeline_mode<synchronous>, transform_indices = @transform_1, window_bounds = array<i64: 9, 98, 98>}, {pipeline_mode = #tpu.pipeline_mode<synchronous>, transform_indices = @transform_2, window_bounds = array<i64: 48, 32>}, {pipeline_mode = #tpu.pipeline_mode<synchronous>, transform_indices = @transform_3, window_bounds = array<i64: 1, 32>}, {pipeline_mode = #tpu.pipeline_mode<synchronous>, transform_indices = @transform_4, window_bounds = array<i64: 16, 32, 32>}, {pipeline_mode = #tpu.pipeline_mode<synchronous>, transform_indices = @transform_5, window_bounds = array<i64: 1, 32>}, {pipeline_mode = #tpu.pipeline_mode<synchronous>, transform_indices = @transform_6, window_bounds = array<i64: 49, 32, 256>}, {pipeline_mode = #tpu.pipeline_mode<synchronous>, transform_indices = @transform_7, window_bounds = array<i64: 1, 256>}, {pipeline_mode = #tpu.pipeline_mode<synchronous>, transform_indices = @transform_8, window_bounds = array<i64: 256, 128>}, {pipeline_mode = #tpu.pipeline_mode<synchronous>, transform_indices = @transform_9, window_bounds = array<i64: 1, 128>}, {pipeline_mode = #tpu.pipeline_mode<synchronous>, transform_indices = @transform_10, window_bounds = array<i64: 2, 128>}]} {
    %c0 = arith.constant 0 : index
    %c0_0 = arith.constant 0 : index
    %0 = vector.load %arg1[%c0, %c0_0] : memref<392x48xf32, #tpu.memory_space<vmem>>, vector<392x48xf32>
    %c0_1 = arith.constant 0 : index
    %c0_2 = arith.constant 0 : index
    %1 = vector.load %arg3[%c0_1, %c0_2] : memref<48x32xf32, #tpu.memory_space<vmem>>, vector<48x32xf32>
    %cst = arith.constant dense<0.000000e+00> : vector<392x32xf32>
    %2 = tpu.matmul %0, %1, %cst {dimension_numbers = #tpu.dot_dimension_numbers<[1], [0], [0], [1], [0, 0, 1, 1], [], []>} : vector<392x48xf32>, vector<48x32xf32>, vector<392x32xf32> -> vector<392x32xf32>
    %c0_3 = arith.constant 0 : index
    %c0_4 = arith.constant 0 : index
    %3 = vector.load %arg4[%c0_3, %c0_4] : memref<1x32xf32, #tpu.memory_space<vmem>>, vector<1x32xf32>
    %4 = vector.broadcast %3 : vector<1x32xf32> to vector<392x32xf32>
    %5 = arith.addf %2, %4 : vector<392x32xf32>
    %cst_5 = arith.constant 0.000000e+00 : f32
    %6 = vector.broadcast %cst_5 : f32 to vector<392x32xf32>
    %7 = arith.maximumf %5, %6 : vector<392x32xf32>
    %c0_6 = arith.constant 0 : index
    %c0_7 = arith.constant 0 : index
    %8 = vector.load %arg12[%c0_6, %c0_7] : memref<392x32xf32, #tpu.memory_space<vmem>>, vector<392x32xf32>
    tpu.vector_store %arg12[%c0_6, %c0_7], %7 {strides = array<i32>} : memref<392x32xf32, #tpu.memory_space<vmem>>, vector<392x32xf32>,
    %cst_8 = arith.constant 0.000000e+00 : f32
    %9 = vector.broadcast %cst_8 : f32 to vector<98x32xf32>
    %c294 = arith.constant 294 : index
    %c0_9 = arith.constant 0 : index
    %10 = vector.load %arg12[%c294, %c0_9] : memref<392x32xf32, #tpu.memory_space<vmem>>, vector<98x32xf32>
    %c0_10 = arith.constant 0 : index
    %c0_11 = arith.constant 0 : index
    %c0_12 = arith.constant 0 : index
    %11 = vector.load %arg2[%c0_10, %c0_11, %c0_12] : memref<9x98x98xf32, #tpu.memory_space<vmem>>, vector<1x98x98xf32>
    %12 = vector.shape_cast %11 : vector<1x98x98xf32> to vector<98x98xf32>
    %cst_13 = arith.constant dense<0.000000e+00> : vector<98x32xf32>
    %13 = tpu.matmul %12, %10, %cst_13 {dimension_numbers = #tpu.dot_dimension_numbers<[1], [0], [0], [1], [0, 0, 1, 1], [], []>} : vector<98x98xf32>, vector<98x32xf32>, vector<98x32xf32> -> vector<98x32xf32>
    %c0_14 = arith.constant 0 : index
    %c0_15 = arith.constant 0 : index
    %c0_16 = arith.constant 0 : index
    %14 = vector.load %arg5[%c0_14, %c0_15, %c0_16] : memref<16x32x32xf32, #tpu.memory_space<vmem>>, vector<1x32x32xf32>
    %15 = vector.shape_cast %14 : vector<1x32x32xf32> to vector<32x32xf32>
    %cst_17 = arith.constant dense<0.000000e+00> : vector<98x32xf32>
    %16 = tpu.matmul %13, %15, %cst_17 {dimension_numbers = #tpu.dot_dimension_numbers<[1], [0], [0], [1], [0, 0, 1, 1], [], []>} : vector<98x32xf32>, vector<32x32xf32>, vector<98x32xf32> -> vector<98x32xf32>
    %17 = arith.addf %9, %16 : vector<98x32xf32>
    %c196 = arith.constant 196 : index
    %c0_18 = arith.constant 0 : index
    %18 = vector.load %arg12[%c196, %c0_18] : memref<392x32xf32, #tpu.memory_space<vmem>>, vector<98x32xf32>
    %c1 = arith.constant 1 : index
    %c0_19 = arith.constant 0 : index
    %c0_20 = arith.constant 0 : index
    %19 = vector.load %arg2[%c1, %c0_19, %c0_20] : memref<9x98x98xf32, #tpu.memory_space<vmem>>, vector<1x98x98xf32>
    %20 = vector.shape_cast %19 : vector<1x98x98xf32> to vector<98x98xf32>
    %cst_21 = arith.constant dense<0.000000e+00> : vector<98x32xf32>
    %21 = tpu.matmul %20, %18, %cst_21 {dimension_numbers = #tpu.dot_dimension_numbers<[1], [0], [0], [1], [0, 0, 1, 1], [], []>} : vector<98x98xf32>, vector<98x32xf32>, vector<98x32xf32> -> vector<98x32xf32>
    %c1_22 = arith.constant 1 : index
    %c0_23 = arith.constant 0 : index
    %c0_24 = arith.constant 0 : index
    %22 = vector.load %arg5[%c1_22, %c0_23, %c0_24] : memref<16x32x32xf32, #tpu.memory_space<vmem>>, vector<1x32x32xf32>
    %23 = vector.shape_cast %22 : vector<1x32x32xf32> to vector<32x32xf32>
    %cst_25 = arith.constant dense<0.000000e+00> : vector<98x32xf32>
    %24 = tpu.matmul %21, %23, %cst_25 {dimension_numbers = #tpu.dot_dimension_numbers<[1], [0], [0], [1], [0, 0, 1, 1], [], []>} : vector<98x32xf32>, vector<32x32xf32>, vector<98x32xf32> -> vector<98x32xf32>
    %25 = arith.addf %17, %24 : vector<98x32xf32>
    %c294_26 = arith.constant 294 : index
    %c0_27 = arith.constant 0 : index
    %26 = vector.load %arg12[%c294_26, %c0_27] : memref<392x32xf32, #tpu.memory_space<vmem>>, vector<98x32xf32>
    %c1_28 = arith.constant 1 : index
    %c0_29 = arith.constant 0 : index
    %c0_30 = arith.constant 0 : index
    %27 = vector.load %arg2[%c1_28, %c0_29, %c0_30] : memref<9x98x98xf32, #tpu.memory_space<vmem>>, vector<1x98x98xf32>
    %28 = vector.shape_cast %27 : vector<1x98x98xf32> to vector<98x98xf32>
    %cst_31 = arith.constant dense<0.000000e+00> : vector<98x32xf32>
    %29 = tpu.matmul %28, %26, %cst_31 {dimension_numbers = #tpu.dot_dimension_numbers<[1], [0], [0], [1], [0, 0, 1, 1], [], []>} : vector<98x98xf32>, vector<98x32xf32>, vector<98x32xf32> -> vector<98x32xf32>
    %c2 = arith.constant 2 : index
    %c0_32 = arith.constant 0 : index
    %c0_33 = arith.constant 0 : index
    %30 = vector.load %arg5[%c2, %c0_32, %c0_33] : memref<16x32x32xf32, #tpu.memory_space<vmem>>, vector<1x32x32xf32>
    %31 = vector.shape_cast %30 : vector<1x32x32xf32> to vector<32x32xf32>
    %cst_34 = arith.constant dense<0.000000e+00> : vector<98x32xf32>
    %32 = tpu.matmul %29, %31, %cst_34 {dimension_numbers = #tpu.dot_dimension_numbers<[1], [0], [0], [1], [0, 0, 1, 1], [], []>} : vector<98x32xf32>, vector<32x32xf32>, vector<98x32xf32> -> vector<98x32xf32>
    %33 = arith.addf %25, %32 : vector<98x32xf32>
    %c196_35 = arith.constant 196 : index
    %c0_36 = arith.constant 0 : index
    %34 = vector.load %arg12[%c196_35, %c0_36] : memref<392x32xf32, #tpu.memory_space<vmem>>, vector<98x32xf32>
    %c2_37 = arith.constant 2 : index
    %c0_38 = arith.constant 0 : index
    %c0_39 = arith.constant 0 : index
    %35 = vector.load %arg2[%c2_37, %c0_38, %c0_39] : memref<9x98x98xf32, #tpu.memory_space<vmem>>, vector<1x98x98xf32>
    %36 = vector.shape_cast %35 : vector<1x98x98xf32> to vector<98x98xf32>
    %cst_40 = arith.constant dense<0.000000e+00> : vector<98x32xf32>
    %37 = tpu.matmul %36, %34, %cst_40 {dimension_numbers = #tpu.dot_dimension_numbers<[1], [0], [0], [1], [0, 0, 1, 1], [], []>} : vector<98x98xf32>, vector<98x32xf32>, vector<98x32xf32> -> vector<98x32xf32>
    %c3 = arith.constant 3 : index
    %c0_41 = arith.constant 0 : index
    %c0_42 = arith.constant 0 : index
    %38 = vector.load %arg5[%c3, %c0_41, %c0_42] : memref<16x32x32xf32, #tpu.memory_space<vmem>>, vector<1x32x32xf32>
    %39 = vector.shape_cast %38 : vector<1x32x32xf32> to vector<32x32xf32>
    %cst_43 = arith.constant dense<0.000000e+00> : vector<98x32xf32>
    %40 = tpu.matmul %37, %39, %cst_43 {dimension_numbers = #tpu.dot_dimension_numbers<[1], [0], [0], [1], [0, 0, 1, 1], [], []>} : vector<98x32xf32>, vector<32x32xf32>, vector<98x32xf32> -> vector<98x32xf32>
    %41 = arith.addf %33, %40 : vector<98x32xf32>
    %c98 = arith.constant 98 : index
    %c0_44 = arith.constant 0 : index
    %42 = vector.load %arg12[%c98, %c0_44] : memref<392x32xf32, #tpu.memory_space<vmem>>, vector<98x32xf32>
    %c3_45 = arith.constant 3 : index
    %c0_46 = arith.constant 0 : index
    %c0_47 = arith.constant 0 : index
    %43 = vector.load %arg2[%c3_45, %c0_46, %c0_47] : memref<9x98x98xf32, #tpu.memory_space<vmem>>, vector<1x98x98xf32>
    %44 = vector.shape_cast %43 : vector<1x98x98xf32> to vector<98x98xf32>
    %cst_48 = arith.constant dense<0.000000e+00> : vector<98x32xf32>
    %45 = tpu.matmul %44, %42, %cst_48 {dimension_numbers = #tpu.dot_dimension_numbers<[1], [0], [0], [1], [0, 0, 1, 1], [], []>} : vector<98x98xf32>, vector<98x32xf32>, vector<98x32xf32> -> vector<98x32xf32>
    %c4 = arith.constant 4 : index
    %c0_49 = arith.constant 0 : index
    %c0_50 = arith.constant 0 : index
    %46 = vector.load %arg5[%c4, %c0_49, %c0_50] : memref<16x32x32xf32, #tpu.memory_space<vmem>>, vector<1x32x32xf32>
    %47 = vector.shape_cast %46 : vector<1x32x32xf32> to vector<32x32xf32>
    %cst_51 = arith.constant dense<0.000000e+00> : vector<98x32xf32>
    %48 = tpu.matmul %45, %47, %cst_51 {dimension_numbers = #tpu.dot_dimension_numbers<[1], [0], [0], [1], [0, 0, 1, 1], [], []>} : vector<98x32xf32>, vector<32x32xf32>, vector<98x32xf32> -> vector<98x32xf32>
    %49 = arith.addf %41, %48 : vector<98x32xf32>
    %c0_52 = arith.constant 0 : index
    %c0_53 = arith.constant 0 : index
    %50 = vector.load %arg12[%c0_52, %c0_53] : memref<392x32xf32, #tpu.memory_space<vmem>>, vector<98x32xf32>
    %c4_54 = arith.constant 4 : index
    %c0_55 = arith.constant 0 : index
    %c0_56 = arith.constant 0 : index
    %51 = vector.load %arg2[%c4_54, %c0_55, %c0_56] : memref<9x98x98xf32, #tpu.memory_space<vmem>>, vector<1x98x98xf32>
    %52 = vector.shape_cast %51 : vector<1x98x98xf32> to vector<98x98xf32>
    %cst_57 = arith.constant dense<0.000000e+00> : vector<98x32xf32>
    %53 = tpu.matmul %52, %50, %cst_57 {dimension_numbers = #tpu.dot_dimension_numbers<[1], [0], [0], [1], [0, 0, 1, 1], [], []>} : vector<98x98xf32>, vector<98x32xf32>, vector<98x32xf32> -> vector<98x32xf32>
    %c5 = arith.constant 5 : index
    %c0_58 = arith.constant 0 : index
    %c0_59 = arith.constant 0 : index
    %54 = vector.load %arg5[%c5, %c0_58, %c0_59] : memref<16x32x32xf32, #tpu.memory_space<vmem>>, vector<1x32x32xf32>
    %55 = vector.shape_cast %54 : vector<1x32x32xf32> to vector<32x32xf32>
    %cst_60 = arith.constant dense<0.000000e+00> : vector<98x32xf32>
    %56 = tpu.matmul %53, %55, %cst_60 {dimension_numbers = #tpu.dot_dimension_numbers<[1], [0], [0], [1], [0, 0, 1, 1], [], []>} : vector<98x32xf32>, vector<32x32xf32>, vector<98x32xf32> -> vector<98x32xf32>
    %57 = arith.addf %49, %56 : vector<98x32xf32>
    %c98_61 = arith.constant 98 : index
    %c0_62 = arith.constant 0 : index
    %58 = vector.load %arg12[%c98_61, %c0_62] : memref<392x32xf32, #tpu.memory_space<vmem>>, vector<98x32xf32>
    %c4_63 = arith.constant 4 : index
    %c0_64 = arith.constant 0 : index
    %c0_65 = arith.constant 0 : index
    %59 = vector.load %arg2[%c4_63, %c0_64, %c0_65] : memref<9x98x98xf32, #tpu.memory_space<vmem>>, vector<1x98x98xf32>
    %60 = vector.shape_cast %59 : vector<1x98x98xf32> to vector<98x98xf32>
    %cst_66 = arith.constant dense<0.000000e+00> : vector<98x32xf32>
    %61 = tpu.matmul %60, %58, %cst_66 {dimension_numbers = #tpu.dot_dimension_numbers<[1], [0], [0], [1], [0, 0, 1, 1], [], []>} : vector<98x98xf32>, vector<98x32xf32>, vector<98x32xf32> -> vector<98x32xf32>
    %c6 = arith.constant 6 : index
    %c0_67 = arith.constant 0 : index
    %c0_68 = arith.constant 0 : index
    %62 = vector.load %arg5[%c6, %c0_67, %c0_68] : memref<16x32x32xf32, #tpu.memory_space<vmem>>, vector<1x32x32xf32>
    %63 = vector.shape_cast %62 : vector<1x32x32xf32> to vector<32x32xf32>
    %cst_69 = arith.constant dense<0.000000e+00> : vector<98x32xf32>
    %64 = tpu.matmul %61, %63, %cst_69 {dimension_numbers = #tpu.dot_dimension_numbers<[1], [0], [0], [1], [0, 0, 1, 1], [], []>} : vector<98x32xf32>, vector<32x32xf32>, vector<98x32xf32> -> vector<98x32xf32>
    %65 = arith.addf %57, %64 : vector<98x32xf32>
    %c0_70 = arith.constant 0 : index
    %c0_71 = arith.constant 0 : index
    %66 = vector.load %arg12[%c0_70, %c0_71] : memref<392x32xf32, #tpu.memory_space<vmem>>, vector<98x32xf32>
    %c5_72 = arith.constant 5 : index
    %c0_73 = arith.constant 0 : index
    %c0_74 = arith.constant 0 : index
    %67 = vector.load %arg2[%c5_72, %c0_73, %c0_74] : memref<9x98x98xf32, #tpu.memory_space<vmem>>, vector<1x98x98xf32>
    %68 = vector.shape_cast %67 : vector<1x98x98xf32> to vector<98x98xf32>
    %cst_75 = arith.constant dense<0.000000e+00> : vector<98x32xf32>
    %69 = tpu.matmul %68, %66, %cst_75 {dimension_numbers = #tpu.dot_dimension_numbers<[1], [0], [0], [1], [0, 0, 1, 1], [], []>} : vector<98x98xf32>, vector<98x32xf32>, vector<98x32xf32> -> vector<98x32xf32>
    %c7 = arith.constant 7 : index
    %c0_76 = arith.constant 0 : index
    %c0_77 = arith.constant 0 : index
    %70 = vector.load %arg5[%c7, %c0_76, %c0_77] : memref<16x32x32xf32, #tpu.memory_space<vmem>>, vector<1x32x32xf32>
    %71 = vector.shape_cast %70 : vector<1x32x32xf32> to vector<32x32xf32>
    %cst_78 = arith.constant dense<0.000000e+00> : vector<98x32xf32>
    %72 = tpu.matmul %69, %71, %cst_78 {dimension_numbers = #tpu.dot_dimension_numbers<[1], [0], [0], [1], [0, 0, 1, 1], [], []>} : vector<98x32xf32>, vector<32x32xf32>, vector<98x32xf32> -> vector<98x32xf32>
    %73 = arith.addf %65, %72 : vector<98x32xf32>
    %c294_79 = arith.constant 294 : index
    %c0_80 = arith.constant 0 : index
    %74 = vector.load %arg12[%c294_79, %c0_80] : memref<392x32xf32, #tpu.memory_space<vmem>>, vector<98x32xf32>
    %c3_81 = arith.constant 3 : index
    %c0_82 = arith.constant 0 : index
    %c0_83 = arith.constant 0 : index
    %75 = vector.load %arg2[%c3_81, %c0_82, %c0_83] : memref<9x98x98xf32, #tpu.memory_space<vmem>>, vector<1x98x98xf32>
    %76 = vector.shape_cast %75 : vector<1x98x98xf32> to vector<98x98xf32>
    %cst_84 = arith.constant dense<0.000000e+00> : vector<98x32xf32>
    %77 = tpu.matmul %76, %74, %cst_84 {dimension_numbers = #tpu.dot_dimension_numbers<[1], [0], [0], [1], [0, 0, 1, 1], [], []>} : vector<98x98xf32>, vector<98x32xf32>, vector<98x32xf32> -> vector<98x32xf32>
    %c8 = arith.constant 8 : index
    %c0_85 = arith.constant 0 : index
    %c0_86 = arith.constant 0 : index
    %78 = vector.load %arg5[%c8, %c0_85, %c0_86] : memref<16x32x32xf32, #tpu.memory_space<vmem>>, vector<1x32x32xf32>
    %79 = vector.shape_cast %78 : vector<1x32x32xf32> to vector<32x32xf32>
    %cst_87 = arith.constant dense<0.000000e+00> : vector<98x32xf32>
    %80 = tpu.matmul %77, %79, %cst_87 {dimension_numbers = #tpu.dot_dimension_numbers<[1], [0], [0], [1], [0, 0, 1, 1], [], []>} : vector<98x32xf32>, vector<32x32xf32>, vector<98x32xf32> -> vector<98x32xf32>
    %81 = arith.addf %73, %80 : vector<98x32xf32>
    %c196_88 = arith.constant 196 : index
    %c0_89 = arith.constant 0 : index
    %82 = vector.load %arg12[%c196_88, %c0_89] : memref<392x32xf32, #tpu.memory_space<vmem>>, vector<98x32xf32>
    %c4_90 = arith.constant 4 : index
    %c0_91 = arith.constant 0 : index
    %c0_92 = arith.constant 0 : index
    %83 = vector.load %arg2[%c4_90, %c0_91, %c0_92] : memref<9x98x98xf32, #tpu.memory_space<vmem>>, vector<1x98x98xf32>
    %84 = vector.shape_cast %83 : vector<1x98x98xf32> to vector<98x98xf32>
    %cst_93 = arith.constant dense<0.000000e+00> : vector<98x32xf32>
    %85 = tpu.matmul %84, %82, %cst_93 {dimension_numbers = #tpu.dot_dimension_numbers<[1], [0], [0], [1], [0, 0, 1, 1], [], []>} : vector<98x98xf32>, vector<98x32xf32>, vector<98x32xf32> -> vector<98x32xf32>
    %c9 = arith.constant 9 : index
    %c0_94 = arith.constant 0 : index
    %c0_95 = arith.constant 0 : index
    %86 = vector.load %arg5[%c9, %c0_94, %c0_95] : memref<16x32x32xf32, #tpu.memory_space<vmem>>, vector<1x32x32xf32>
    %87 = vector.shape_cast %86 : vector<1x32x32xf32> to vector<32x32xf32>
    %cst_96 = arith.constant dense<0.000000e+00> : vector<98x32xf32>
    %88 = tpu.matmul %85, %87, %cst_96 {dimension_numbers = #tpu.dot_dimension_numbers<[1], [0], [0], [1], [0, 0, 1, 1], [], []>} : vector<98x32xf32>, vector<32x32xf32>, vector<98x32xf32> -> vector<98x32xf32>
    %89 = arith.addf %81, %88 : vector<98x32xf32>
    %c294_97 = arith.constant 294 : index
    %c0_98 = arith.constant 0 : index
    %90 = vector.load %arg12[%c294_97, %c0_98] : memref<392x32xf32, #tpu.memory_space<vmem>>, vector<98x32xf32>
    %c4_99 = arith.constant 4 : index
    %c0_100 = arith.constant 0 : index
    %c0_101 = arith.constant 0 : index
    %91 = vector.load %arg2[%c4_99, %c0_100, %c0_101] : memref<9x98x98xf32, #tpu.memory_space<vmem>>, vector<1x98x98xf32>
    %92 = vector.shape_cast %91 : vector<1x98x98xf32> to vector<98x98xf32>
    %cst_102 = arith.constant dense<0.000000e+00> : vector<98x32xf32>
    %93 = tpu.matmul %92, %90, %cst_102 {dimension_numbers = #tpu.dot_dimension_numbers<[1], [0], [0], [1], [0, 0, 1, 1], [], []>} : vector<98x98xf32>, vector<98x32xf32>, vector<98x32xf32> -> vector<98x32xf32>
    %c10 = arith.constant 10 : index
    %c0_103 = arith.constant 0 : index
    %c0_104 = arith.constant 0 : index
    %94 = vector.load %arg5[%c10, %c0_103, %c0_104] : memref<16x32x32xf32, #tpu.memory_space<vmem>>, vector<1x32x32xf32>
    %95 = vector.shape_cast %94 : vector<1x32x32xf32> to vector<32x32xf32>
    %cst_105 = arith.constant dense<0.000000e+00> : vector<98x32xf32>
    %96 = tpu.matmul %93, %95, %cst_105 {dimension_numbers = #tpu.dot_dimension_numbers<[1], [0], [0], [1], [0, 0, 1, 1], [], []>} : vector<98x32xf32>, vector<32x32xf32>, vector<98x32xf32> -> vector<98x32xf32>
    %97 = arith.addf %89, %96 : vector<98x32xf32>
    %c196_106 = arith.constant 196 : index
    %c0_107 = arith.constant 0 : index
    %98 = vector.load %arg12[%c196_106, %c0_107] : memref<392x32xf32, #tpu.memory_space<vmem>>, vector<98x32xf32>
    %c5_108 = arith.constant 5 : index
    %c0_109 = arith.constant 0 : index
    %c0_110 = arith.constant 0 : index
    %99 = vector.load %arg2[%c5_108, %c0_109, %c0_110] : memref<9x98x98xf32, #tpu.memory_space<vmem>>, vector<1x98x98xf32>
    %100 = vector.shape_cast %99 : vector<1x98x98xf32> to vector<98x98xf32>
    %cst_111 = arith.constant dense<0.000000e+00> : vector<98x32xf32>
    %101 = tpu.matmul %100, %98, %cst_111 {dimension_numbers = #tpu.dot_dimension_numbers<[1], [0], [0], [1], [0, 0, 1, 1], [], []>} : vector<98x98xf32>, vector<98x32xf32>, vector<98x32xf32> -> vector<98x32xf32>
    %c11 = arith.constant 11 : index
    %c0_112 = arith.constant 0 : index
    %c0_113 = arith.constant 0 : index
    %102 = vector.load %arg5[%c11, %c0_112, %c0_113] : memref<16x32x32xf32, #tpu.memory_space<vmem>>, vector<1x32x32xf32>
    %103 = vector.shape_cast %102 : vector<1x32x32xf32> to vector<32x32xf32>
    %cst_114 = arith.constant dense<0.000000e+00> : vector<98x32xf32>
    %104 = tpu.matmul %101, %103, %cst_114 {dimension_numbers = #tpu.dot_dimension_numbers<[1], [0], [0], [1], [0, 0, 1, 1], [], []>} : vector<98x32xf32>, vector<32x32xf32>, vector<98x32xf32> -> vector<98x32xf32>
    %105 = arith.addf %97, %104 : vector<98x32xf32>
    %c98_115 = arith.constant 98 : index
    %c0_116 = arith.constant 0 : index
    %106 = vector.load %arg12[%c98_115, %c0_116] : memref<392x32xf32, #tpu.memory_space<vmem>>, vector<98x32xf32>
    %c6_117 = arith.constant 6 : index
    %c0_118 = arith.constant 0 : index
    %c0_119 = arith.constant 0 : index
    %107 = vector.load %arg2[%c6_117, %c0_118, %c0_119] : memref<9x98x98xf32, #tpu.memory_space<vmem>>, vector<1x98x98xf32>
    %108 = vector.shape_cast %107 : vector<1x98x98xf32> to vector<98x98xf32>
    %cst_120 = arith.constant dense<0.000000e+00> : vector<98x32xf32>
    %109 = tpu.matmul %108, %106, %cst_120 {dimension_numbers = #tpu.dot_dimension_numbers<[1], [0], [0], [1], [0, 0, 1, 1], [], []>} : vector<98x98xf32>, vector<98x32xf32>, vector<98x32xf32> -> vector<98x32xf32>
    %c12 = arith.constant 12 : index
    %c0_121 = arith.constant 0 : index
    %c0_122 = arith.constant 0 : index
    %110 = vector.load %arg5[%c12, %c0_121, %c0_122] : memref<16x32x32xf32, #tpu.memory_space<vmem>>, vector<1x32x32xf32>
    %111 = vector.shape_cast %110 : vector<1x32x32xf32> to vector<32x32xf32>
    %cst_123 = arith.constant dense<0.000000e+00> : vector<98x32xf32>
    %112 = tpu.matmul %109, %111, %cst_123 {dimension_numbers = #tpu.dot_dimension_numbers<[1], [0], [0], [1], [0, 0, 1, 1], [], []>} : vector<98x32xf32>, vector<32x32xf32>, vector<98x32xf32> -> vector<98x32xf32>
    %113 = arith.addf %105, %112 : vector<98x32xf32>
    %c0_124 = arith.constant 0 : index
    %c0_125 = arith.constant 0 : index
    %114 = vector.load %arg12[%c0_124, %c0_125] : memref<392x32xf32, #tpu.memory_space<vmem>>, vector<98x32xf32>
    %c7_126 = arith.constant 7 : index
    %c0_127 = arith.constant 0 : index
    %c0_128 = arith.constant 0 : index
    %115 = vector.load %arg2[%c7_126, %c0_127, %c0_128] : memref<9x98x98xf32, #tpu.memory_space<vmem>>, vector<1x98x98xf32>
    %116 = vector.shape_cast %115 : vector<1x98x98xf32> to vector<98x98xf32>
    %cst_129 = arith.constant dense<0.000000e+00> : vector<98x32xf32>
    %117 = tpu.matmul %116, %114, %cst_129 {dimension_numbers = #tpu.dot_dimension_numbers<[1], [0], [0], [1], [0, 0, 1, 1], [], []>} : vector<98x98xf32>, vector<98x32xf32>, vector<98x32xf32> -> vector<98x32xf32>
    %c13 = arith.constant 13 : index
    %c0_130 = arith.constant 0 : index
    %c0_131 = arith.constant 0 : index
    %118 = vector.load %arg5[%c13, %c0_130, %c0_131] : memref<16x32x32xf32, #tpu.memory_space<vmem>>, vector<1x32x32xf32>
    %119 = vector.shape_cast %118 : vector<1x32x32xf32> to vector<32x32xf32>
    %cst_132 = arith.constant dense<0.000000e+00> : vector<98x32xf32>
    %120 = tpu.matmul %117, %119, %cst_132 {dimension_numbers = #tpu.dot_dimension_numbers<[1], [0], [0], [1], [0, 0, 1, 1], [], []>} : vector<98x32xf32>, vector<32x32xf32>, vector<98x32xf32> -> vector<98x32xf32>
    %121 = arith.addf %113, %120 : vector<98x32xf32>
    %c98_133 = arith.constant 98 : index
    %c0_134 = arith.constant 0 : index
    %122 = vector.load %arg12[%c98_133, %c0_134] : memref<392x32xf32, #tpu.memory_space<vmem>>, vector<98x32xf32>
    %c7_135 = arith.constant 7 : index
    %c0_136 = arith.constant 0 : index
    %c0_137 = arith.constant 0 : index
    %123 = vector.load %arg2[%c7_135, %c0_136, %c0_137] : memref<9x98x98xf32, #tpu.memory_space<vmem>>, vector<1x98x98xf32>
    %124 = vector.shape_cast %123 : vector<1x98x98xf32> to vector<98x98xf32>
    %cst_138 = arith.constant dense<0.000000e+00> : vector<98x32xf32>
    %125 = tpu.matmul %124, %122, %cst_138 {dimension_numbers = #tpu.dot_dimension_numbers<[1], [0], [0], [1], [0, 0, 1, 1], [], []>} : vector<98x98xf32>, vector<98x32xf32>, vector<98x32xf32> -> vector<98x32xf32>
    %c14 = arith.constant 14 : index
    %c0_139 = arith.constant 0 : index
    %c0_140 = arith.constant 0 : index
    %126 = vector.load %arg5[%c14, %c0_139, %c0_140] : memref<16x32x32xf32, #tpu.memory_space<vmem>>, vector<1x32x32xf32>
    %127 = vector.shape_cast %126 : vector<1x32x32xf32> to vector<32x32xf32>
    %cst_141 = arith.constant dense<0.000000e+00> : vector<98x32xf32>
    %128 = tpu.matmul %125, %127, %cst_141 {dimension_numbers = #tpu.dot_dimension_numbers<[1], [0], [0], [1], [0, 0, 1, 1], [], []>} : vector<98x32xf32>, vector<32x32xf32>, vector<98x32xf32> -> vector<98x32xf32>
    %129 = arith.addf %121, %128 : vector<98x32xf32>
    %c0_142 = arith.constant 0 : index
    %c0_143 = arith.constant 0 : index
    %130 = vector.load %arg12[%c0_142, %c0_143] : memref<392x32xf32, #tpu.memory_space<vmem>>, vector<98x32xf32>
    %c8_144 = arith.constant 8 : index
    %c0_145 = arith.constant 0 : index
    %c0_146 = arith.constant 0 : index
    %131 = vector.load %arg2[%c8_144, %c0_145, %c0_146] : memref<9x98x98xf32, #tpu.memory_space<vmem>>, vector<1x98x98xf32>
    %132 = vector.shape_cast %131 : vector<1x98x98xf32> to vector<98x98xf32>
    %cst_147 = arith.constant dense<0.000000e+00> : vector<98x32xf32>
    %133 = tpu.matmul %132, %130, %cst_147 {dimension_numbers = #tpu.dot_dimension_numbers<[1], [0], [0], [1], [0, 0, 1, 1], [], []>} : vector<98x98xf32>, vector<98x32xf32>, vector<98x32xf32> -> vector<98x32xf32>
    %c15 = arith.constant 15 : index
    %c0_148 = arith.constant 0 : index
    %c0_149 = arith.constant 0 : index
    %134 = vector.load %arg5[%c15, %c0_148, %c0_149] : memref<16x32x32xf32, #tpu.memory_space<vmem>>, vector<1x32x32xf32>
    %135 = vector.shape_cast %134 : vector<1x32x32xf32> to vector<32x32xf32>
    %cst_150 = arith.constant dense<0.000000e+00> : vector<98x32xf32>
    %136 = tpu.matmul %133, %135, %cst_150 {dimension_numbers = #tpu.dot_dimension_numbers<[1], [0], [0], [1], [0, 0, 1, 1], [], []>} : vector<98x32xf32>, vector<32x32xf32>, vector<98x32xf32> -> vector<98x32xf32>
    %137 = arith.addf %129, %136 : vector<98x32xf32>
    %c0_151 = arith.constant 0 : index
    %c0_152 = arith.constant 0 : index
    %138 = vector.load %arg6[%c0_151, %c0_152] : memref<1x32xf32, #tpu.memory_space<vmem>>, vector<1x32xf32>
    %139 = vector.broadcast %138 : vector<1x32xf32> to vector<98x32xf32>
    %140 = arith.addf %137, %139 : vector<98x32xf32>
    %cst_153 = arith.constant 0.000000e+00 : f32
    %141 = vector.broadcast %cst_153 : f32 to vector<98x32xf32>
    %142 = arith.maximumf %140, %141 : vector<98x32xf32>
    %c0_154 = arith.constant 0 : index
    %c0_155 = arith.constant 0 : index
    %143 = vector.load %arg13[%c0_154, %c0_155] : memref<98x32xf32, #tpu.memory_space<vmem>>, vector<98x32xf32>
    tpu.vector_store %arg13[%c0_154, %c0_155], %142 {strides = array<i32>} : memref<98x32xf32, #tpu.memory_space<vmem>>, vector<98x32xf32>,
    %cst_156 = arith.constant 0.000000e+00 : f32
    %144 = vector.broadcast %cst_156 : f32 to vector<2x256xf32>
    %c0_157 = arith.constant 0 : index
    %c0_158 = arith.constant 0 : index
    %145 = vector.load %arg13[%c0_157, %c0_158] : memref<98x32xf32, #tpu.memory_space<vmem>>, vector<2x32xf32>
    %c0_159 = arith.constant 0 : index
    %c0_160 = arith.constant 0 : index
    %c0_161 = arith.constant 0 : index
    %146 = vector.load %arg7[%c0_159, %c0_160, %c0_161] : memref<49x32x256xf32, #tpu.memory_space<vmem>>, vector<1x32x256xf32>
    %147 = vector.shape_cast %146 : vector<1x32x256xf32> to vector<32x256xf32>
    %cst_162 = arith.constant dense<0.000000e+00> : vector<2x256xf32>
    %148 = tpu.matmul %145, %147, %cst_162 {dimension_numbers = #tpu.dot_dimension_numbers<[1], [0], [0], [1], [0, 0, 1, 1], [], []>} : vector<2x32xf32>, vector<32x256xf32>, vector<2x256xf32> -> vector<2x256xf32>
    %149 = arith.addf %144, %148 : vector<2x256xf32>
    %c2_163 = arith.constant 2 : index
    %c0_164 = arith.constant 0 : index
    %150 = vector.load %arg13[%c2_163, %c0_164] : memref<98x32xf32, #tpu.memory_space<vmem>>, vector<2x32xf32>
    %c1_165 = arith.constant 1 : index
    %c0_166 = arith.constant 0 : index
    %c0_167 = arith.constant 0 : index
    %151 = vector.load %arg7[%c1_165, %c0_166, %c0_167] : memref<49x32x256xf32, #tpu.memory_space<vmem>>, vector<1x32x256xf32>
    %152 = vector.shape_cast %151 : vector<1x32x256xf32> to vector<32x256xf32>
    %cst_168 = arith.constant dense<0.000000e+00> : vector<2x256xf32>
    %153 = tpu.matmul %150, %152, %cst_168 {dimension_numbers = #tpu.dot_dimension_numbers<[1], [0], [0], [1], [0, 0, 1, 1], [], []>} : vector<2x32xf32>, vector<32x256xf32>, vector<2x256xf32> -> vector<2x256xf32>
    %154 = arith.addf %149, %153 : vector<2x256xf32>
    %c4_169 = arith.constant 4 : index
    %c0_170 = arith.constant 0 : index
    %155 = vector.load %arg13[%c4_169, %c0_170] : memref<98x32xf32, #tpu.memory_space<vmem>>, vector<2x32xf32>
    %c2_171 = arith.constant 2 : index
    %c0_172 = arith.constant 0 : index
    %c0_173 = arith.constant 0 : index
    %156 = vector.load %arg7[%c2_171, %c0_172, %c0_173] : memref<49x32x256xf32, #tpu.memory_space<vmem>>, vector<1x32x256xf32>
    %157 = vector.shape_cast %156 : vector<1x32x256xf32> to vector<32x256xf32>
    %cst_174 = arith.constant dense<0.000000e+00> : vector<2x256xf32>
    %158 = tpu.matmul %155, %157, %cst_174 {dimension_numbers = #tpu.dot_dimension_numbers<[1], [0], [0], [1], [0, 0, 1, 1], [], []>} : vector<2x32xf32>, vector<32x256xf32>, vector<2x256xf32> -> vector<2x256xf32>
    %159 = arith.addf %154, %158 : vector<2x256xf32>
    %c6_175 = arith.constant 6 : index
    %c0_176 = arith.constant 0 : index
    %160 = vector.load %arg13[%c6_175, %c0_176] : memref<98x32xf32, #tpu.memory_space<vmem>>, vector<2x32xf32>
    %c3_177 = arith.constant 3 : index
    %c0_178 = arith.constant 0 : index
    %c0_179 = arith.constant 0 : index
    %161 = vector.load %arg7[%c3_177, %c0_178, %c0_179] : memref<49x32x256xf32, #tpu.memory_space<vmem>>, vector<1x32x256xf32>
    %162 = vector.shape_cast %161 : vector<1x32x256xf32> to vector<32x256xf32>
    %cst_180 = arith.constant dense<0.000000e+00> : vector<2x256xf32>
    %163 = tpu.matmul %160, %162, %cst_180 {dimension_numbers = #tpu.dot_dimension_numbers<[1], [0], [0], [1], [0, 0, 1, 1], [], []>} : vector<2x32xf32>, vector<32x256xf32>, vector<2x256xf32> -> vector<2x256xf32>
    %164 = arith.addf %159, %163 : vector<2x256xf32>
    %c8_181 = arith.constant 8 : index
    %c0_182 = arith.constant 0 : index
    %165 = vector.load %arg13[%c8_181, %c0_182] : memref<98x32xf32, #tpu.memory_space<vmem>>, vector<2x32xf32>
    %c4_183 = arith.constant 4 : index
    %c0_184 = arith.constant 0 : index
    %c0_185 = arith.constant 0 : index
    %166 = vector.load %arg7[%c4_183, %c0_184, %c0_185] : memref<49x32x256xf32, #tpu.memory_space<vmem>>, vector<1x32x256xf32>
    %167 = vector.shape_cast %166 : vector<1x32x256xf32> to vector<32x256xf32>
    %cst_186 = arith.constant dense<0.000000e+00> : vector<2x256xf32>
    %168 = tpu.matmul %165, %167, %cst_186 {dimension_numbers = #tpu.dot_dimension_numbers<[1], [0], [0], [1], [0, 0, 1, 1], [], []>} : vector<2x32xf32>, vector<32x256xf32>, vector<2x256xf32> -> vector<2x256xf32>
    %169 = arith.addf %164, %168 : vector<2x256xf32>
    %c10_187 = arith.constant 10 : index
    %c0_188 = arith.constant 0 : index
    %170 = vector.load %arg13[%c10_187, %c0_188] : memref<98x32xf32, #tpu.memory_space<vmem>>, vector<2x32xf32>
    %c5_189 = arith.constant 5 : index
    %c0_190 = arith.constant 0 : index
    %c0_191 = arith.constant 0 : index
    %171 = vector.load %arg7[%c5_189, %c0_190, %c0_191] : memref<49x32x256xf32, #tpu.memory_space<vmem>>, vector<1x32x256xf32>
    %172 = vector.shape_cast %171 : vector<1x32x256xf32> to vector<32x256xf32>
    %cst_192 = arith.constant dense<0.000000e+00> : vector<2x256xf32>
    %173 = tpu.matmul %170, %172, %cst_192 {dimension_numbers = #tpu.dot_dimension_numbers<[1], [0], [0], [1], [0, 0, 1, 1], [], []>} : vector<2x32xf32>, vector<32x256xf32>, vector<2x256xf32> -> vector<2x256xf32>
    %174 = arith.addf %169, %173 : vector<2x256xf32>
    %c12_193 = arith.constant 12 : index
    %c0_194 = arith.constant 0 : index
    %175 = vector.load %arg13[%c12_193, %c0_194] : memref<98x32xf32, #tpu.memory_space<vmem>>, vector<2x32xf32>
    %c6_195 = arith.constant 6 : index
    %c0_196 = arith.constant 0 : index
    %c0_197 = arith.constant 0 : index
    %176 = vector.load %arg7[%c6_195, %c0_196, %c0_197] : memref<49x32x256xf32, #tpu.memory_space<vmem>>, vector<1x32x256xf32>
    %177 = vector.shape_cast %176 : vector<1x32x256xf32> to vector<32x256xf32>
    %cst_198 = arith.constant dense<0.000000e+00> : vector<2x256xf32>
    %178 = tpu.matmul %175, %177, %cst_198 {dimension_numbers = #tpu.dot_dimension_numbers<[1], [0], [0], [1], [0, 0, 1, 1], [], []>} : vector<2x32xf32>, vector<32x256xf32>, vector<2x256xf32> -> vector<2x256xf32>
    %179 = arith.addf %174, %178 : vector<2x256xf32>
    %c14_199 = arith.constant 14 : index
    %c0_200 = arith.constant 0 : index
    %180 = vector.load %arg13[%c14_199, %c0_200] : memref<98x32xf32, #tpu.memory_space<vmem>>, vector<2x32xf32>
    %c7_201 = arith.constant 7 : index
    %c0_202 = arith.constant 0 : index
    %c0_203 = arith.constant 0 : index
    %181 = vector.load %arg7[%c7_201, %c0_202, %c0_203] : memref<49x32x256xf32, #tpu.memory_space<vmem>>, vector<1x32x256xf32>
    %182 = vector.shape_cast %181 : vector<1x32x256xf32> to vector<32x256xf32>
    %cst_204 = arith.constant dense<0.000000e+00> : vector<2x256xf32>
    %183 = tpu.matmul %180, %182, %cst_204 {dimension_numbers = #tpu.dot_dimension_numbers<[1], [0], [0], [1], [0, 0, 1, 1], [], []>} : vector<2x32xf32>, vector<32x256xf32>, vector<2x256xf32> -> vector<2x256xf32>
    %184 = arith.addf %179, %183 : vector<2x256xf32>
    %c16 = arith.constant 16 : index
    %c0_205 = arith.constant 0 : index
    %185 = vector.load %arg13[%c16, %c0_205] : memref<98x32xf32, #tpu.memory_space<vmem>>, vector<2x32xf32>
    %c8_206 = arith.constant 8 : index
    %c0_207 = arith.constant 0 : index
    %c0_208 = arith.constant 0 : index
    %186 = vector.load %arg7[%c8_206, %c0_207, %c0_208] : memref<49x32x256xf32, #tpu.memory_space<vmem>>, vector<1x32x256xf32>
    %187 = vector.shape_cast %186 : vector<1x32x256xf32> to vector<32x256xf32>
    %cst_209 = arith.constant dense<0.000000e+00> : vector<2x256xf32>
    %188 = tpu.matmul %185, %187, %cst_209 {dimension_numbers = #tpu.dot_dimension_numbers<[1], [0], [0], [1], [0, 0, 1, 1], [], []>} : vector<2x32xf32>, vector<32x256xf32>, vector<2x256xf32> -> vector<2x256xf32>
    %189 = arith.addf %184, %188 : vector<2x256xf32>
    %c18 = arith.constant 18 : index
    %c0_210 = arith.constant 0 : index
    %190 = vector.load %arg13[%c18, %c0_210] : memref<98x32xf32, #tpu.memory_space<vmem>>, vector<2x32xf32>
    %c9_211 = arith.constant 9 : index
    %c0_212 = arith.constant 0 : index
    %c0_213 = arith.constant 0 : index
    %191 = vector.load %arg7[%c9_211, %c0_212, %c0_213] : memref<49x32x256xf32, #tpu.memory_space<vmem>>, vector<1x32x256xf32>
    %192 = vector.shape_cast %191 : vector<1x32x256xf32> to vector<32x256xf32>
    %cst_214 = arith.constant dense<0.000000e+00> : vector<2x256xf32>
    %193 = tpu.matmul %190, %192, %cst_214 {dimension_numbers = #tpu.dot_dimension_numbers<[1], [0], [0], [1], [0, 0, 1, 1], [], []>} : vector<2x32xf32>, vector<32x256xf32>, vector<2x256xf32> -> vector<2x256xf32>
    %194 = arith.addf %189, %193 : vector<2x256xf32>
    %c20 = arith.constant 20 : index
    %c0_215 = arith.constant 0 : index
    %195 = vector.load %arg13[%c20, %c0_215] : memref<98x32xf32, #tpu.memory_space<vmem>>, vector<2x32xf32>
    %c10_216 = arith.constant 10 : index
    %c0_217 = arith.constant 0 : index
    %c0_218 = arith.constant 0 : index
    %196 = vector.load %arg7[%c10_216, %c0_217, %c0_218] : memref<49x32x256xf32, #tpu.memory_space<vmem>>, vector<1x32x256xf32>
    %197 = vector.shape_cast %196 : vector<1x32x256xf32> to vector<32x256xf32>
    %cst_219 = arith.constant dense<0.000000e+00> : vector<2x256xf32>
    %198 = tpu.matmul %195, %197, %cst_219 {dimension_numbers = #tpu.dot_dimension_numbers<[1], [0], [0], [1], [0, 0, 1, 1], [], []>} : vector<2x32xf32>, vector<32x256xf32>, vector<2x256xf32> -> vector<2x256xf32>
    %199 = arith.addf %194, %198 : vector<2x256xf32>
    %c22 = arith.constant 22 : index
    %c0_220 = arith.constant 0 : index
    %200 = vector.load %arg13[%c22, %c0_220] : memref<98x32xf32, #tpu.memory_space<vmem>>, vector<2x32xf32>
    %c11_221 = arith.constant 11 : index
    %c0_222 = arith.constant 0 : index
    %c0_223 = arith.constant 0 : index
    %201 = vector.load %arg7[%c11_221, %c0_222, %c0_223] : memref<49x32x256xf32, #tpu.memory_space<vmem>>, vector<1x32x256xf32>
    %202 = vector.shape_cast %201 : vector<1x32x256xf32> to vector<32x256xf32>
    %cst_224 = arith.constant dense<0.000000e+00> : vector<2x256xf32>
    %203 = tpu.matmul %200, %202, %cst_224 {dimension_numbers = #tpu.dot_dimension_numbers<[1], [0], [0], [1], [0, 0, 1, 1], [], []>} : vector<2x32xf32>, vector<32x256xf32>, vector<2x256xf32> -> vector<2x256xf32>
    %204 = arith.addf %199, %203 : vector<2x256xf32>
    %c24 = arith.constant 24 : index
    %c0_225 = arith.constant 0 : index
    %205 = vector.load %arg13[%c24, %c0_225] : memref<98x32xf32, #tpu.memory_space<vmem>>, vector<2x32xf32>
    %c12_226 = arith.constant 12 : index
    %c0_227 = arith.constant 0 : index
    %c0_228 = arith.constant 0 : index
    %206 = vector.load %arg7[%c12_226, %c0_227, %c0_228] : memref<49x32x256xf32, #tpu.memory_space<vmem>>, vector<1x32x256xf32>
    %207 = vector.shape_cast %206 : vector<1x32x256xf32> to vector<32x256xf32>
    %cst_229 = arith.constant dense<0.000000e+00> : vector<2x256xf32>
    %208 = tpu.matmul %205, %207, %cst_229 {dimension_numbers = #tpu.dot_dimension_numbers<[1], [0], [0], [1], [0, 0, 1, 1], [], []>} : vector<2x32xf32>, vector<32x256xf32>, vector<2x256xf32> -> vector<2x256xf32>
    %209 = arith.addf %204, %208 : vector<2x256xf32>
    %c26 = arith.constant 26 : index
    %c0_230 = arith.constant 0 : index
    %210 = vector.load %arg13[%c26, %c0_230] : memref<98x32xf32, #tpu.memory_space<vmem>>, vector<2x32xf32>
    %c13_231 = arith.constant 13 : index
    %c0_232 = arith.constant 0 : index
    %c0_233 = arith.constant 0 : index
    %211 = vector.load %arg7[%c13_231, %c0_232, %c0_233] : memref<49x32x256xf32, #tpu.memory_space<vmem>>, vector<1x32x256xf32>
    %212 = vector.shape_cast %211 : vector<1x32x256xf32> to vector<32x256xf32>
    %cst_234 = arith.constant dense<0.000000e+00> : vector<2x256xf32>
    %213 = tpu.matmul %210, %212, %cst_234 {dimension_numbers = #tpu.dot_dimension_numbers<[1], [0], [0], [1], [0, 0, 1, 1], [], []>} : vector<2x32xf32>, vector<32x256xf32>, vector<2x256xf32> -> vector<2x256xf32>
    %214 = arith.addf %209, %213 : vector<2x256xf32>
    %c28 = arith.constant 28 : index
    %c0_235 = arith.constant 0 : index
    %215 = vector.load %arg13[%c28, %c0_235] : memref<98x32xf32, #tpu.memory_space<vmem>>, vector<2x32xf32>
    %c14_236 = arith.constant 14 : index
    %c0_237 = arith.constant 0 : index
    %c0_238 = arith.constant 0 : index
    %216 = vector.load %arg7[%c14_236, %c0_237, %c0_238] : memref<49x32x256xf32, #tpu.memory_space<vmem>>, vector<1x32x256xf32>
    %217 = vector.shape_cast %216 : vector<1x32x256xf32> to vector<32x256xf32>
    %cst_239 = arith.constant dense<0.000000e+00> : vector<2x256xf32>
    %218 = tpu.matmul %215, %217, %cst_239 {dimension_numbers = #tpu.dot_dimension_numbers<[1], [0], [0], [1], [0, 0, 1, 1], [], []>} : vector<2x32xf32>, vector<32x256xf32>, vector<2x256xf32> -> vector<2x256xf32>
    %219 = arith.addf %214, %218 : vector<2x256xf32>
    %c30 = arith.constant 30 : index
    %c0_240 = arith.constant 0 : index
    %220 = vector.load %arg13[%c30, %c0_240] : memref<98x32xf32, #tpu.memory_space<vmem>>, vector<2x32xf32>
    %c15_241 = arith.constant 15 : index
    %c0_242 = arith.constant 0 : index
    %c0_243 = arith.constant 0 : index
    %221 = vector.load %arg7[%c15_241, %c0_242, %c0_243] : memref<49x32x256xf32, #tpu.memory_space<vmem>>, vector<1x32x256xf32>
    %222 = vector.shape_cast %221 : vector<1x32x256xf32> to vector<32x256xf32>
    %cst_244 = arith.constant dense<0.000000e+00> : vector<2x256xf32>
    %223 = tpu.matmul %220, %222, %cst_244 {dimension_numbers = #tpu.dot_dimension_numbers<[1], [0], [0], [1], [0, 0, 1, 1], [], []>} : vector<2x32xf32>, vector<32x256xf32>, vector<2x256xf32> -> vector<2x256xf32>
    %224 = arith.addf %219, %223 : vector<2x256xf32>
    %c32 = arith.constant 32 : index
    %c0_245 = arith.constant 0 : index
    %225 = vector.load %arg13[%c32, %c0_245] : memref<98x32xf32, #tpu.memory_space<vmem>>, vector<2x32xf32>
    %c16_246 = arith.constant 16 : index
    %c0_247 = arith.constant 0 : index
    %c0_248 = arith.constant 0 : index
    %226 = vector.load %arg7[%c16_246, %c0_247, %c0_248] : memref<49x32x256xf32, #tpu.memory_space<vmem>>, vector<1x32x256xf32>
    %227 = vector.shape_cast %226 : vector<1x32x256xf32> to vector<32x256xf32>
    %cst_249 = arith.constant dense<0.000000e+00> : vector<2x256xf32>
    %228 = tpu.matmul %225, %227, %cst_249 {dimension_numbers = #tpu.dot_dimension_numbers<[1], [0], [0], [1], [0, 0, 1, 1], [], []>} : vector<2x32xf32>, vector<32x256xf32>, vector<2x256xf32> -> vector<2x256xf32>
    %229 = arith.addf %224, %228 : vector<2x256xf32>
    %c34 = arith.constant 34 : index
    %c0_250 = arith.constant 0 : index
    %230 = vector.load %arg13[%c34, %c0_250] : memref<98x32xf32, #tpu.memory_space<vmem>>, vector<2x32xf32>
    %c17 = arith.constant 17 : index
    %c0_251 = arith.constant 0 : index
    %c0_252 = arith.constant 0 : index
    %231 = vector.load %arg7[%c17, %c0_251, %c0_252] : memref<49x32x256xf32, #tpu.memory_space<vmem>>, vector<1x32x256xf32>
    %232 = vector.shape_cast %231 : vector<1x32x256xf32> to vector<32x256xf32>
    %cst_253 = arith.constant dense<0.000000e+00> : vector<2x256xf32>
    %233 = tpu.matmul %230, %232, %cst_253 {dimension_numbers = #tpu.dot_dimension_numbers<[1], [0], [0], [1], [0, 0, 1, 1], [], []>} : vector<2x32xf32>, vector<32x256xf32>, vector<2x256xf32> -> vector<2x256xf32>
    %234 = arith.addf %229, %233 : vector<2x256xf32>
    %c36 = arith.constant 36 : index
    %c0_254 = arith.constant 0 : index
    %235 = vector.load %arg13[%c36, %c0_254] : memref<98x32xf32, #tpu.memory_space<vmem>>, vector<2x32xf32>
    %c18_255 = arith.constant 18 : index
    %c0_256 = arith.constant 0 : index
    %c0_257 = arith.constant 0 : index
    %236 = vector.load %arg7[%c18_255, %c0_256, %c0_257] : memref<49x32x256xf32, #tpu.memory_space<vmem>>, vector<1x32x256xf32>
    %237 = vector.shape_cast %236 : vector<1x32x256xf32> to vector<32x256xf32>
    %cst_258 = arith.constant dense<0.000000e+00> : vector<2x256xf32>
    %238 = tpu.matmul %235, %237, %cst_258 {dimension_numbers = #tpu.dot_dimension_numbers<[1], [0], [0], [1], [0, 0, 1, 1], [], []>} : vector<2x32xf32>, vector<32x256xf32>, vector<2x256xf32> -> vector<2x256xf32>
    %239 = arith.addf %234, %238 : vector<2x256xf32>
    %c38 = arith.constant 38 : index
    %c0_259 = arith.constant 0 : index
    %240 = vector.load %arg13[%c38, %c0_259] : memref<98x32xf32, #tpu.memory_space<vmem>>, vector<2x32xf32>
    %c19 = arith.constant 19 : index
    %c0_260 = arith.constant 0 : index
    %c0_261 = arith.constant 0 : index
    %241 = vector.load %arg7[%c19, %c0_260, %c0_261] : memref<49x32x256xf32, #tpu.memory_space<vmem>>, vector<1x32x256xf32>
    %242 = vector.shape_cast %241 : vector<1x32x256xf32> to vector<32x256xf32>
    %cst_262 = arith.constant dense<0.000000e+00> : vector<2x256xf32>
    %243 = tpu.matmul %240, %242, %cst_262 {dimension_numbers = #tpu.dot_dimension_numbers<[1], [0], [0], [1], [0, 0, 1, 1], [], []>} : vector<2x32xf32>, vector<32x256xf32>, vector<2x256xf32> -> vector<2x256xf32>
    %244 = arith.addf %239, %243 : vector<2x256xf32>
    %c40 = arith.constant 40 : index
    %c0_263 = arith.constant 0 : index
    %245 = vector.load %arg13[%c40, %c0_263] : memref<98x32xf32, #tpu.memory_space<vmem>>, vector<2x32xf32>
    %c20_264 = arith.constant 20 : index
    %c0_265 = arith.constant 0 : index
    %c0_266 = arith.constant 0 : index
    %246 = vector.load %arg7[%c20_264, %c0_265, %c0_266] : memref<49x32x256xf32, #tpu.memory_space<vmem>>, vector<1x32x256xf32>
    %247 = vector.shape_cast %246 : vector<1x32x256xf32> to vector<32x256xf32>
    %cst_267 = arith.constant dense<0.000000e+00> : vector<2x256xf32>
    %248 = tpu.matmul %245, %247, %cst_267 {dimension_numbers = #tpu.dot_dimension_numbers<[1], [0], [0], [1], [0, 0, 1, 1], [], []>} : vector<2x32xf32>, vector<32x256xf32>, vector<2x256xf32> -> vector<2x256xf32>
    %249 = arith.addf %244, %248 : vector<2x256xf32>
    %c42 = arith.constant 42 : index
    %c0_268 = arith.constant 0 : index
    %250 = vector.load %arg13[%c42, %c0_268] : memref<98x32xf32, #tpu.memory_space<vmem>>, vector<2x32xf32>
    %c21 = arith.constant 21 : index
    %c0_269 = arith.constant 0 : index
    %c0_270 = arith.constant 0 : index
    %251 = vector.load %arg7[%c21, %c0_269, %c0_270] : memref<49x32x256xf32, #tpu.memory_space<vmem>>, vector<1x32x256xf32>
    %252 = vector.shape_cast %251 : vector<1x32x256xf32> to vector<32x256xf32>
    %cst_271 = arith.constant dense<0.000000e+00> : vector<2x256xf32>
    %253 = tpu.matmul %250, %252, %cst_271 {dimension_numbers = #tpu.dot_dimension_numbers<[1], [0], [0], [1], [0, 0, 1, 1], [], []>} : vector<2x32xf32>, vector<32x256xf32>, vector<2x256xf32> -> vector<2x256xf32>
    %254 = arith.addf %249, %253 : vector<2x256xf32>
    %c44 = arith.constant 44 : index
    %c0_272 = arith.constant 0 : index
    %255 = vector.load %arg13[%c44, %c0_272] : memref<98x32xf32, #tpu.memory_space<vmem>>, vector<2x32xf32>
    %c22_273 = arith.constant 22 : index
    %c0_274 = arith.constant 0 : index
    %c0_275 = arith.constant 0 : index
    %256 = vector.load %arg7[%c22_273, %c0_274, %c0_275] : memref<49x32x256xf32, #tpu.memory_space<vmem>>, vector<1x32x256xf32>
    %257 = vector.shape_cast %256 : vector<1x32x256xf32> to vector<32x256xf32>
    %cst_276 = arith.constant dense<0.000000e+00> : vector<2x256xf32>
    %258 = tpu.matmul %255, %257, %cst_276 {dimension_numbers = #tpu.dot_dimension_numbers<[1], [0], [0], [1], [0, 0, 1, 1], [], []>} : vector<2x32xf32>, vector<32x256xf32>, vector<2x256xf32> -> vector<2x256xf32>
    %259 = arith.addf %254, %258 : vector<2x256xf32>
    %c46 = arith.constant 46 : index
    %c0_277 = arith.constant 0 : index
    %260 = vector.load %arg13[%c46, %c0_277] : memref<98x32xf32, #tpu.memory_space<vmem>>, vector<2x32xf32>
    %c23 = arith.constant 23 : index
    %c0_278 = arith.constant 0 : index
    %c0_279 = arith.constant 0 : index
    %261 = vector.load %arg7[%c23, %c0_278, %c0_279] : memref<49x32x256xf32, #tpu.memory_space<vmem>>, vector<1x32x256xf32>
    %262 = vector.shape_cast %261 : vector<1x32x256xf32> to vector<32x256xf32>
    %cst_280 = arith.constant dense<0.000000e+00> : vector<2x256xf32>
    %263 = tpu.matmul %260, %262, %cst_280 {dimension_numbers = #tpu.dot_dimension_numbers<[1], [0], [0], [1], [0, 0, 1, 1], [], []>} : vector<2x32xf32>, vector<32x256xf32>, vector<2x256xf32> -> vector<2x256xf32>
    %264 = arith.addf %259, %263 : vector<2x256xf32>
    %c48 = arith.constant 48 : index
    %c0_281 = arith.constant 0 : index
    %265 = vector.load %arg13[%c48, %c0_281] : memref<98x32xf32, #tpu.memory_space<vmem>>, vector<2x32xf32>
    %c24_282 = arith.constant 24 : index
    %c0_283 = arith.constant 0 : index
    %c0_284 = arith.constant 0 : index
    %266 = vector.load %arg7[%c24_282, %c0_283, %c0_284] : memref<49x32x256xf32, #tpu.memory_space<vmem>>, vector<1x32x256xf32>
    %267 = vector.shape_cast %266 : vector<1x32x256xf32> to vector<32x256xf32>
    %cst_285 = arith.constant dense<0.000000e+00> : vector<2x256xf32>
    %268 = tpu.matmul %265, %267, %cst_285 {dimension_numbers = #tpu.dot_dimension_numbers<[1], [0], [0], [1], [0, 0, 1, 1], [], []>} : vector<2x32xf32>, vector<32x256xf32>, vector<2x256xf32> -> vector<2x256xf32>
    %269 = arith.addf %264, %268 : vector<2x256xf32>
    %c50 = arith.constant 50 : index
    %c0_286 = arith.constant 0 : index
    %270 = vector.load %arg13[%c50, %c0_286] : memref<98x32xf32, #tpu.memory_space<vmem>>, vector<2x32xf32>
    %c25 = arith.constant 25 : index
    %c0_287 = arith.constant 0 : index
    %c0_288 = arith.constant 0 : index
    %271 = vector.load %arg7[%c25, %c0_287, %c0_288] : memref<49x32x256xf32, #tpu.memory_space<vmem>>, vector<1x32x256xf32>
    %272 = vector.shape_cast %271 : vector<1x32x256xf32> to vector<32x256xf32>
    %cst_289 = arith.constant dense<0.000000e+00> : vector<2x256xf32>
    %273 = tpu.matmul %270, %272, %cst_289 {dimension_numbers = #tpu.dot_dimension_numbers<[1], [0], [0], [1], [0, 0, 1, 1], [], []>} : vector<2x32xf32>, vector<32x256xf32>, vector<2x256xf32> -> vector<2x256xf32>
    %274 = arith.addf %269, %273 : vector<2x256xf32>
    %c52 = arith.constant 52 : index
    %c0_290 = arith.constant 0 : index
    %275 = vector.load %arg13[%c52, %c0_290] : memref<98x32xf32, #tpu.memory_space<vmem>>, vector<2x32xf32>
    %c26_291 = arith.constant 26 : index
    %c0_292 = arith.constant 0 : index
    %c0_293 = arith.constant 0 : index
    %276 = vector.load %arg7[%c26_291, %c0_292, %c0_293] : memref<49x32x256xf32, #tpu.memory_space<vmem>>, vector<1x32x256xf32>
    %277 = vector.shape_cast %276 : vector<1x32x256xf32> to vector<32x256xf32>
    %cst_294 = arith.constant dense<0.000000e+00> : vector<2x256xf32>
    %278 = tpu.matmul %275, %277, %cst_294 {dimension_numbers = #tpu.dot_dimension_numbers<[1], [0], [0], [1], [0, 0, 1, 1], [], []>} : vector<2x32xf32>, vector<32x256xf32>, vector<2x256xf32> -> vector<2x256xf32>
    %279 = arith.addf %274, %278 : vector<2x256xf32>
    %c54 = arith.constant 54 : index
    %c0_295 = arith.constant 0 : index
    %280 = vector.load %arg13[%c54, %c0_295] : memref<98x32xf32, #tpu.memory_space<vmem>>, vector<2x32xf32>
    %c27 = arith.constant 27 : index
    %c0_296 = arith.constant 0 : index
    %c0_297 = arith.constant 0 : index
    %281 = vector.load %arg7[%c27, %c0_296, %c0_297] : memref<49x32x256xf32, #tpu.memory_space<vmem>>, vector<1x32x256xf32>
    %282 = vector.shape_cast %281 : vector<1x32x256xf32> to vector<32x256xf32>
    %cst_298 = arith.constant dense<0.000000e+00> : vector<2x256xf32>
    %283 = tpu.matmul %280, %282, %cst_298 {dimension_numbers = #tpu.dot_dimension_numbers<[1], [0], [0], [1], [0, 0, 1, 1], [], []>} : vector<2x32xf32>, vector<32x256xf32>, vector<2x256xf32> -> vector<2x256xf32>
    %284 = arith.addf %279, %283 : vector<2x256xf32>
    %c56 = arith.constant 56 : index
    %c0_299 = arith.constant 0 : index
    %285 = vector.load %arg13[%c56, %c0_299] : memref<98x32xf32, #tpu.memory_space<vmem>>, vector<2x32xf32>
    %c28_300 = arith.constant 28 : index
    %c0_301 = arith.constant 0 : index
    %c0_302 = arith.constant 0 : index
    %286 = vector.load %arg7[%c28_300, %c0_301, %c0_302] : memref<49x32x256xf32, #tpu.memory_space<vmem>>, vector<1x32x256xf32>
    %287 = vector.shape_cast %286 : vector<1x32x256xf32> to vector<32x256xf32>
    %cst_303 = arith.constant dense<0.000000e+00> : vector<2x256xf32>
    %288 = tpu.matmul %285, %287, %cst_303 {dimension_numbers = #tpu.dot_dimension_numbers<[1], [0], [0], [1], [0, 0, 1, 1], [], []>} : vector<2x32xf32>, vector<32x256xf32>, vector<2x256xf32> -> vector<2x256xf32>
    %289 = arith.addf %284, %288 : vector<2x256xf32>
    %c58 = arith.constant 58 : index
    %c0_304 = arith.constant 0 : index
    %290 = vector.load %arg13[%c58, %c0_304] : memref<98x32xf32, #tpu.memory_space<vmem>>, vector<2x32xf32>
    %c29 = arith.constant 29 : index
    %c0_305 = arith.constant 0 : index
    %c0_306 = arith.constant 0 : index
    %291 = vector.load %arg7[%c29, %c0_305, %c0_306] : memref<49x32x256xf32, #tpu.memory_space<vmem>>, vector<1x32x256xf32>
    %292 = vector.shape_cast %291 : vector<1x32x256xf32> to vector<32x256xf32>
    %cst_307 = arith.constant dense<0.000000e+00> : vector<2x256xf32>
    %293 = tpu.matmul %290, %292, %cst_307 {dimension_numbers = #tpu.dot_dimension_numbers<[1], [0], [0], [1], [0, 0, 1, 1], [], []>} : vector<2x32xf32>, vector<32x256xf32>, vector<2x256xf32> -> vector<2x256xf32>
    %294 = arith.addf %289, %293 : vector<2x256xf32>
    %c60 = arith.constant 60 : index
    %c0_308 = arith.constant 0 : index
    %295 = vector.load %arg13[%c60, %c0_308] : memref<98x32xf32, #tpu.memory_space<vmem>>, vector<2x32xf32>
    %c30_309 = arith.constant 30 : index
    %c0_310 = arith.constant 0 : index
    %c0_311 = arith.constant 0 : index
    %296 = vector.load %arg7[%c30_309, %c0_310, %c0_311] : memref<49x32x256xf32, #tpu.memory_space<vmem>>, vector<1x32x256xf32>
    %297 = vector.shape_cast %296 : vector<1x32x256xf32> to vector<32x256xf32>
    %cst_312 = arith.constant dense<0.000000e+00> : vector<2x256xf32>
    %298 = tpu.matmul %295, %297, %cst_312 {dimension_numbers = #tpu.dot_dimension_numbers<[1], [0], [0], [1], [0, 0, 1, 1], [], []>} : vector<2x32xf32>, vector<32x256xf32>, vector<2x256xf32> -> vector<2x256xf32>
    %299 = arith.addf %294, %298 : vector<2x256xf32>
    %c62 = arith.constant 62 : index
    %c0_313 = arith.constant 0 : index
    %300 = vector.load %arg13[%c62, %c0_313] : memref<98x32xf32, #tpu.memory_space<vmem>>, vector<2x32xf32>
    %c31 = arith.constant 31 : index
    %c0_314 = arith.constant 0 : index
    %c0_315 = arith.constant 0 : index
    %301 = vector.load %arg7[%c31, %c0_314, %c0_315] : memref<49x32x256xf32, #tpu.memory_space<vmem>>, vector<1x32x256xf32>
    %302 = vector.shape_cast %301 : vector<1x32x256xf32> to vector<32x256xf32>
    %cst_316 = arith.constant dense<0.000000e+00> : vector<2x256xf32>
    %303 = tpu.matmul %300, %302, %cst_316 {dimension_numbers = #tpu.dot_dimension_numbers<[1], [0], [0], [1], [0, 0, 1, 1], [], []>} : vector<2x32xf32>, vector<32x256xf32>, vector<2x256xf32> -> vector<2x256xf32>
    %304 = arith.addf %299, %303 : vector<2x256xf32>
    %c64 = arith.constant 64 : index
    %c0_317 = arith.constant 0 : index
    %305 = vector.load %arg13[%c64, %c0_317] : memref<98x32xf32, #tpu.memory_space<vmem>>, vector<2x32xf32>
    %c32_318 = arith.constant 32 : index
    %c0_319 = arith.constant 0 : index
    %c0_320 = arith.constant 0 : index
    %306 = vector.load %arg7[%c32_318, %c0_319, %c0_320] : memref<49x32x256xf32, #tpu.memory_space<vmem>>, vector<1x32x256xf32>
    %307 = vector.shape_cast %306 : vector<1x32x256xf32> to vector<32x256xf32>
    %cst_321 = arith.constant dense<0.000000e+00> : vector<2x256xf32>
    %308 = tpu.matmul %305, %307, %cst_321 {dimension_numbers = #tpu.dot_dimension_numbers<[1], [0], [0], [1], [0, 0, 1, 1], [], []>} : vector<2x32xf32>, vector<32x256xf32>, vector<2x256xf32> -> vector<2x256xf32>
    %309 = arith.addf %304, %308 : vector<2x256xf32>
    %c66 = arith.constant 66 : index
    %c0_322 = arith.constant 0 : index
    %310 = vector.load %arg13[%c66, %c0_322] : memref<98x32xf32, #tpu.memory_space<vmem>>, vector<2x32xf32>
    %c33 = arith.constant 33 : index
    %c0_323 = arith.constant 0 : index
    %c0_324 = arith.constant 0 : index
    %311 = vector.load %arg7[%c33, %c0_323, %c0_324] : memref<49x32x256xf32, #tpu.memory_space<vmem>>, vector<1x32x256xf32>
    %312 = vector.shape_cast %311 : vector<1x32x256xf32> to vector<32x256xf32>
    %cst_325 = arith.constant dense<0.000000e+00> : vector<2x256xf32>
    %313 = tpu.matmul %310, %312, %cst_325 {dimension_numbers = #tpu.dot_dimension_numbers<[1], [0], [0], [1], [0, 0, 1, 1], [], []>} : vector<2x32xf32>, vector<32x256xf32>, vector<2x256xf32> -> vector<2x256xf32>
    %314 = arith.addf %309, %313 : vector<2x256xf32>
    %c68 = arith.constant 68 : index
    %c0_326 = arith.constant 0 : index
    %315 = vector.load %arg13[%c68, %c0_326] : memref<98x32xf32, #tpu.memory_space<vmem>>, vector<2x32xf32>
    %c34_327 = arith.constant 34 : index
    %c0_328 = arith.constant 0 : index
    %c0_329 = arith.constant 0 : index
    %316 = vector.load %arg7[%c34_327, %c0_328, %c0_329] : memref<49x32x256xf32, #tpu.memory_space<vmem>>, vector<1x32x256xf32>
    %317 = vector.shape_cast %316 : vector<1x32x256xf32> to vector<32x256xf32>
    %cst_330 = arith.constant dense<0.000000e+00> : vector<2x256xf32>
    %318 = tpu.matmul %315, %317, %cst_330 {dimension_numbers = #tpu.dot_dimension_numbers<[1], [0], [0], [1], [0, 0, 1, 1], [], []>} : vector<2x32xf32>, vector<32x256xf32>, vector<2x256xf32> -> vector<2x256xf32>
    %319 = arith.addf %314, %318 : vector<2x256xf32>
    %c70 = arith.constant 70 : index
    %c0_331 = arith.constant 0 : index
    %320 = vector.load %arg13[%c70, %c0_331] : memref<98x32xf32, #tpu.memory_space<vmem>>, vector<2x32xf32>
    %c35 = arith.constant 35 : index
    %c0_332 = arith.constant 0 : index
    %c0_333 = arith.constant 0 : index
    %321 = vector.load %arg7[%c35, %c0_332, %c0_333] : memref<49x32x256xf32, #tpu.memory_space<vmem>>, vector<1x32x256xf32>
    %322 = vector.shape_cast %321 : vector<1x32x256xf32> to vector<32x256xf32>
    %cst_334 = arith.constant dense<0.000000e+00> : vector<2x256xf32>
    %323 = tpu.matmul %320, %322, %cst_334 {dimension_numbers = #tpu.dot_dimension_numbers<[1], [0], [0], [1], [0, 0, 1, 1], [], []>} : vector<2x32xf32>, vector<32x256xf32>, vector<2x256xf32> -> vector<2x256xf32>
    %324 = arith.addf %319, %323 : vector<2x256xf32>
    %c72 = arith.constant 72 : index
    %c0_335 = arith.constant 0 : index
    %325 = vector.load %arg13[%c72, %c0_335] : memref<98x32xf32, #tpu.memory_space<vmem>>, vector<2x32xf32>
    %c36_336 = arith.constant 36 : index
    %c0_337 = arith.constant 0 : index
    %c0_338 = arith.constant 0 : index
    %326 = vector.load %arg7[%c36_336, %c0_337, %c0_338] : memref<49x32x256xf32, #tpu.memory_space<vmem>>, vector<1x32x256xf32>
    %327 = vector.shape_cast %326 : vector<1x32x256xf32> to vector<32x256xf32>
    %cst_339 = arith.constant dense<0.000000e+00> : vector<2x256xf32>
    %328 = tpu.matmul %325, %327, %cst_339 {dimension_numbers = #tpu.dot_dimension_numbers<[1], [0], [0], [1], [0, 0, 1, 1], [], []>} : vector<2x32xf32>, vector<32x256xf32>, vector<2x256xf32> -> vector<2x256xf32>
    %329 = arith.addf %324, %328 : vector<2x256xf32>
    %c74 = arith.constant 74 : index
    %c0_340 = arith.constant 0 : index
    %330 = vector.load %arg13[%c74, %c0_340] : memref<98x32xf32, #tpu.memory_space<vmem>>, vector<2x32xf32>
    %c37 = arith.constant 37 : index
    %c0_341 = arith.constant 0 : index
    %c0_342 = arith.constant 0 : index
    %331 = vector.load %arg7[%c37, %c0_341, %c0_342] : memref<49x32x256xf32, #tpu.memory_space<vmem>>, vector<1x32x256xf32>
    %332 = vector.shape_cast %331 : vector<1x32x256xf32> to vector<32x256xf32>
    %cst_343 = arith.constant dense<0.000000e+00> : vector<2x256xf32>
    %333 = tpu.matmul %330, %332, %cst_343 {dimension_numbers = #tpu.dot_dimension_numbers<[1], [0], [0], [1], [0, 0, 1, 1], [], []>} : vector<2x32xf32>, vector<32x256xf32>, vector<2x256xf32> -> vector<2x256xf32>
    %334 = arith.addf %329, %333 : vector<2x256xf32>
    %c76 = arith.constant 76 : index
    %c0_344 = arith.constant 0 : index
    %335 = vector.load %arg13[%c76, %c0_344] : memref<98x32xf32, #tpu.memory_space<vmem>>, vector<2x32xf32>
    %c38_345 = arith.constant 38 : index
    %c0_346 = arith.constant 0 : index
    %c0_347 = arith.constant 0 : index
    %336 = vector.load %arg7[%c38_345, %c0_346, %c0_347] : memref<49x32x256xf32, #tpu.memory_space<vmem>>, vector<1x32x256xf32>
    %337 = vector.shape_cast %336 : vector<1x32x256xf32> to vector<32x256xf32>
    %cst_348 = arith.constant dense<0.000000e+00> : vector<2x256xf32>
    %338 = tpu.matmul %335, %337, %cst_348 {dimension_numbers = #tpu.dot_dimension_numbers<[1], [0], [0], [1], [0, 0, 1, 1], [], []>} : vector<2x32xf32>, vector<32x256xf32>, vector<2x256xf32> -> vector<2x256xf32>
    %339 = arith.addf %334, %338 : vector<2x256xf32>
    %c78 = arith.constant 78 : index
    %c0_349 = arith.constant 0 : index
    %340 = vector.load %arg13[%c78, %c0_349] : memref<98x32xf32, #tpu.memory_space<vmem>>, vector<2x32xf32>
    %c39 = arith.constant 39 : index
    %c0_350 = arith.constant 0 : index
    %c0_351 = arith.constant 0 : index
    %341 = vector.load %arg7[%c39, %c0_350, %c0_351] : memref<49x32x256xf32, #tpu.memory_space<vmem>>, vector<1x32x256xf32>
    %342 = vector.shape_cast %341 : vector<1x32x256xf32> to vector<32x256xf32>
    %cst_352 = arith.constant dense<0.000000e+00> : vector<2x256xf32>
    %343 = tpu.matmul %340, %342, %cst_352 {dimension_numbers = #tpu.dot_dimension_numbers<[1], [0], [0], [1], [0, 0, 1, 1], [], []>} : vector<2x32xf32>, vector<32x256xf32>, vector<2x256xf32> -> vector<2x256xf32>
    %344 = arith.addf %339, %343 : vector<2x256xf32>
    %c80 = arith.constant 80 : index
    %c0_353 = arith.constant 0 : index
    %345 = vector.load %arg13[%c80, %c0_353] : memref<98x32xf32, #tpu.memory_space<vmem>>, vector<2x32xf32>
    %c40_354 = arith.constant 40 : index
    %c0_355 = arith.constant 0 : index
    %c0_356 = arith.constant 0 : index
    %346 = vector.load %arg7[%c40_354, %c0_355, %c0_356] : memref<49x32x256xf32, #tpu.memory_space<vmem>>, vector<1x32x256xf32>
    %347 = vector.shape_cast %346 : vector<1x32x256xf32> to vector<32x256xf32>
    %cst_357 = arith.constant dense<0.000000e+00> : vector<2x256xf32>
    %348 = tpu.matmul %345, %347, %cst_357 {dimension_numbers = #tpu.dot_dimension_numbers<[1], [0], [0], [1], [0, 0, 1, 1], [], []>} : vector<2x32xf32>, vector<32x256xf32>, vector<2x256xf32> -> vector<2x256xf32>
    %349 = arith.addf %344, %348 : vector<2x256xf32>
    %c82 = arith.constant 82 : index
    %c0_358 = arith.constant 0 : index
    %350 = vector.load %arg13[%c82, %c0_358] : memref<98x32xf32, #tpu.memory_space<vmem>>, vector<2x32xf32>
    %c41 = arith.constant 41 : index
    %c0_359 = arith.constant 0 : index
    %c0_360 = arith.constant 0 : index
    %351 = vector.load %arg7[%c41, %c0_359, %c0_360] : memref<49x32x256xf32, #tpu.memory_space<vmem>>, vector<1x32x256xf32>
    %352 = vector.shape_cast %351 : vector<1x32x256xf32> to vector<32x256xf32>
    %cst_361 = arith.constant dense<0.000000e+00> : vector<2x256xf32>
    %353 = tpu.matmul %350, %352, %cst_361 {dimension_numbers = #tpu.dot_dimension_numbers<[1], [0], [0], [1], [0, 0, 1, 1], [], []>} : vector<2x32xf32>, vector<32x256xf32>, vector<2x256xf32> -> vector<2x256xf32>
    %354 = arith.addf %349, %353 : vector<2x256xf32>
    %c84 = arith.constant 84 : index
    %c0_362 = arith.constant 0 : index
    %355 = vector.load %arg13[%c84, %c0_362] : memref<98x32xf32, #tpu.memory_space<vmem>>, vector<2x32xf32>
    %c42_363 = arith.constant 42 : index
    %c0_364 = arith.constant 0 : index
    %c0_365 = arith.constant 0 : index
    %356 = vector.load %arg7[%c42_363, %c0_364, %c0_365] : memref<49x32x256xf32, #tpu.memory_space<vmem>>, vector<1x32x256xf32>
    %357 = vector.shape_cast %356 : vector<1x32x256xf32> to vector<32x256xf32>
    %cst_366 = arith.constant dense<0.000000e+00> : vector<2x256xf32>
    %358 = tpu.matmul %355, %357, %cst_366 {dimension_numbers = #tpu.dot_dimension_numbers<[1], [0], [0], [1], [0, 0, 1, 1], [], []>} : vector<2x32xf32>, vector<32x256xf32>, vector<2x256xf32> -> vector<2x256xf32>
    %359 = arith.addf %354, %358 : vector<2x256xf32>
    %c86 = arith.constant 86 : index
    %c0_367 = arith.constant 0 : index
    %360 = vector.load %arg13[%c86, %c0_367] : memref<98x32xf32, #tpu.memory_space<vmem>>, vector<2x32xf32>
    %c43 = arith.constant 43 : index
    %c0_368 = arith.constant 0 : index
    %c0_369 = arith.constant 0 : index
    %361 = vector.load %arg7[%c43, %c0_368, %c0_369] : memref<49x32x256xf32, #tpu.memory_space<vmem>>, vector<1x32x256xf32>
    %362 = vector.shape_cast %361 : vector<1x32x256xf32> to vector<32x256xf32>
    %cst_370 = arith.constant dense<0.000000e+00> : vector<2x256xf32>
    %363 = tpu.matmul %360, %362, %cst_370 {dimension_numbers = #tpu.dot_dimension_numbers<[1], [0], [0], [1], [0, 0, 1, 1], [], []>} : vector<2x32xf32>, vector<32x256xf32>, vector<2x256xf32> -> vector<2x256xf32>
    %364 = arith.addf %359, %363 : vector<2x256xf32>
    %c88 = arith.constant 88 : index
    %c0_371 = arith.constant 0 : index
    %365 = vector.load %arg13[%c88, %c0_371] : memref<98x32xf32, #tpu.memory_space<vmem>>, vector<2x32xf32>
    %c44_372 = arith.constant 44 : index
    %c0_373 = arith.constant 0 : index
    %c0_374 = arith.constant 0 : index
    %366 = vector.load %arg7[%c44_372, %c0_373, %c0_374] : memref<49x32x256xf32, #tpu.memory_space<vmem>>, vector<1x32x256xf32>
    %367 = vector.shape_cast %366 : vector<1x32x256xf32> to vector<32x256xf32>
    %cst_375 = arith.constant dense<0.000000e+00> : vector<2x256xf32>
    %368 = tpu.matmul %365, %367, %cst_375 {dimension_numbers = #tpu.dot_dimension_numbers<[1], [0], [0], [1], [0, 0, 1, 1], [], []>} : vector<2x32xf32>, vector<32x256xf32>, vector<2x256xf32> -> vector<2x256xf32>
    %369 = arith.addf %364, %368 : vector<2x256xf32>
    %c90 = arith.constant 90 : index
    %c0_376 = arith.constant 0 : index
    %370 = vector.load %arg13[%c90, %c0_376] : memref<98x32xf32, #tpu.memory_space<vmem>>, vector<2x32xf32>
    %c45 = arith.constant 45 : index
    %c0_377 = arith.constant 0 : index
    %c0_378 = arith.constant 0 : index
    %371 = vector.load %arg7[%c45, %c0_377, %c0_378] : memref<49x32x256xf32, #tpu.memory_space<vmem>>, vector<1x32x256xf32>
    %372 = vector.shape_cast %371 : vector<1x32x256xf32> to vector<32x256xf32>
    %cst_379 = arith.constant dense<0.000000e+00> : vector<2x256xf32>
    %373 = tpu.matmul %370, %372, %cst_379 {dimension_numbers = #tpu.dot_dimension_numbers<[1], [0], [0], [1], [0, 0, 1, 1], [], []>} : vector<2x32xf32>, vector<32x256xf32>, vector<2x256xf32> -> vector<2x256xf32>
    %374 = arith.addf %369, %373 : vector<2x256xf32>
    %c92 = arith.constant 92 : index
    %c0_380 = arith.constant 0 : index
    %375 = vector.load %arg13[%c92, %c0_380] : memref<98x32xf32, #tpu.memory_space<vmem>>, vector<2x32xf32>
    %c46_381 = arith.constant 46 : index
    %c0_382 = arith.constant 0 : index
    %c0_383 = arith.constant 0 : index
    %376 = vector.load %arg7[%c46_381, %c0_382, %c0_383] : memref<49x32x256xf32, #tpu.memory_space<vmem>>, vector<1x32x256xf32>
    %377 = vector.shape_cast %376 : vector<1x32x256xf32> to vector<32x256xf32>
    %cst_384 = arith.constant dense<0.000000e+00> : vector<2x256xf32>
    %378 = tpu.matmul %375, %377, %cst_384 {dimension_numbers = #tpu.dot_dimension_numbers<[1], [0], [0], [1], [0, 0, 1, 1], [], []>} : vector<2x32xf32>, vector<32x256xf32>, vector<2x256xf32> -> vector<2x256xf32>
    %379 = arith.addf %374, %378 : vector<2x256xf32>
    %c94 = arith.constant 94 : index
    %c0_385 = arith.constant 0 : index
    %380 = vector.load %arg13[%c94, %c0_385] : memref<98x32xf32, #tpu.memory_space<vmem>>, vector<2x32xf32>
    %c47 = arith.constant 47 : index
    %c0_386 = arith.constant 0 : index
    %c0_387 = arith.constant 0 : index
    %381 = vector.load %arg7[%c47, %c0_386, %c0_387] : memref<49x32x256xf32, #tpu.memory_space<vmem>>, vector<1x32x256xf32>
    %382 = vector.shape_cast %381 : vector<1x32x256xf32> to vector<32x256xf32>
    %cst_388 = arith.constant dense<0.000000e+00> : vector<2x256xf32>
    %383 = tpu.matmul %380, %382, %cst_388 {dimension_numbers = #tpu.dot_dimension_numbers<[1], [0], [0], [1], [0, 0, 1, 1], [], []>} : vector<2x32xf32>, vector<32x256xf32>, vector<2x256xf32> -> vector<2x256xf32>
    %384 = arith.addf %379, %383 : vector<2x256xf32>
    %c96 = arith.constant 96 : index
    %c0_389 = arith.constant 0 : index
    %385 = vector.load %arg13[%c96, %c0_389] : memref<98x32xf32, #tpu.memory_space<vmem>>, vector<2x32xf32>
    %c48_390 = arith.constant 48 : index
    %c0_391 = arith.constant 0 : index
    %c0_392 = arith.constant 0 : index
    %386 = vector.load %arg7[%c48_390, %c0_391, %c0_392] : memref<49x32x256xf32, #tpu.memory_space<vmem>>, vector<1x32x256xf32>
    %387 = vector.shape_cast %386 : vector<1x32x256xf32> to vector<32x256xf32>
    %cst_393 = arith.constant dense<0.000000e+00> : vector<2x256xf32>
    %388 = tpu.matmul %385, %387, %cst_393 {dimension_numbers = #tpu.dot_dimension_numbers<[1], [0], [0], [1], [0, 0, 1, 1], [], []>} : vector<2x32xf32>, vector<32x256xf32>, vector<2x256xf32> -> vector<2x256xf32>
    %389 = arith.addf %384, %388 : vector<2x256xf32>
    %c0_394 = arith.constant 0 : index
    %c0_395 = arith.constant 0 : index
    %390 = vector.load %arg8[%c0_394, %c0_395] : memref<1x256xf32, #tpu.memory_space<vmem>>, vector<1x256xf32>
    %391 = vector.broadcast %390 : vector<1x256xf32> to vector<2x256xf32>
    %392 = arith.addf %389, %391 : vector<2x256xf32>
    %cst_396 = arith.constant 0.000000e+00 : f32
    %393 = vector.broadcast %cst_396 : f32 to vector<2x256xf32>
    %394 = arith.maximumf %392, %393 : vector<2x256xf32>
    %c0_397 = arith.constant 0 : index
    %c0_398 = arith.constant 0 : index
    %395 = vector.load %arg9[%c0_397, %c0_398] : memref<256x128xf32, #tpu.memory_space<vmem>>, vector<256x128xf32>
    %cst_399 = arith.constant dense<0.000000e+00> : vector<2x128xf32>
    %396 = tpu.matmul %394, %395, %cst_399 {dimension_numbers = #tpu.dot_dimension_numbers<[1], [0], [0], [1], [0, 0, 1, 1], [], []>} : vector<2x256xf32>, vector<256x128xf32>, vector<2x128xf32> -> vector<2x128xf32>
    %c0_400 = arith.constant 0 : index
    %c0_401 = arith.constant 0 : index
    %397 = vector.load %arg10[%c0_400, %c0_401] : memref<1x128xf32, #tpu.memory_space<vmem>>, vector<1x128xf32>
    %398 = vector.broadcast %397 : vector<1x128xf32> to vector<2x128xf32>
    %399 = arith.addf %396, %398 : vector<2x128xf32>
    %c0_402 = arith.constant 0 : index
    %c0_403 = arith.constant 0 : index
    %400 = vector.load %arg11[%c0_402, %c0_403] : memref<2x128xf32, #tpu.memory_space<vmem>>, vector<2x128xf32>
    tpu.vector_store %arg11[%c0_402, %c0_403], %399 {strides = array<i32>} : memref<2x128xf32, #tpu.memory_space<vmem>>, vector<2x128xf32>,
    return
  }
  func.func @transform_0(%arg0: i32) -> (i32, i32) {
    %c0_i32 = arith.constant 0 : i32
    %c0_i32_0 = arith.constant 0 : i32
    %c0_i32_1 = arith.constant 0 : i32
    return %c0_i32, %c0_i32_0 : i32, i32
  }
  func.func @transform_1(%arg0: i32) -> (i32, i32, i32) {
    %c0_i32 = arith.constant 0 : i32
    %c0_i32_0 = arith.constant 0 : i32
    %c0_i32_1 = arith.constant 0 : i32
    %c0_i32_2 = arith.constant 0 : i32
    return %c0_i32, %c0_i32_0, %c0_i32_1 : i32, i32, i32
  }
  func.func @transform_2(%arg0: i32) -> (i32, i32) {
    %c0_i32 = arith.constant 0 : i32
    %c0_i32_0 = arith.constant 0 : i32
    %c0_i32_1 = arith.constant 0 : i32
    return %c0_i32, %c0_i32_0 : i32, i32
  }
  func.func @transform_3(%arg0: i32) -> (i32, i32) {
    %c0_i32 = arith.constant 0 : i32
    %c0_i32_0 = arith.constant 0 : i32
    %c0_i32_1 = arith.constant 0 : i32
    return %c0_i32, %c0_i32_0 : i32, i32
  }
  func.func @transform_4(%arg0: i32) -> (i32, i32, i32) {
    %c0_i32 = arith.constant 0 : i32
    %c0_i32_0 = arith.constant 0 : i32
    %c0_i32_1 = arith.constant 0 : i32
    %c0_i32_2 = arith.constant 0 : i32
    return %c0_i32, %c0_i32_0, %c0_i32_1 : i32, i32, i32
  }
  func.func @transform_5(%arg0: i32) -> (i32, i32) {
    %c0_i32 = arith.constant 0 : i32
    %c0_i32_0 = arith.constant 0 : i32
    %c0_i32_1 = arith.constant 0 : i32
    return %c0_i32, %c0_i32_0 : i32, i32
  }
  func.func @transform_6(%arg0: i32) -> (i32, i32, i32) {
    %c0_i32 = arith.constant 0 : i32
    %c0_i32_0 = arith.constant 0 : i32
    %c0_i32_1 = arith.constant 0 : i32
    %c0_i32_2 = arith.constant 0 : i32
    return %c0_i32, %c0_i32_0, %c0_i32_1 : i32, i32, i32
  }
  func.func @transform_7(%arg0: i32) -> (i32, i32) {
    %c0_i32 = arith.constant 0 : i32
    %c0_i32_0 = arith.constant 0 : i32
    %c0_i32_1 = arith.constant 0 : i32
    return %c0_i32, %c0_i32_0 : i32, i32
  }
  func.func @transform_8(%arg0: i32) -> (i32, i32) {
    %c0_i32 = arith.constant 0 : i32
    %c0_i32_0 = arith.constant 0 : i32
    %c0_i32_1 = arith.constant 0 : i32
    return %c0_i32, %c0_i32_0 : i32, i32
  }
  func.func @transform_9(%arg0: i32) -> (i32, i32) {
    %c0_i32 = arith.constant 0 : i32
    %c0_i32_0 = arith.constant 0 : i32
    %c0_i32_1 = arith.constant 0 : i32
    return %c0_i32, %c0_i32_0 : i32, i32
  }
  func.func @transform_10(%arg0: i32) -> (i32, i32) {
    %c0_i32 = arith.constant 0 : i32
    %c0_i32_0 = arith.constant 0 : i32
    %c0_i32_1 = arith.constant 0 : i32
    return %c0_i32, %c0_i32_0 : i32, i32
  }
}

</mosaic_0001>

<bundles_post_ra>
// kernel: encode.1
= control target key start
LH: loop header
LB: loop body
LE: loop exit
PB: predicated region body
PF: predicated region fallthrough
CT: control target
= control target key end

     0   :  { %s11665_s0 = inlined_call_operand.vmem [shape: f32[392,48], index: 0, kind: input, shape index: {}]   ;;  %s11666_s1 = inlined_call_operand.vmem [shape: f32[9,98,98], index: 1, kind: input, shape index: {}]   ;;  %s11667_s2 = inlined_call_operand.vmem [shape: f32[48,32], index: 2, kind: input, shape index: {}]   ;;  %s11668_s3 = inlined_call_operand.vmem [shape: f32[1,32], index: 3, kind: input, shape index: {}]   ;;  %s11669_s4 = inlined_call_operand.vmem [shape: f32[16,32,32], index: 4, kind: input, shape index: {}]   ;;  %s11670_s5 = inlined_call_operand.vmem [shape: f32[1,32], index: 5, kind: input, shape index: {}]   ;;  %s11671_s6 = inlined_call_operand.vmem [shape: f32[49,32,256], index: 6, kind: input, shape index: {}]   ;;  %s11672_s7 = inlined_call_operand.vmem [shape: f32[1,256], index: 7, kind: input, shape index: {}]   ;;  %s11673_s8 = inlined_call_operand.vmem [shape: f32[256,128], index: 8, kind: input, shape index: {}]   ;;  %s11674_s9 = inlined_call_operand.vmem [shape: f32[1,128], index: 9, kind: input, shape index: {}]   ;;  %s11675_s10 = inlined_call_operand.hbm [shape: f32[2,128], index: 10, kind: output, shape index: {}]  }
   0x1   :  { %v90_v0 = vld [vmem:[%s11667_s2 + $0x28] sm:$0xff]  ;;  %v89_v1 = vld [vmem:[%s11667_s2 + $0x20] sm:$0xff]  ;;  %v88_v2 = vld [vmem:[%s11667_s2 + $0x18] sm:$0xff] }
   0x2   :  { %253 = vmatpush.msra.mxu0 %v90_v0  ;;  %v87_v3 = vld [vmem:[%s11667_s2 + $0x10] sm:$0xff] }
   0x4   :  { %254 = vmatpush.msra.mxu0 %v89_v1 }
   0x5   :  { %15 = vsyncpa [#allocation5], 0  ;;  %v86_v4 = vld [vmem:[%s11667_s2 + $0x8] sm:$0xff]  ;;  %v85_v5 = vld [vmem:[%s11667_s2] sm:$0xff]  ;;  %vm95_vm0 = vcmask 392192   ;;  %vm456_vm1 = vcmask 261120  }
   0x6   :  { %255 = vmatpush.msra.mxu0 %v88_v2  ;;  %v36_v6 = vld [vmem:[%s11665_s0] sm:$0xff]  ;;  %v37_v7 = vld [vmem:[%s11665_s0 + $0x8] sm:$0xff]  ;;  %v38_v8 = vld [vmem:[%s11665_s0 + $0x10] sm:$0xff]  ;;  %vm572_vm2 = vcmask 1041408   ;;  %vm532_vm3 = vcmask 801792   ;;  %vm3767_vm4 = vcmask 254976  }
   0x7   :  { %v39_v9 = vld [vmem:[%s11665_s0 + $0x18] sm:$0xff]  ;;  %v40_v10 = vld [vmem:[%s11665_s0 + $0x20] sm:$0xff]  ;;  %v41_v11 = vld [vmem:[%s11665_s0 + $0x28] sm:$0xff]  ;;  %s7783_s26 = smov [#allocation4]   ;;  %s6553_s30 = sshll.u32 %s11675_s10, 4  ;;  %s6554_s30 = int_to_ptr.hbm [resolvable:$true] %s6553_s30 }
   0x8   :  { %256 = vmatpush.msra.mxu0 %v87_v3  ;;  %v42_v12 = vld [vmem:[%s11665_s0 + $0x30] sm:$0xff]  ;;  %v43_v13 = vld [vmem:[%s11665_s0 + $0x38] sm:$0xff]  ;;  %v44_v14 = vld [vmem:[%s11665_s0 + $0x40] sm:$0xff]  ;;  %s6551_s27 = sshll.u32 %s7783_s26, 4  ;;  %s6552_s27 = int_to_ptr.vmem [resolvable:$true] %s6551_s27 }
   0x9   :  { %v45_v15 = vld [vmem:[%s11665_s0 + $0x48] sm:$0xff]  ;;  %v46_v16 = vld [vmem:[%s11665_s0 + $0x50] sm:$0xff]  ;;  %v47_v17 = vld [vmem:[%s11665_s0 + $0x58] sm:$0xff] }
   0xa   :  { %257 = vmatpush.msra.mxu0 %v86_v4  ;;  %v48_v18 = vld [vmem:[%s11665_s0 + $0x60] sm:$0xff]  ;;  %v49_v19 = vld [vmem:[%s11665_s0 + $0x68] sm:$0xff]  ;;  %v50_v20 = vld [vmem:[%s11665_s0 + $0x70] sm:$0xff] }
   0xb   :  { %v51_v21 = vld [vmem:[%s11665_s0 + $0x78] sm:$0xff]  ;;  %v7924_v22 = vld [vmem:[%s11668_s3] ss:$0 sm:$0xff]  ;;  %v53_v28 = vld [vmem:[%s11665_s0 + $0x88] sm:$0xff] }
   0xc   :  { %258 = vmatpush.msra.mxu0 %v85_v5  ;;  %v52_v24 = vld [vmem:[%s11665_s0 + $0x80] sm:$0xff]  ;;  %v54_v32 = vld [vmem:[%s11665_s0 + $0x90] sm:$0xff]  ;;  %v55_v36 = vld [vmem:[%s11665_s0 + $0x98] sm:$0xff] }
   0xd   :  { %6562 = vmatmul.msk.f32.vlgmr.msra.gmra.mxu0 %vm95_vm0, %v36_v6  ;;  %v56_v40 = vld [vmem:[%s11665_s0 + $0xa0] sm:$0xff]  ;;  %v57_v44 = vld [vmem:[%s11665_s0 + $0xa8] sm:$0xff]  ;;  %v58_v48 = vld [vmem:[%s11665_s0 + $0xb0] sm:$0xff] }
   0xe   :  { %v59_v52 = vld [vmem:[%s11665_s0 + $0xb8] sm:$0xff]  ;;  %v60_v56 = vld [vmem:[%s11665_s0 + $0xc0] sm:$0xff]  ;;  %v61_v60 = vld [vmem:[%s11665_s0 + $0xc8] sm:$0xff] }
   0xf   :  { %v62_v0 = vld [vmem:[%s11665_s0 + $0xd0] sm:$0xff]  ;;  %v63_v4 = vld [vmem:[%s11665_s0 + $0xd8] sm:$0xff] }
  0x15   :  { %6563 = vmatmul.msk.f32.gmra.mxu0 %vm95_vm0, %v37_v7 }
  0x1d   :  { %6564 = vmatmul.msk.f32.gmra.mxu0 %vm95_vm0, %v38_v8  ;;  %v64_v8 = vld [vmem:[%s11665_s0 + $0xe0] sm:$0xff] }
  0x25   :  { %6565 = vmatmul.msk.f32.gmra.mxu0 %vm95_vm0, %v39_v9 }
  0x2d   :  { %6566 = vmatmul.msk.f32.gmra.mxu0 %vm95_vm0, %v40_v10 }
  0x35   :  { %6567 = vmatmul.msk.f32.gmra.mxu0 %vm95_vm0, %v41_v11 }
  0x3d   :  { %6568 = vmatmul.msk.f32.gmra.mxu0 %vm95_vm0, %v42_v12  ;;  %v65_v12 = vld [vmem:[%s11665_s0 + $0xe8] sm:$0xff] }
  0x45   :  { %6569 = vmatmul.msk.f32.gmra.mxu0 %vm95_vm0, %v43_v13 }
  0x4d   :  { %6570 = vmatmul.msk.f32.gmra.mxu0 %vm95_vm0, %v44_v14 }
  0x55   :  { %6571 = vmatmul.msk.f32.gmra.mxu0 %vm95_vm0, %v45_v15 }
  0x5d   :  { %6572 = vmatmul.msk.f32.gmra.mxu0 %vm95_vm0, %v46_v16  ;;  %v66_v16 = vld [vmem:[%s11665_s0 + $0xf0] sm:$0xff] }
  0x65   :  { %6573 = vmatmul.msk.f32.gmra.mxu0 %vm95_vm0, %v47_v17 }
  0x6d   :  { %6574 = vmatmul.msk.f32.gmra.mxu0 %vm95_vm0, %v48_v18 }
  0x75   :  { %6575 = vmatmul.msk.f32.gmra.mxu0 %vm95_vm0, %v49_v19 }
  0x7d   :  { %6576 = vmatmul.msk.f32.gmra.mxu0 %vm95_vm0, %v50_v20  ;;  %v67_v20 = vld [vmem:[%s11665_s0 + $0xf8] sm:$0xff] }
  0x85   :  { %6577 = vmatmul.msk.f32.gmra.mxu0 %vm95_vm0, %v51_v21 }
  0x8a   :  { %v260_v23 = vpop.f32.mrf.mxu0 }
  0x8b   :  { %v261_v25 = vadd.f32 %v7924_v22, %v260_v23 }
  0x8d   :  { %v407_v26 = vmax.f32 %v261_v25, 0.0  ;;  %6578 = vmatmul.msk.f32.gmra.mxu0 %vm95_vm0, %v52_v24  ;;  %v68_v25 = vld [vmem:[%s11665_s0 + $0x100] sm:$0xff] }
  0x8f   :  { %457 = vst.msk [vmem:[#allocation2] sm:$0xff] %vm456_vm1, %v407_v26 }
  0x92   :  { %v263_v27 = vpop.f32.mrf.mxu0 }
  0x93   :  { %v264_v29 = vadd.f32 %v7924_v22, %v263_v27 }
  0x95   :  { %v408_v30 = vmax.f32 %v264_v29, 0.0  ;;  %6579 = vmatmul.msk.f32.gmra.mxu0 %vm95_vm0, %v53_v28  ;;  %v69_v29 = vld [vmem:[%s11665_s0 + $0x108] sm:$0xff] }
  0x97   :  { %458 = vst.msk [vmem:[#allocation2 + $0x8] sm:$0xff] %vm456_vm1, %v408_v30 }
  0x9a   :  { %v266_v31 = vpop.f32.mrf.mxu0 }
  0x9b   :  { %v267_v33 = vadd.f32 %v7924_v22, %v266_v31 }
  0x9d   :  { %v409_v34 = vmax.f32 %v267_v33, 0.0  ;;  %6580 = vmatmul.msk.f32.gmra.mxu0 %vm95_vm0, %v54_v32  ;;  %v70_v33 = vld [vmem:[%s11665_s0 + $0x110] sm:$0xff] }
  0x9f   :  { %459 = vst.msk [vmem:[#allocation2 + $0x10] sm:$0xff] %vm456_vm1, %v409_v34 }
  0xa2   :  { %v269_v35 = vpop.f32.mrf.mxu0 }
  0xa3   :  { %v270_v37 = vadd.f32 %v7924_v22, %v269_v35 }
  0xa5   :  { %v410_v38 = vmax.f32 %v270_v37, 0.0  ;;  %6581 = vmatmul.msk.f32.gmra.mxu0 %vm95_vm0, %v55_v36  ;;  %v71_v37 = vld [vmem:[%s11665_s0 + $0x118] sm:$0xff] }
  0xa7   :  { %460 = vst.msk [vmem:[#allocation2 + $0x18] sm:$0xff] %vm456_vm1, %v410_v38 }
  0xaa   :  { %v272_v39 = vpop.f32.mrf.mxu0 }
  0xab   :  { %v273_v41 = vadd.f32 %v7924_v22, %v272_v39 }
  0xad   :  { %v411_v42 = vmax.f32 %v273_v41, 0.0  ;;  %6582 = vmatmul.msk.f32.gmra.mxu0 %vm95_vm0, %v56_v40  ;;  %v72_v41 = vld [vmem:[%s11665_s0 + $0x120] sm:$0xff] }
  0xaf   :  { %461 = vst.msk [vmem:[#allocation2 + $0x20] sm:$0xff] %vm456_vm1, %v411_v42 }
  0xb2   :  { %v275_v43 = vpop.f32.mrf.mxu0 }
  0xb3   :  { %v276_v45 = vadd.f32 %v7924_v22, %v275_v43 }
  0xb5   :  { %v412_v46 = vmax.f32 %v276_v45, 0.0  ;;  %6583 = vmatmul.msk.f32.gmra.mxu0 %vm95_vm0, %v57_v44  ;;  %v73_v45 = vld [vmem:[%s11665_s0 + $0x128] sm:$0xff] }
  0xb7   :  { %462 = vst.msk [vmem:[#allocation2 + $0x28] sm:$0xff] %vm456_vm1, %v412_v46 }
  0xba   :  { %v278_v47 = vpop.f32.mrf.mxu0 }
  0xbb   :  { %v279_v49 = vadd.f32 %v7924_v22, %v278_v47 }
  0xbd   :  { %v413_v50 = vmax.f32 %v279_v49, 0.0  ;;  %6584 = vmatmul.msk.f32.gmra.mxu0 %vm95_vm0, %v58_v48  ;;  %v74_v49 = vld [vmem:[%s11665_s0 + $0x130] sm:$0xff] }
  0xbf   :  { %463 = vst.msk [vmem:[#allocation2 + $0x30] sm:$0xff] %vm456_vm1, %v413_v50 }
  0xc2   :  { %v281_v51 = vpop.f32.mrf.mxu0 }
  0xc3   :  { %v282_v53 = vadd.f32 %v7924_v22, %v281_v51 }
  0xc5   :  { %v414_v54 = vmax.f32 %v282_v53, 0.0  ;;  %6585 = vmatmul.msk.f32.gmra.mxu0 %vm95_vm0, %v59_v52  ;;  %v75_v53 = vld [vmem:[%s11665_s0 + $0x138] sm:$0xff] }
  0xc7   :  { %464 = vst.msk [vmem:[#allocation2 + $0x38] sm:$0xff] %vm456_vm1, %v414_v54 }
  0xca   :  { %v284_v55 = vpop.f32.mrf.mxu0 }
  0xcb   :  { %v285_v57 = vadd.f32 %v7924_v22, %v284_v55 }
  0xcd   :  { %v415_v58 = vmax.f32 %v285_v57, 0.0  ;;  %6586 = vmatmul.msk.f32.gmra.mxu0 %vm95_vm0, %v60_v56  ;;  %v76_v57 = vld [vmem:[%s11665_s0 + $0x140] sm:$0xff] }
  0xcf   :  { %465 = vst.msk [vmem:[#allocation2 + $0x40] sm:$0xff] %vm456_vm1, %v415_v58 }
  0xd2   :  { %v287_v59 = vpop.f32.mrf.mxu0 }
  0xd3   :  { %v288_v61 = vadd.f32 %v7924_v22, %v287_v59 }
  0xd5   :  { %v416_v62 = vmax.f32 %v288_v61, 0.0  ;;  %6587 = vmatmul.msk.f32.gmra.mxu0 %vm95_vm0, %v61_v60  ;;  %v77_v61 = vld [vmem:[%s11665_s0 + $0x148] sm:$0xff] }
  0xd7   :  { %466 = vst.msk [vmem:[#allocation2 + $0x48] sm:$0xff] %vm456_vm1, %v416_v62 }
  0xda   :  { %v290_v63 = vpop.f32.mrf.mxu0 }
  0xdb   :  { %v291_v1 = vadd.f32 %v7924_v22, %v290_v63 }
  0xdd   :  { %v417_v2 = vmax.f32 %v291_v1, 0.0  ;;  %6588 = vmatmul.msk.f32.gmra.mxu0 %vm95_vm0, %v62_v0 }
  0xdf   :  { %467 = vst.msk [vmem:[#allocation2 + $0x50] sm:$0xff] %vm456_vm1, %v417_v2 }
  0xe2   :  { %v293_v3 = vpop.f32.mrf.mxu0 }
  0xe3   :  { %v294_v5 = vadd.f32 %v7924_v22, %v293_v3 }
  0xe5   :  { %v418_v6 = vmax.f32 %v294_v5, 0.0  ;;  %6589 = vmatmul.msk.f32.gmra.mxu0 %vm95_vm0, %v63_v4  ;;  %v78_v4 = vld [vmem:[%s11665_s0 + $0x150] sm:$0xff] }
  0xe7   :  { %468 = vst.msk [vmem:[#allocation2 + $0x58] sm:$0xff] %vm456_vm1, %v418_v6 }
  0xea   :  { %v296_v7 = vpop.f32.mrf.mxu0 }
  0xeb   :  { %v297_v9 = vadd.f32 %v7924_v22, %v296_v7 }
  0xed   :  { %v419_v10 = vmax.f32 %v297_v9, 0.0  ;;  %6590 = vmatmul.msk.f32.gmra.mxu0 %vm95_vm0, %v64_v8 }
  0xef   :  { %469 = vst.msk [vmem:[#allocation2 + $0x60] sm:$0xff] %vm456_vm1, %v419_v10 }
  0xf2   :  { %v299_v11 = vpop.f32.mrf.mxu0 }
  0xf3   :  { %v300_v13 = vadd.f32 %v7924_v22, %v299_v11  ;;  %v79_v11 = vld [vmem:[%s11665_s0 + $0x158] sm:$0xff] }
  0xf5   :  { %v420_v14 = vmax.f32 %v300_v13, 0.0  ;;  %6591 = vmatmul.msk.f32.gmra.mxu0 %vm95_vm0, %v65_v12 }
  0xf7   :  { %470 = vst.msk [vmem:[#allocation2 + $0x68] sm:$0xff] %vm456_vm1, %v420_v14 }
  0xfa   :  { %v302_v15 = vpop.f32.mrf.mxu0 }
  0xfb   :  { %v303_v17 = vadd.f32 %v7924_v22, %v302_v15 }
  0xfd   :  { %v421_v18 = vmax.f32 %v303_v17, 0.0  ;;  %6592 = vmatmul.msk.f32.gmra.mxu0 %vm95_vm0, %v66_v16 }
  0xff   :  { %471 = vst.msk [vmem:[#allocation2 + $0x70] sm:$0xff] %vm456_vm1, %v421_v18 }
 0x102   :  { %v305_v19 = vpop.f32.mrf.mxu0 }
 0x103   :  { %v306_v21 = vadd.f32 %v7924_v22, %v305_v19  ;;  %v80_v19 = vld [vmem:[%s11665_s0 + $0x160] sm:$0xff] }
 0x105   :  { %v422_v23 = vmax.f32 %v306_v21, 0.0  ;;  %6593 = vmatmul.msk.f32.gmra.mxu0 %vm95_vm0, %v67_v20 }
 0x107   :  { %472 = vst.msk [vmem:[#allocation2 + $0x78] sm:$0xff] %vm456_vm1, %v422_v23 }
 0x10a   :  { %v308_v24 = vpop.f32.mrf.mxu0 }
 0x10b   :  { %v309_v26 = vadd.f32 %v7924_v22, %v308_v24  ;;  %v8133_v24 = vld [vmem:[#allocation2 + $0x6a] sm:$0xff] }
 0x10d   :  { %v423_v27 = vmax.f32 %v309_v26, 0.0  ;;  %6594 = vmatmul.msk.f32.gmra.mxu0 %vm95_vm0, %v68_v25  ;;  %v8137_v25 = vld [vmem:[#allocation2 + $0x62] sm:$0xff] }
 0x10e   :  { %v8129_v21 = vld [vmem:[#allocation2 + $0x72] sm:$0xff] }
 0x10f   :  { %473 = vst.msk [vmem:[#allocation2 + $0x80] sm:$0xff] %vm456_vm1, %v423_v27  ;;  %v81_v27 = vld [vmem:[%s11665_s0 + $0x168] sm:$0xff] }
 0x112   :  { %v311_v28 = vpop.f32.mrf.mxu0 }
 0x113   :  { %v312_v30 = vadd.f32 %v7924_v22, %v311_v28 }
 0x115   :  { %v424_v31 = vmax.f32 %v312_v30, 0.0  ;;  %6595 = vmatmul.msk.f32.gmra.mxu0 %vm95_vm0, %v69_v29 }
 0x116   :  { %v8122_v17 = vld [vmem:[#allocation2 + $0x7a] sm:$0xff] }
 0x117   :  { %474 = vst.msk [vmem:[#allocation2 + $0x88] sm:$0xff] %vm456_vm1, %v424_v31  ;;  %v82_v31 = vld [vmem:[%s11665_s0 + $0x170] sm:$0xff] }
 0x11a   :  { %v314_v32 = vpop.f32.mrf.mxu0 }
 0x11b   :  { %v315_v34 = vadd.f32 %v7924_v22, %v314_v32 }
 0x11d   :  { %v425_v35 = vmax.f32 %v315_v34, 0.0  ;;  %6596 = vmatmul.msk.f32.gmra.mxu0 %vm95_vm0, %v70_v33 }
 0x11e   :  { %v8119_v16 = vld [vmem:[#allocation2 + $0x82] sm:$0xff] }
 0x11f   :  { %475 = vst.msk [vmem:[#allocation2 + $0x90] sm:$0xff] %vm456_vm1, %v425_v35  ;;  %v83_v35 = vld [vmem:[%s11665_s0 + $0x178] sm:$0xff] }
 0x122   :  { %v317_v36 = vpop.f32.mrf.mxu0 }
 0x123   :  { %v318_v38 = vadd.f32 %v7924_v22, %v317_v36 }
 0x125   :  { %v426_v39 = vmax.f32 %v318_v38, 0.0  ;;  %6597 = vmatmul.msk.f32.gmra.mxu0 %vm95_vm0, %v71_v37 }
 0x126   :  { %v8115_v15 = vld [vmem:[#allocation2 + $0x8a] sm:$0xff] }
 0x127   :  { %476 = vst.msk [vmem:[#allocation2 + $0x98] sm:$0xff] %vm456_vm1, %v426_v39  ;;  %v84_v39 = vld [vmem:[%s11665_s0 + $0x180] sm:$0xff] }
 0x12a   :  { %v320_v40 = vpop.f32.mrf.mxu0 }
 0x12b   :  { %v321_v42 = vadd.f32 %v7924_v22, %v320_v40 }
 0x12d   :  { %v427_v43 = vmax.f32 %v321_v42, 0.0  ;;  %6598 = vmatmul.msk.f32.gmra.mxu0 %vm95_vm0, %v72_v41 }
 0x12e   :  { %v8111_v13 = vld [vmem:[#allocation2 + $0x92] sm:$0xff] }
 0x12f   :  { %477 = vst.msk [vmem:[#allocation2 + $0xa0] sm:$0xff] %vm456_vm1, %v427_v43 }
 0x132   :  { %v323_v44 = vpop.f32.mrf.mxu0 }
 0x133   :  { %v324_v46 = vadd.f32 %v7924_v22, %v323_v44 }
 0x135   :  { %v428_v47 = vmax.f32 %v324_v46, 0.0  ;;  %6599 = vmatmul.msk.f32.gmra.mxu0 %vm95_vm0, %v73_v45 }
 0x136   :  { %v8104_v9 = vld [vmem:[#allocation2 + $0x9a] sm:$0xff] }
 0x137   :  { %478 = vst.msk [vmem:[#allocation2 + $0xa8] sm:$0xff] %vm456_vm1, %v428_v47 }
 0x13a   :  { %v326_v48 = vpop.f32.mrf.mxu0 }
 0x13b   :  { %v327_v50 = vadd.f32 %v7924_v22, %v326_v48 }
 0x13d   :  { %v429_v51 = vmax.f32 %v327_v50, 0.0  ;;  %6600 = vmatmul.msk.f32.gmra.mxu0 %vm95_vm0, %v74_v49 }
 0x13e   :  { %v8101_v8 = vld [vmem:[#allocation2 + $0xa2] sm:$0xff] }
 0x13f   :  { %479 = vst.msk [vmem:[#allocation2 + $0xb0] sm:$0xff] %vm456_vm1, %v429_v51 }
 0x142   :  { %v329_v52 = vpop.f32.mrf.mxu0 }
 0x143   :  { %v330_v54 = vadd.f32 %v7924_v22, %v329_v52 }
 0x145   :  { %v430_v55 = vmax.f32 %v330_v54, 0.0  ;;  %6601 = vmatmul.msk.f32.gmra.mxu0 %vm95_vm0, %v75_v53  ;;  %v8175_v54 = vld [vmem:[%s11666_s1 + $0x1a0] sm:$0xff] }
 0x146   :  { %v8097_v7 = vld [vmem:[#allocation2 + $0xaa] sm:$0xff] }
 0x147   :  { %480 = vst.msk [vmem:[#allocation2 + $0xb8] sm:$0xff] %vm456_vm1, %v430_v55 }
 0x14a   :  { %v332_v56 = vpop.f32.mrf.mxu0 }
 0x14b   :  { %v333_v58 = vadd.f32 %v7924_v22, %v332_v56 }
 0x14d   :  { %v431_v59 = vmax.f32 %v333_v58, 0.0  ;;  %6602 = vmatmul.msk.f32.gmra.mxu0 %vm95_vm0, %v76_v57 }
 0x14e   :  { %v8089_v3 = vld [vmem:[#allocation2 + $0xb2] sm:$0xff] }
 0x14f   :  { %481 = vst.msk [vmem:[#allocation2 + $0xc0] sm:$0xff] %vm456_vm1, %v431_v59 }
 0x152   :  { %v335_v60 = vpop.f32.mrf.mxu0 }
 0x153   :  { %v336_v62 = vadd.f32 %v7924_v22, %v335_v60  ;;  %v6802_v60 = vld [vmem:[%s11666_s1 + $0x1a8] sm:$0xff] }
 0x155   :  { %v432_v63 = vmax.f32 %v336_v62, 0.0  ;;  %6603 = vmatmul.msk.f32.gmra.mxu0 %vm95_vm0, %v77_v61 }
 0x156   :  { %v8081_v0 = vld [vmem:[#allocation2 + $0xc2] sm:$0x3]  ;;  %v8086_v1 = vld [vmem:[#allocation2 + $0xba] sm:$0xff] }
 0x157   :  { %482 = vst.msk [vmem:[#allocation2 + $0xc8] sm:$0xff] %vm456_vm1, %v432_v63  ;;  %6845 = vmatpush.msk.msrb.mxu0 %vm572_vm2, %v8081_v0 }
 0x159   :  { %1827 = vmatpush.msrb.mxu0 %v8086_v1 }
 0x15a   :  { %v338_v2 = vpop.f32.mrf.mxu0 }
 0x15b   :  { %v339_v5 = vadd.f32 %v7924_v22, %v338_v2  ;;  %1828 = vmatpush.msrb.mxu0 %v8089_v3 }
 0x15d   :  { %v433_v6 = vmax.f32 %v339_v5, 0.0  ;;  %6604 = vmatmul.msk.f32.gmra.mxu0 %vm95_vm0, %v78_v4 }
 0x15e   :  { %1829 = vmatpush.msrb.mxu0 %v8097_v7 }
 0x15f   :  { %483 = vst.msk [vmem:[#allocation2 + $0xd0] sm:$0xff] %vm456_vm1, %v433_v6 }
 0x160   :  { %1830 = vmatpush.msrb.mxu0 %v8101_v8 }
 0x162   :  { %1831 = vmatpush.msrb.mxu0 %v8104_v9  ;;  %v341_v10 = vpop.f32.mrf.mxu0 }
 0x163   :  { %v342_v12 = vadd.f32 %v7924_v22, %v341_v10  ;;  %v6803_v10 = vld [vmem:[%s11666_s1 + $0x1b0] sm:$0xff] }
 0x164   :  { %1832 = vmatpush.msrb.mxu0 %v8111_v13 }
 0x165   :  { %v434_v14 = vmax.f32 %v342_v12, 0.0  ;;  %6605 = vmatmul.msk.f32.gmra.mxu0 %vm95_vm0, %v79_v11 }
 0x166   :  { %1833 = vmatpush.msrb.mxu0 %v8115_v15 }
 0x167   :  { %484 = vst.msk [vmem:[#allocation2 + $0xd8] sm:$0xff] %vm456_vm1, %v434_v14 }
 0x168   :  { %1834 = vmatpush.msrb.mxu0 %v8119_v16 }
 0x16a   :  { %1835 = vmatpush.msrb.mxu0 %v8122_v17  ;;  %v344_v18 = vpop.f32.mrf.mxu0 }
 0x16b   :  { %v345_v20 = vadd.f32 %v7924_v22, %v344_v18 }
 0x16c   :  { %1836 = vmatpush.msrb.mxu0 %v8129_v21 }
 0x16d   :  { %v435_v23 = vmax.f32 %v345_v20, 0.0  ;;  %6606 = vmatmul.msk.f32.gmra.mxu0 %vm95_vm0, %v80_v19 }
 0x16e   :  { %1837 = vmatpush.msrb.mxu0 %v8133_v24 }
 0x16f   :  { %485 = vst.msk [vmem:[#allocation2 + $0xe0] sm:$0xff] %vm456_vm1, %v435_v23 }
 0x170   :  { %1838 = vmatpush.msrb.mxu0 %v8137_v25 }
 0x172   :  { %v347_v26 = vpop.f32.mrf.mxu0 }
 0x173   :  { %v348_v28 = vadd.f32 %v7924_v22, %v347_v26  ;;  %v6804_v26 = vld [vmem:[%s11666_s1 + $0x1b8] sm:$0xff] }
 0x175   :  { %v436_v29 = vmax.f32 %v348_v28, 0.0  ;;  %6607 = vmatmul.msk.f32.gmra.mxu0 %vm95_vm0, %v81_v27  ;;  %v8228_v28 = vld [vmem:[#allocation2 + $0xd4] sm:$0xff] }
 0x176   :  { %v8221_v23 = vld [vmem:[#allocation2 + $0xdc] sm:$0xff] }
 0x177   :  { %486 = vst.msk [vmem:[#allocation2 + $0xe8] sm:$0xff] %vm456_vm1, %v436_v29 }
 0x17a   :  { %v350_v30 = vpop.f32.mrf.mxu0 }
 0x17b   :  { %v351_v32 = vadd.f32 %v7924_v22, %v350_v30  ;;  %v8232_v30 = vld [vmem:[#allocation2 + $0xcc] sm:$0xff] }
 0x17d   :  { %v437_v33 = vmax.f32 %v351_v32, 0.0  ;;  %6608 = vmatmul.msk.f32.gmra.mxu0 %vm95_vm0, %v82_v31  ;;  %v8238_v32 = vld [vmem:[%s11666_s1 + $0x68] sm:$0xff] }
 0x17e   :  { %v8217_v20 = vld [vmem:[#allocation2 + $0xe4] sm:$0xff] }
 0x17f   :  { %487 = vst.msk [vmem:[#allocation2 + $0xf0] sm:$0xff] %vm456_vm1, %v437_v33  ;;  %v8240_v33 = vld [vmem:[#allocation2 + $0xc4] sm:$0xff] }
 0x182   :  { %v353_v34 = vpop.f32.mrf.mxu0 }
 0x183   :  { %v354_v36 = vadd.f32 %v7924_v22, %v353_v34  ;;  %v6699_v34 = vld [vmem:[%s11669_s4 + $0x58] sm:$0xff] }
 0x185   :  { %v438_v37 = vmax.f32 %v354_v36, 0.0  ;;  %6609 = vmatmul.msk.f32.gmra.mxu0 %vm95_vm0, %v83_v35  ;;  %v6698_v35 = vld [vmem:[%s11669_s4 + $0x50] sm:$0xff]  ;;  %v6805_v36 = vld [vmem:[%s11666_s1 + $0x1c0] sm:$0xff] }
 0x186   :  { %v8214_v18 = vld [vmem:[#allocation2 + $0xec] sm:$0xff] }
 0x187   :  { %488 = vst.msk [vmem:[#allocation2 + $0xf8] sm:$0xff] %vm456_vm1, %v438_v37 }
 0x18a   :  { %v356_v38 = vpop.f32.mrf.mxu0 }
 0x18b   :  { %v357_v40 = vadd.f32 %v7924_v22, %v356_v38  ;;  %v6697_v38 = vld [vmem:[%s11669_s4 + $0x48] sm:$0xff] }
 0x18d   :  { %v439_v41 = vmax.f32 %v357_v40, 0.0  ;;  %6610 = vmatmul.msk.f32.gmra.mxu0 %vm95_vm0, %v84_v39  ;;  %v6696_v40 = vld [vmem:[%s11669_s4 + $0x40] sm:$0xff] }
 0x18e   :  { %v8210_v12 = vld [vmem:[#allocation2 + $0xf4] sm:$0xff] }
 0x18f   :  { %489 = vst.msk [vmem:[#allocation2 + $0x100] sm:$0xff] %vm456_vm1, %v439_v41 }
 0x192   :  { %v359_v42 = vpop.f32.mrf.mxu0 }
 0x193   :  { %v360_v43 = vadd.f32 %v7924_v22, %v359_v42  ;;  %v8266_v42 = vld [vmem:[%s11666_s1 + $0x70] sm:$0xff] }
 0x195   :  { %v440_v44 = vmax.f32 %v360_v43, 0.0  ;;  %6846 = vmatmul.msk.f32.vlgmr.msrb.gmra.mxu0 %vm532_vm3, %v8175_v54  ;;  %v6806_v43 = vld [vmem:[%s11666_s1 + $0x1c8] sm:$0xff] }
 0x196   :  { %v8203_v6 = vld [vmem:[#allocation2 + $0xfc] sm:$0xff] }
 0x197   :  { %490 = vst.msk [vmem:[#allocation2 + $0x108] sm:$0xff] %vm456_vm1, %v440_v44 }
 0x19a   :  { %v362_v45 = vpop.f32.mrf.mxu0 }
 0x19b   :  { %v363_v46 = vadd.f32 %v7924_v22, %v362_v45 }
 0x19d   :  { %v441_v47 = vmax.f32 %v363_v46, 0.0  ;;  %6847 = vmatmul.msk.f32.gmra.mxu0 %vm532_vm3, %v6802_v60  ;;  %v8318_v60 = vld [vmem:[%s11666_s1 + $0x88] sm:$0xff] }
 0x19e   :  { %v8199_v5 = vld [vmem:[#allocation2 + $0x104] sm:$0xff] }
 0x19f   :  { %491 = vst.msk [vmem:[#allocation2 + $0x110] sm:$0xff] %vm456_vm1, %v441_v47  ;;  %v8284_v47 = vld [vmem:[%s11666_s1 + $0x78] sm:$0xff] }
 0x1a2   :  { %v365_v48 = vpop.f32.mrf.mxu0 }
 0x1a3   :  { %v366_v49 = vadd.f32 %v7924_v22, %v365_v48  ;;  %v6807_v48 = vld [vmem:[%s11666_s1 + $0x1d0] sm:$0xff] }
 0x1a5   :  { %v442_v50 = vmax.f32 %v366_v49, 0.0  ;;  %6848 = vmatmul.msk.f32.gmra.mxu0 %vm532_vm3, %v6803_v10 }
 0x1a6   :  { %v8196_v2 = vld [vmem:[#allocation2 + $0x10c] sm:$0xff] }
 0x1a7   :  { %492 = vst.msk [vmem:[#allocation2 + $0x118] sm:$0xff] %vm456_vm1, %v442_v50 }
 0x1aa   :  { %v368_v51 = vpop.f32.mrf.mxu0 }
 0x1ab   :  { %v369_v52 = vadd.f32 %v7924_v22, %v368_v51 }
 0x1ad   :  { %v443_v53 = vmax.f32 %v369_v52, 0.0  ;;  %6849 = vmatmul.msk.f32.gmra.mxu0 %vm532_vm3, %v6804_v26  ;;  %v8301_v52 = vld [vmem:[%s11666_s1 + $0x80] sm:$0xff] }
 0x1ae   :  { %v8192_v62 = vld [vmem:[#allocation2 + $0x114] sm:$0xff] }
 0x1af   :  { %493 = vst.msk [vmem:[#allocation2 + $0x120] sm:$0xff] %vm456_vm1, %v443_v53  ;;  %v6808_v53 = vld [vmem:[%s11666_s1 + $0x1d8] sm:$0xff] }
 0x1b2   :  { %v371_v55 = vpop.f32.mrf.mxu0 }
 0x1b3   :  { %v372_v56 = vadd.f32 %v7924_v22, %v371_v55 }
 0x1b5   :  { %v444_v57 = vmax.f32 %v372_v56, 0.0  ;;  %6850 = vmatmul.msk.f32.gmra.mxu0 %vm532_vm3, %v6805_v36 }
 0x1b6   :  { %v8180_v58 = vld [vmem:[#allocation2 + $0x124] sm:$0x3]  ;;  %v8185_v59 = vld [vmem:[#allocation2 + $0x11c] sm:$0xff] }
 0x1b7   :  { %494 = vst.msk [vmem:[#allocation2 + $0x128] sm:$0xff] %vm456_vm1, %v444_v57  ;;  %6638 = vmatpush.msk.msra.mxu2 %vm572_vm2, %v8180_v58 }
 0x1b9   :  { %709 = vmatpush.msra.mxu2 %v8185_v59 }
 0x1ba   :  { %v374_v61 = vpop.f32.mrf.mxu0 }
 0x1bb   :  { %v375_v63 = vadd.f32 %v7924_v22, %v374_v61  ;;  %710 = vmatpush.msra.mxu2 %v8192_v62  ;;  %v6809_v61 = vld [vmem:[%s11666_s1 + $0x1e0] sm:$0xff] }
 0x1bd   :  { %v445_v4 = vmax.f32 %v375_v63, 0.0  ;;  %711 = vmatpush.msra.mxu2 %v8196_v2  ;;  %6851 = vmatmul.msk.f32.gmra.mxu0 %vm532_vm3, %v6806_v43  ;;  %v8371_v43 = vld [vmem:[%s11666_s1 + $0xa8] sm:$0xff] }
 0x1bf   :  { %495 = vst.msk [vmem:[#allocation2 + $0x130] sm:$0xff] %vm456_vm1, %v445_v4  ;;  %712 = vmatpush.msra.mxu2 %v8199_v5 }
 0x1c1   :  { %713 = vmatpush.msra.mxu2 %v8203_v6 }
 0x1c2   :  { %v377_v11 = vpop.f32.mrf.mxu0 }
 0x1c3   :  { %v378_v14 = vadd.f32 %v7924_v22, %v377_v11  ;;  %714 = vmatpush.msra.mxu2 %v8210_v12  ;;  %v8332_v11 = vld [vmem:[%s11666_s1 + $0x90] sm:$0xff] }
 0x1c5   :  { %v446_v19 = vmax.f32 %v378_v14, 0.0  ;;  %715 = vmatpush.msra.mxu2 %v8214_v18  ;;  %6852 = vmatmul.msk.f32.gmra.mxu0 %vm532_vm3, %v6807_v48  ;;  %v6810_v14 = vld [vmem:[%s11666_s1 + $0x1e8] sm:$0xff] }
 0x1c7   :  { %496 = vst.msk [vmem:[#allocation2 + $0x138] sm:$0xff] %vm456_vm1, %v446_v19  ;;  %716 = vmatpush.msra.mxu2 %v8217_v20 }
 0x1c9   :  { %717 = vmatpush.msra.mxu2 %v8221_v23 }
 0x1ca   :  { %v380_v27 = vpop.f32.mrf.mxu0 }
 0x1cb   :  { %v381_v29 = vadd.f32 %v7924_v22, %v380_v27  ;;  %718 = vmatpush.msra.mxu2 %v8228_v28 }
 0x1cd   :  { %v447_v31 = vmax.f32 %v381_v29, 0.0  ;;  %719 = vmatpush.msra.mxu2 %v8232_v30  ;;  %6853 = vmatmul.msk.f32.gmra.mxu0 %vm532_vm3, %v6808_v53  ;;  %v8345_v29 = vld [vmem:[%s11666_s1 + $0x98] sm:$0xff] }
 0x1cf   :  { %497 = vst.msk [vmem:[#allocation2 + $0x140] sm:$0xff] %vm456_vm1, %v447_v31  ;;  %720 = vmatpush.msra.mxu2 %v8240_v33  ;;  %v6811_v31 = vld [vmem:[%s11666_s1 + $0x1f0] sm:$0xff] }
 0x1d0   :  { %6639 = vmatmul.msk.f32.vlgmr.msra.gmra.mxu2 %vm532_vm3, %v8238_v32 }
 0x1d1   :  { %1068 = vmatpush.msrb.mxu2 %v6699_v34 }
 0x1d2   :  { %v383_v37 = vpop.f32.mrf.mxu0 }
 0x1d3   :  { %v384_v39 = vadd.f32 %v7924_v22, %v383_v37  ;;  %1069 = vmatpush.msrb.mxu2 %v6698_v35  ;;  %v8358_v37 = vld [vmem:[%s11666_s1 + $0xa0] sm:$0xff] }
 0x1d5   :  { %v448_v41 = vmax.f32 %v384_v39, 0.0  ;;  %1070 = vmatpush.msrb.mxu2 %v6697_v38  ;;  %6854 = vmatmul.msk.f32.gmra.mxu0 %vm532_vm3, %v6809_v61  ;;  %v6812_v38 = vld [vmem:[%s11666_s1 + $0x1f8] sm:$0xff] }
 0x1d6   :  { %v6655_v61 = vld [vmem:[%s11669_s4 + $0x38] sm:$0xff] }
 0x1d7   :  { %498 = vst.msk [vmem:[#allocation2 + $0x148] sm:$0xff] %vm456_vm1, %v448_v41  ;;  %1071 = vmatpush.msrb.mxu2 %v6696_v40  ;;  %817 = vmatpush.msra.mxu3 %v6655_v61  ;;  %v8561_v61 = vld [vmem:[%s11666_s1 + $0x160] sm:$0xff] }
 0x1d8   :  { %6640 = vmatmul.msk.f32.gmra.mxu2 %vm532_vm3, %v8266_v42 }
 0x1d9   :  { %6770 = vmatpush.msk.msra.mxu2 %vm572_vm2, %v8081_v0 }
 0x1da   :  { %v386_v44 = vpop.f32.mrf.mxu0 }
 0x1db   :  { %1420 = vmatpush.msra.mxu2 %v8086_v1  ;;  %v387_v45 = vadd.f32 %v7924_v22, %v386_v44 }
 0x1dd   :  { %1421 = vmatpush.msra.mxu2 %v8089_v3  ;;  %v449_v46 = vmax.f32 %v387_v45, 0.0  ;;  %6855 = vmatmul.msk.f32.gmra.mxu0 %vm532_vm3, %v6810_v14  ;;  %v8381_v45 = vld [vmem:[%s11666_s1 + $0xb0] sm:$0xff] }
 0x1de   :  { %v507_v14 = vld [vmem:[#allocation2 + $0x12e] sm:$0xff] }
 0x1df   :  { %1422 = vmatpush.msra.mxu2 %v8097_v7  ;;  %499 = vst.msk [vmem:[#allocation2 + $0x150] sm:$0xff] %vm456_vm1, %v449_v46 }
 0x1e0   :  { %6641 = vmatmul.msk.f32.gmra.mxu2 %vm532_vm3, %v8284_v47 }
 0x1e1   :  { %1423 = vmatpush.msra.mxu2 %v8101_v8 }
 0x1e2   :  { %v389_v49 = vpop.f32.mrf.mxu0 }
 0x1e3   :  { %1424 = vmatpush.msra.mxu2 %v8104_v9  ;;  %v390_v50 = vadd.f32 %v7924_v22, %v389_v49 }
 0x1e5   :  { %1425 = vmatpush.msra.mxu2 %v8111_v13  ;;  %v450_v51 = vmax.f32 %v390_v50, 0.0  ;;  %6856 = vmatmul.msk.f32.gmra.mxu0 %vm532_vm3, %v6811_v31  ;;  %v8406_v50 = vld [vmem:[%s11666_s1 + $0xb8] sm:$0xff]  ;;  %v8446_v31 = vld [vmem:[%s11666_s1 + $0xc8] sm:$0x3] }
 0x1e7   :  { %1426 = vmatpush.msra.mxu2 %v8115_v15  ;;  %500 = vst.msk [vmem:[#allocation2 + $0x158] sm:$0xff] %vm456_vm1, %v450_v51 }
 0x1e8   :  { %6642 = vmatmul.msk.f32.gmra.mxu2 %vm532_vm3, %v8301_v52 }
 0x1e9   :  { %1427 = vmatpush.msra.mxu2 %v8119_v16 }
 0x1ea   :  { %v392_v55 = vpop.f32.mrf.mxu0 }
 0x1eb   :  { %1428 = vmatpush.msra.mxu2 %v8122_v17  ;;  %v393_v56 = vadd.f32 %v7924_v22, %v392_v55  ;;  %v8416_v55 = vld [vmem:[#allocation2 + $0x14e] sm:$0xff] }
 0x1ed   :  { %1429 = vmatpush.msra.mxu2 %v8129_v21  ;;  %v451_v57 = vmax.f32 %v393_v56, 0.0  ;;  %6857 = vmatmul.msk.f32.gmra.mxu0 %vm532_vm3, %v6812_v38  ;;  %v8420_v56 = vld [vmem:[#allocation2 + $0x146] sm:$0xff]  ;;  %v634_v38 = vld [vmem:[%s11669_s4 + $0x10] sm:$0xff] }
 0x1ee   :  { %v512_v53 = vld [vmem:[#allocation2 + $0x156] sm:$0xff] }
 0x1ef   :  { %1430 = vmatpush.msra.mxu2 %v8133_v24  ;;  %501 = vst.msk [vmem:[#allocation2 + $0x160] sm:$0xff] %vm456_vm1, %v451_v57  ;;  %v8425_v57 = vld [vmem:[%s11666_s1 + $0xc0] sm:$0xff] }
 0x1f0   :  { %6643 = vmatmul.msk.f32.gmra.mxu2 %vm532_vm3, %v8318_v60 }
 0x1f1   :  { %1431 = vmatpush.msra.mxu2 %v8137_v25 }
 0x1f2   :  { %v395_v63 = vpop.f32.mrf.mxu0 }
 0x1f3   :  { %v396_v4 = vadd.f32 %v7924_v22, %v395_v63  ;;  %v509_v63 = vld [vmem:[#allocation2 + $0x13e] sm:$0xff] }
 0x1f5   :  { %v452_v10 = vmax.f32 %v396_v4, 0.0  ;;  %v6654_v4 = vld [vmem:[%s11669_s4 + $0x30] sm:$0xff] }
 0x1f6   :  { %v8410_v51 = vld [vmem:[#allocation2 + $0x15e] sm:$0xff]  ;;  %818 = vmatpush.msra.mxu3 %v6654_v4  ;;  %v8644_v4 = vld [vmem:[%s11666_s1 + $0x188] sm:$0xff] }
 0x1f7   :  { %502 = vst.msk [vmem:[#allocation2 + $0x168] sm:$0xff] %vm456_vm1, %v452_v10  ;;  %v508_v10 = vld [vmem:[#allocation2 + $0x136] sm:$0xff] }
 0x1f8   :  { %6644 = vmatmul.msk.f32.gmra.mxu2 %vm532_vm3, %v8332_v11 }
 0x1fa   :  { %v398_v19 = vpop.f32.mrf.mxu0 }
 0x1fb   :  { %v399_v26 = vadd.f32 %v7924_v22, %v398_v19  ;;  %v6653_v19 = vld [vmem:[%s11669_s4 + $0x28] sm:$0xff] }
 0x1fc   :  { %819 = vmatpush.msra.mxu3 %v6653_v19  ;;  %v8656_v19 = vld [vmem:[%s11666_s1 + $0x190] sm:$0xff] }
 0x1fd   :  { %v453_v27 = vmax.f32 %v399_v26, 0.0  ;;  %v519_v26 = vld [vmem:[%s11666_s1] sm:$0xff] }
 0x1fe   :  { %v8401_v49 = vld [vmem:[#allocation2 + $0x166] sm:$0xff] }
 0x1ff   :  { %503 = vst.msk [vmem:[#allocation2 + $0x170] sm:$0xff] %vm456_vm1, %v453_v27  ;;  %v506_v27 = vld [vmem:[#allocation2 + $0x126] sm:$0xff] }
 0x200   :  { %6645 = vmatmul.msk.f32.gmra.mxu2 %vm532_vm3, %v8345_v29 }
 0x202   :  { %v401_v34 = vpop.f32.mrf.mxu0 }
 0x203   :  { %v402_v35 = vadd.f32 %v7924_v22, %v401_v34  ;;  %v6652_v34 = vld [vmem:[%s11669_s4 + $0x20] sm:$0xff] }
 0x204   :  { %820 = vmatpush.msra.mxu3 %v6652_v34 }
 0x205   :  { %v454_v36 = vmax.f32 %v402_v35, 0.0  ;;  %v8454_v35 = vld [vmem:[%s11666_s1 + $0x138] sm:$0xff] }
 0x206   :  { %v8397_v48 = vld [vmem:[#allocation2 + $0x16e] sm:$0xff] }
 0x207   :  { %504 = vst.msk [vmem:[#allocation2 + $0x178] sm:$0xff] %vm456_vm1, %v454_v36  ;;  %v635_v36 = vld [vmem:[%s11669_s4 + $0x18] sm:$0xff] }
 0x208   :  { %6646 = vmatmul.msk.f32.gmra.mxu2 %vm532_vm3, %v8358_v37  ;;  %912 = vmatpush.msrb.mxu3 %v635_v36  ;;  %v8670_v36 = vld [vmem:[%s11666_s1 + $0x198] sm:$0x3] }
 0x20a   :  { %v404_v39 = vpop.f32.mrf.mxu0  ;;  %913 = vmatpush.msrb.mxu3 %v634_v38 }
 0x20b   :  { %v405_v40 = vadd.f32 %v7924_v22, %v404_v39  ;;  %v633_v39 = vld [vmem:[%s11669_s4 + $0x8] sm:$0xff] }
 0x20c   :  { %914 = vmatpush.msrb.mxu3 %v633_v39 }
 0x20d   :  { %v455_v41 = vmax.f32 %v405_v40, 0.0  ;;  %v520_v40 = vld [vmem:[%s11666_s1 + $0x8] sm:$0xff] }
 0x20e   :  { %v8393_v22 = vld [vmem:[#allocation2 + $0x176] sm:$0xff] }
 0x20f   :  { %505 = vst.msk [vmem:[#allocation2 + $0x180] sm:$0xff] %vm456_vm1, %v455_v41  ;;  %v632_v41 = vld [vmem:[%s11669_s4] sm:$0xff] }
 0x210   :  { %6647 = vmatmul.msk.f32.gmra.mxu2 %vm532_vm3, %v8371_v43  ;;  %915 = vmatpush.msrb.mxu3 %v632_v41 }
 0x212   :  { %v8665_v34 = vpop.f32.mrf.mxu0 }
 0x216   :  { %v8376_v44 = vld [vmem:[#allocation2 + $0x186] sm:$0x3]  ;;  %v8383_v46 = vld [vmem:[#allocation2 + $0x17e] sm:$0xff] }
 0x217   :  { %6611 = vmatpush.msk.msra.mxu1 %vm572_vm2, %v8376_v44  ;;  %6920 = vmatpush.msk.msra.mxu0 %vm572_vm2, %v8376_v44 }
 0x218   :  { %6648 = vmatmul.msk.f32.gmra.mxu2 %vm532_vm3, %v8381_v45 }
 0x219   :  { %580 = vmatpush.msra.mxu1 %v8383_v46  ;;  %2218 = vmatpush.msra.mxu0 %v8383_v46 }
 0x21a   :  { %v8676_v39 = vpop.f32.mrf.mxu0 }
 0x21b   :  { %581 = vmatpush.msra.mxu1 %v8393_v22  ;;  %2219 = vmatpush.msra.mxu0 %v8393_v22 }
 0x21d   :  { %582 = vmatpush.msra.mxu1 %v8397_v48  ;;  %2220 = vmatpush.msra.mxu0 %v8397_v48 }
 0x21f   :  { %583 = vmatpush.msra.mxu1 %v8401_v49  ;;  %2221 = vmatpush.msra.mxu0 %v8401_v49 }
 0x220   :  { %6649 = vmatmul.msk.f32.gmra.mxu2 %vm532_vm3, %v8406_v50 }
 0x221   :  { %584 = vmatpush.msra.mxu1 %v8410_v51  ;;  %2222 = vmatpush.msra.mxu0 %v8410_v51 }
 0x223   :  { %585 = vmatpush.msra.mxu1 %v512_v53  ;;  %2223 = vmatpush.msra.mxu0 %v512_v53 }
 0x225   :  { %586 = vmatpush.msra.mxu1 %v8416_v55  ;;  %2224 = vmatpush.msra.mxu0 %v8416_v55 }
 0x227   :  { %587 = vmatpush.msra.mxu1 %v8420_v56  ;;  %2225 = vmatpush.msra.mxu0 %v8420_v56 }
 0x228   :  { %6650 = vmatmul.msk.f32.gmra.mxu2 %vm532_vm3, %v8425_v57 }
 0x229   :  { %588 = vmatpush.msra.mxu1 %v509_v63  ;;  %2226 = vmatpush.msra.mxu0 %v509_v63 }
 0x22b   :  { %589 = vmatpush.msra.mxu1 %v508_v10  ;;  %2227 = vmatpush.msra.mxu0 %v508_v10 }
 0x22d   :  { %590 = vmatpush.msra.mxu1 %v507_v14  ;;  %2228 = vmatpush.msra.mxu0 %v507_v14 }
 0x22f   :  { %591 = vmatpush.msra.mxu1 %v506_v27  ;;  %2229 = vmatpush.msra.mxu0 %v506_v27 }
 0x230   :  { %6612 = vmatmul.msk.f32.vlgmr.msra.gmra.mxu1 %vm532_vm3, %v519_v26  ;;  %6651 = vmatmul.msk.f32.gmra.mxu2 %vm532_vm3, %v8446_v31 }
 0x231   :  { %6682 = vmatpush.msk.msrb.mxu1 %vm572_vm2, %v8376_v44  ;;  %6921 = vmatmul.msk.f32.vlgmr.msra.gmra.mxu0 %vm532_vm3, %v8454_v35 }
 0x232   :  { %6982 = vmatpush.msk.msrb.mxu0 %vm572_vm2, %v8376_v44  ;;  %v8488_v44 = vld [vmem:[%s11666_s1 + $0x140] sm:$0xff] }
 0x233   :  { %960 = vmatpush.msrb.mxu1 %v8383_v46 }
 0x234   :  { %2556 = vmatpush.msrb.mxu0 %v8383_v46  ;;  %v521_v46 = vld [vmem:[%s11666_s1 + $0x10] sm:$0xff] }
 0x235   :  { %961 = vmatpush.msrb.mxu1 %v8393_v22 }
 0x236   :  { %2557 = vmatpush.msrb.mxu0 %v8393_v22  ;;  %v8505_v22 = vld [vmem:[%s11666_s1 + $0x148] sm:$0xff] }
 0x237   :  { %962 = vmatpush.msrb.mxu1 %v8397_v48 }
 0x238   :  { %6613 = vmatmul.msk.f32.gmra.mxu1 %vm532_vm3, %v520_v40  ;;  %2558 = vmatpush.msrb.mxu0 %v8397_v48  ;;  %v522_v48 = vld [vmem:[%s11666_s1 + $0x18] sm:$0xff] }
 0x239   :  { %963 = vmatpush.msrb.mxu1 %v8401_v49  ;;  %6922 = vmatmul.msk.f32.gmra.mxu0 %vm532_vm3, %v8488_v44 }
 0x23a   :  { %2559 = vmatpush.msrb.mxu0 %v8401_v49  ;;  %v8519_v49 = vld [vmem:[%s11666_s1 + $0x150] sm:$0xff] }
 0x23b   :  { %964 = vmatpush.msrb.mxu1 %v8410_v51 }
 0x23c   :  { %2560 = vmatpush.msrb.mxu0 %v8410_v51  ;;  %v523_v51 = vld [vmem:[%s11666_s1 + $0x20] sm:$0xff] }
 0x23d   :  { %965 = vmatpush.msrb.mxu1 %v512_v53 }
 0x23e   :  { %2561 = vmatpush.msrb.mxu0 %v512_v53  ;;  %v8539_v53 = vld [vmem:[%s11666_s1 + $0x158] sm:$0xff] }
 0x23f   :  { %966 = vmatpush.msrb.mxu1 %v8416_v55 }
 0x240   :  { %6614 = vmatmul.msk.f32.gmra.mxu1 %vm532_vm3, %v521_v46  ;;  %2562 = vmatpush.msrb.mxu0 %v8416_v55 }
 0x241   :  { %967 = vmatpush.msrb.mxu1 %v8420_v56  ;;  %6923 = vmatmul.msk.f32.gmra.mxu0 %vm532_vm3, %v8505_v22 }
 0x242   :  { %2563 = vmatpush.msrb.mxu0 %v8420_v56  ;;  %v524_v56 = vld [vmem:[%s11666_s1 + $0x28] sm:$0xff] }
 0x243   :  { %968 = vmatpush.msrb.mxu1 %v509_v63 }
 0x244   :  { %2564 = vmatpush.msrb.mxu0 %v509_v63  ;;  %v529_v63 = vld [vmem:[%s11666_s1 + $0x50] sm:$0xff] }
 0x245   :  { %969 = vmatpush.msrb.mxu1 %v508_v10 }
 0x246   :  { %2565 = vmatpush.msrb.mxu0 %v508_v10 }
 0x247   :  { %970 = vmatpush.msrb.mxu1 %v507_v14 }
 0x248   :  { %6615 = vmatmul.msk.f32.gmra.mxu1 %vm532_vm3, %v522_v48  ;;  %2566 = vmatpush.msrb.mxu0 %v507_v14  ;;  %v530_v14 = vld [vmem:[%s11666_s1 + $0x58] sm:$0xff] }
 0x249   :  { %971 = vmatpush.msrb.mxu1 %v506_v27  ;;  %6924 = vmatmul.msk.f32.gmra.mxu0 %vm532_vm3, %v8519_v49  ;;  %v6714_v48 = vld [vmem:[%s11666_s1 + $0xd8] sm:$0xff] }
 0x24a   :  { %2567 = vmatpush.msrb.mxu0 %v506_v27  ;;  %v531_v27 = vld [vmem:[%s11666_s1 + $0x60] sm:$0x3] }
 0x24b   :  { %6726 = vmatpush.msk.msra.mxu1 %vm572_vm2, %v8180_v58 }
 0x24c   :  { %7057 = vmatpush.msk.msra.mxu0 %vm572_vm2, %v8081_v0 }
 0x24d   :  { %1182 = vmatpush.msra.mxu1 %v8185_v59 }
 0x24e   :  { %2947 = vmatpush.msra.mxu0 %v8086_v1 }
 0x24f   :  { %1183 = vmatpush.msra.mxu1 %v8192_v62 }
 0x250   :  { %2948 = vmatpush.msra.mxu0 %v8089_v3  ;;  %6616 = vmatmul.msk.f32.gmra.mxu1 %vm532_vm3, %v523_v51  ;;  %v8775_v51 = vld [vmem:[#allocation2 + $0x48] sm:$0xff] }
 0x251   :  { %1184 = vmatpush.msra.mxu1 %v8196_v2  ;;  %6925 = vmatmul.msk.f32.gmra.mxu0 %vm532_vm3, %v8539_v53 }
 0x252   :  { %2949 = vmatpush.msra.mxu0 %v8097_v7 }
 0x253   :  { %1185 = vmatpush.msra.mxu1 %v8199_v5  ;;  %v722_v55 = vpop.f32.mrf.mxu2 }
 0x254   :  { %2950 = vmatpush.msra.mxu0 %v8101_v8  ;;  %6656 = vmatmul.msk.f32.vlgmr.msra.gmra.mxu3 %vm456_vm1, %v722_v55 }
 0x255   :  { %1186 = vmatpush.msra.mxu1 %v8203_v6  ;;  %7689 = vmatpush.msk.msra.mxu3 %vm572_vm2, %v8180_v58 }
 0x256   :  { %2951 = vmatpush.msra.mxu0 %v8104_v9 }
 0x257   :  { %1187 = vmatpush.msra.mxu1 %v8210_v12  ;;  %7690 = vmatpush.msra.mxu3 %v8185_v59  ;;  %v525_v59 = vld [vmem:[%s11666_s1 + $0x30] sm:$0xff] }
 0x258   :  { %2952 = vmatpush.msra.mxu0 %v8111_v13  ;;  %6617 = vmatmul.msk.f32.gmra.mxu1 %vm532_vm3, %v524_v56  ;;  %v8781_v56 = vld [vmem:[#allocation2 + $0x40] sm:$0xff] }
 0x259   :  { %1188 = vmatpush.msra.mxu1 %v8214_v18  ;;  %7691 = vmatpush.msra.mxu3 %v8192_v62  ;;  %v8584_v62 = vld [vmem:[%s11666_s1 + $0x168] sm:$0xff] }
 0x25a   :  { %2953 = vmatpush.msra.mxu0 %v8115_v15 }
 0x25b   :  { %6926 = vmatmul.msk.f32.gmra.mxu0 %vm532_vm3, %v8561_v61  ;;  %1189 = vmatpush.msra.mxu1 %v8217_v20  ;;  %v725_v58 = vpop.f32.mrf.mxu2 }
 0x25c   :  { %2954 = vmatpush.msra.mxu0 %v8119_v16  ;;  %7692 = vmatpush.msra.mxu3 %v8196_v2 }
 0x25d   :  { %1190 = vmatpush.msra.mxu1 %v8221_v23  ;;  %6657 = vmatmul.msk.f32.gmra.mxu3 %vm456_vm1, %v725_v58  ;;  %v8784_v58 = vld [vmem:[#allocation2 + $0x38] sm:$0xff] }
 0x25e   :  { %2955 = vmatpush.msra.mxu0 %v8122_v17  ;;  %7693 = vmatpush.msra.mxu3 %v8199_v5  ;;  %v526_v5 = vld [vmem:[%s11666_s1 + $0x38] sm:$0xff] }
 0x25f   :  { %1191 = vmatpush.msra.mxu1 %v8228_v28 }
 0x260   :  { %2956 = vmatpush.msra.mxu0 %v8129_v21  ;;  %7694 = vmatpush.msra.mxu3 %v8203_v6  ;;  %v8604_v6 = vld [vmem:[%s11666_s1 + $0x170] sm:$0xff] }
 0x261   :  { %1192 = vmatpush.msra.mxu1 %v8232_v30 }
 0x262   :  { %2957 = vmatpush.msra.mxu0 %v8133_v24  ;;  %6618 = vmatmul.msk.f32.gmra.mxu1 %vm532_vm3, %v525_v59  ;;  %v8788_v59 = vld [vmem:[#allocation2 + $0x30] sm:$0xff] }
 0x263   :  { %7695 = vmatpush.msra.mxu3 %v8210_v12  ;;  %6927 = vmatmul.msk.f32.gmra.mxu0 %vm532_vm3, %v8584_v62  ;;  %v728_v2 = vpop.f32.mrf.mxu2 }
 0x264   :  { %1193 = vmatpush.msra.mxu1 %v8240_v33  ;;  %2958 = vmatpush.msra.mxu0 %v8137_v25 }
 0x265   :  { %7696 = vmatpush.msra.mxu3 %v8214_v18  ;;  %v527_v18 = vld [vmem:[%s11666_s1 + $0x40] sm:$0xff] }
 0x266   :  { %6658 = vmatmul.msk.f32.gmra.mxu3 %vm456_vm1, %v728_v2 }
 0x267   :  { %7697 = vmatpush.msra.mxu3 %v8217_v20  ;;  %v8620_v20 = vld [vmem:[%s11666_s1 + $0x178] sm:$0xff] }
 0x269   :  { %7698 = vmatpush.msra.mxu3 %v8221_v23 }
 0x26a   :  { %6619 = vmatmul.msk.f32.gmra.mxu1 %vm532_vm3, %v526_v5  ;;  %v8791_v5 = vld [vmem:[#allocation2 + $0x28] sm:$0xff] }
 0x26b   :  { %7699 = vmatpush.msra.mxu3 %v8228_v28  ;;  %6928 = vmatmul.msk.f32.gmra.mxu0 %vm532_vm3, %v8604_v6  ;;  %v731_v12 = vpop.f32.mrf.mxu2  ;;  %v528_v28 = vld [vmem:[%s11666_s1 + $0x48] sm:$0xff] }
 0x26d   :  { %7700 = vmatpush.msra.mxu3 %v8232_v30  ;;  %v8632_v30 = vld [vmem:[%s11666_s1 + $0x180] sm:$0xff] }
 0x26e   :  { %6659 = vmatmul.msk.f32.gmra.mxu3 %vm456_vm1, %v731_v12 }
 0x26f   :  { %7701 = vmatpush.msra.mxu3 %v8240_v33 }
 0x272   :  { %6620 = vmatmul.msk.f32.gmra.mxu1 %vm532_vm3, %v527_v18  ;;  %v8796_v18 = vld [vmem:[#allocation2 + $0x20] sm:$0xff] }
 0x273   :  { %6929 = vmatmul.msk.f32.gmra.mxu0 %vm532_vm3, %v8620_v20  ;;  %v734_v23 = vpop.f32.mrf.mxu2 }
 0x276   :  { %6660 = vmatmul.msk.f32.gmra.mxu3 %vm456_vm1, %v734_v23  ;;  %v8799_v23 = vld [vmem:[#allocation2 + $0x18] sm:$0xff] }
 0x27a   :  { %6621 = vmatmul.msk.f32.gmra.mxu1 %vm532_vm3, %v528_v28  ;;  %v8803_v28 = vld [vmem:[#allocation2 + $0x10] sm:$0xff] }
 0x27b   :  { %6930 = vmatmul.msk.f32.gmra.mxu0 %vm532_vm3, %v8632_v30  ;;  %v737_v33 = vpop.f32.mrf.mxu2 }
 0x27e   :  { %6661 = vmatmul.msk.f32.gmra.mxu3 %vm456_vm1, %v737_v33 }
 0x282   :  { %6622 = vmatmul.msk.f32.gmra.mxu1 %vm532_vm3, %v529_v63  ;;  %v8807_v63 = vld [vmem:[#allocation2 + $0x8] sm:$0xff] }
 0x283   :  { %6931 = vmatmul.msk.f32.gmra.mxu0 %vm532_vm3, %v8644_v4  ;;  %v740_v10 = vpop.f32.mrf.mxu2 }
 0x286   :  { %6662 = vmatmul.msk.f32.gmra.mxu3 %vm456_vm1, %v740_v10 }
 0x28a   :  { %6623 = vmatmul.msk.f32.gmra.mxu1 %vm532_vm3, %v530_v14  ;;  %v8812_v14 = vld [vmem:[#allocation2] sm:$0xff] }
 0x28b   :  { %6932 = vmatmul.msk.f32.gmra.mxu0 %vm532_vm3, %v8656_v19  ;;  %v743_v26 = vpop.f32.mrf.mxu2 }
 0x28e   :  { %6663 = vmatmul.msk.f32.gmra.mxu3 %vm456_vm1, %v743_v26 }
 0x292   :  { %6624 = vmatmul.msk.f32.gmra.mxu1 %vm532_vm3, %v531_v27 }
 0x293   :  { %6933 = vmatmul.msk.f32.gmra.mxu0 %vm532_vm3, %v8670_v36  ;;  %v746_v38 = vpop.f32.mrf.mxu2 }
 0x296   :  { %6664 = vmatmul.msk.f32.gmra.mxu3 %vm456_vm1, %v746_v38  ;;  %v6715_v38 = vld [vmem:[%s11666_s1 + $0xe0] sm:$0xff] }
 0x29a   :  { %6683 = vmatmul.msk.f32.vlgmr.msrb.gmra.mxu1 %vm532_vm3, %v8238_v32  ;;  %v6740_v32 = vld [vmem:[%s11669_s4 + $0x60] sm:$0xff] }
 0x29b   :  { %6983 = vmatmul.msk.f32.vlgmr.msrb.gmra.mxu0 %vm532_vm3, %v8175_v54  ;;  %v749_v40 = vpop.f32.mrf.mxu2 }
 0x29c   :  { %7132 = vmatpush.msk.msrb.mxu0 %vm572_vm2, %v8081_v0 }
 0x29e   :  { %3338 = vmatpush.msrb.mxu0 %v8086_v1  ;;  %6665 = vmatmul.msk.f32.gmra.mxu3 %vm456_vm1, %v749_v40 }
 0x2a0   :  { %3339 = vmatpush.msrb.mxu0 %v8089_v3 }
 0x2a2   :  { %3340 = vmatpush.msrb.mxu0 %v8097_v7  ;;  %6684 = vmatmul.msk.f32.gmra.mxu1 %vm532_vm3, %v8266_v42 }
 0x2a3   :  { %v752_v41 = vpop.f32.mrf.mxu2 }
 0x2a4   :  { %3341 = vmatpush.msrb.mxu0 %v8101_v8 }
 0x2a6   :  { %3342 = vmatpush.msrb.mxu0 %v8104_v9  ;;  %6666 = vmatmul.msk.f32.gmra.mxu3 %vm456_vm1, %v752_v41 }
 0x2a8   :  { %3343 = vmatpush.msrb.mxu0 %v8111_v13 }
 0x2aa   :  { %3344 = vmatpush.msrb.mxu0 %v8115_v15  ;;  %6685 = vmatmul.msk.f32.gmra.mxu1 %vm532_vm3, %v8284_v47 }
 0x2ab   :  { %v755_v0 = vpop.f32.mrf.mxu2 }
 0x2ac   :  { %3345 = vmatpush.msrb.mxu0 %v8119_v16 }
 0x2ad   :  { %v593_v1 = vpop.f32.mrf.mxu1 }
 0x2ae   :  { %3346 = vmatpush.msrb.mxu0 %v8122_v17  ;;  %6667 = vmatmul.msk.f32.gmra.mxu3 %vm456_vm1, %v755_v0  ;;  %v6743_v17 = vld [vmem:[%s11669_s4 + $0x78] sm:$0xff]  ;;  %v6716_v0 = vld [vmem:[%s11666_s1 + $0xe8] sm:$0xff] }
 0x2af   :  { %1290 = vmatpush.msrb.mxu1 %v6743_v17 }
 0x2b0   :  { %3347 = vmatpush.msrb.mxu0 %v8129_v21  ;;  %v6742_v21 = vld [vmem:[%s11669_s4 + $0x70] sm:$0xff] }
 0x2b1   :  { %1291 = vmatpush.msrb.mxu1 %v6742_v21  ;;  %v6719_v21 = vld [vmem:[%s11666_s1 + $0x100] sm:$0xff] }
 0x2b2   :  { %3348 = vmatpush.msrb.mxu0 %v8133_v24  ;;  %6686 = vmatmul.msk.f32.gmra.mxu1 %vm532_vm3, %v8301_v52 }
 0x2b3   :  { %v758_v3 = vpop.f32.mrf.mxu2 }
 0x2b4   :  { %3349 = vmatpush.msrb.mxu0 %v8137_v25  ;;  %v6741_v25 = vld [vmem:[%s11669_s4 + $0x68] sm:$0xff] }
 0x2b5   :  { %v596_v7 = vpop.f32.mrf.mxu1  ;;  %1292 = vmatpush.msrb.mxu1 %v6741_v25 }
 0x2b6   :  { %6668 = vmatmul.msk.f32.gmra.mxu3 %vm456_vm1, %v758_v3 }
 0x2b7   :  { %1293 = vmatpush.msrb.mxu1 %v6740_v32  ;;  %v6720_v32 = vld [vmem:[%s11666_s1 + $0x108] sm:$0xff] }
 0x2ba   :  { %6687 = vmatmul.msk.f32.gmra.mxu1 %vm532_vm3, %v8318_v60 }
 0x2bd   :  { %v599_v8 = vpop.f32.mrf.mxu1 }
 0x2be   :  { %6669 = vmatmul.msk.f32.vlgmr.msrb.gmra.mxu3 %vm456_vm1, %v593_v1 }
 0x2c2   :  { %6688 = vmatmul.msk.f32.gmra.mxu1 %vm532_vm3, %v8332_v11 }
 0x2c5   :  { %v602_v9 = vpop.f32.mrf.mxu1 }
 0x2c6   :  { %6670 = vmatmul.msk.f32.gmra.mxu3 %vm456_vm1, %v596_v7  ;;  %v6717_v7 = vld [vmem:[%s11666_s1 + $0xf0] sm:$0xff] }
 0x2ca   :  { %6689 = vmatmul.msk.f32.gmra.mxu1 %vm532_vm3, %v8345_v29 }
 0x2cd   :  { %v605_v13 = vpop.f32.mrf.mxu1 }
 0x2ce   :  { %6671 = vmatmul.msk.f32.gmra.mxu3 %vm456_vm1, %v599_v8 }
 0x2d2   :  { %6690 = vmatmul.msk.f32.gmra.mxu1 %vm532_vm3, %v8358_v37 }
 0x2d5   :  { %v608_v15 = vpop.f32.mrf.mxu1 }
 0x2d6   :  { %6672 = vmatmul.msk.f32.gmra.mxu3 %vm456_vm1, %v602_v9 }
 0x2d7   :  { %v8718_v16 = vpop.f32.mrf.mxu3 }
 0x2da   :  { %6691 = vmatmul.msk.f32.gmra.mxu1 %vm532_vm3, %v8371_v43  ;;  %v6713_v43 = vld [vmem:[%s11666_s1 + $0xd0] sm:$0xff] }
 0x2de   :  { %6673 = vmatmul.msk.f32.gmra.mxu3 %vm456_vm1, %v605_v13  ;;  %v6718_v13 = vld [vmem:[%s11666_s1 + $0xf8] sm:$0xff] }
 0x2df   :  { %v611_v24 = vpop.f32.mrf.mxu1 }
 0x2e0   :  { %v8732_v54 = vpop.f32.mrf.mxu3 }
 0x2e2   :  { %6692 = vmatmul.msk.f32.gmra.mxu1 %vm532_vm3, %v8381_v45 }
 0x2e6   :  { %6674 = vmatmul.msk.f32.gmra.mxu3 %vm456_vm1, %v608_v15 }
 0x2e7   :  { %v614_v42 = vpop.f32.mrf.mxu1 }
 0x2e9   :  { %v8740_v47 = vpop.f32.mrf.mxu3 }
 0x2ea   :  { %6693 = vmatmul.msk.f32.gmra.mxu1 %vm532_vm3, %v8406_v50  ;;  %v8761_v50 = vld [vmem:[#allocation2 + $0x60] sm:$0x3] }
 0x2ee   :  { %6675 = vmatmul.msk.f32.gmra.mxu3 %vm456_vm1, %v611_v24 }
 0x2ef   :  { %v617_v52 = vpop.f32.mrf.mxu1 }
 0x2f1   :  { %v8745_v60 = vpop.f32.mrf.mxu3 }
 0x2f2   :  { %6694 = vmatmul.msk.f32.gmra.mxu1 %vm532_vm3, %v8425_v57  ;;  %v8765_v57 = vld [vmem:[#allocation2 + $0x58] sm:$0xff] }
 0x2f6   :  { %6676 = vmatmul.msk.f32.gmra.mxu3 %vm456_vm1, %v614_v42 }
 0x2f7   :  { %v620_v11 = vpop.f32.mrf.mxu1 }
 0x2f9   :  { %v8750_v29 = vpop.f32.mrf.mxu3 }
 0x2fa   :  { %6695 = vmatmul.msk.f32.gmra.mxu1 %vm532_vm3, %v8446_v31  ;;  %v8769_v31 = vld [vmem:[#allocation2 + $0x50] sm:$0xff] }
 0x2fe   :  { %6677 = vmatmul.msk.f32.gmra.mxu3 %vm456_vm1, %v617_v52 }
 0x2ff   :  { %v623_v37 = vpop.f32.mrf.mxu1 }
 0x301   :  { %v8758_v45 = vpop.f32.mrf.mxu3 }
 0x302   :  { %11676 = vst [vmem:[#allocation7_spill] sm:$0xff] %v8758_v45  ;;  %6727 = vmatmul.msk.f32.vlgmr.msra.gmra.mxu1 %vm532_vm3, %v6713_v43  ;;  %v9159_v45 = vld [vmem:[%s11666_s1 + $0x1f8] sm:$0xff] }
 0x303   :  { %6814 = vmatpush.msk.msra.mxu1 %vm572_vm2, %v8761_v50 }
 0x305   :  { %1658 = vmatpush.msra.mxu1 %v8765_v57 }
 0x306   :  { %6678 = vmatmul.msk.f32.gmra.mxu3 %vm456_vm1, %v620_v11  ;;  %v6721_v11 = vld [vmem:[%s11666_s1 + $0x110] sm:$0xff] }
 0x307   :  { %1659 = vmatpush.msra.mxu1 %v8769_v31  ;;  %v626_v46 = vpop.f32.mrf.mxu1 }
 0x309   :  { %1660 = vmatpush.msra.mxu1 %v8775_v51  ;;  %v8778_v55 = vpop.f32.mrf.mxu3 }
 0x30a   :  { %11677 = vst [vmem:[#allocation8_spill] sm:$0xff] %v8778_v55  ;;  %6728 = vmatmul.msk.f32.gmra.mxu1 %vm532_vm3, %v6714_v48  ;;  %v6830_v48 = vld [vmem:[%s11669_s4 + $0xb0] sm:$0xff] }
 0x30b   :  { %1661 = vmatpush.msra.mxu1 %v8781_v56 }
 0x30d   :  { %1662 = vmatpush.msra.mxu1 %v8784_v58 }
 0x30e   :  { %6679 = vmatmul.msk.f32.gmra.mxu3 %vm456_vm1, %v623_v37 }
 0x30f   :  { %1663 = vmatpush.msra.mxu1 %v8788_v59  ;;  %v629_v2 = vpop.f32.mrf.mxu1 }
 0x311   :  { %1664 = vmatpush.msra.mxu1 %v8791_v5  ;;  %v8794_v12 = vpop.f32.mrf.mxu3 }
 0x312   :  { %11678 = vst [vmem:[#allocation9_spill] sm:$0xff] %v8794_v12  ;;  %v9119_v12 = vld [vmem:[%s11666_s1 + $0x1d8] sm:$0xff] }
 0x313   :  { %1665 = vmatpush.msra.mxu1 %v8796_v18 }
 0x315   :  { %1666 = vmatpush.msra.mxu1 %v8799_v23 }
 0x316   :  { %6680 = vmatmul.msk.f32.gmra.mxu3 %vm456_vm1, %v626_v46  ;;  %v6831_v46 = vld [vmem:[%s11669_s4 + $0xb8] sm:$0xff] }
 0x317   :  { %1667 = vmatpush.msra.mxu1 %v8803_v28  ;;  %v973_v33 = vpop.f32.mrf.mxu1 }
 0x318   :  { %6700 = vmatmul.msk.f32.vlgmr.msrb.gmra.mxu2 %vm456_vm1, %v973_v33  ;;  %v6829_v33 = vld [vmem:[%s11669_s4 + $0xa8] sm:$0xff] }
 0x319   :  { %1668 = vmatpush.msra.mxu1 %v8807_v63  ;;  %v8810_v10 = vpop.f32.mrf.mxu3  ;;  %1766 = vmatpush.msrb.mxu2 %v6831_v46  ;;  %v7720_v46 = vld [vmem:[#allocation2 + $0xba] sm:$0xff] }
 0x31a   :  { %11679 = vst [vmem:[#allocation10_spill] sm:$0xff] %v8810_v10 }
 0x31b   :  { %1669 = vmatpush.msra.mxu1 %v8812_v14  ;;  %1767 = vmatpush.msrb.mxu2 %v6830_v48  ;;  %v7721_v48 = vld [vmem:[#allocation2 + $0xb2] sm:$0xff] }
 0x31d   :  { %1768 = vmatpush.msrb.mxu2 %v6829_v33  ;;  %v7723_v33 = vld [vmem:[#allocation2 + $0xa2] sm:$0xff] }
 0x31e   :  { %6681 = vmatmul.msk.f32.gmra.mxu3 %vm456_vm1, %v629_v2  ;;  %v6722_v2 = vld [vmem:[%s11666_s1 + $0x118] sm:$0xff] }
 0x31f   :  { %v976_v26 = vpop.f32.mrf.mxu1 }
 0x320   :  { %6701 = vmatmul.msk.f32.gmra.mxu2 %vm456_vm1, %v976_v26 }
 0x321   :  { %v8817_v27 = vpop.f32.mrf.mxu3 }
 0x322   :  { %11680 = vst [vmem:[#allocation11_spill] sm:$0xff] %v8817_v27 }
 0x326   :  { %6729 = vmatmul.msk.f32.vlgmr.msra.gmra.mxu3 %vm532_vm3, %v6715_v38  ;;  %v6828_v38 = vld [vmem:[%s11669_s4 + $0xa0] sm:$0xff] }
 0x327   :  { %v979_v40 = vpop.f32.mrf.mxu1  ;;  %1769 = vmatpush.msrb.mxu2 %v6828_v38  ;;  %v7724_v38 = vld [vmem:[#allocation2 + $0x9a] sm:$0xff] }
 0x328   :  { %6702 = vmatmul.msk.f32.gmra.mxu2 %vm456_vm1, %v979_v40 }
 0x329   :  { %v8824_v41 = vpop.f32.mrf.mxu3 }
 0x32a   :  { %11681 = vst [vmem:[#allocation12_spill] sm:$0xff] %v8824_v41 }
 0x32e   :  { %6730 = vmatmul.msk.f32.gmra.mxu3 %vm532_vm3, %v6716_v0  ;;  %v6723_v0 = vld [vmem:[%s11666_s1 + $0x120] sm:$0xff] }
 0x32f   :  { %v982_v1 = vpop.f32.mrf.mxu1 }
 0x330   :  { %6703 = vmatmul.msk.f32.gmra.mxu2 %vm456_vm1, %v982_v1 }
 0x331   :  { %v8831_v3 = vpop.f32.mrf.mxu3 }
 0x332   :  { %11682 = vst [vmem:[#allocation13_spill] sm:$0xff] %v8831_v3  ;;  %v9067_v3 = vld [vmem:[#allocation2 + $0xd4] sm:$0xff] }
 0x336   :  { %6731 = vmatmul.msk.f32.gmra.mxu3 %vm532_vm3, %v6717_v7 }
 0x337   :  { %v985_v8 = vpop.f32.mrf.mxu1 }
 0x338   :  { %6704 = vmatmul.msk.f32.gmra.mxu2 %vm456_vm1, %v985_v8  ;;  %v6724_v8 = vld [vmem:[%s11666_s1 + $0x128] sm:$0xff] }
 0x339   :  { %v8838_v9 = vpop.f32.mrf.mxu3 }
 0x33a   :  { %11683 = vst [vmem:[#allocation14_spill] sm:$0xff] %v8838_v9 }
 0x33e   :  { %6732 = vmatmul.msk.f32.gmra.mxu3 %vm532_vm3, %v6718_v13 }
 0x33f   :  { %v988_v15 = vpop.f32.mrf.mxu1 }
 0x340   :  { %6705 = vmatmul.msk.f32.gmra.mxu2 %vm456_vm1, %v988_v15 }
 0x341   :  { %v8845_v17 = vpop.f32.mrf.mxu3 }
 0x346   :  { %6733 = vmatmul.msk.f32.gmra.mxu3 %vm532_vm3, %v6719_v21  ;;  %v6725_v21 = vld [vmem:[%s11666_s1 + $0x130] sm:$0x3] }
 0x347   :  { %v991_v24 = vpop.f32.mrf.mxu1 }
 0x348   :  { %6706 = vmatmul.msk.f32.gmra.mxu2 %vm456_vm1, %v991_v24 }
 0x349   :  { %v8852_v25 = vpop.f32.mrf.mxu3 }
 0x34e   :  { %6734 = vmatmul.msk.f32.gmra.mxu3 %vm532_vm3, %v6720_v32 }
 0x34f   :  { %v994_v42 = vpop.f32.mrf.mxu1 }
 0x350   :  { %6707 = vmatmul.msk.f32.gmra.mxu2 %vm456_vm1, %v994_v42 }
 0x351   :  { %v8859_v52 = vpop.f32.mrf.mxu3 }
 0x356   :  { %6735 = vmatmul.msk.f32.gmra.mxu3 %vm532_vm3, %v6721_v11  ;;  %v7719_v11 = vld [vmem:[#allocation2 + $0xc2] sm:$0x3] }
 0x357   :  { %v997_v37 = vpop.f32.mrf.mxu1 }
 0x358   :  { %6708 = vmatmul.msk.f32.gmra.mxu2 %vm456_vm1, %v997_v37 }
 0x359   :  { %v8866_v43 = vpop.f32.mrf.mxu3 }
 0x35e   :  { %6736 = vmatmul.msk.f32.gmra.mxu3 %vm532_vm3, %v6722_v2  ;;  %v7722_v2 = vld [vmem:[#allocation2 + $0xaa] sm:$0xff] }
 0x35f   :  { %v1000_v26 = vpop.f32.mrf.mxu1 }
 0x360   :  { %6709 = vmatmul.msk.f32.gmra.mxu2 %vm456_vm1, %v1000_v26 }
 0x361   :  { %v8885_v40 = vpop.f32.mrf.mxu3 }
 0x366   :  { %6737 = vmatmul.msk.f32.gmra.mxu3 %vm532_vm3, %v6723_v0  ;;  %v7725_v0 = vld [vmem:[#allocation2 + $0x92] sm:$0xff] }
 0x367   :  { %v1003_v1 = vpop.f32.mrf.mxu1 }
 0x368   :  { %6710 = vmatmul.msk.f32.gmra.mxu2 %vm456_vm1, %v1003_v1  ;;  %v7726_v1 = vld [vmem:[#allocation2 + $0x8a] sm:$0xff] }
 0x369   :  { %v8892_v7 = vpop.f32.mrf.mxu3 }
 0x36a   :  { %11684 = vst [vmem:[#allocation15_spill] sm:$0xff] %v8892_v7  ;;  %v9149_v7 = vld [vmem:[%s11666_s1 + $0x1f0] sm:$0xff] }
 0x36e   :  { %6738 = vmatmul.msk.f32.gmra.mxu3 %vm532_vm3, %v6724_v8 }
 0x36f   :  { %v1006_v13 = vpop.f32.mrf.mxu1 }
 0x370   :  { %6711 = vmatmul.msk.f32.gmra.mxu2 %vm456_vm1, %v1006_v13  ;;  %v7728_v13 = vld [vmem:[#allocation2 + $0x7a] sm:$0xff] }
 0x371   :  { %v8899_v15 = vpop.f32.mrf.mxu3 }
 0x372   :  { %11685 = vst [vmem:[#allocation16_spill] sm:$0xff] %v8899_v15  ;;  %v9129_v15 = vld [vmem:[%s11666_s1 + $0x1e0] sm:$0xff] }
 0x376   :  { %6739 = vmatmul.msk.f32.gmra.mxu3 %vm532_vm3, %v6725_v21  ;;  %v7729_v21 = vld [vmem:[#allocation2 + $0x72] sm:$0xff] }
 0x377   :  { %v1009_v24 = vpop.f32.mrf.mxu1 }
 0x378   :  { %6712 = vmatmul.msk.f32.gmra.mxu2 %vm456_vm1, %v1009_v24  ;;  %v7730_v24 = vld [vmem:[#allocation2 + $0x6a] sm:$0xff] }
 0x379   :  { %v8906_v32 = vpop.f32.mrf.mxu3 }
 0x37a   :  { %11686 = vst [vmem:[#allocation17_spill] sm:$0xff] %v8906_v32 }
 0x37f   :  { %v1195_v42 = vpop.f32.mrf.mxu1 }
 0x380   :  { %6744 = vmatmul.msk.f32.vlgmr.msrb.gmra.mxu1 %vm456_vm1, %v1195_v42  ;;  %6771 = vmatmul.msk.f32.vlgmr.msra.gmra.mxu2 %vm532_vm3, %v8454_v35 }
 0x381   :  { %7702 = vmatpush.msk.msra.mxu2 %vm572_vm2, %v7719_v11  ;;  %6889 = vmatpush.msk.msrb.mxu1 %vm572_vm2, %v8761_v50  ;;  %v8914_v37 = vpop.f32.mrf.mxu3 }
 0x382   :  { %11687 = vst [vmem:[#allocation18_spill] sm:$0xff] %v8914_v37  ;;  %v9099_v37 = vld [vmem:[%s11666_s1 + $0x1c8] sm:$0xff] }
 0x383   :  { %7703 = vmatpush.msra.mxu2 %v7720_v46  ;;  %2049 = vmatpush.msrb.mxu1 %v8765_v57 }
 0x385   :  { %7704 = vmatpush.msra.mxu2 %v7721_v48  ;;  %2050 = vmatpush.msrb.mxu1 %v8769_v31 }
 0x387   :  { %7705 = vmatpush.msra.mxu2 %v7722_v2  ;;  %2051 = vmatpush.msrb.mxu1 %v8775_v51  ;;  %v1198_v35 = vpop.f32.mrf.mxu1 }
 0x388   :  { %6745 = vmatmul.msk.f32.gmra.mxu1 %vm456_vm1, %v1198_v35  ;;  %6772 = vmatmul.msk.f32.gmra.mxu2 %vm532_vm3, %v8488_v44  ;;  %v7727_v44 = vld [vmem:[#allocation2 + $0x82] sm:$0xff] }
 0x389   :  { %7706 = vmatpush.msra.mxu2 %v7723_v33  ;;  %2052 = vmatpush.msrb.mxu1 %v8781_v56  ;;  %v8923_v26 = vpop.f32.mrf.mxu3 }
 0x38a   :  { %11688 = vst [vmem:[#allocation19_spill] sm:$0xff] %v8923_v26  ;;  %v9089_v26 = vld [vmem:[%s11666_s1 + $0x1c0] sm:$0xff] }
 0x38b   :  { %7707 = vmatpush.msra.mxu2 %v7724_v38  ;;  %2053 = vmatpush.msrb.mxu1 %v8784_v58 }
 0x38d   :  { %7708 = vmatpush.msra.mxu2 %v7725_v0  ;;  %2054 = vmatpush.msrb.mxu1 %v8788_v59 }
 0x38f   :  { %7709 = vmatpush.msra.mxu2 %v7726_v1  ;;  %2055 = vmatpush.msrb.mxu1 %v8791_v5 }
 0x390   :  { %6773 = vmatmul.msk.f32.gmra.mxu2 %vm532_vm3, %v8505_v22  ;;  %v7731_v22 = vld [vmem:[#allocation2 + $0x62] sm:$0xff] }
 0x391   :  { %7710 = vmatpush.msra.mxu2 %v7727_v44  ;;  %2056 = vmatpush.msrb.mxu1 %v8796_v18  ;;  %v8931_v8 = vpop.f32.mrf.mxu3 }
 0x392   :  { %11689 = vst [vmem:[#allocation20_spill] sm:$0xff] %v8931_v8  ;;  %v9076_v8 = vld [vmem:[%s11666_s1 + $0x1b8] sm:$0xff] }
 0x393   :  { %7711 = vmatpush.msra.mxu2 %v7728_v13  ;;  %2057 = vmatpush.msrb.mxu1 %v8799_v23  ;;  %v6787_v13 = vld [vmem:[%s11669_s4 + $0x98] sm:$0xff] }
 0x394   :  { %1528 = vmatpush.msrb.mxu3 %v6787_v13 }
 0x395   :  { %7712 = vmatpush.msra.mxu2 %v7729_v21  ;;  %2058 = vmatpush.msrb.mxu1 %v8803_v28 }
 0x397   :  { %7713 = vmatpush.msra.mxu2 %v7730_v24  ;;  %2059 = vmatpush.msrb.mxu1 %v8807_v63 }
 0x398   :  { %6774 = vmatmul.msk.f32.gmra.mxu2 %vm532_vm3, %v8519_v49 }
 0x399   :  { %7714 = vmatpush.msra.mxu2 %v7731_v22  ;;  %2060 = vmatpush.msrb.mxu1 %v8812_v14  ;;  %v8939_v42 = vpop.f32.mrf.mxu3  ;;  %v6784_v22 = vld [vmem:[%s11669_s4 + $0x80] sm:$0xff] }
 0x39a   :  { %11690 = vst [vmem:[#allocation21_spill] sm:$0xff] %v8939_v42  ;;  %v9064_v42 = vld [vmem:[#allocation2 + $0xdc] sm:$0xff] }
 0x39b   :  { %v8941_v11 = vpop.f32.mrf.mxu2 }
 0x3a0   :  { %6775 = vmatmul.msk.f32.gmra.mxu2 %vm532_vm3, %v8539_v53 }
 0x3a1   :  { %v8945_v46 = vpop.f32.mrf.mxu3 }
 0x3a2   :  { %11691 = vst [vmem:[#allocation22_spill] sm:$0xff] %v8945_v46  ;;  %v9054_v46 = vld [vmem:[%s11666_s1 + $0x1b0] sm:$0xff] }
 0x3a3   :  { %v8947_v48 = vpop.f32.mrf.mxu2 }
 0x3a8   :  { %6776 = vmatmul.msk.f32.gmra.mxu2 %vm532_vm3, %v8561_v61 }
 0x3a9   :  { %v1201_v2 = vpop.f32.mrf.mxu3 }
 0x3aa   :  { %6746 = vmatmul.msk.f32.gmra.mxu1 %vm456_vm1, %v1201_v2 }
 0x3ab   :  { %v8952_v49 = vpop.f32.mrf.mxu2 }
 0x3b0   :  { %6777 = vmatmul.msk.f32.gmra.mxu2 %vm532_vm3, %v8584_v62 }
 0x3b1   :  { %v1204_v35 = vpop.f32.mrf.mxu3 }
 0x3b2   :  { %6747 = vmatmul.msk.f32.gmra.mxu1 %vm456_vm1, %v1204_v35 }
 0x3b3   :  { %v8957_v33 = vpop.f32.mrf.mxu2 }
 0x3b8   :  { %6778 = vmatmul.msk.f32.gmra.mxu2 %vm532_vm3, %v8604_v6 }
 0x3b9   :  { %v1207_v53 = vpop.f32.mrf.mxu3 }
 0x3ba   :  { %6748 = vmatmul.msk.f32.gmra.mxu1 %vm456_vm1, %v1207_v53 }
 0x3bb   :  { %v8962_v61 = vpop.f32.mrf.mxu2 }
 0x3bc   :  { %11692 = vst [vmem:[#allocation23_spill] sm:$0xff] %v8962_v61  ;;  %v6860_v61 = vld [vmem:[%s11669_s4 + $0xc8] sm:$0xff] }
 0x3c0   :  { %6779 = vmatmul.msk.f32.gmra.mxu2 %vm532_vm3, %v8620_v20 }
 0x3c1   :  { %v1210_v38 = vpop.f32.mrf.mxu3 }
 0x3c2   :  { %6749 = vmatmul.msk.f32.gmra.mxu1 %vm456_vm1, %v1210_v38 }
 0x3c3   :  { %v8967_v62 = vpop.f32.mrf.mxu2 }
 0x3c4   :  { %11693 = vst [vmem:[#allocation24_spill] sm:$0xff] %v8967_v62  ;;  %v9139_v62 = vld [vmem:[%s11666_s1 + $0x1e8] sm:$0xff] }
 0x3c8   :  { %6780 = vmatmul.msk.f32.gmra.mxu2 %vm532_vm3, %v8632_v30 }
 0x3c9   :  { %v1213_v0 = vpop.f32.mrf.mxu3 }
 0x3ca   :  { %6750 = vmatmul.msk.f32.gmra.mxu1 %vm456_vm1, %v1213_v0 }
 0x3cb   :  { %v8972_v6 = vpop.f32.mrf.mxu2 }
 0x3cc   :  { %11694 = vst [vmem:[#allocation25_spill] sm:$0xff] %v8972_v6 }
 0x3d0   :  { %6781 = vmatmul.msk.f32.gmra.mxu2 %vm532_vm3, %v8644_v4  ;;  %v6786_v4 = vld [vmem:[%s11669_s4 + $0x90] sm:$0xff] }
 0x3d1   :  { %v1216_v1 = vpop.f32.mrf.mxu3  ;;  %1529 = vmatpush.msrb.mxu3 %v6786_v4  ;;  %v9022_v4 = vld [vmem:[#allocation2 + $0x11c] sm:$0xff] }
 0x3d2   :  { %6751 = vmatmul.msk.f32.gmra.mxu1 %vm456_vm1, %v1216_v1  ;;  %v9013_v1 = vld [vmem:[%s11666_s1 + $0x1a0] sm:$0xff] }
 0x3d3   :  { %v8977_v20 = vpop.f32.mrf.mxu2 }
 0x3d4   :  { %11695 = vst [vmem:[#allocation26_spill] sm:$0xff] %v8977_v20  ;;  %v9109_v20 = vld [vmem:[%s11666_s1 + $0x1d0] sm:$0xff] }
 0x3d8   :  { %6782 = vmatmul.msk.f32.gmra.mxu2 %vm532_vm3, %v8656_v19  ;;  %v6785_v19 = vld [vmem:[%s11669_s4 + $0x88] sm:$0xff] }
 0x3d9   :  { %v1219_v44 = vpop.f32.mrf.mxu3  ;;  %1530 = vmatpush.msrb.mxu3 %v6785_v19  ;;  %v9025_v19 = vld [vmem:[#allocation2 + $0x114] sm:$0xff] }
 0x3da   :  { %6752 = vmatmul.msk.f32.gmra.mxu1 %vm456_vm1, %v1219_v44  ;;  %v9017_v44 = vld [vmem:[#allocation2 + $0x124] sm:$0x3] }
 0x3db   :  { %v8982_v30 = vpop.f32.mrf.mxu2  ;;  %1531 = vmatpush.msrb.mxu3 %v6784_v22  ;;  %v9034_v22 = vld [vmem:[%s11666_s1 + $0x1a8] sm:$0xff] }
 0x3dc   :  { %11696 = vst [vmem:[#allocation27_spill] sm:$0xff] %v8982_v30 }
 0x3e0   :  { %6783 = vmatmul.msk.f32.gmra.mxu2 %vm532_vm3, %v8670_v36 }
 0x3e1   :  { %v1222_v21 = vpop.f32.mrf.mxu3 }
 0x3e2   :  { %6753 = vmatmul.msk.f32.gmra.mxu1 %vm456_vm1, %v1222_v21  ;;  %v9028_v21 = vld [vmem:[#allocation2 + $0x10c] sm:$0xff] }
 0x3e3   :  { %v8996_v24 = vpop.f32.mrf.mxu2 }
 0x3e4   :  { %11697 = vst [vmem:[#allocation28_spill] sm:$0xff] %v8996_v24 }
 0x3e9   :  { %v1225_v2 = vpop.f32.mrf.mxu3 }
 0x3ea   :  { %6754 = vmatmul.msk.f32.gmra.mxu1 %vm456_vm1, %v1225_v2  ;;  %v9038_v2 = vld [vmem:[#allocation2 + $0x104] sm:$0xff] }
 0x3eb   :  { %v9002_v36 = vpop.f32.mrf.mxu2 }
 0x3ec   :  { %11698 = vst [vmem:[#allocation29_spill] sm:$0xff] %v9002_v36  ;;  %v9070_v36 = vld [vmem:[#allocation2 + $0xcc] sm:$0xff] }
 0x3f1   :  { %v1228_v35 = vpop.f32.mrf.mxu3 }
 0x3f2   :  { %6755 = vmatmul.msk.f32.gmra.mxu1 %vm456_vm1, %v1228_v35 }
 0x3f3   :  { %v9005_v53 = vpop.f32.mrf.mxu2 }
 0x3f4   :  { %11699 = vst [vmem:[#allocation30_spill] sm:$0xff] %v9005_v53 }
 0x3f9   :  { %v1231_v38 = vpop.f32.mrf.mxu3 }
 0x3fa   :  { %6756 = vmatmul.msk.f32.gmra.mxu1 %vm456_vm1, %v1231_v38  ;;  %v9042_v38 = vld [vmem:[#allocation2 + $0xfc] sm:$0xff] }
 0x3fb   :  { %v9008_v0 = vpop.f32.mrf.mxu2 }
 0x3fc   :  { %11700 = vst [vmem:[#allocation31_spill] sm:$0xff] %v9008_v0  ;;  %v9048_v0 = vld [vmem:[#allocation2 + $0xec] sm:$0xff] }
 0x3fd   :  { %v9062_v53 = vpop.f32.mrf.mxu1 }
 0x402   :  { %6815 = vmatmul.msk.f32.vlgmr.msra.gmra.mxu1 %vm532_vm3, %v9013_v1 }
 0x403   :  { %6951 = vmatpush.msk.msra.mxu1 %vm572_vm2, %v9017_v44  ;;  %v1433_v13 = vpop.f32.mrf.mxu2 }
 0x404   :  { %6788 = vmatmul.msk.f32.vlgmr.msrb.gmra.mxu3 %vm456_vm1, %v1433_v13  ;;  %v9045_v13 = vld [vmem:[#allocation2 + $0xf4] sm:$0xff] }
 0x405   :  { %2387 = vmatpush.msra.mxu1 %v9022_v4  ;;  %v9084_v24 = vpop.f32.mrf.mxu1 }
 0x407   :  { %2388 = vmatpush.msra.mxu1 %v9025_v19 }
 0x409   :  { %2389 = vmatpush.msra.mxu1 %v9028_v21 }
 0x40a   :  { %6816 = vmatmul.msk.f32.gmra.mxu1 %vm532_vm3, %v9034_v22 }
 0x40b   :  { %2390 = vmatpush.msra.mxu1 %v9038_v2  ;;  %v1436_v35 = vpop.f32.mrf.mxu2 }
 0x40c   :  { %6789 = vmatmul.msk.f32.gmra.mxu3 %vm456_vm1, %v1436_v35  ;;  %v9058_v35 = vld [vmem:[#allocation2 + $0xe4] sm:$0xff] }
 0x40d   :  { %2391 = vmatpush.msra.mxu1 %v9042_v38 }
 0x40f   :  { %2392 = vmatpush.msra.mxu1 %v9045_v13 }
 0x411   :  { %2393 = vmatpush.msra.mxu1 %v9048_v0 }
 0x412   :  { %6817 = vmatmul.msk.f32.gmra.mxu1 %vm532_vm3, %v9054_v46 }
 0x413   :  { %2394 = vmatpush.msra.mxu1 %v9058_v35  ;;  %v1439_v9 = vpop.f32.mrf.mxu2 }
 0x414   :  { %6790 = vmatmul.msk.f32.gmra.mxu3 %vm456_vm1, %v1439_v9  ;;  %v9080_v9 = vld [vmem:[#allocation2 + $0xc4] sm:$0xff] }
 0x415   :  { %2395 = vmatpush.msra.mxu1 %v9064_v42 }
 0x417   :  { %2396 = vmatpush.msra.mxu1 %v9067_v3 }
 0x419   :  { %2397 = vmatpush.msra.mxu1 %v9070_v36 }
 0x41a   :  { %6818 = vmatmul.msk.f32.gmra.mxu1 %vm532_vm3, %v9076_v8 }
 0x41b   :  { %2398 = vmatpush.msra.mxu1 %v9080_v9  ;;  %v1442_v41 = vpop.f32.mrf.mxu2 }
 0x41c   :  { %6791 = vmatmul.msk.f32.gmra.mxu3 %vm456_vm1, %v1442_v41 }
 0x422   :  { %6819 = vmatmul.msk.f32.gmra.mxu1 %vm532_vm3, %v9089_v26 }
 0x423   :  { %v1445_v27 = vpop.f32.mrf.mxu2 }
 0x424   :  { %6792 = vmatmul.msk.f32.gmra.mxu3 %vm456_vm1, %v1445_v27 }
 0x427   :  { %v9094_v30 = vpop.f32.mrf.mxu1 }
 0x42a   :  { %6820 = vmatmul.msk.f32.gmra.mxu1 %vm532_vm3, %v9099_v37 }
 0x42b   :  { %v1448_v41 = vpop.f32.mrf.mxu2 }
 0x42c   :  { %6793 = vmatmul.msk.f32.gmra.mxu3 %vm456_vm1, %v1448_v41 }
 0x42f   :  { %v9104_v10 = vpop.f32.mrf.mxu1 }
 0x432   :  { %6821 = vmatmul.msk.f32.gmra.mxu1 %vm532_vm3, %v9109_v20 }
 0x433   :  { %v1451_v27 = vpop.f32.mrf.mxu2 }
 0x434   :  { %6794 = vmatmul.msk.f32.gmra.mxu3 %vm456_vm1, %v1451_v27 }
 0x437   :  { %v9114_v32 = vpop.f32.mrf.mxu1 }
 0x438   :  { %11701 = vst [vmem:[#allocation32_spill] sm:$0xff] %v9114_v32  ;;  %v9175_v32 = vld [vmem:[%s11666_s1 + $0x200] sm:$0x3] }
 0x43a   :  { %6822 = vmatmul.msk.f32.gmra.mxu1 %vm532_vm3, %v9119_v12 }
 0x43b   :  { %v1454_v41 = vpop.f32.mrf.mxu2 }
 0x43c   :  { %6795 = vmatmul.msk.f32.gmra.mxu3 %vm456_vm1, %v1454_v41 }
 0x43f   :  { %v9124_v6 = vpop.f32.mrf.mxu1 }
 0x440   :  { %11702 = vst [vmem:[#allocation33_spill] sm:$0xff] %v9124_v6 }
 0x442   :  { %6823 = vmatmul.msk.f32.gmra.mxu1 %vm532_vm3, %v9129_v15 }
 0x443   :  { %v1457_v27 = vpop.f32.mrf.mxu2 }
 0x444   :  { %6796 = vmatmul.msk.f32.gmra.mxu3 %vm456_vm1, %v1457_v27 }
 0x447   :  { %v9134_v55 = vpop.f32.mrf.mxu1 }
 0x448   :  { %11703 = vst [vmem:[#allocation34_spill] sm:$0xff] %v9134_v55 }
 0x44a   :  { %6824 = vmatmul.msk.f32.gmra.mxu1 %vm532_vm3, %v9139_v62 }
 0x44b   :  { %v1460_v41 = vpop.f32.mrf.mxu2 }
 0x44c   :  { %6797 = vmatmul.msk.f32.gmra.mxu3 %vm456_vm1, %v1460_v41 }
 0x44f   :  { %v9144_v6 = vpop.f32.mrf.mxu1 }
 0x450   :  { %11704 = vst [vmem:[#allocation35_spill] sm:$0xff] %v9144_v6  ;;  %v6862_v6 = vld [vmem:[%s11669_s4 + $0xd8] sm:$0xff] }
 0x451   :  { %1935 = vmatpush.msra.mxu3 %v6862_v6  ;;  %v6859_v6 = vld [vmem:[%s11669_s4 + $0xc0] sm:$0xff] }
 0x452   :  { %6825 = vmatmul.msk.f32.gmra.mxu1 %vm532_vm3, %v9149_v7 }
 0x453   :  { %v1463_v27 = vpop.f32.mrf.mxu2 }
 0x454   :  { %6798 = vmatmul.msk.f32.gmra.mxu3 %vm456_vm1, %v1463_v27  ;;  %v6861_v27 = vld [vmem:[%s11669_s4 + $0xd0] sm:$0xff] }
 0x455   :  { %1936 = vmatpush.msra.mxu3 %v6861_v27  ;;  %v9191_v27 = vld [vmem:[%s11666_s1 + $0x208] sm:$0xff] }
 0x457   :  { %v9154_v55 = vpop.f32.mrf.mxu1  ;;  %1937 = vmatpush.msra.mxu3 %v6860_v61 }
 0x458   :  { %11705 = vst [vmem:[#allocation36_spill] sm:$0xff] %v9154_v55 }
 0x459   :  { %1938 = vmatpush.msra.mxu3 %v6859_v6  ;;  %v9206_v6 = vld [vmem:[%s11666_s1 + $0x210] sm:$0xff] }
 0x45a   :  { %6826 = vmatmul.msk.f32.gmra.mxu1 %vm532_vm3, %v9159_v45 }
 0x45b   :  { %v1466_v41 = vpop.f32.mrf.mxu2 }
 0x45c   :  { %6799 = vmatmul.msk.f32.gmra.mxu3 %vm456_vm1, %v1466_v41 }
 0x45f   :  { %v9170_v55 = vpop.f32.mrf.mxu1 }
 0x460   :  { %11706 = vst [vmem:[#allocation37_spill] sm:$0xff] %v9170_v55 }
 0x462   :  { %6827 = vmatmul.msk.f32.gmra.mxu1 %vm532_vm3, %v9175_v32 }
 0x463   :  { %v1469_v41 = vpop.f32.mrf.mxu2 }
 0x464   :  { %6800 = vmatmul.msk.f32.gmra.mxu3 %vm456_vm1, %v1469_v41  ;;  %v1846_v41 = vpop.f32.mrf.mxu0  ;;  %6984 = vmatmul.msk.f32.gmra.mxu0 %vm532_vm3, %v9034_v22 }
 0x467   :  { %v9186_v55 = vpop.f32.mrf.mxu1 }
 0x46a   :  { %6890 = vmatmul.msk.f32.vlgmr.msrb.gmra.mxu1 %vm532_vm3, %v9191_v27 }
 0x46b   :  { %7013 = vmatpush.msk.msrb.mxu1 %vm572_vm2, %v9017_v44  ;;  %v9223_v44 = vld [vmem:[%s11666_s1 + $0x218] sm:$0xff] }
 0x46c   :  { %6863 = vmatmul.msk.f32.vlgmr.msra.gmra.mxu3 %vm456_vm1, %v8665_v34 }
 0x46d   :  { %2725 = vmatpush.msrb.mxu1 %v9022_v4  ;;  %v1849_v4 = vpop.f32.mrf.mxu0  ;;  %6985 = vmatmul.msk.f32.gmra.mxu0 %vm532_vm3, %v9054_v46 }
 0x46f   :  { %2726 = vmatpush.msrb.mxu1 %v9025_v19  ;;  %v9201_v61 = vpop.f32.mrf.mxu1  ;;  %v9237_v19 = vld [vmem:[%s11666_s1 + $0x220] sm:$0xff] }
 0x471   :  { %2727 = vmatpush.msrb.mxu1 %v9028_v21  ;;  %v918_v21 = vadd.f32 %v8845_v17, %v8718_v16 }
 0x472   :  { %6891 = vmatmul.msk.f32.gmra.mxu1 %vm532_vm3, %v9206_v6 }
 0x473   :  { %2728 = vmatpush.msrb.mxu1 %v9038_v2 }
 0x474   :  { %6864 = vmatmul.msk.f32.gmra.mxu3 %vm456_vm1, %v8676_v39 }
 0x475   :  { %2729 = vmatpush.msrb.mxu1 %v9042_v38 }
 0x477   :  { %2730 = vmatpush.msrb.mxu1 %v9045_v13  ;;  %v9218_v34 = vpop.f32.mrf.mxu1 }
 0x479   :  { %2731 = vmatpush.msrb.mxu1 %v9048_v0  ;;  %v1852_v0 = vpop.f32.mrf.mxu0  ;;  %6986 = vmatmul.msk.f32.gmra.mxu0 %vm532_vm3, %v9076_v8 }
 0x47a   :  { %6892 = vmatmul.msk.f32.gmra.mxu1 %vm532_vm3, %v9223_v44 }
 0x47b   :  { %2732 = vmatpush.msrb.mxu1 %v9058_v35 }
 0x47c   :  { %6865 = vmatmul.msk.f32.gmra.mxu3 %vm456_vm1, %v1846_v41 }
 0x47d   :  { %2733 = vmatpush.msrb.mxu1 %v9064_v42 }
 0x47f   :  { %2734 = vmatpush.msrb.mxu1 %v9067_v3  ;;  %v1671_v39 = vpop.f32.mrf.mxu1  ;;  %v1112_v3 = vadd.f32 %v8941_v11, %v918_v21  ;;  %v9267_v11 = vld [vmem:[%s11666_s1 + $0x230] sm:$0xff] }
 0x480   :  { %6832 = vmatmul.msk.f32.vlgmr.msrb.gmra.mxu2 %vm456_vm1, %v1671_v39  ;;  %v9289_v39 = vld [vmem:[%s11666_s1 + $0x240] sm:$0xff] }
 0x481   :  { %2735 = vmatpush.msrb.mxu1 %v9070_v36  ;;  %v1334_v42 = vadd.f32 %v9062_v53, %v1112_v3  ;;  %v9254_v36 = vld [vmem:[%s11666_s1 + $0x228] sm:$0xff]  ;;  %v1855_v16 = vpop.f32.mrf.mxu0  ;;  %6987 = vmatmul.msk.f32.gmra.mxu0 %vm532_vm3, %v9089_v26 }
 0x482   :  { %6893 = vmatmul.msk.f32.gmra.mxu1 %vm532_vm3, %v9237_v19  ;;  %v9300_v3 = vld [vmem:[%s11666_s1 + $0x248] sm:$0xff] }
 0x483   :  { %2736 = vmatpush.msrb.mxu1 %v9080_v9  ;;  %v9278_v9 = vld [vmem:[%s11666_s1 + $0x238] sm:$0xff] }
 0x484   :  { %6866 = vmatmul.msk.f32.gmra.mxu3 %vm456_vm1, %v1849_v4 }
 0x487   :  { %v1533_v2 = vpop.f32.mrf.mxu3  ;;  %v1674_v38 = vpop.f32.mrf.mxu1 }
 0x488   :  { %v9256_v13 = vadd.f32 %v1533_v2, %v1334_v42  ;;  %6833 = vmatmul.msk.f32.gmra.mxu2 %vm456_vm1, %v1674_v38  ;;  %v9311_v38 = vld [vmem:[%s11666_s1 + $0x250] sm:$0xff] }
 0x489   :  { %v1858_v53 = vpop.f32.mrf.mxu0  ;;  %6988 = vmatmul.msk.f32.gmra.mxu0 %vm532_vm3, %v9099_v37 }
 0x48a   :  { %6894 = vmatmul.msk.f32.gmra.mxu1 %vm532_vm3, %v9254_v36 }
 0x48c   :  { %6867 = vmatmul.msk.f32.gmra.mxu3 %vm456_vm1, %v1852_v0 }
 0x48f   :  { %v1677_v17 = vpop.f32.mrf.mxu1 }
 0x490   :  { %6834 = vmatmul.msk.f32.gmra.mxu2 %vm456_vm1, %v1677_v17 }
 0x491   :  { %v1861_v41 = vpop.f32.mrf.mxu0  ;;  %6989 = vmatmul.msk.f32.gmra.mxu0 %vm532_vm3, %v9109_v20 }
 0x492   :  { %6895 = vmatmul.msk.f32.gmra.mxu1 %vm532_vm3, %v9267_v11 }
 0x494   :  { %6868 = vmatmul.msk.f32.gmra.mxu3 %vm456_vm1, %v1855_v16 }
 0x497   :  { %v1680_v35 = vpop.f32.mrf.mxu1 }
 0x498   :  { %6835 = vmatmul.msk.f32.gmra.mxu2 %vm456_vm1, %v1680_v35 }
 0x499   :  { %v1864_v0 = vpop.f32.mrf.mxu0  ;;  %6990 = vmatmul.msk.f32.gmra.mxu0 %vm532_vm3, %v9119_v12 }
 0x49a   :  { %6896 = vmatmul.msk.f32.gmra.mxu1 %vm532_vm3, %v9278_v9 }
 0x49c   :  { %6869 = vmatmul.msk.f32.gmra.mxu3 %vm456_vm1, %v1858_v53  ;;  %v9322_v53 = vld [vmem:[%s11666_s1 + $0x258] sm:$0xff] }
 0x49f   :  { %v1683_v4 = vpop.f32.mrf.mxu1 }
 0x4a0   :  { %6836 = vmatmul.msk.f32.gmra.mxu2 %vm456_vm1, %v1683_v4  ;;  %v9333_v4 = vld [vmem:[%s11666_s1 + $0x260] sm:$0xff] }
 0x4a1   :  { %v1867_v42 = vpop.f32.mrf.mxu0  ;;  %6991 = vmatmul.msk.f32.gmra.mxu0 %vm532_vm3, %v9129_v15 }
 0x4a2   :  { %6897 = vmatmul.msk.f32.gmra.mxu1 %vm532_vm3, %v9289_v39 }
 0x4a4   :  { %6870 = vmatmul.msk.f32.gmra.mxu3 %vm456_vm1, %v1861_v41 }
 0x4a7   :  { %v1686_v21 = vpop.f32.mrf.mxu1 }
 0x4a8   :  { %6837 = vmatmul.msk.f32.gmra.mxu2 %vm456_vm1, %v1686_v21  ;;  %v9342_v21 = vld [vmem:[%s11666_s1 + $0x268] sm:$0x3] }
 0x4a9   :  { %v1870_v16 = vpop.f32.mrf.mxu0  ;;  %6992 = vmatmul.msk.f32.gmra.mxu0 %vm532_vm3, %v9139_v62 }
 0x4aa   :  { %6898 = vmatmul.msk.f32.gmra.mxu1 %vm532_vm3, %v9300_v3 }
 0x4ac   :  { %6871 = vmatmul.msk.f32.gmra.mxu3 %vm456_vm1, %v1864_v0 }
 0x4af   :  { %v1689_v2 = vpop.f32.mrf.mxu1 }
 0x4b0   :  { %6838 = vmatmul.msk.f32.gmra.mxu2 %vm456_vm1, %v1689_v2  ;;  %v6905_v2 = vld [vmem:[%s11669_s4 + $0xf0] sm:$0xff] }
 0x4b1   :  { %v1873_v35 = vpop.f32.mrf.mxu0  ;;  %6993 = vmatmul.msk.f32.gmra.mxu0 %vm532_vm3, %v9149_v7 }
 0x4b2   :  { %6899 = vmatmul.msk.f32.gmra.mxu1 %vm532_vm3, %v9311_v38 }
 0x4b4   :  { %6872 = vmatmul.msk.f32.gmra.mxu3 %vm456_vm1, %v1867_v42  ;;  %v6906_v42 = vld [vmem:[%s11669_s4 + $0xf8] sm:$0xff] }
 0x4b5   :  { %2157 = vmatpush.msrb.mxu2 %v6906_v42 }
 0x4b7   :  { %v1692_v17 = vpop.f32.mrf.mxu1  ;;  %2158 = vmatpush.msrb.mxu2 %v6905_v2  ;;  %v6968_v2 = vld [vmem:[%s11669_s4 + $0x138] sm:$0xff] }
 0x4b8   :  { %6839 = vmatmul.msk.f32.gmra.mxu2 %vm456_vm1, %v1692_v17  ;;  %v6903_v17 = vld [vmem:[%s11669_s4 + $0xe0] sm:$0xff] }
 0x4ba   :  { %6900 = vmatmul.msk.f32.gmra.mxu1 %vm532_vm3, %v9322_v53 }
 0x4bc   :  { %6873 = vmatmul.msk.f32.gmra.mxu3 %vm456_vm1, %v1870_v16  ;;  %v6904_v16 = vld [vmem:[%s11669_s4 + $0xe8] sm:$0xff] }
 0x4bd   :  { %2159 = vmatpush.msrb.mxu2 %v6904_v16 }
 0x4bf   :  { %v1695_v41 = vpop.f32.mrf.mxu1  ;;  %2160 = vmatpush.msrb.mxu2 %v6903_v17 }
 0x4c0   :  { %6840 = vmatmul.msk.f32.gmra.mxu2 %vm456_vm1, %v1695_v41 }
 0x4c2   :  { %6901 = vmatmul.msk.f32.gmra.mxu1 %vm532_vm3, %v9333_v4 }
 0x4c4   :  { %6874 = vmatmul.msk.f32.gmra.mxu3 %vm456_vm1, %v1873_v35 }
 0x4c7   :  { %v1698_v0 = vpop.f32.mrf.mxu1 }
 0x4c8   :  { %6841 = vmatmul.msk.f32.gmra.mxu2 %vm456_vm1, %v1698_v0  ;;  %v1536_v0 = vpop.f32.mrf.mxu3 }
 0x4ca   :  { %6902 = vmatmul.msk.f32.gmra.mxu1 %vm532_vm3, %v9342_v21 }
 0x4cf   :  { %v1701_v35 = vpop.f32.mrf.mxu1 }
 0x4d0   :  { %6842 = vmatmul.msk.f32.gmra.mxu2 %vm456_vm1, %v1701_v35  ;;  %v9389_v42 = vpop.f32.mrf.mxu3 }
 0x4d2   :  { %6952 = vmatmul.msk.f32.vlgmr.msra.gmra.mxu1 %vm532_vm3, %v9013_v1 }
 0x4d3   :  { %7101 = vmatpush.msk.msra.mxu1 %vm572_vm2, %v8761_v50 }
 0x4d5   :  { %3169 = vmatpush.msra.mxu1 %v8765_v57 }
 0x4d7   :  { %3170 = vmatpush.msra.mxu1 %v8769_v31  ;;  %v1704_v41 = vpop.f32.mrf.mxu1 }
 0x4d8   :  { %6843 = vmatmul.msk.f32.gmra.mxu2 %vm456_vm1, %v1704_v41 }
 0x4d9   :  { %3171 = vmatpush.msra.mxu1 %v8775_v51 }
 0x4da   :  { %6953 = vmatmul.msk.f32.gmra.mxu1 %vm532_vm3, %v9034_v22 }
 0x4db   :  { %3172 = vmatpush.msra.mxu1 %v8781_v56 }
 0x4dd   :  { %3173 = vmatpush.msra.mxu1 %v8784_v58 }
 0x4df   :  { %3174 = vmatpush.msra.mxu1 %v8788_v59  ;;  %v1707_v1 = vpop.f32.mrf.mxu1 }
 0x4e0   :  { %6844 = vmatmul.msk.f32.gmra.mxu2 %vm456_vm1, %v1707_v1 }
 0x4e1   :  { %3175 = vmatpush.msra.mxu1 %v8791_v5 }
 0x4e2   :  { %6954 = vmatmul.msk.f32.gmra.mxu1 %vm532_vm3, %v9054_v46  ;;  %v6937_v46 = vld [vmem:[%s11669_s4 + $0x118] sm:$0xff] }
 0x4e3   :  { %3176 = vmatpush.msra.mxu1 %v8796_v18  ;;  %2326 = vmatpush.msrb.mxu3 %v6937_v46 }
 0x4e5   :  { %3177 = vmatpush.msra.mxu1 %v8799_v23 }
 0x4e7   :  { %3178 = vmatpush.msra.mxu1 %v8803_v28  ;;  %v2062_v22 = vpop.f32.mrf.mxu1 }
 0x4e8   :  { %6858 = vmatmul.msk.f32.vlgmr.msra.gmra.mxu2 %vm532_vm3, %v9175_v32 }
 0x4e9   :  { %3179 = vmatpush.msra.mxu1 %v8807_v63  ;;  %2495 = vmatpush.msra.mxu2 %v6968_v2 }
 0x4ea   :  { %6955 = vmatmul.msk.f32.gmra.mxu1 %vm532_vm3, %v9076_v8  ;;  %v9397_v8 = vpop.f32.mrf.mxu3 }
 0x4eb   :  { %3180 = vmatpush.msra.mxu1 %v8812_v14 }
 0x4ef   :  { %v2065_v16 = vpop.f32.mrf.mxu1 }
 0x4f0   :  { %6907 = vmatmul.msk.f32.vlgmr.msrb.gmra.mxu2 %vm456_vm1, %v2062_v22 }
 0x4f2   :  { %6956 = vmatmul.msk.f32.gmra.mxu1 %vm532_vm3, %v9089_v26  ;;  %v9403_v41 = vpop.f32.mrf.mxu3  ;;  %v921_v26 = vadd.f32 %v8852_v25, %v8732_v54 }
 0x4f4   :  { %v1113_v46 = vadd.f32 %v8947_v48, %v921_v26 }
 0x4f7   :  { %v2068_v17 = vpop.f32.mrf.mxu1 }
 0x4f8   :  { %6908 = vmatmul.msk.f32.gmra.mxu2 %vm456_vm1, %v2065_v16  ;;  %v1335_v16 = vadd.f32 %v9084_v24, %v1113_v46  ;;  %v6966_v46 = vld [vmem:[%s11669_s4 + $0x128] sm:$0xff] }
 0x4fa   :  { %6957 = vmatmul.msk.f32.gmra.mxu1 %vm532_vm3, %v9099_v37  ;;  %v6936_v37 = vld [vmem:[%s11669_s4 + $0x110] sm:$0xff]  ;;  %v1573_v54 = vadd.f32 %v1536_v0, %v1335_v16  ;;  %v9423_v25 = vpop.f32.mrf.mxu3 }
 0x4fb   :  { %2327 = vmatpush.msrb.mxu3 %v6936_v37 }
 0x4ff   :  { %v2071_v35 = vpop.f32.mrf.mxu1 }
 0x500   :  { %6909 = vmatmul.msk.f32.gmra.mxu2 %vm456_vm1, %v2068_v17 }
 0x502   :  { %6958 = vmatmul.msk.f32.gmra.mxu1 %vm532_vm3, %v9109_v20  ;;  %v6967_v20 = vld [vmem:[%s11669_s4 + $0x130] sm:$0xff] }
 0x503   :  { %v1771_v1 = vpop.f32.mrf.mxu2  ;;  %2496 = vmatpush.msra.mxu2 %v6967_v20 }
 0x504   :  { %v9410_v22 = vadd.f32 %v1771_v1, %v9256_v13 }
 0x505   :  { %2497 = vmatpush.msra.mxu2 %v6966_v46 }
 0x507   :  { %v2074_v2 = vpop.f32.mrf.mxu1 }
 0x508   :  { %6910 = vmatmul.msk.f32.gmra.mxu2 %vm456_vm1, %v2071_v35  ;;  %v9432_v35 = vpop.f32.mrf.mxu3 }
 0x50a   :  { %6959 = vmatmul.msk.f32.gmra.mxu1 %vm532_vm3, %v9119_v12 }
 0x50b   :  { %v1774_v48 = vpop.f32.mrf.mxu2 }
 0x50c   :  { %v9425_v13 = vadd.f32 %v1774_v48, %v1573_v54  ;;  %v6934_v48 = vld [vmem:[%s11669_s4 + $0x100] sm:$0xff] }
 0x50f   :  { %v2077_v17 = vpop.f32.mrf.mxu1 }
 0x510   :  { %6911 = vmatmul.msk.f32.gmra.mxu2 %vm456_vm1, %v2074_v2  ;;  %v9439_v0 = vpop.f32.mrf.mxu3 }
 0x512   :  { %6960 = vmatmul.msk.f32.gmra.mxu1 %vm532_vm3, %v9129_v15  ;;  %v6935_v15 = vld [vmem:[%s11669_s4 + $0x108] sm:$0xff] }
 0x513   :  { %v9430_v24 = vpop.f32.mrf.mxu2  ;;  %2328 = vmatpush.msrb.mxu3 %v6935_v15 }
 0x515   :  { %2329 = vmatpush.msrb.mxu3 %v6934_v48 }
 0x517   :  { %v2080_v1 = vpop.f32.mrf.mxu1 }
 0x518   :  { %6912 = vmatmul.msk.f32.gmra.mxu2 %vm456_vm1, %v2077_v17  ;;  %v9453_v2 = vpop.f32.mrf.mxu3 }
 0x51a   :  { %6961 = vmatmul.msk.f32.gmra.mxu1 %vm532_vm3, %v9139_v62 }
 0x51b   :  { %v9437_v12 = vpop.f32.mrf.mxu2 }
 0x51f   :  { %v2083_v26 = vpop.f32.mrf.mxu1 }
 0x520   :  { %6913 = vmatmul.msk.f32.gmra.mxu2 %vm456_vm1, %v2080_v1 }
 0x522   :  { %6962 = vmatmul.msk.f32.gmra.mxu1 %vm532_vm3, %v9149_v7  ;;  %v9462_v7 = vpop.f32.mrf.mxu3 }
 0x523   :  { %v9450_v62 = vpop.f32.mrf.mxu2 }
 0x527   :  { %v2086_v37 = vpop.f32.mrf.mxu1 }
 0x528   :  { %6914 = vmatmul.msk.f32.gmra.mxu2 %vm456_vm1, %v2083_v26  ;;  %v6965_v26 = vld [vmem:[%s11669_s4 + $0x120] sm:$0xff] }
 0x529   :  { %2498 = vmatpush.msra.mxu2 %v6965_v26 }
 0x52a   :  { %6963 = vmatmul.msk.f32.gmra.mxu1 %vm532_vm3, %v9159_v45  ;;  %v9479_v15 = vpop.f32.mrf.mxu3 }
 0x52b   :  { %v9457_v16 = vpop.f32.mrf.mxu2 }
 0x52f   :  { %v2089_v20 = vpop.f32.mrf.mxu1 }
 0x530   :  { %6915 = vmatmul.msk.f32.gmra.mxu2 %vm456_vm1, %v2086_v37 }
 0x532   :  { %6964 = vmatmul.msk.f32.gmra.mxu1 %vm532_vm3, %v9175_v32  ;;  %v9491_v46 = vpop.f32.mrf.mxu3 }
 0x533   :  { %v9464_v54 = vpop.f32.mrf.mxu2 }
 0x537   :  { %v2092_v17 = vpop.f32.mrf.mxu1 }
 0x538   :  { %6916 = vmatmul.msk.f32.gmra.mxu2 %vm456_vm1, %v2089_v20  ;;  %v6998_v20 = vld [vmem:[%s11669_s4 + $0x150] sm:$0xff] }
 0x53a   :  { %7014 = vmatmul.msk.f32.vlgmr.msrb.gmra.mxu1 %vm532_vm3, %v9191_v27 }
 0x53b   :  { %7176 = vmatpush.msk.msrb.mxu1 %vm572_vm2, %v8761_v50  ;;  %v9474_v1 = vpop.f32.mrf.mxu2 }
 0x53d   :  { %3560 = vmatpush.msrb.mxu1 %v8765_v57 }
 0x53f   :  { %3561 = vmatpush.msrb.mxu1 %v8769_v31  ;;  %v2095_v27 = vpop.f32.mrf.mxu1 }
 0x540   :  { %6917 = vmatmul.msk.f32.gmra.mxu2 %vm456_vm1, %v2092_v17 }
 0x541   :  { %3562 = vmatpush.msrb.mxu1 %v8775_v51  ;;  %v9504_v51 = vpop.f32.mrf.mxu3 }
 0x542   :  { %7015 = vmatmul.msk.f32.gmra.mxu1 %vm532_vm3, %v9206_v6 }
 0x543   :  { %3563 = vmatpush.msrb.mxu1 %v8781_v56  ;;  %v9488_v50 = vpop.f32.mrf.mxu2 }
 0x545   :  { %3564 = vmatpush.msrb.mxu1 %v8784_v58  ;;  %v2231_v58 = vpop.f32.mrf.mxu0  ;;  %6994 = vmatmul.msk.f32.gmra.mxu0 %vm532_vm3, %v9159_v45 }
 0x547   :  { %3565 = vmatpush.msrb.mxu1 %v8788_v59  ;;  %v2098_v31 = vpop.f32.mrf.mxu1  ;;  %v6999_v59 = vld [vmem:[%s11669_s4 + $0x158] sm:$0xff] }
 0x548   :  { %6918 = vmatmul.msk.f32.gmra.mxu2 %vm456_vm1, %v2095_v27  ;;  %2664 = vmatpush.msra.mxu3 %v6999_v59  ;;  %v924_v59 = vadd.f32 %v8859_v52, %v8740_v47 }
 0x549   :  { %3566 = vmatpush.msrb.mxu1 %v8791_v5 }
 0x54a   :  { %7016 = vmatmul.msk.f32.gmra.mxu1 %vm532_vm3, %v9223_v44  ;;  %2665 = vmatpush.msra.mxu3 %v6998_v20 }
 0x54b   :  { %3567 = vmatpush.msrb.mxu1 %v8796_v18  ;;  %v9499_v57 = vpop.f32.mrf.mxu2  ;;  %v7030_v18 = vld [vmem:[%s11669_s4 + $0x178] sm:$0xff] }
 0x54c   :  { %2833 = vmatpush.msrb.mxu2 %v7030_v18  ;;  %v1114_v18 = vadd.f32 %v8952_v49, %v924_v59  ;;  %v927_v49 = vadd.f32 %v8866_v43, %v8745_v60  ;;  %v11710_v59 = vld [vmem:[#allocation15_spill] sm:$0xff] }
 0x54d   :  { %3568 = vmatpush.msrb.mxu1 %v8799_v23  ;;  %v1940_v23 = vpop.f32.mrf.mxu3 }
 0x54f   :  { %3569 = vmatpush.msrb.mxu1 %v8803_v28  ;;  %v2400_v5 = vpop.f32.mrf.mxu1 }
 0x550   :  { %6919 = vmatmul.msk.f32.gmra.mxu2 %vm456_vm1, %v2098_v31 }
 0x551   :  { %3570 = vmatpush.msrb.mxu1 %v8807_v63  ;;  %v2234_v63 = vpop.f32.mrf.mxu0  ;;  %6995 = vmatmul.msk.f32.gmra.mxu0 %vm532_vm3, %v9175_v32 }
 0x552   :  { %7017 = vmatmul.msk.f32.gmra.mxu1 %vm532_vm3, %v9237_v19 }
 0x553   :  { %3571 = vmatpush.msrb.mxu1 %v8812_v14  ;;  %v9510_v56 = vpop.f32.mrf.mxu2 }
 0x555   :  { %v1943_v45 = vpop.f32.mrf.mxu3 }
 0x557   :  { %v2403_v14 = vpop.f32.mrf.mxu1 }
 0x558   :  { %6969 = vmatmul.msk.f32.vlgmr.msra.gmra.mxu2 %vm456_vm1, %v2400_v5 }
 0x559   :  { %v2237_v44 = vpop.f32.mrf.mxu0 }
 0x55a   :  { %7018 = vmatmul.msk.f32.gmra.mxu1 %vm532_vm3, %v9254_v36 }
 0x55b   :  { %v9523_v28 = vpop.f32.mrf.mxu2 }
 0x55d   :  { %v1946_v48 = vpop.f32.mrf.mxu3 }
 0x55f   :  { %v2406_v19 = vpop.f32.mrf.mxu1 }
 0x560   :  { %6970 = vmatmul.msk.f32.gmra.mxu2 %vm456_vm1, %v2403_v14 }
 0x561   :  { %v2240_v37 = vpop.f32.mrf.mxu0 }
 0x562   :  { %7019 = vmatmul.msk.f32.gmra.mxu1 %vm532_vm3, %v9267_v11  ;;  %v7029_v11 = vld [vmem:[%s11669_s4 + $0x170] sm:$0xff] }
 0x563   :  { %v9530_v6 = vpop.f32.mrf.mxu2  ;;  %2834 = vmatpush.msrb.mxu2 %v7029_v11 }
 0x565   :  { %v1949_v5 = vpop.f32.mrf.mxu3 }
 0x567   :  { %v2409_v32 = vpop.f32.mrf.mxu1 }
 0x568   :  { %6971 = vmatmul.msk.f32.gmra.mxu2 %vm456_vm1, %v2406_v19 }
 0x569   :  { %v2243_v27 = vpop.f32.mrf.mxu0 }
 0x56a   :  { %7020 = vmatmul.msk.f32.gmra.mxu1 %vm532_vm3, %v9278_v9  ;;  %v1979_v9 = vadd.f32 %v1940_v23, %v9410_v22  ;;  %v1336_v22 = vadd.f32 %v9094_v30, %v1114_v18  ;;  %v1980_v23 = vadd.f32 %v1943_v45, %v9425_v13  ;;  %v1115_v30 = vadd.f32 %v8957_v33, %v927_v49  ;;  %v6997_v33 = vld [vmem:[%s11669_s4 + $0x148] sm:$0xff] }
 0x56b   :  { %v1876_v36 = vpop.f32.mrf.mxu2  ;;  %2666 = vmatpush.msra.mxu3 %v6997_v33 }
 0x56c   :  { %6875 = vmatmul.msk.f32.gmra.mxu3 %vm456_vm1, %v1876_v36 }
 0x56d   :  { %v1952_v13 = vpop.f32.mrf.mxu3 }
 0x56f   :  { %v2412_v31 = vpop.f32.mrf.mxu1 }
 0x570   :  { %6972 = vmatmul.msk.f32.gmra.mxu2 %vm456_vm1, %v2409_v32 }
 0x571   :  { %v2246_v47 = vpop.f32.mrf.mxu0 }
 0x572   :  { %7021 = vmatmul.msk.f32.gmra.mxu1 %vm532_vm3, %v9289_v39 }
 0x573   :  { %v2162_v17 = vpop.f32.mrf.mxu2 }
 0x574   :  { %v9546_v26 = vadd.f32 %v2162_v17, %v1979_v9  ;;  %6938 = vmatmul.msk.f32.vlgmr.msrb.gmra.mxu3 %vm456_vm1, %v2231_v58  ;;  %v1574_v58 = vadd.f32 %v9389_v42, %v1336_v22 }
 0x576   :  { %v1812_v19 = vadd.f32 %v9430_v24, %v1574_v58  ;;  %v11707_v24 = vld [vmem:[#allocation23_spill] sm:$0xff] }
 0x577   :  { %v2415_v52 = vpop.f32.mrf.mxu1 }
 0x578   :  { %6973 = vmatmul.msk.f32.gmra.mxu2 %vm456_vm1, %v2412_v31  ;;  %v1981_v45 = vadd.f32 %v1946_v48, %v1812_v19  ;;  %v1955_v48 = vpop.f32.mrf.mxu3 }
 0x579   :  { %v2249_v60 = vpop.f32.mrf.mxu0 }
 0x57a   :  { %7022 = vmatmul.msk.f32.gmra.mxu1 %vm532_vm3, %v9300_v3  ;;  %v1337_v3 = vadd.f32 %v9104_v10, %v1115_v30  ;;  %v7028_v10 = vld [vmem:[%s11669_s4 + $0x168] sm:$0xff]  ;;  %v11713_v30 = vld [vmem:[#allocation8_spill] sm:$0xff] }
 0x57b   :  { %v2165_v39 = vpop.f32.mrf.mxu2  ;;  %2835 = vmatpush.msrb.mxu2 %v7028_v10 }
 0x57c   :  { %v9558_v14 = vadd.f32 %v2165_v39, %v1980_v23  ;;  %6939 = vmatmul.msk.f32.gmra.mxu3 %vm456_vm1, %v2234_v63  ;;  %v1575_v63 = vadd.f32 %v9397_v8, %v1337_v3  ;;  %v11711_v23 = vld [vmem:[#allocation24_spill] sm:$0xff] }
 0x57d   :  { %v11714_v3 = vld [vmem:[#allocation16_spill] sm:$0xff] }
 0x57e   :  { %v1813_v8 = vadd.f32 %v9437_v12, %v1575_v63  ;;  %v11709_v12 = vld [vmem:[#allocation7_spill] sm:$0xff] }
 0x57f   :  { %v2418_v43 = vpop.f32.mrf.mxu1  ;;  %v933_v18 = vadd.f32 %v11710_v59, %v11709_v12 }
 0x580   :  { %6974 = vmatmul.msk.f32.gmra.mxu2 %vm456_vm1, %v2415_v52  ;;  %v1982_v11 = vadd.f32 %v1949_v5, %v1813_v8  ;;  %v1958_v19 = vpop.f32.mrf.mxu3  ;;  %v6996_v8 = vld [vmem:[%s11669_s4 + $0x140] sm:$0xff] }
 0x581   :  { %v1117_v5 = vadd.f32 %v11711_v23, %v933_v18  ;;  %2667 = vmatpush.msra.mxu3 %v6996_v8  ;;  %v9643_v23 = vld [vmem:[%s11666_s1 + $0x2d8] sm:$0xff] }
 0x582   :  { %7023 = vmatmul.msk.f32.gmra.mxu1 %vm532_vm3, %v9311_v38  ;;  %v930_v38 = vadd.f32 %v8885_v40, %v8750_v29  ;;  %v2252_v29 = vpop.f32.mrf.mxu0 }
 0x583   :  { %v2168_v42 = vpop.f32.mrf.mxu2 }
 0x584   :  { %v9570_v36 = vadd.f32 %v2168_v42, %v1981_v45  ;;  %6940 = vmatmul.msk.f32.gmra.mxu3 %vm456_vm1, %v2237_v44  ;;  %v1116_v32 = vadd.f32 %v11707_v24, %v930_v38  ;;  %v11708_v44 = vld [vmem:[#allocation32_spill] sm:$0xff]  ;;  %v936_v45 = vadd.f32 %v11714_v3, %v11713_v30  ;;  %v11717_v24 = vld [vmem:[#allocation9_spill] sm:$0xff] }
 0x586   :  { %v1338_v20 = vadd.f32 %v11708_v44, %v1116_v32  ;;  %v11718_v32 = vld [vmem:[#allocation17_spill] sm:$0xff] }
 0x587   :  { %v2421_v40 = vpop.f32.mrf.mxu1  ;;  %v939_v44 = vadd.f32 %v11718_v32, %v11717_v24 }
 0x588   :  { %6975 = vmatmul.msk.f32.gmra.mxu2 %vm456_vm1, %v2418_v43  ;;  %v1576_v17 = vadd.f32 %v9403_v41, %v1338_v20  ;;  %v1961_v20 = vpop.f32.mrf.mxu3 }
 0x58a   :  { %7024 = vmatmul.msk.f32.gmra.mxu1 %vm532_vm3, %v9322_v53  ;;  %v1814_v22 = vadd.f32 %v9450_v62, %v1576_v17  ;;  %v11712_v53 = vld [vmem:[#allocation33_spill] sm:$0xff]  ;;  %v9603_v49 = vpop.f32.mrf.mxu0 }
 0x58b   :  { %v2171_v9 = vpop.f32.mrf.mxu2  ;;  %v1339_v39 = vadd.f32 %v11712_v53, %v1117_v5 }
 0x58c   :  { %v9588_v31 = vadd.f32 %v2171_v9, %v1982_v11  ;;  %6941 = vmatmul.msk.f32.gmra.mxu3 %vm456_vm1, %v2240_v37  ;;  %v1983_v58 = vadd.f32 %v1952_v13, %v1814_v22  ;;  %v11715_v13 = vld [vmem:[#allocation25_spill] sm:$0xff]  ;;  %v11719_v11 = vld [vmem:[#allocation26_spill] sm:$0xff] }
 0x58d   :  { %v1577_v37 = vadd.f32 %v9423_v25, %v1339_v39  ;;  %v1118_v63 = vadd.f32 %v11715_v13, %v936_v45  ;;  %v7044_v22 = vld [vmem:[%s11666_s1 + $0x270] sm:$0xff]  ;;  %v7045_v13 = vld [vmem:[%s11666_s1 + $0x278] sm:$0xff] }
 0x58e   :  { %7058 = vmatmul.msk.f32.vlgmr.msra.gmra.mxu0 %vm532_vm3, %v7044_v22  ;;  %v11723_v39 = vld [vmem:[#allocation27_spill] sm:$0xff] }
 0x58f   :  { %v2424_v62 = vpop.f32.mrf.mxu1  ;;  %v1815_v42 = vadd.f32 %v9457_v16, %v1577_v37  ;;  %v11724_v37 = vld [vmem:[#allocation36_spill] sm:$0xff] }
 0x590   :  { %6976 = vmatmul.msk.f32.gmra.mxu2 %vm456_vm1, %v2421_v40 }
 0x591   :  { %v1984_v25 = vadd.f32 %v1955_v48, %v1815_v42  ;;  %v11720_v48 = vld [vmem:[#allocation35_spill] sm:$0xff] }
 0x592   :  { %7025 = vmatmul.msk.f32.gmra.mxu1 %vm532_vm3, %v9333_v4  ;;  %v11716_v4 = vld [vmem:[#allocation34_spill] sm:$0xff]  ;;  %v9617_v38 = vpop.f32.mrf.mxu0 }
 0x593   :  { %v2174_v41 = vpop.f32.mrf.mxu2  ;;  %v1340_v43 = vadd.f32 %v11716_v4, %v1118_v63  ;;  %v9666_v63 = vld [vmem:[%s11666_s1 + $0x2e0] sm:$0xff]  ;;  %v11725_v4 = vld [vmem:[#allocation11_spill] sm:$0xff] }
 0x594   :  { %v9600_v52 = vadd.f32 %v2174_v41, %v1983_v58  ;;  %6942 = vmatmul.msk.f32.gmra.mxu3 %vm456_vm1, %v2243_v27  ;;  %v1964_v41 = vpop.f32.mrf.mxu3 }
 0x595   :  { %v1578_v33 = vadd.f32 %v9432_v35, %v1340_v43  ;;  %v1119_v35 = vadd.f32 %v11719_v11, %v939_v44  ;;  %v7046_v11 = vld [vmem:[%s11666_s1 + $0x280] sm:$0xff] }
 0x596   :  { %7059 = vmatmul.msk.f32.gmra.mxu0 %vm532_vm3, %v7045_v13 }
 0x597   :  { %v2427_v16 = vpop.f32.mrf.mxu1 }
 0x598   :  { %6977 = vmatmul.msk.f32.gmra.mxu2 %vm456_vm1, %v2424_v62 }
 0x59a   :  { %7026 = vmatmul.msk.f32.gmra.mxu1 %vm532_vm3, %v9342_v21  ;;  %v1816_v21 = vadd.f32 %v9464_v54, %v1578_v33  ;;  %v9632_v59 = vpop.f32.mrf.mxu0  ;;  %v7027_v54 = vld [vmem:[%s11669_s4 + $0x160] sm:$0xff] }
 0x59b   :  { %v2177_v27 = vpop.f32.mrf.mxu2  ;;  %2836 = vmatpush.msrb.mxu2 %v7027_v54  ;;  %v11728_v33 = vld [vmem:[#allocation37_spill] sm:$0xff] }
 0x59c   :  { %v9614_v10 = vadd.f32 %v2177_v27, %v1984_v25  ;;  %6943 = vmatmul.msk.f32.gmra.mxu3 %vm456_vm1, %v2246_v47  ;;  %v1341_v47 = vadd.f32 %v11720_v48, %v1119_v35  ;;  %v1985_v9 = vadd.f32 %v1958_v19, %v1816_v21  ;;  %v1967_v24 = vpop.f32.mrf.mxu3  ;;  %v9688_v35 = vld [vmem:[%s11666_s1 + $0x2e8] sm:$0xff]  ;;  %v11729_v48 = vld [vmem:[#allocation12_spill] sm:$0xff] }
 0x59e   :  { %v1579_v40 = vadd.f32 %v9439_v0, %v1341_v47  ;;  %v11721_v0 = vld [vmem:[#allocation10_spill] sm:$0xff]  ;;  %7060 = vmatmul.msk.f32.gmra.mxu0 %vm532_vm3, %v7046_v11 }
 0x59f   :  { %v2430_v18 = vpop.f32.mrf.mxu1  ;;  %v9773_v11 = vld [vmem:[%s11666_s1 + $0x308] sm:$0xff] }
 0x5a0   :  { %6978 = vmatmul.msk.f32.gmra.mxu2 %vm456_vm1, %v2427_v16  ;;  %v1817_v53 = vadd.f32 %v9474_v1, %v1579_v40 }
 0x5a2   :  { %7102 = vmatmul.msk.f32.vlgmr.msra.gmra.mxu1 %vm532_vm3, %v9643_v23  ;;  %v1986_v19 = vadd.f32 %v1961_v20, %v1817_v53  ;;  %v9658_v42 = vpop.f32.mrf.mxu0  ;;  %v7047_v53 = vld [vmem:[%s11666_s1 + $0x288] sm:$0xff] }
 0x5a3   :  { %v2180_v17 = vpop.f32.mrf.mxu2 }
 0x5a4   :  { %v9629_v12 = vadd.f32 %v2180_v17, %v1985_v9  ;;  %6944 = vmatmul.msk.f32.gmra.mxu3 %vm456_vm1, %v2249_v60  ;;  %v11722_v60 = vld [vmem:[#allocation18_spill] sm:$0xff] }
 0x5a5   :  { %v942_v5 = vadd.f32 %v11722_v60, %v11721_v0 }
 0x5a6   :  { %7061 = vmatmul.msk.f32.gmra.mxu0 %vm532_vm3, %v7047_v53 }
 0x5a7   :  { %v1120_v58 = vadd.f32 %v11723_v39, %v942_v5  ;;  %v2433_v1 = vpop.f32.mrf.mxu1  ;;  %v11732_v39 = vld [vmem:[#allocation13_spill] sm:$0xff] }
 0x5a8   :  { %6979 = vmatmul.msk.f32.gmra.mxu2 %vm456_vm1, %v2430_v18 }
 0x5a9   :  { %v1342_v62 = vadd.f32 %v11724_v37, %v1120_v58  ;;  %v11733_v58 = vld [vmem:[#allocation21_spill] sm:$0xff] }
 0x5aa   :  { %7103 = vmatmul.msk.f32.gmra.mxu1 %vm532_vm3, %v9666_v63 }
 0x5ab   :  { %v2183_v30 = vpop.f32.mrf.mxu2  ;;  %v1580_v3 = vadd.f32 %v9453_v2, %v1342_v62  ;;  %v11726_v2 = vld [vmem:[#allocation19_spill] sm:$0xff]  ;;  %v11734_v62 = vld [vmem:[#allocation30_spill] sm:$0xff] }
 0x5ac   :  { %v9655_v45 = vadd.f32 %v2183_v30, %v1986_v19  ;;  %6945 = vmatmul.msk.f32.gmra.mxu3 %vm456_vm1, %v2252_v29  ;;  %v945_v43 = vadd.f32 %v11726_v2, %v11725_v4  ;;  %v11727_v29 = vld [vmem:[#allocation28_spill] sm:$0xff] }
 0x5ad   :  { %v1818_v25 = vadd.f32 %v9488_v50, %v1580_v3  ;;  %v2267_v50 = vpop.f32.mrf.mxu0 }
 0x5ae   :  { %v1121_v27 = vadd.f32 %v11727_v29, %v945_v43  ;;  %v7048_v43 = vld [vmem:[%s11666_s1 + $0x290] sm:$0xff] }
 0x5af   :  { %v1987_v8 = vadd.f32 %v1964_v41, %v1818_v25  ;;  %v2436_v20 = vpop.f32.mrf.mxu1  ;;  %v951_v41 = vadd.f32 %v11733_v58, %v11732_v39  ;;  %v9738_v25 = vld [vmem:[%s11666_s1 + $0x2f8] sm:$0xff]  ;;  %7062 = vmatmul.msk.f32.gmra.mxu0 %vm532_vm3, %v7048_v43  ;;  %v7054_v43 = vld [vmem:[%s11666_s1 + $0x2c0] sm:$0xff] }
 0x5b0   :  { %6980 = vmatmul.msk.f32.gmra.mxu2 %vm456_vm1, %v2433_v1  ;;  %v1343_v16 = vadd.f32 %v11728_v33, %v1121_v27 }
 0x5b1   :  { %v1123_v19 = vadd.f32 %v11734_v62, %v951_v41  ;;  %v7053_v62 = vld [vmem:[%s11666_s1 + $0x2b8] sm:$0xff] }
 0x5b2   :  { %v1581_v44 = vadd.f32 %v9462_v7, %v1343_v16  ;;  %v11730_v7 = vld [vmem:[#allocation20_spill] sm:$0xff]  ;;  %7104 = vmatmul.msk.f32.gmra.mxu1 %vm532_vm3, %v9688_v35 }
 0x5b3   :  { %v2186_v32 = vpop.f32.mrf.mxu2  ;;  %v948_v47 = vadd.f32 %v11730_v7, %v11729_v48  ;;  %v1345_v30 = vadd.f32 %v9201_v61, %v1123_v19 }
 0x5b4   :  { %v9678_v21 = vadd.f32 %v2186_v32, %v1987_v8  ;;  %6946 = vmatmul.msk.f32.gmra.mxu3 %vm456_vm1, %v9603_v49  ;;  %v1819_v9 = vadd.f32 %v9499_v57, %v1581_v44  ;;  %v11731_v49 = vld [vmem:[#allocation29_spill] sm:$0xff]  ;;  %v7074_v57 = vld [vmem:[%s11669_s4 + $0x198] sm:$0xff] }
 0x5b5   :  { %v1122_v17 = vadd.f32 %v11731_v49, %v948_v47  ;;  %v2569_v60 = vpop.f32.mrf.mxu0  ;;  %3055 = vmatpush.msrb.mxu3 %v7074_v57  ;;  %v1583_v13 = vadd.f32 %v9491_v46, %v1345_v30  ;;  %v7049_v8 = vld [vmem:[%s11666_s1 + $0x298] sm:$0xff]  ;;  %v7050_v44 = vld [vmem:[%s11666_s1 + $0x2a0] sm:$0xff]  ;;  %v9789_v49 = vld [vmem:[%s11666_s1 + $0x310] sm:$0xff] }
 0x5b6   :  { %v1988_v54 = vadd.f32 %v1967_v24, %v1819_v9  ;;  %v7051_v9 = vld [vmem:[%s11666_s1 + $0x2a8] sm:$0xff] }
 0x5b7   :  { %v1344_v40 = vadd.f32 %v9186_v55, %v1122_v17  ;;  %v2738_v5 = vpop.f32.mrf.mxu1  ;;  %v7118_v55 = vld [vmem:[%s11669_s4 + $0x1b8] sm:$0xff]  ;;  %v1821_v61 = vadd.f32 %v9523_v28, %v1583_v13  ;;  %7063 = vmatmul.msk.f32.gmra.mxu0 %vm532_vm3, %v7049_v8  ;;  %v9757_v28 = vld [vmem:[%s11666_s1 + $0x300] sm:$0xff] }
 0x5b8   :  { %6981 = vmatmul.msk.f32.gmra.mxu2 %vm456_vm1, %v2436_v20  ;;  %v7073_v20 = vld [vmem:[%s11669_s4 + $0x190] sm:$0xff] }
 0x5b9   :  { %v1582_v22 = vadd.f32 %v9479_v15, %v1344_v40  ;;  %v1970_v15 = vpop.f32.mrf.mxu3  ;;  %3277 = vmatpush.msra.mxu2 %v7118_v55  ;;  %3056 = vmatpush.msrb.mxu3 %v7073_v20  ;;  %v9805_v55 = vld [vmem:[%s11666_s1 + $0x318] sm:$0xff] }
 0x5bb   :  { %v2189_v18 = vpop.f32.mrf.mxu2  ;;  %v1820_v37 = vadd.f32 %v9510_v56, %v1582_v22  ;;  %v11735_v22 = vld [vmem:[#allocation14_spill] sm:$0xff] }
 0x5bc   :  { %v9700_v0 = vadd.f32 %v2189_v18, %v1988_v54  ;;  %6947 = vmatmul.msk.f32.gmra.mxu3 %vm456_vm1, %v9617_v38  ;;  %v9717_v38 = vld [vmem:[%s11666_s1 + $0x2f0] sm:$0xff] }
 0x5bd   :  { %7105 = vmatmul.msk.f32.gmra.mxu1 %vm532_vm3, %v9717_v38  ;;  %v1989_v3 = vadd.f32 %v1970_v15, %v1820_v37  ;;  %v2572_v56 = vpop.f32.mrf.mxu0  ;;  %v7052_v18 = vld [vmem:[%s11666_s1 + $0x2b0] sm:$0xff] }
 0x5bf   :  { %v2741_v2 = vpop.f32.mrf.mxu1  ;;  %7064 = vmatmul.msk.f32.gmra.mxu0 %vm532_vm3, %v7050_v44 }
 0x5c0   :  { %7031 = vmatmul.msk.f32.vlgmr.msrb.gmra.mxu2 %vm456_vm1, %v2738_v5  ;;  %v11737_v5 = vld [vmem:[#allocation31_spill] sm:$0xff] }
 0x5c1   :  { %v1973_v46 = vpop.f32.mrf.mxu3 }
 0x5c3   :  { %v2192_v1 = vpop.f32.mrf.mxu2 }
 0x5c4   :  { %v9728_v4 = vadd.f32 %v2192_v1, %v1989_v3  ;;  %6948 = vmatmul.msk.f32.gmra.mxu3 %vm456_vm1, %v9632_v59  ;;  %v1990_v59 = vadd.f32 %v1973_v46, %v1821_v61 }
 0x5c5   :  { %7106 = vmatmul.msk.f32.gmra.mxu1 %vm532_vm3, %v9738_v25  ;;  %v2575_v33 = vpop.f32.mrf.mxu0 }
 0x5c7   :  { %v2744_v16 = vpop.f32.mrf.mxu1  ;;  %7065 = vmatmul.msk.f32.gmra.mxu0 %vm532_vm3, %v7051_v9  ;;  %v9875_v9 = vld [vmem:[%s11666_s1 + $0x338] sm:$0x3] }
 0x5c8   :  { %7032 = vmatmul.msk.f32.gmra.mxu2 %vm456_vm1, %v2741_v2 }
 0x5cb   :  { %v2195_v29 = vpop.f32.mrf.mxu2 }
 0x5cc   :  { %v9745_v27 = vadd.f32 %v2195_v29, %v1990_v59  ;;  %6949 = vmatmul.msk.f32.gmra.mxu3 %vm456_vm1, %v9658_v42  ;;  %v9843_v59 = vld [vmem:[%s11666_s1 + $0x328] sm:$0xff] }
 0x5cd   :  { %7107 = vmatmul.msk.f32.gmra.mxu1 %vm532_vm3, %v9757_v28  ;;  %v2578_v42 = vpop.f32.mrf.mxu0 }
 0x5cf   :  { %v2747_v32 = vpop.f32.mrf.mxu1  ;;  %7066 = vmatmul.msk.f32.gmra.mxu0 %vm532_vm3, %v7052_v18  ;;  %v7115_v18 = vld [vmem:[%s11669_s4 + $0x1a0] sm:$0xff] }
 0x5d0   :  { %7033 = vmatmul.msk.f32.gmra.mxu2 %vm456_vm1, %v2744_v16 }
 0x5d3   :  { %v2198_v24 = vpop.f32.mrf.mxu2 }
 0x5d4   :  { %6950 = vmatmul.msk.f32.gmra.mxu3 %vm456_vm1, %v2267_v50  ;;  %v7117_v50 = vld [vmem:[%s11669_s4 + $0x1b0] sm:$0xff] }
 0x5d5   :  { %7108 = vmatmul.msk.f32.gmra.mxu1 %vm532_vm3, %v9773_v11  ;;  %3278 = vmatpush.msra.mxu2 %v7117_v50  ;;  %v2581_v7 = vpop.f32.mrf.mxu0 }
 0x5d7   :  { %v2750_v47 = vpop.f32.mrf.mxu1  ;;  %7067 = vmatmul.msk.f32.gmra.mxu0 %vm532_vm3, %v7053_v62 }
 0x5d8   :  { %7034 = vmatmul.msk.f32.gmra.mxu2 %vm456_vm1, %v2747_v32  ;;  %v9859_v32 = vld [vmem:[%s11666_s1 + $0x330] sm:$0xff] }
 0x5db   :  { %v2500_v48 = vpop.f32.mrf.mxu2 }
 0x5dc   :  { %7000 = vmatmul.msk.f32.vlgmr.msra.gmra.mxu3 %vm456_vm1, %v2569_v60  ;;  %v11736_v60 = vld [vmem:[#allocation22_spill] sm:$0xff] }
 0x5dd   :  { %7109 = vmatmul.msk.f32.gmra.mxu1 %vm532_vm3, %v9789_v49  ;;  %v2584_v40 = vpop.f32.mrf.mxu0  ;;  %v954_v57 = vadd.f32 %v11736_v60, %v11735_v22 }
 0x5df   :  { %v2753_v54 = vpop.f32.mrf.mxu1  ;;  %v1124_v53 = vadd.f32 %v11737_v5, %v954_v57  ;;  %7068 = vmatmul.msk.f32.gmra.mxu0 %vm532_vm3, %v7054_v43  ;;  %v7163_v5 = vld [vmem:[%s11666_s1 + $0x340] sm:$0xff] }
 0x5e0   :  { %7035 = vmatmul.msk.f32.gmra.mxu2 %vm456_vm1, %v2750_v47 }
 0x5e1   :  { %v1346_v15 = vadd.f32 %v9218_v34, %v1124_v53  ;;  %v7072_v34 = vld [vmem:[%s11669_s4 + $0x188] sm:$0xff] }
 0x5e2   :  { %3057 = vmatpush.msrb.mxu3 %v7072_v34 }
 0x5e3   :  { %v2503_v17 = vpop.f32.mrf.mxu2  ;;  %v1584_v58 = vadd.f32 %v9504_v51, %v1346_v15  ;;  %v9824_v51 = vld [vmem:[%s11666_s1 + $0x320] sm:$0xff] }
 0x5e4   :  { %7001 = vmatmul.msk.f32.gmra.mxu3 %vm456_vm1, %v2572_v56 }
 0x5e5   :  { %7110 = vmatmul.msk.f32.gmra.mxu1 %vm532_vm3, %v9805_v55  ;;  %v2587_v41 = vpop.f32.mrf.mxu0  ;;  %v1822_v19 = vadd.f32 %v9530_v6, %v1584_v58  ;;  %v7116_v6 = vld [vmem:[%s11669_s4 + $0x1a8] sm:$0xff] }
 0x5e6   :  { %3279 = vmatpush.msra.mxu2 %v7116_v6 }
 0x5e7   :  { %v2756_v37 = vpop.f32.mrf.mxu1 }
 0x5e8   :  { %7036 = vmatmul.msk.f32.gmra.mxu2 %vm456_vm1, %v2753_v54 }
 0x5e9   :  { %3280 = vmatpush.msra.mxu2 %v7115_v18  ;;  %v7192_v18 = vld [vmem:[%s11669_s4 + $0x1f0] sm:$0xff] }
 0x5eb   :  { %v2506_v39 = vpop.f32.mrf.mxu2 }
 0x5ec   :  { %7002 = vmatmul.msk.f32.gmra.mxu3 %vm456_vm1, %v2575_v33 }
 0x5ed   :  { %7111 = vmatmul.msk.f32.gmra.mxu1 %vm532_vm3, %v9824_v51  ;;  %v2590_v56 = vpop.f32.mrf.mxu0 }
 0x5ef   :  { %v1976_v30 = vpop.f32.mrf.mxu3  ;;  %v2759_v2 = vpop.f32.mrf.mxu1 }
 0x5f0   :  { %v1991_v3 = vadd.f32 %v1976_v30, %v1822_v19  ;;  %7037 = vmatmul.msk.f32.gmra.mxu2 %vm456_vm1, %v2756_v37 }
 0x5f2   :  { %v9828_v1 = vadd.f32 %v2198_v24, %v1991_v3  ;;  %v7165_v3 = vld [vmem:[%s11666_s1 + $0x350] sm:$0xff] }
 0x5f3   :  { %v2509_v13 = vpop.f32.mrf.mxu2 }
 0x5f4   :  { %7003 = vmatmul.msk.f32.gmra.mxu3 %vm456_vm1, %v2578_v42 }
 0x5f5   :  { %7112 = vmatmul.msk.f32.gmra.mxu1 %vm532_vm3, %v9843_v59  ;;  %v2593_v16 = vpop.f32.mrf.mxu0 }
 0x5f7   :  { %v2331_v61 = vpop.f32.mrf.mxu3  ;;  %v2762_v8 = vpop.f32.mrf.mxu1 }
 0x5f8   :  { %v2370_v46 = vadd.f32 %v2331_v61, %v9546_v26  ;;  %7038 = vmatmul.msk.f32.gmra.mxu2 %vm456_vm1, %v2759_v2  ;;  %v7055_v26 = vld [vmem:[%s11666_s1 + $0x2c8] sm:$0xff]  ;;  %v7166_v61 = vld [vmem:[%s11666_s1 + $0x358] sm:$0xff] }
 0x5f9   :  { %7069 = vmatmul.msk.f32.gmra.mxu0 %vm532_vm3, %v7055_v26  ;;  %v7167_v26 = vld [vmem:[%s11666_s1 + $0x360] sm:$0xff] }
 0x5fa   :  { %v9847_v29 = vadd.f32 %v2500_v48, %v2370_v46 }
 0x5fb   :  { %v2512_v33 = vpop.f32.mrf.mxu2 }
 0x5fc   :  { %7004 = vmatmul.msk.f32.gmra.mxu3 %vm456_vm1, %v2581_v7 }
 0x5fd   :  { %7113 = vmatmul.msk.f32.gmra.mxu1 %vm532_vm3, %v9859_v32  ;;  %v2596_v50 = vpop.f32.mrf.mxu0 }
 0x5ff   :  { %v2334_v24 = vpop.f32.mrf.mxu3  ;;  %v2765_v48 = vpop.f32.mrf.mxu1 }
 0x600   :  { %v2371_v42 = vadd.f32 %v2334_v24, %v9558_v14  ;;  %7039 = vmatmul.msk.f32.gmra.mxu2 %vm456_vm1, %v2762_v8  ;;  %v7056_v14 = vld [vmem:[%s11666_s1 + $0x2d0] sm:$0x3] }
 0x601   :  { %7070 = vmatmul.msk.f32.gmra.mxu0 %vm532_vm3, %v7056_v14 }
 0x602   :  { %v9863_v44 = vadd.f32 %v2503_v17, %v2371_v42 }
 0x603   :  { %v2515_v20 = vpop.f32.mrf.mxu2 }
 0x604   :  { %7005 = vmatmul.msk.f32.gmra.mxu3 %vm456_vm1, %v2584_v40  ;;  %v7071_v40 = vld [vmem:[%s11669_s4 + $0x180] sm:$0xff] }
 0x605   :  { %7114 = vmatmul.msk.f32.gmra.mxu1 %vm532_vm3, %v9875_v9  ;;  %3058 = vmatpush.msrb.mxu3 %v7071_v40 }
 0x607   :  { %v2337_v7 = vpop.f32.mrf.mxu3  ;;  %v2768_v22 = vpop.f32.mrf.mxu1 }
 0x608   :  { %v2372_v47 = vadd.f32 %v2337_v7, %v9570_v36  ;;  %7040 = vmatmul.msk.f32.gmra.mxu2 %vm456_vm1, %v2765_v48  ;;  %v2599_v36 = vpop.f32.mrf.mxu0  ;;  %v7168_v48 = vld [vmem:[%s11666_s1 + $0x368] sm:$0xff] }
 0x609   :  { %7133 = vmatmul.msk.f32.vlgmr.msrb.gmra.mxu0 %vm532_vm3, %v9643_v23 }
 0x60a   :  { %v9879_v17 = vadd.f32 %v2506_v39, %v2372_v47 }
 0x60b   :  { %v2518_v54 = vpop.f32.mrf.mxu2 }
 0x60c   :  { %7006 = vmatmul.msk.f32.gmra.mxu3 %vm456_vm1, %v2587_v41  ;;  %v7164_v41 = vld [vmem:[%s11666_s1 + $0x348] sm:$0xff] }
 0x60d   :  { %7177 = vmatmul.msk.f32.vlgmr.msrb.gmra.mxu1 %vm532_vm3, %v7163_v5 }
 0x60f   :  { %v2340_v60 = vpop.f32.mrf.mxu3  ;;  %v2771_v58 = vpop.f32.mrf.mxu1 }
 0x610   :  { %v2373_v57 = vadd.f32 %v2340_v60, %v9588_v31  ;;  %7041 = vmatmul.msk.f32.gmra.mxu2 %vm456_vm1, %v2768_v22  ;;  %v2602_v39 = vpop.f32.mrf.mxu0 }
 0x611   :  { %7134 = vmatmul.msk.f32.gmra.mxu0 %vm532_vm3, %v9666_v63 }
 0x612   :  { %v9896_v53 = vadd.f32 %v2509_v13, %v2373_v57 }
 0x613   :  { %v2521_v15 = vpop.f32.mrf.mxu2 }
 0x614   :  { %7007 = vmatmul.msk.f32.gmra.mxu3 %vm456_vm1, %v2590_v56 }
 0x615   :  { %7178 = vmatmul.msk.f32.gmra.mxu1 %vm532_vm3, %v7164_v41  ;;  %v7171_v41 = vld [vmem:[%s11666_s1 + $0x380] sm:$0xff] }
 0x617   :  { %v2343_v23 = vpop.f32.mrf.mxu3  ;;  %v2774_v30 = vpop.f32.mrf.mxu1 }
 0x618   :  { %v2374_v31 = vadd.f32 %v2343_v23, %v9600_v52  ;;  %7042 = vmatmul.msk.f32.gmra.mxu2 %vm456_vm1, %v2771_v58  ;;  %v2605_v19 = vpop.f32.mrf.mxu0 }
 0x619   :  { %7135 = vmatmul.msk.f32.gmra.mxu0 %vm532_vm3, %v9688_v35  ;;  %v7149_v35 = vld [vmem:[%s11669_s4 + $0x1d8] sm:$0xff] }
 0x61a   :  { %v9907_v37 = vadd.f32 %v2512_v33, %v2374_v31  ;;  %3446 = vmatpush.msra.mxu3 %v7149_v35 }
 0x61b   :  { %v2524_v62 = vpop.f32.mrf.mxu2 }
 0x61c   :  { %7008 = vmatmul.msk.f32.gmra.mxu3 %vm456_vm1, %v2593_v16 }
 0x61d   :  { %7179 = vmatmul.msk.f32.gmra.mxu1 %vm532_vm3, %v7165_v3  ;;  %v7172_v3 = vld [vmem:[%s11666_s1 + $0x388] sm:$0xff] }
 0x61f   :  { %v2346_v63 = vpop.f32.mrf.mxu3  ;;  %v3182_v56 = vpop.f32.mrf.mxu1 }
 0x620   :  { %v2375_v52 = vadd.f32 %v2346_v63, %v9614_v10  ;;  %7043 = vmatmul.msk.f32.gmra.mxu2 %vm456_vm1, %v2774_v30  ;;  %v2960_v13 = vpop.f32.mrf.mxu0  ;;  %v7193_v10 = vld [vmem:[%s11669_s4 + $0x1f8] sm:$0xff] }
 0x621   :  { %7136 = vmatmul.msk.f32.gmra.mxu0 %vm532_vm3, %v9717_v38  ;;  %3668 = vmatpush.msrb.mxu2 %v7193_v10 }
 0x622   :  { %v9918_v34 = vadd.f32 %v2515_v20, %v2375_v52  ;;  %v7147_v52 = vld [vmem:[%s11669_s4 + $0x1c8] sm:$0xff] }
 0x623   :  { %v2527_v6 = vpop.f32.mrf.mxu2  ;;  %3669 = vmatpush.msrb.mxu2 %v7192_v18 }
 0x624   :  { %7009 = vmatmul.msk.f32.gmra.mxu3 %vm456_vm1, %v2596_v50 }
 0x625   :  { %7180 = vmatmul.msk.f32.gmra.mxu1 %vm532_vm3, %v7166_v61 }
 0x627   :  { %v2349_v2 = vpop.f32.mrf.mxu3  ;;  %v3185_v8 = vpop.f32.mrf.mxu1 }
 0x628   :  { %v2376_v43 = vadd.f32 %v2349_v2, %v9629_v12  ;;  %7119 = vmatmul.msk.f32.vlgmr.msra.gmra.mxu2 %vm456_vm1, %v3182_v56  ;;  %v2963_v16 = vpop.f32.mrf.mxu0  ;;  %v7173_v2 = vld [vmem:[%s11666_s1 + $0x390] sm:$0xff] }
 0x629   :  { %7137 = vmatmul.msk.f32.gmra.mxu0 %vm532_vm3, %v9738_v25 }
 0x62a   :  { %v9935_v46 = vadd.f32 %v2518_v54, %v2376_v43 }
 0x62b   :  { %v2530_v33 = vpop.f32.mrf.mxu2 }
 0x62c   :  { %7010 = vmatmul.msk.f32.gmra.mxu3 %vm456_vm1, %v2599_v36  ;;  %v7169_v36 = vld [vmem:[%s11666_s1 + $0x370] sm:$0xff] }
 0x62d   :  { %7181 = vmatmul.msk.f32.gmra.mxu1 %vm532_vm3, %v7167_v26 }
 0x62f   :  { %v2352_v38 = vpop.f32.mrf.mxu3  ;;  %v3188_v50 = vpop.f32.mrf.mxu1 }
 0x630   :  { %v2377_v12 = vadd.f32 %v2352_v38, %v9655_v45  ;;  %7120 = vmatmul.msk.f32.gmra.mxu2 %vm456_vm1, %v3185_v8  ;;  %v2966_v20 = vpop.f32.mrf.mxu0  ;;  %v7174_v8 = vld [vmem:[%s11666_s1 + $0x398] sm:$0xff] }
 0x631   :  { %7138 = vmatmul.msk.f32.gmra.mxu0 %vm532_vm3, %v9757_v28  ;;  %v7148_v28 = vld [vmem:[%s11669_s4 + $0x1d0] sm:$0xff] }
 0x632   :  { %v9946_v24 = vadd.f32 %v2521_v15, %v2377_v12  ;;  %3447 = vmatpush.msra.mxu3 %v7148_v28  ;;  %v7170_v15 = vld [vmem:[%s11666_s1 + $0x378] sm:$0xff] }
 0x633   :  { %v2533_v42 = vpop.f32.mrf.mxu2 }
 0x634   :  { %7011 = vmatmul.msk.f32.gmra.mxu3 %vm456_vm1, %v2602_v39 }
 0x635   :  { %7182 = vmatmul.msk.f32.gmra.mxu1 %vm532_vm3, %v7168_v48  ;;  %3448 = vmatpush.msra.mxu3 %v7147_v52 }
 0x637   :  { %v2355_v25 = vpop.f32.mrf.mxu3 }
 0x638   :  { %v2378_v45 = vadd.f32 %v2355_v25, %v9678_v21  ;;  %7121 = vmatmul.msk.f32.gmra.mxu2 %vm456_vm1, %v3188_v50  ;;  %v2969_v47 = vpop.f32.mrf.mxu0  ;;  %v7146_v25 = vld [vmem:[%s11669_s4 + $0x1c0] sm:$0xff] }
 0x639   :  { %7139 = vmatmul.msk.f32.gmra.mxu0 %vm532_vm3, %v9773_v11  ;;  %3449 = vmatpush.msra.mxu3 %v7146_v25 }
 0x63a   :  { %v9957_v14 = vadd.f32 %v2524_v62, %v2378_v45  ;;  %v3191_v40 = vpop.f32.mrf.mxu1 }
 0x63b   :  { %v2536_v7 = vpop.f32.mrf.mxu2 }
 0x63c   :  { %7012 = vmatmul.msk.f32.gmra.mxu3 %vm456_vm1, %v2605_v19 }
 0x63d   :  { %7183 = vmatmul.msk.f32.gmra.mxu1 %vm532_vm3, %v7169_v36 }
 0x63f   :  { %v2358_v21 = vpop.f32.mrf.mxu3 }
 0x640   :  { %v2379_v54 = vadd.f32 %v2358_v21, %v9700_v0  ;;  %7122 = vmatmul.msk.f32.gmra.mxu2 %vm456_vm1, %v3191_v40  ;;  %v2972_v60 = vpop.f32.mrf.mxu0 }
 0x641   :  { %7140 = vmatmul.msk.f32.gmra.mxu0 %vm532_vm3, %v9789_v49 }
 0x642   :  { %v9974_v22 = vadd.f32 %v2527_v6, %v2379_v54  ;;  %v3194_v0 = vpop.f32.mrf.mxu1 }
 0x643   :  { %v2838_v11 = vpop.f32.mrf.mxu2 }
 0x644   :  { %7075 = vmatmul.msk.f32.vlgmr.msrb.gmra.mxu3 %vm456_vm1, %v2960_v13 }
 0x645   :  { %7184 = vmatmul.msk.f32.gmra.mxu1 %vm532_vm3, %v7170_v15 }
 0x647   :  { %v2361_v57 = vpop.f32.mrf.mxu3 }
 0x648   :  { %v2380_v5 = vadd.f32 %v2361_v57, %v9728_v4  ;;  %7123 = vmatmul.msk.f32.gmra.mxu2 %vm456_vm1, %v3194_v0  ;;  %v2975_v23 = vpop.f32.mrf.mxu0 }
 0x649   :  { %7141 = vmatmul.msk.f32.gmra.mxu0 %vm532_vm3, %v9805_v55 }
 0x64a   :  { %v9985_v39 = vadd.f32 %v2530_v33, %v2380_v5  ;;  %v3197_v49 = vpop.f32.mrf.mxu1 }
 0x64b   :  { %v2841_v58 = vpop.f32.mrf.mxu2 }
 0x64c   :  { %7076 = vmatmul.msk.f32.gmra.mxu3 %vm456_vm1, %v2963_v16 }
 0x64d   :  { %7185 = vmatmul.msk.f32.gmra.mxu1 %vm532_vm3, %v7171_v41 }
 0x64f   :  { %v2364_v31 = vpop.f32.mrf.mxu3 }
 0x650   :  { %v2381_v4 = vadd.f32 %v2364_v31, %v9745_v27  ;;  %7124 = vmatmul.msk.f32.gmra.mxu2 %vm456_vm1, %v3197_v49  ;;  %v2978_v30 = vpop.f32.mrf.mxu0 }
 0x651   :  { %7142 = vmatmul.msk.f32.gmra.mxu0 %vm532_vm3, %v9824_v51  ;;  %v7191_v51 = vld [vmem:[%s11669_s4 + $0x1e8] sm:$0xff] }
 0x652   :  { %v9996_v62 = vadd.f32 %v2533_v42, %v2381_v4  ;;  %v3200_v55 = vpop.f32.mrf.mxu1  ;;  %3670 = vmatpush.msrb.mxu2 %v7191_v51 }
 0x653   :  { %v2844_v19 = vpop.f32.mrf.mxu2 }
 0x654   :  { %7077 = vmatmul.msk.f32.gmra.mxu3 %vm456_vm1, %v2966_v20  ;;  %v7175_v20 = vld [vmem:[%s11666_s1 + $0x3a0] sm:$0x3] }
 0x655   :  { %7186 = vmatmul.msk.f32.gmra.mxu1 %vm532_vm3, %v7172_v3 }
 0x657   :  { %v2367_v63 = vpop.f32.mrf.mxu3 }
 0x658   :  { %v2382_v27 = vadd.f32 %v2367_v63, %v9828_v1  ;;  %7125 = vmatmul.msk.f32.gmra.mxu2 %vm456_vm1, %v3200_v55  ;;  %v2981_v13 = vpop.f32.mrf.mxu0 }
 0x659   :  { %7143 = vmatmul.msk.f32.gmra.mxu0 %vm532_vm3, %v9843_v59 }
 0x65a   :  { %v10010_v6 = vadd.f32 %v2536_v7, %v2382_v27  ;;  %v3203_v35 = vpop.f32.mrf.mxu1 }
 0x65b   :  { %v2847_v1 = vpop.f32.mrf.mxu2 }
 0x65c   :  { %7078 = vmatmul.msk.f32.gmra.mxu3 %vm456_vm1, %v2969_v47 }
 0x65d   :  { %7187 = vmatmul.msk.f32.gmra.mxu1 %vm532_vm3, %v7173_v2 }
 0x65f   :  { %v2669_v56 = vpop.f32.mrf.mxu3 }
 0x660   :  { %v2708_v10 = vadd.f32 %v2669_v56, %v9847_v29  ;;  %7126 = vmatmul.msk.f32.gmra.mxu2 %vm456_vm1, %v3203_v35  ;;  %v2984_v33 = vpop.f32.mrf.mxu0 }
 0x661   :  { %7144 = vmatmul.msk.f32.gmra.mxu0 %vm532_vm3, %v9859_v32 }
 0x662   :  { %v10024_v43 = vadd.f32 %v2838_v11, %v2708_v10  ;;  %v3206_v59 = vpop.f32.mrf.mxu1 }
 0x663   :  { %v2850_v61 = vpop.f32.mrf.mxu2 }
 0x664   :  { %7079 = vmatmul.msk.f32.gmra.mxu3 %vm456_vm1, %v2972_v60 }
 0x665   :  { %7188 = vmatmul.msk.f32.gmra.mxu1 %vm532_vm3, %v7174_v8 }
 0x667   :  { %v2672_v16 = vpop.f32.mrf.mxu3 }
 0x668   :  { %v2709_v29 = vadd.f32 %v2672_v16, %v9863_v44  ;;  %7127 = vmatmul.msk.f32.gmra.mxu2 %vm456_vm1, %v3206_v59  ;;  %v2987_v26 = vpop.f32.mrf.mxu0 }
 0x669   :  { %7145 = vmatmul.msk.f32.gmra.mxu0 %vm532_vm3, %v9875_v9 }
 0x66a   :  { %v10035_v38 = vadd.f32 %v2841_v58, %v2709_v29  ;;  %v3209_v32 = vpop.f32.mrf.mxu1 }
 0x66b   :  { %v2853_v12 = vpop.f32.mrf.mxu2 }
 0x66c   :  { %7080 = vmatmul.msk.f32.gmra.mxu3 %vm456_vm1, %v2975_v23 }
 0x66d   :  { %7189 = vmatmul.msk.f32.gmra.mxu1 %vm532_vm3, %v7175_v20 }
 0x66f   :  { %v2675_v42 = vpop.f32.mrf.mxu3 }
 0x670   :  { %v2710_v44 = vadd.f32 %v2675_v42, %v9879_v17  ;;  %7128 = vmatmul.msk.f32.gmra.mxu2 %vm456_vm1, %v3209_v32  ;;  %v2990_v9 = vpop.f32.mrf.mxu0  ;;  %v7190_v17 = vld [vmem:[%s11669_s4 + $0x1e0] sm:$0xff]  ;;  %v7214_v42 = vld [vmem:[%s11671_s6 + $0x78] sm:$0xff] }
 0x671   :  { %3671 = vmatpush.msrb.mxu2 %v7190_v17  ;;  %3823 = vmatpush.msra.mxu0 %v7214_v42 }
 0x672   :  { %v10046_v50 = vadd.f32 %v2844_v19, %v2710_v44  ;;  %v3212_v48 = vpop.f32.mrf.mxu1 }
 0x673   :  { %v2856_v45 = vpop.f32.mrf.mxu2 }
 0x674   :  { %7081 = vmatmul.msk.f32.gmra.mxu3 %vm456_vm1, %v2978_v30 }
 0x677   :  { %v2678_v7 = vpop.f32.mrf.mxu3 }
 0x678   :  { %v2711_v47 = vadd.f32 %v2678_v7, %v9896_v53  ;;  %7129 = vmatmul.msk.f32.gmra.mxu2 %vm456_vm1, %v3212_v48  ;;  %v2993_v21 = vpop.f32.mrf.mxu0 }
 0x67a   :  { %v10057_v40 = vadd.f32 %v2847_v1, %v2711_v47  ;;  %v3215_v54 = vpop.f32.mrf.mxu1 }
 0x67b   :  { %v2859_v28 = vpop.f32.mrf.mxu2 }
 0x67c   :  { %7082 = vmatmul.msk.f32.gmra.mxu3 %vm456_vm1, %v2981_v13 }
 0x67f   :  { %v2681_v36 = vpop.f32.mrf.mxu3 }
 0x680   :  { %v2712_v18 = vadd.f32 %v2681_v36, %v9907_v37  ;;  %7130 = vmatmul.msk.f32.gmra.mxu2 %vm456_vm1, %v3215_v54  ;;  %v2996_v57 = vpop.f32.mrf.mxu0 }
 0x682   :  { %v10062_v11 = vadd.f32 %v2850_v61, %v2712_v18  ;;  %v3218_v53 = vpop.f32.mrf.mxu1 }
 0x683   :  { %v2862_v60 = vpop.f32.mrf.mxu2 }
 0x684   :  { %7083 = vmatmul.msk.f32.gmra.mxu3 %vm456_vm1, %v2984_v33 }
 0x687   :  { %v2684_v0 = vpop.f32.mrf.mxu3 }
 0x688   :  { %v2713_v5 = vadd.f32 %v2684_v0, %v9918_v34  ;;  %7131 = vmatmul.msk.f32.gmra.mxu2 %vm456_vm1, %v3218_v53  ;;  %v3351_v31 = vpop.f32.mrf.mxu0 }
 0x68a   :  { %v10067_v15 = vadd.f32 %v2853_v12, %v2713_v5  ;;  %v3573_v37 = vpop.f32.mrf.mxu1 }
 0x68b   :  { %v2865_v58 = vpop.f32.mrf.mxu2 }
 0x68c   :  { %7084 = vmatmul.msk.f32.gmra.mxu3 %vm456_vm1, %v2987_v26  ;;  %v3777_v26 = vld [vmem:[%s11671_s6 + $0x38] sm:$0xff] }
 0x68d   :  { %3866 = vmatpush.msrb.mxu3 %v3777_v26  ;;  %v7241_v26 = vld [vmem:[%s11671_s6 + $0x110] sm:$0xff] }
 0x68f   :  { %v2687_v23 = vpop.f32.mrf.mxu3 }
 0x690   :  { %v2714_v49 = vadd.f32 %v2687_v23, %v9935_v46  ;;  %7194 = vmatmul.msk.f32.vlgmr.msrb.gmra.mxu2 %vm456_vm1, %v3573_v37  ;;  %v3354_v63 = vpop.f32.mrf.mxu0 }
 0x692   :  { %v10072_v4 = vadd.f32 %v2856_v45, %v2714_v49  ;;  %v3576_v34 = vpop.f32.mrf.mxu1  ;;  %v7211_v49 = vld [vmem:[%s11671_s6 + $0x60] sm:$0xff] }
 0x693   :  { %v2868_v41 = vpop.f32.mrf.mxu2 }
 0x694   :  { %7085 = vmatmul.msk.f32.gmra.mxu3 %vm456_vm1, %v2990_v9  ;;  %v7213_v9 = vld [vmem:[%s11671_s6 + $0x70] sm:$0xff] }
 0x695   :  { %3803 = vmatpush.msra.mxu2 %v7213_v9 }
 0x697   :  { %v2690_v19 = vpop.f32.mrf.mxu3  ;;  %3804 = vmatpush.msra.mxu2 %v7211_v49  ;;  %v7220_v49 = vld [vmem:[%s11671_s6 + $0x88] sm:$0xff] }
 0x698   :  { %v2715_v30 = vadd.f32 %v2690_v19, %v9946_v24  ;;  %7195 = vmatmul.msk.f32.gmra.mxu2 %vm456_vm1, %v3576_v34  ;;  %v3357_v24 = vpop.f32.mrf.mxu0 }
 0x69a   :  { %v10077_v55 = vadd.f32 %v2859_v28, %v2715_v30  ;;  %v3579_v46 = vpop.f32.mrf.mxu1 }
 0x69b   :  { %v2871_v27 = vpop.f32.mrf.mxu2 }
 0x69c   :  { %7086 = vmatmul.msk.f32.gmra.mxu3 %vm456_vm1, %v2993_v21 }
 0x69f   :  { %v2693_v52 = vpop.f32.mrf.mxu3 }
 0x6a0   :  { %v2716_v3 = vadd.f32 %v2693_v52, %v9957_v14  ;;  %7196 = vmatmul.msk.f32.gmra.mxu2 %vm456_vm1, %v3579_v46  ;;  %v3360_v33 = vpop.f32.mrf.mxu0  ;;  %v3773_v52 = vld [vmem:[%s11671_s6 + $0x18] sm:$0xff] }
 0x6a2   :  { %v10082_v51 = vadd.f32 %v2862_v60, %v2716_v3  ;;  %v3582_v13 = vpop.f32.mrf.mxu1  ;;  %v7210_v3 = vld [vmem:[%s11671_s6 + $0x58] sm:$0xff] }
 0x6a3   :  { %v2874_v1 = vpop.f32.mrf.mxu2 }
 0x6a4   :  { %7087 = vmatmul.msk.f32.gmra.mxu3 %vm456_vm1, %v2996_v57  ;;  %v7212_v57 = vld [vmem:[%s11671_s6 + $0x68] sm:$0xff] }
 0x6a5   :  { %3824 = vmatpush.msra.mxu0 %v7212_v57  ;;  %v3772_v57 = vld [vmem:[%s11671_s6 + $0x10] sm:$0xff] }
 0x6a7   :  { %v2696_v35 = vpop.f32.mrf.mxu3  ;;  %3825 = vmatpush.msra.mxu0 %v7210_v3  ;;  %v7261_v3 = vld [vmem:[%s11671_s6 + $0x190] sm:$0xff] }
 0x6a8   :  { %v2717_v56 = vadd.f32 %v2696_v35, %v9974_v22  ;;  %7197 = vmatmul.msk.f32.gmra.mxu2 %vm456_vm1, %v3582_v13  ;;  %v3363_v32 = vpop.f32.mrf.mxu0  ;;  %v7209_v35 = vld [vmem:[%s11671_s6 + $0x50] sm:$0xff] }
 0x6a9   :  { %3805 = vmatpush.msra.mxu2 %v7209_v35  ;;  %v10267_v35 = vld [vmem:[%s11670_s5] ss:$0 sm:$0xff] }
 0x6aa   :  { %v10087_v10 = vadd.f32 %v2865_v58, %v2717_v56  ;;  %v3585_v14 = vpop.f32.mrf.mxu1 }
 0x6ab   :  { %v3282_v2 = vpop.f32.mrf.mxu2 }
 0x6ac   :  { %7150 = vmatmul.msk.f32.vlgmr.msra.gmra.mxu3 %vm456_vm1, %v3351_v31 }
 0x6af   :  { %v2699_v61 = vpop.f32.mrf.mxu3 }
 0x6b0   :  { %v2718_v59 = vadd.f32 %v2699_v61, %v9985_v39  ;;  %7198 = vmatmul.msk.f32.gmra.mxu2 %vm456_vm1, %v3585_v14  ;;  %v3366_v17 = vpop.f32.mrf.mxu0 }
 0x6b2   :  { %v10092_v16 = vadd.f32 %v2868_v41, %v2718_v59  ;;  %v3588_v22 = vpop.f32.mrf.mxu1 }
 0x6b3   :  { %v3285_v29 = vpop.f32.mrf.mxu2 }
 0x6b4   :  { %7151 = vmatmul.msk.f32.gmra.mxu3 %vm456_vm1, %v3354_v63 }
 0x6b7   :  { %v2702_v8 = vpop.f32.mrf.mxu3 }
 0x6b8   :  { %v2719_v12 = vadd.f32 %v2702_v8, %v9996_v62  ;;  %7199 = vmatmul.msk.f32.gmra.mxu2 %vm456_vm1, %v3588_v22  ;;  %v3369_v54 = vpop.f32.mrf.mxu0 }
 0x6ba   :  { %v10100_v39 = vadd.f32 %v2871_v27, %v2719_v12  ;;  %v3591_v62 = vpop.f32.mrf.mxu1  ;;  %v7208_v12 = vld [vmem:[%s11671_s6 + $0x48] sm:$0xff] }
 0x6bb   :  { %v10105_v44 = vpop.f32.mrf.mxu2  ;;  %3826 = vmatpush.msra.mxu0 %v7208_v12 }
 0x6bc   :  { %7152 = vmatmul.msk.f32.gmra.mxu3 %vm456_vm1, %v3357_v24 }
 0x6bf   :  { %v2705_v20 = vpop.f32.mrf.mxu3 }
 0x6c0   :  { %v2720_v25 = vadd.f32 %v2705_v20, %v10010_v6  ;;  %7200 = vmatmul.msk.f32.gmra.mxu2 %vm456_vm1, %v3591_v62  ;;  %v3372_v37 = vpop.f32.mrf.mxu0  ;;  %v7207_v20 = vld [vmem:[%s11671_s6 + $0x40] sm:$0xff] }
 0x6c1   :  { %3806 = vmatpush.msra.mxu2 %v7207_v20 }
 0x6c2   :  { %v10110_v45 = vadd.f32 %v2874_v1, %v2720_v25  ;;  %v3594_v7 = vpop.f32.mrf.mxu1  ;;  %v7243_v1 = vld [vmem:[%s11671_s6 + $0x120] sm:$0xff] }
 0x6c3   :  { %v10115_v48 = vpop.f32.mrf.mxu2 }
 0x6c4   :  { %7153 = vmatmul.msk.f32.gmra.mxu3 %vm456_vm1, %v3360_v33 }
 0x6c7   :  { %v3060_v47 = vpop.f32.mrf.mxu3 }
 0x6c8   :  { %v3099_v28 = vadd.f32 %v3060_v47, %v10024_v43  ;;  %7201 = vmatmul.msk.f32.gmra.mxu2 %vm456_vm1, %v3594_v7  ;;  %v3775_v43 = vld [vmem:[%s11671_s6 + $0x28] sm:$0xff]  ;;  %v3375_v34 = vpop.f32.mrf.mxu0  ;;  %v7226_v47 = vld [vmem:[%s11671_s6 + $0xb8] sm:$0xff] }
 0x6c9   :  { %3867 = vmatpush.msrb.mxu3 %v3775_v43  ;;  %v7222_v43 = vld [vmem:[%s11671_s6 + $0x98] sm:$0xff] }
 0x6ca   :  { %v10120_v6 = vadd.f32 %v3282_v2, %v3099_v28  ;;  %v3597_v36 = vpop.f32.mrf.mxu1  ;;  %v3776_v28 = vld [vmem:[%s11671_s6 + $0x30] sm:$0xff] }
 0x6cb   :  { %v10122_v21 = vpop.f32.mrf.mxu2  ;;  %3868 = vmatpush.msrb.mxu3 %v3773_v52  ;;  %3846 = vmatpush.msrb.mxu0 %v3776_v28  ;;  %v7263_v52 = vld [vmem:[%s11671_s6 + $0x1a0] sm:$0xff] }
 0x6cc   :  { %7154 = vmatmul.msk.f32.gmra.mxu3 %vm456_vm1, %v3363_v32 }
 0x6cf   :  { %v3063_v18 = vpop.f32.mrf.mxu3 }
 0x6d0   :  { %v3100_v60 = vadd.f32 %v3063_v18, %v10035_v38  ;;  %7202 = vmatmul.msk.f32.gmra.mxu2 %vm456_vm1, %v3597_v36  ;;  %v7245_v38 = vld [vmem:[%s11671_s6 + $0x130] sm:$0xff]  ;;  %v3378_v27 = vpop.f32.mrf.mxu0  ;;  %v7224_v36 = vld [vmem:[%s11671_s6 + $0xa8] sm:$0xff]  ;;  %v3774_v18 = vld [vmem:[%s11671_s6 + $0x20] sm:$0xff] }
 0x6d1   :  { %4009 = vmatpush.msra.mxu1 %v7245_v38  ;;  %3847 = vmatpush.msrb.mxu0 %v3774_v18  ;;  %v7242_v38 = vld [vmem:[%s11671_s6 + $0x118] sm:$0xff]  ;;  %v7225_v18 = vld [vmem:[%s11671_s6 + $0xb0] sm:$0xff] }
 0x6d2   :  { %v10127_v53 = vadd.f32 %v3285_v29, %v3100_v60  ;;  %v3600_v5 = vpop.f32.mrf.mxu1  ;;  %v3771_v29 = vld [vmem:[%s11671_s6 + $0x8] sm:$0xff] }
 0x6d3   :  { %v10132_v0 = vpop.f32.mrf.mxu2  ;;  %4010 = vmatpush.msra.mxu1 %v7243_v1  ;;  %3869 = vmatpush.msrb.mxu3 %v3771_v29  ;;  %v7244_v60 = vld [vmem:[%s11671_s6 + $0x128] sm:$0xff] }
 0x6d4   :  { %7155 = vmatmul.msk.f32.gmra.mxu3 %vm456_vm1, %v3366_v17  ;;  %3848 = vmatpush.msrb.mxu0 %v3772_v57  ;;  %v7234_v57 = vld [vmem:[%s11671_s6 + $0xe8] sm:$0xff] }
 0x6d5   :  { %4011 = vmatpush.msra.mxu1 %v7241_v26  ;;  %3919 = vmatpush.msra.mxu3 %v7226_v47 }
 0x6d7   :  { %v10141_v58 = vpop.f32.mrf.mxu3  ;;  %3920 = vmatpush.msra.mxu3 %v7224_v36 }
 0x6d8   :  { %7203 = vmatmul.msk.f32.gmra.mxu2 %vm456_vm1, %v3600_v5  ;;  %v3381_v2 = vpop.f32.mrf.mxu0  ;;  %v3101_v20 = vadd.f32 %v10141_v58, %v10046_v50  ;;  %v7266_v50 = vld [vmem:[%s11671_s6 + $0x1b8] sm:$0xff] }
 0x6d9   :  { %3921 = vmatpush.msra.mxu3 %v7222_v43 }
 0x6da   :  { %v3603_v31 = vpop.f32.mrf.mxu1 }
 0x6db   :  { %v10144_v23 = vpop.f32.mrf.mxu2  ;;  %3922 = vmatpush.msra.mxu3 %v7220_v49 }
 0x6dc   :  { %7156 = vmatmul.msk.f32.gmra.mxu3 %vm456_vm1, %v3369_v54  ;;  %v7246_v54 = vld [vmem:[%s11671_s6 + $0x138] sm:$0xff] }
 0x6dd   :  { %4029 = vmatpush.msrb.mxu2 %v7246_v54  ;;  %v3323_v54 = vadd.f32 %v10105_v44, %v3101_v20 }
 0x6df   :  { %v10150_v41 = vpop.f32.mrf.mxu3  ;;  %4030 = vmatpush.msrb.mxu2 %v7244_v60 }
 0x6e0   :  { %7204 = vmatmul.msk.f32.gmra.mxu2 %vm456_vm1, %v3603_v31  ;;  %v3384_v59 = vpop.f32.mrf.mxu0  ;;  %v3770_v31 = vld [vmem:[%s11671_s6] sm:$0xff] }
 0x6e1   :  { %4031 = vmatpush.msrb.mxu2 %v7242_v38  ;;  %3849 = vmatpush.msrb.mxu0 %v3770_v31  ;;  %v7264_v38 = vld [vmem:[%s11671_s6 + $0x1a8] sm:$0xff]  ;;  %v7221_v31 = vld [vmem:[%s11671_s6 + $0x90] sm:$0xff] }
 0x6e2   :  { %v3606_v30 = vpop.f32.mrf.mxu1 }
 0x6e3   :  { %v10153_v19 = vpop.f32.mrf.mxu2 }
 0x6e4   :  { %7157 = vmatmul.msk.f32.gmra.mxu3 %vm456_vm1, %v3372_v37  ;;  %v7239_v37 = vld [vmem:[%s11671_s6 + $0x100] sm:$0xff] }
 0x6e5   :  { %4012 = vmatpush.msra.mxu1 %v7239_v37  ;;  %v3102_v37 = vadd.f32 %v10150_v41, %v10057_v40  ;;  %v7219_v40 = vld [vmem:[%s11671_s6 + $0x80] sm:$0xff] }
 0x6e7   :  { %v10156_v63 = vpop.f32.mrf.mxu3  ;;  %v3324_v41 = vadd.f32 %v10115_v48, %v3102_v37  ;;  %v7229_v37 = vld [vmem:[%s11671_s6 + $0xc0] sm:$0xff] }
 0x6e8   :  { %7205 = vmatmul.msk.f32.gmra.mxu2 %vm456_vm1, %v3606_v30  ;;  %v3387_v32 = vpop.f32.mrf.mxu0  ;;  %v7265_v30 = vld [vmem:[%s11671_s6 + $0x1b0] sm:$0xff] }
 0x6e9   :  { %4119 = vmatpush.msrb.mxu1 %v7265_v30  ;;  %v7262_v30 = vld [vmem:[%s11671_s6 + $0x198] sm:$0xff] }
 0x6ea   :  { %v3609_v24 = vpop.f32.mrf.mxu1 }
 0x6eb   :  { %v10159_v46 = vpop.f32.mrf.mxu2  ;;  %4120 = vmatpush.msrb.mxu1 %v7263_v52 }
 0x6ec   :  { %7158 = vmatmul.msk.f32.gmra.mxu3 %vm456_vm1, %v3375_v34  ;;  %v7240_v34 = vld [vmem:[%s11671_s6 + $0x108] sm:$0xff] }
 0x6ed   :  { %4032 = vmatpush.msrb.mxu2 %v7240_v34  ;;  %4121 = vmatpush.msrb.mxu1 %v7261_v3  ;;  %v7232_v34 = vld [vmem:[%s11671_s6 + $0xd8] sm:$0xff] }
 0x6ef   :  { %v10171_v13 = vpop.f32.mrf.mxu3 }
 0x6f0   :  { %7206 = vmatmul.msk.f32.gmra.mxu2 %vm456_vm1, %v3609_v24 }
 0x6f3   :  { %v10177_v56 = vpop.f32.mrf.mxu2 }
 0x6f4   :  { %7159 = vmatmul.msk.f32.gmra.mxu3 %vm456_vm1, %v3378_v27 }
 0x6f7   :  { %v10180_v14 = vpop.f32.mrf.mxu3 }
 0x6fb   :  { %v10182_v61 = vpop.f32.mrf.mxu2 }
 0x6fc   :  { %7160 = vmatmul.msk.f32.gmra.mxu3 %vm456_vm1, %v3381_v2  ;;  %v7259_v2 = vld [vmem:[%s11671_s6 + $0x180] sm:$0xff] }
 0x6fd   :  { %4122 = vmatpush.msrb.mxu1 %v7259_v2  ;;  %v7260_v2 = vld [vmem:[%s11671_s6 + $0x188] sm:$0xff] }
 0x6ff   :  { %v10185_v33 = vpop.f32.mrf.mxu3 }
 0x703   :  { %v10190_v22 = vpop.f32.mrf.mxu2 }
 0x704   :  { %7161 = vmatmul.msk.f32.gmra.mxu3 %vm456_vm1, %v3384_v59 }
 0x707   :  { %v10193_v8 = vpop.f32.mrf.mxu3 }
 0x70b   :  { %v10202_v42 = vpop.f32.mrf.mxu2 }
 0x70c   :  { %7162 = vmatmul.msk.f32.gmra.mxu3 %vm456_vm1, %v3387_v32 }
 0x70f   :  { %v10204_v62 = vpop.f32.mrf.mxu3 }
 0x713   :  { %v3673_v9 = vpop.f32.mrf.mxu2 }
 0x717   :  { %v10209_v25 = vpop.f32.mrf.mxu3 }
 0x71b   :  { %v3676_v7 = vpop.f32.mrf.mxu2 }
 0x71f   :  { %v10211_v17 = vpop.f32.mrf.mxu3 }
 0x723   :  { %v3679_v27 = vpop.f32.mrf.mxu2 }
 0x727   :  { %v10240_v5 = vpop.f32.mrf.mxu3 }
 0x72b   :  { %v3682_v12 = vpop.f32.mrf.mxu2 }
 0x72f   :  { %v3451_v1 = vpop.f32.mrf.mxu3 }
 0x730   :  { %v3490_v24 = vadd.f32 %v3451_v1, %v10120_v6 }
 0x732   :  { %v3712_v59 = vadd.f32 %v3673_v9, %v3490_v24  ;;  %v7236_v9 = vld [vmem:[%s11671_s6 + $0xf8] sm:$0xff]  ;;  %v7230_v24 = vld [vmem:[%s11671_s6 + $0xc8] sm:$0xff] }
 0x733   :  { %v10288_v58 = vpop.f32.mrf.mxu2 }
 0x734   :  { %v3729_v29 = vadd.f32 %v10267_v35, %v3712_v59 }
 0x736   :  { %v3742_v26 = vmax.f32 %v3729_v29, 0.0  ;;  %v7256_v29 = vld [vmem:[%s11671_s6 + $0x178] sm:$0xff] }
 0x737   :  { %v3454_v32 = vpop.f32.mrf.mxu3 }
 0x738   :  { %3755 = vst.msk [vmem:[#allocation3] sm:$0xff] %vm456_vm1, %v3742_v26  ;;  %v3491_v6 = vadd.f32 %v3454_v32, %v10127_v53  ;;  %v7235_v26 = vld [vmem:[%s11671_s6 + $0xf0] sm:$0xff] }
 0x739   :  { %v7285_v32 = vld [vmem:[%s11671_s6 + $0x230] sm:$0xff] }
 0x73a   :  { %v3713_v47 = vadd.f32 %v3676_v7, %v3491_v6  ;;  %v7223_v7 = vld [vmem:[%s11671_s6 + $0xa0] sm:$0xff]  ;;  %v7286_v6 = vld [vmem:[%s11671_s6 + $0x238] sm:$0xff] }
 0x73b   :  { %v10342_v20 = vpop.f32.mrf.mxu2 }
 0x73c   :  { %v3730_v28 = vadd.f32 %v10267_v35, %v3713_v47  ;;  %v3103_v47 = vadd.f32 %v10156_v63, %v10062_v11  ;;  %v7284_v11 = vld [vmem:[%s11671_s6 + $0x228] sm:$0xff] }
 0x73e   :  { %v3743_v36 = vmax.f32 %v3730_v28, 0.0 }
 0x73f   :  { %v3457_v60 = vpop.f32.mrf.mxu3  ;;  %v3778_v43 = vld [vmem:[#allocation3 + $0x2] sm:$0x3]  ;;  %v3769_v53 = vld [vmem:[#allocation3] sm:$0x3]  ;;  %v3874_v48 = vld [vmem:[#allocation3 + $0x4] sm:$0x3] }
 0x740   :  { %3756 = vst.msk [vmem:[#allocation3 + $0x8] sm:$0xff] %vm456_vm1, %v3743_v36  ;;  %v3492_v44 = vadd.f32 %v3457_v60, %v3323_v54  ;;  %7215 = vmatmul.msk.f32.vlgmr.msra.gmra.mxu2 %vm456_vm1, %v3778_v43  ;;  %7216 = vmatmul.msk.f32.vlgmr.msra.gmra.mxu0 %vm456_vm1, %v3778_v43  ;;  %v7254_v54 = vld [vmem:[%s11671_s6 + $0x168] sm:$0xff]  ;;  %v7233_v36 = vld [vmem:[%s11671_s6 + $0xe0] sm:$0xff]  ;;  %v3325_v60 = vadd.f32 %v10122_v21, %v3103_v47  ;;  %v7301_v47 = vld [vmem:[%s11671_s6 + $0x290] sm:$0xff] }
 0x741   :  { %7218 = vmatmul.msk.f32.vlgmr.msrb.gmra.mxu3 %vm456_vm1, %v3769_v53  ;;  %3899 = vmatpush.msra.mxu0 %v7225_v18  ;;  %v7231_v18 = vld [vmem:[%s11671_s6 + $0xd0] sm:$0xff]  ;;  %v3929_v21 = vld [vmem:[#allocation3 + $0x6] sm:$0x3] }
 0x742   :  { %v3714_v49 = vadd.f32 %v3679_v27, %v3492_v44  ;;  %3974 = vmatpush.msrb.mxu3 %v7236_v9  ;;  %4139 = vmatpush.msra.mxu2 %v7266_v50  ;;  %v7283_v9 = vld [vmem:[%s11671_s6 + $0x220] sm:$0xff]  ;;  %v7281_v44 = vld [vmem:[%s11671_s6 + $0x210] sm:$0xff] }
 0x743   :  { %3900 = vmatpush.msra.mxu0 %v7223_v7  ;;  %v7282_v7 = vld [vmem:[%s11671_s6 + $0x218] sm:$0xff] }
 0x744   :  { %v3731_v52 = vadd.f32 %v10267_v35, %v3714_v49  ;;  %3975 = vmatpush.msrb.mxu3 %v7234_v57  ;;  %4140 = vmatpush.msra.mxu2 %v7264_v38  ;;  %v7250_v38 = vld [vmem:[%s11671_s6 + $0x148] sm:$0xff]  ;;  %v7279_v49 = vld [vmem:[%s11671_s6 + $0x200] sm:$0xff] }
 0x745   :  { %3901 = vmatpush.msra.mxu0 %v7221_v31  ;;  %v7280_v31 = vld [vmem:[%s11671_s6 + $0x208] sm:$0xff] }
 0x746   :  { %v3744_v27 = vmax.f32 %v3731_v52, 0.0  ;;  %3976 = vmatpush.msrb.mxu3 %v7232_v34  ;;  %4141 = vmatpush.msra.mxu2 %v7262_v30  ;;  %v3104_v34 = vadd.f32 %v10171_v13, %v10067_v15  ;;  %v7276_v52 = vld [vmem:[%s11671_s6 + $0x1f8] sm:$0xff]  ;;  %v10404_v13 = vpop.f32.mrf.mxu2 }
 0x747   :  { %v3460_v3 = vpop.f32.mrf.mxu3  ;;  %v3984_v1 = vld [vmem:[#allocation3 + $0x8] sm:$0x3]  ;;  %3902 = vmatpush.msra.mxu0 %v7219_v40  ;;  %v4094_v50 = vld [vmem:[#allocation3 + $0xc] sm:$0x3]  ;;  %v7306_v15 = vld [vmem:[%s11671_s6 + $0x2b8] sm:$0xff] }
 0x748   :  { %3757 = vst.msk [vmem:[#allocation3 + $0x10] sm:$0xff] %vm456_vm1, %v3744_v27  ;;  %v3493_v59 = vadd.f32 %v3460_v3, %v3324_v41  ;;  %7217 = vmatmul.msk.f32.vlgmr.msrb.gmra.mxu0 %vm456_vm1, %v3769_v53  ;;  %7247 = vmatmul.msk.f32.vlgmr.msra.gmra.mxu1 %vm456_vm1, %v3984_v1  ;;  %v7255_v40 = vld [vmem:[%s11671_s6 + $0x170] sm:$0xff]  ;;  %v7274_v27 = vld [vmem:[%s11671_s6 + $0x1e8] sm:$0xff]  ;;  %v7253_v3 = vld [vmem:[%s11671_s6 + $0x160] sm:$0xff] }
 0x749   :  { %7228 = vmatmul.msk.f32.vlgmr.msra.gmra.mxu3 %vm456_vm1, %v3874_v48  ;;  %7248 = vmatmul.msk.f32.vlgmr.msrb.gmra.mxu2 %vm456_vm1, %v3984_v1  ;;  %v7305_v41 = vld [vmem:[%s11671_s6 + $0x2b0] sm:$0xff]  ;;  %v3326_v1 = vadd.f32 %v10132_v0, %v3104_v34 }
 0x74a   :  { %v3715_v28 = vadd.f32 %v3682_v12, %v3493_v59  ;;  %3977 = vmatpush.msrb.mxu3 %v7230_v24  ;;  %4142 = vmatpush.msra.mxu2 %v7260_v2  ;;  %v7252_v12 = vld [vmem:[%s11671_s6 + $0x158] sm:$0xff]  ;;  %v4039_v0 = vld [vmem:[#allocation3 + $0xa] sm:$0x3] }
 0x74b   :  { %3954 = vmatpush.msrb.mxu0 %v7235_v26  ;;  %4229 = vmatpush.msra.mxu1 %v7285_v32  ;;  %v7272_v32 = vld [vmem:[%s11671_s6 + $0x1d8] sm:$0xff] }
 0x74c   :  { %4084 = vmatpush.msra.mxu3 %v7256_v29  ;;  %v3732_v63 = vadd.f32 %v10267_v35, %v3715_v28  ;;  %4249 = vmatpush.msrb.mxu2 %v7286_v6  ;;  %v7304_v29 = vld [vmem:[%s11671_s6 + $0x2a8] sm:$0xff]  ;;  %v7251_v6 = vld [vmem:[%s11671_s6 + $0x150] sm:$0xff]  ;;  %v7302_v28 = vld [vmem:[%s11671_s6 + $0x298] sm:$0xff] }
 0x74d   :  { %3955 = vmatpush.msrb.mxu0 %v7233_v36  ;;  %4230 = vmatpush.msra.mxu1 %v7283_v9  ;;  %v7270_v9 = vld [vmem:[%s11671_s6 + $0x1c8] sm:$0xff] }
 0x74e   :  { %4085 = vmatpush.msra.mxu3 %v7254_v54  ;;  %v3745_v43 = vmax.f32 %v3732_v63, 0.0  ;;  %4250 = vmatpush.msrb.mxu2 %v7284_v11  ;;  %v3105_v54 = vadd.f32 %v10180_v14, %v10072_v4  ;;  %v7249_v11 = vld [vmem:[%s11671_s6 + $0x140] sm:$0xff]  ;;  %v7300_v4 = vld [vmem:[%s11671_s6 + $0x288] sm:$0xff] }
 0x74f   :  { %v3463_v53 = vpop.f32.mrf.mxu3  ;;  %3956 = vmatpush.msrb.mxu0 %v7231_v18  ;;  %4231 = vmatpush.msra.mxu1 %v7281_v44  ;;  %v4204_v59 = vld [vmem:[#allocation3 + $0x10] sm:$0x3]  ;;  %v7299_v63 = vld [vmem:[%s11671_s6 + $0x280] sm:$0xff]  ;;  %v10459_v18 = vpop.f32.mrf.mxu2  ;;  %v7325_v44 = vld [vmem:[%s11671_s6 + $0x330] sm:$0xff] }
 0x750   :  { %4086 = vmatpush.msra.mxu3 %v7252_v12  ;;  %3758 = vst.msk [vmem:[#allocation3 + $0x18] sm:$0xff] %vm456_vm1, %v3745_v43  ;;  %v3494_v57 = vadd.f32 %v3463_v53, %v3325_v60  ;;  %7227 = vmatmul.msk.f32.vlgmr.msra.gmra.mxu0 %vm456_vm1, %v3874_v48  ;;  %v7303_v48 = vld [vmem:[%s11671_s6 + $0x2a0] sm:$0xff]  ;;  %v7275_v12 = vld [vmem:[%s11671_s6 + $0x1f0] sm:$0xff]  ;;  %v3327_v60 = vadd.f32 %v10144_v23, %v3105_v54 }
 0x751   :  { %7267 = vmatmul.msk.f32.vlgmr.msrb.gmra.mxu1 %vm456_vm1, %v4094_v50  ;;  %7238 = vmatmul.msk.f32.vlgmr.msrb.gmra.mxu3 %vm456_vm1, %v3929_v21  ;;  %v4149_v23 = vld [vmem:[#allocation3 + $0xe] sm:$0x3] }
 0x752   :  { %7268 = vmatmul.msk.f32.vlgmr.msra.gmra.mxu2 %vm456_vm1, %v4094_v50  ;;  %v3716_v30 = vadd.f32 %v10288_v58, %v3494_v57  ;;  %4087 = vmatpush.msra.mxu3 %v7250_v38  ;;  %v4314_v50 = vld [vmem:[#allocation3 + $0x14] sm:$0x3]  ;;  %v7273_v38 = vld [vmem:[%s11671_s6 + $0x1e0] sm:$0xff] }
 0x753   :  { %4251 = vmatpush.msrb.mxu2 %v7282_v7  ;;  %3957 = vmatpush.msrb.mxu0 %v7229_v37  ;;  %v7326_v7 = vld [vmem:[%s11671_s6 + $0x338] sm:$0xff]  ;;  %v7323_v37 = vld [vmem:[%s11671_s6 + $0x320] sm:$0xff] }
 0x754   :  { %v3733_v58 = vadd.f32 %v10267_v35, %v3716_v30  ;;  %4232 = vmatpush.msra.mxu1 %v7279_v49  ;;  %4194 = vmatpush.msrb.mxu3 %v7276_v52  ;;  %v7324_v49 = vld [vmem:[%s11671_s6 + $0x328] sm:$0xff]  ;;  %v7292_v30 = vld [vmem:[%s11671_s6 + $0x258] sm:$0xff]  ;;  %v7271_v52 = vld [vmem:[%s11671_s6 + $0x1d0] sm:$0xff] }
 0x755   :  { %4252 = vmatpush.msrb.mxu2 %v7280_v31  ;;  %4064 = vmatpush.msra.mxu0 %v7255_v40  ;;  %v3106_v31 = vadd.f32 %v10185_v33, %v10077_v55  ;;  %v7321_v40 = vld [vmem:[%s11671_s6 + $0x310] sm:$0xff]  ;;  %v7322_v55 = vld [vmem:[%s11671_s6 + $0x318] sm:$0xff] }
 0x756   :  { %v3746_v24 = vmax.f32 %v3733_v58, 0.0  ;;  %4339 = vmatpush.msrb.mxu1 %v7305_v41  ;;  %4195 = vmatpush.msrb.mxu3 %v7274_v27  ;;  %v7290_v41 = vld [vmem:[%s11671_s6 + $0x248] sm:$0xff] }
 0x757   :  { %4359 = vmatpush.msra.mxu2 %v7306_v15  ;;  %v3466_v2 = vpop.f32.mrf.mxu3  ;;  %4065 = vmatpush.msra.mxu0 %v7253_v3  ;;  %v7269_v15 = vld [vmem:[%s11671_s6 + $0x1c0] sm:$0xff]  ;;  %v7320_v58 = vld [vmem:[%s11671_s6 + $0x308] sm:$0xff]  ;;  %v3328_v27 = vadd.f32 %v10153_v19, %v3106_v31  ;;  %v7295_v19 = vld [vmem:[%s11671_s6 + $0x270] sm:$0xff] }
 0x758   :  { %3759 = vst.msk [vmem:[#allocation3 + $0x20] sm:$0xff] %vm456_vm1, %v3746_v24  ;;  %v3495_v26 = vadd.f32 %v3466_v2, %v3326_v1  ;;  %7237 = vmatmul.msk.f32.vlgmr.msrb.gmra.mxu0 %vm456_vm1, %v3929_v21  ;;  %4340 = vmatpush.msrb.mxu1 %v7303_v48  ;;  %v7294_v21 = vld [vmem:[%s11671_s6 + $0x268] sm:$0xff]  ;;  %v7316_v24 = vld [vmem:[%s11671_s6 + $0x2f8] sm:$0xff]  ;;  %v3697_v2 = vpop.f32.mrf.mxu2  ;;  %v7363_v31 = vld [vmem:[%s11671_s6 + $0x420] sm:$0xff] }
 0x759   :  { %7287 = vmatmul.msk.f32.vlgmr.msra.gmra.mxu1 %vm456_vm1, %v4204_v59  ;;  %7258 = vmatmul.msk.f32.vlgmr.msra.gmra.mxu3 %vm456_vm1, %v4039_v0  ;;  %v4259_v48 = vld [vmem:[#allocation3 + $0x12] sm:$0x3] }
 0x75a   :  { %7288 = vmatmul.msk.f32.vlgmr.msrb.gmra.mxu2 %vm456_vm1, %v4204_v59  ;;  %v3717_v36 = vadd.f32 %v10342_v20, %v3495_v26  ;;  %4196 = vmatpush.msrb.mxu3 %v7272_v32  ;;  %v7296_v20 = vld [vmem:[%s11671_s6 + $0x278] sm:$0xff]  ;;  %v7345_v26 = vld [vmem:[%s11671_s6 + $0x3b0] sm:$0xff]  ;;  %v3107_v32 = vadd.f32 %v10193_v8, %v10082_v51  ;;  %v7343_v51 = vld [vmem:[%s11671_s6 + $0x3a0] sm:$0xff] }
 0x75b   :  { %4360 = vmatpush.msra.mxu2 %v7304_v29  ;;  %4066 = vmatpush.msra.mxu0 %v7251_v6  ;;  %v4424_v29 = vld [vmem:[#allocation3 + $0x18] sm:$0x3]  ;;  %v7344_v8 = vld [vmem:[%s11671_s6 + $0x3a8] sm:$0xff] }
 0x75c   :  { %v3734_v14 = vadd.f32 %v10267_v35, %v3717_v36  ;;  %4341 = vmatpush.msrb.mxu1 %v7301_v47  ;;  %4197 = vmatpush.msrb.mxu3 %v7270_v9  ;;  %v7314_v47 = vld [vmem:[%s11671_s6 + $0x2e8] sm:$0xff]  ;;  %v7312_v36 = vld [vmem:[%s11671_s6 + $0x2d8] sm:$0xff]  ;;  %v7291_v9 = vld [vmem:[%s11671_s6 + $0x250] sm:$0xff] }
 0x75d   :  { %4361 = vmatpush.msra.mxu2 %v7302_v28  ;;  %4067 = vmatpush.msra.mxu0 %v7249_v11  ;;  %v7293_v28 = vld [vmem:[%s11671_s6 + $0x260] sm:$0xff]  ;;  %v7341_v11 = vld [vmem:[%s11671_s6 + $0x390] sm:$0xff] }
 0x75e   :  { %v3747_v43 = vmax.f32 %v3734_v14, 0.0  ;;  %4342 = vmatpush.msrb.mxu1 %v7299_v63  ;;  %4304 = vmatpush.msra.mxu3 %v7296_v20  ;;  %v7342_v63 = vld [vmem:[%s11671_s6 + $0x398] sm:$0xff]  ;;  %v7310_v20 = vld [vmem:[%s11671_s6 + $0x2c8] sm:$0xff] }
 0x75f   :  { %4362 = vmatpush.msra.mxu2 %v7300_v4  ;;  %v3469_v53 = vpop.f32.mrf.mxu3  ;;  %4174 = vmatpush.msrb.mxu0 %v7275_v12  ;;  %v3329_v4 = vadd.f32 %v10159_v46, %v3107_v32  ;;  %v7289_v12 = vld [vmem:[%s11671_s6 + $0x240] sm:$0xff]  ;;  %v7340_v46 = vld [vmem:[%s11671_s6 + $0x388] sm:$0xff] }
 0x760   :  { %3760 = vst.msk [vmem:[#allocation3 + $0x28] sm:$0xff] %vm456_vm1, %v3747_v43  ;;  %v3496_v57 = vadd.f32 %v3469_v53, %v3327_v60  ;;  %7257 = vmatmul.msk.f32.vlgmr.msra.gmra.mxu0 %vm456_vm1, %v4039_v0  ;;  %4449 = vmatpush.msra.mxu1 %v7325_v44  ;;  %v7346_v0 = vld [vmem:[%s11671_s6 + $0x3b8] sm:$0xff]  ;;  %v7339_v60 = vld [vmem:[%s11671_s6 + $0x380] sm:$0xff]  ;;  %v3108_v44 = vadd.f32 %v10204_v62, %v10087_v10 }
 0x761   :  { %7307 = vmatmul.msk.f32.vlgmr.msrb.gmra.mxu1 %vm456_vm1, %v4314_v50  ;;  %7278 = vmatmul.msk.f32.vlgmr.msrb.gmra.mxu3 %vm456_vm1, %v4149_v23  ;;  %v7336_v53 = vld [vmem:[%s11671_s6 + $0x378] sm:$0xff] }
 0x762   :  { %7308 = vmatmul.msk.f32.vlgmr.msra.gmra.mxu2 %vm456_vm1, %v4314_v50  ;;  %v3718_v34 = vadd.f32 %v10404_v13, %v3496_v57  ;;  %4305 = vmatpush.msra.mxu3 %v7294_v21  ;;  %v7319_v13 = vld [vmem:[%s11671_s6 + $0x300] sm:$0xff]  ;;  %v3700_v50 = vpop.f32.mrf.mxu2  ;;  %v7366_v10 = vld [vmem:[%s11671_s6 + $0x438] sm:$0xff] }
 0x763   :  { %4469 = vmatpush.msrb.mxu2 %v7326_v7  ;;  %4175 = vmatpush.msrb.mxu0 %v7273_v38  ;;  %v4369_v7 = vld [vmem:[#allocation3 + $0x16] sm:$0x3]  ;;  %v4534_v21 = vld [vmem:[#allocation3 + $0x1c] sm:$0x3]  ;;  %v7365_v38 = vld [vmem:[%s11671_s6 + $0x430] sm:$0xff] }
 0x764   :  { %v3735_v33 = vadd.f32 %v10267_v35, %v3718_v34  ;;  %4450 = vmatpush.msra.mxu1 %v7323_v37  ;;  %4306 = vmatpush.msra.mxu3 %v7292_v30  ;;  %v7334_v37 = vld [vmem:[%s11671_s6 + $0x368] sm:$0xff]  ;;  %v3330_v30 = vadd.f32 %v10177_v56, %v3108_v44  ;;  %v7362_v56 = vld [vmem:[%s11671_s6 + $0x418] sm:$0xff] }
 0x765   :  { %4470 = vmatpush.msrb.mxu2 %v7324_v49  ;;  %4176 = vmatpush.msrb.mxu0 %v7271_v52  ;;  %v7313_v49 = vld [vmem:[%s11671_s6 + $0x2e0] sm:$0xff]  ;;  %v7364_v34 = vld [vmem:[%s11671_s6 + $0x428] sm:$0xff] }
 0x766   :  { %v3748_v3 = vmax.f32 %v3735_v33, 0.0  ;;  %4451 = vmatpush.msra.mxu1 %v7321_v40  ;;  %4307 = vmatpush.msra.mxu3 %v7290_v41  ;;  %v7332_v40 = vld [vmem:[%s11671_s6 + $0x358] sm:$0xff]  ;;  %v7361_v33 = vld [vmem:[%s11671_s6 + $0x410] sm:$0xff]  ;;  %v4754_v44 = vld [vmem:[#allocation3 + $0x24] sm:$0x3] }
 0x767   :  { %4471 = vmatpush.msrb.mxu2 %v7322_v55  ;;  %v3472_v1 = vpop.f32.mrf.mxu3  ;;  %4177 = vmatpush.msrb.mxu0 %v7269_v15  ;;  %v7311_v55 = vld [vmem:[%s11671_s6 + $0x2d0] sm:$0xff]  ;;  %v7330_v15 = vld [vmem:[%s11671_s6 + $0x348] sm:$0xff] }
 0x768   :  { %3761 = vst.msk [vmem:[#allocation3 + $0x30] sm:$0xff] %vm456_vm1, %v3748_v3  ;;  %v3497_v59 = vadd.f32 %v3472_v1, %v3328_v27  ;;  %4452 = vmatpush.msra.mxu1 %v7319_v13  ;;  %7277 = vmatmul.msk.f32.vlgmr.msrb.gmra.mxu0 %vm456_vm1, %v4149_v23  ;;  %v7315_v23 = vld [vmem:[%s11671_s6 + $0x2f0] sm:$0xff]  ;;  %v7359_v27 = vld [vmem:[%s11671_s6 + $0x400] sm:$0xff]  ;;  %v7360_v3 = vld [vmem:[%s11671_s6 + $0x408] sm:$0xff]  ;;  %v3109_v1 = vadd.f32 %v10209_v25, %v10092_v16 }
 0x769   :  { %4472 = vmatpush.msrb.mxu2 %v7320_v58  ;;  %7298 = vmatmul.msk.f32.vlgmr.msra.gmra.mxu3 %vm456_vm1, %v4259_v48  ;;  %v7309_v58 = vld [vmem:[%s11671_s6 + $0x2c0] sm:$0xff]  ;;  %v4644_v16 = vld [vmem:[#allocation3 + $0x20] sm:$0x3]  ;;  %v7385_v25 = vld [vmem:[%s11671_s6 + $0x4b0] sm:$0xff] }
 0x76a   :  { %4414 = vmatpush.msrb.mxu3 %v7316_v24  ;;  %7327 = vmatmul.msk.f32.vlgmr.msra.gmra.mxu1 %vm456_vm1, %v4424_v29  ;;  %v3719_v6 = vadd.f32 %v10459_v18, %v3497_v59  ;;  %v3703_v59 = vpop.f32.mrf.mxu2 }
 0x76b   :  { %7328 = vmatmul.msk.f32.vlgmr.msrb.gmra.mxu2 %vm456_vm1, %v4424_v29  ;;  %4284 = vmatpush.msra.mxu0 %v7295_v19  ;;  %v7335_v29 = vld [vmem:[%s11671_s6 + $0x370] sm:$0xff] }
 0x76c   :  { %v3736_v54 = vadd.f32 %v10267_v35, %v3719_v6  ;;  %4559 = vmatpush.msrb.mxu1 %v7345_v26  ;;  %4579 = vmatpush.msra.mxu2 %v7346_v0  ;;  %v7386_v26 = vld [vmem:[%s11671_s6 + $0x4b8] sm:$0xff]  ;;  %v3331_v0 = vadd.f32 %v10182_v61, %v3109_v1  ;;  %v7354_v6 = vld [vmem:[%s11671_s6 + $0x3e8] sm:$0xff]  ;;  %v4864_v1 = vld [vmem:[#allocation3 + $0x28] sm:$0x3] }
 0x76d   :  { %4415 = vmatpush.msrb.mxu3 %v7314_v47  ;;  %4285 = vmatpush.msra.mxu0 %v7293_v28  ;;  %v7333_v47 = vld [vmem:[%s11671_s6 + $0x360] sm:$0xff]  ;;  %v7384_v61 = vld [vmem:[%s11671_s6 + $0x4a8] sm:$0xff] }
 0x76e   :  { %v3749_v14 = vmax.f32 %v3736_v54, 0.0  ;;  %4560 = vmatpush.msrb.mxu1 %v7343_v51  ;;  %4580 = vmatpush.msra.mxu2 %v7344_v8  ;;  %v7383_v28 = vld [vmem:[%s11671_s6 + $0x4a0] sm:$0xff]  ;;  %v7352_v8 = vld [vmem:[%s11671_s6 + $0x3d8] sm:$0xff]  ;;  %v7331_v54 = vld [vmem:[%s11671_s6 + $0x350] sm:$0xff] }
 0x76f   :  { %4416 = vmatpush.msrb.mxu3 %v7312_v36  ;;  %4286 = vmatpush.msra.mxu0 %v7291_v9  ;;  %v3475_v18 = vpop.f32.mrf.mxu3  ;;  %v7381_v9 = vld [vmem:[%s11671_s6 + $0x490] sm:$0xff] }
 0x770   :  { %3762 = vst.msk [vmem:[#allocation3 + $0x38] sm:$0xff] %vm456_vm1, %v3749_v14  ;;  %4561 = vmatpush.msrb.mxu1 %v7341_v11  ;;  %4581 = vmatpush.msra.mxu2 %v7342_v63  ;;  %v3498_v43 = vadd.f32 %v3475_v18, %v3329_v4  ;;  %v7382_v11 = vld [vmem:[%s11671_s6 + $0x498] sm:$0xff]  ;;  %v3110_v63 = vadd.f32 %v10211_v17, %v10100_v39  ;;  %v7350_v4 = vld [vmem:[%s11671_s6 + $0x3c8] sm:$0xff]  ;;  %v7329_v14 = vld [vmem:[%s11671_s6 + $0x340] sm:$0xff] }
 0x771   :  { %4417 = vmatpush.msrb.mxu3 %v7310_v20  ;;  %4287 = vmatpush.msra.mxu0 %v7289_v12  ;;  %v7379_v12 = vld [vmem:[%s11671_s6 + $0x480] sm:$0xff]  ;;  %v7380_v39 = vld [vmem:[%s11671_s6 + $0x488] sm:$0xff]  ;;  %v7376_v18 = vld [vmem:[%s11671_s6 + $0x478] sm:$0xff] }
 0x772   :  { %4562 = vmatpush.msrb.mxu1 %v7339_v60  ;;  %4582 = vmatpush.msra.mxu2 %v7340_v46  ;;  %v3720_v57 = vadd.f32 %v3697_v2, %v3498_v43  ;;  %v7356_v2 = vld [vmem:[%s11671_s6 + $0x3f8] sm:$0xff]  ;;  %v3706_v60 = vpop.f32.mrf.mxu2  ;;  %v3332_v46 = vadd.f32 %v10190_v22, %v3110_v63  ;;  %v4589_v43 = vld [vmem:[#allocation3 + $0x1e] sm:$0x3] }
 0x773   :  { %7297 = vmatmul.msk.f32.vlgmr.msra.gmra.mxu0 %vm456_vm1, %v4259_v48  ;;  %7318 = vmatmul.msk.f32.vlgmr.msrb.gmra.mxu3 %vm456_vm1, %v4369_v7  ;;  %v4479_v48 = vld [vmem:[#allocation3 + $0x1a] sm:$0x3]  ;;  %v7406_v22 = vld [vmem:[%s11671_s6 + $0x538] sm:$0xff] }
 0x774   :  { %4524 = vmatpush.msra.mxu3 %v7336_v53  ;;  %7347 = vmatmul.msk.f32.vlgmr.msrb.gmra.mxu1 %vm456_vm1, %v4534_v21  ;;  %v3737_v62 = vadd.f32 %v10267_v35, %v3720_v57  ;;  %v7446_v63 = vld [vmem:[%s11671_s6 + $0x638] sm:$0xff] }
 0x775   :  { %7348 = vmatmul.msk.f32.vlgmr.msra.gmra.mxu2 %vm456_vm1, %v4534_v21  ;;  %4394 = vmatpush.msrb.mxu0 %v7315_v23  ;;  %v7374_v23 = vld [vmem:[%s11671_s6 + $0x468] sm:$0xff]  ;;  %v7353_v21 = vld [vmem:[%s11671_s6 + $0x3e0] sm:$0xff] }
 0x776   :  { %v3750_v52 = vmax.f32 %v3737_v62, 0.0  ;;  %4669 = vmatpush.msra.mxu1 %v7365_v38  ;;  %4689 = vmatpush.msrb.mxu2 %v7366_v10  ;;  %v7403_v10 = vld [vmem:[%s11671_s6 + $0x520] sm:$0xff]  ;;  %v7404_v62 = vld [vmem:[%s11671_s6 + $0x528] sm:$0xff] }
 0x777   :  { %4525 = vmatpush.msra.mxu3 %v7334_v37  ;;  %4395 = vmatpush.msrb.mxu0 %v7313_v49  ;;  %v3478_v41 = vpop.f32.mrf.mxu3  ;;  %v3111_v37 = vadd.f32 %v10240_v5, %v10110_v45  ;;  %v7372_v49 = vld [vmem:[%s11671_s6 + $0x458] sm:$0xff]  ;;  %v7370_v5 = vld [vmem:[%s11671_s6 + $0x448] sm:$0xff] }
 0x778   :  { %3763 = vst.msk [vmem:[#allocation3 + $0x40] sm:$0xff] %vm456_vm1, %v3750_v52  ;;  %4670 = vmatpush.msra.mxu1 %v7363_v31  ;;  %4690 = vmatpush.msrb.mxu2 %v7364_v34  ;;  %v3499_v13 = vadd.f32 %v3478_v41, %v3330_v30  ;;  %v7351_v31 = vld [vmem:[%s11671_s6 + $0x3d0] sm:$0xff]  ;;  %v7402_v45 = vld [vmem:[%s11671_s6 + $0x518] sm:$0xff]  ;;  %v7349_v52 = vld [vmem:[%s11671_s6 + $0x3c0] sm:$0xff] }
 0x779   :  { %4526 = vmatpush.msra.mxu3 %v7332_v40  ;;  %4396 = vmatpush.msrb.mxu0 %v7311_v55  ;;  %v7401_v30 = vld [vmem:[%s11671_s6 + $0x510] sm:$0xff]  ;;  %v7399_v55 = vld [vmem:[%s11671_s6 + $0x500] sm:$0xff] }
 0x77a   :  { %4671 = vmatpush.msra.mxu1 %v7361_v33  ;;  %4691 = vmatpush.msrb.mxu2 %v7362_v56  ;;  %v3721_v24 = vadd.f32 %v3700_v50, %v3499_v13  ;;  %v7355_v50 = vld [vmem:[%s11671_s6 + $0x3f0] sm:$0xff]  ;;  %v7400_v33 = vld [vmem:[%s11671_s6 + $0x508] sm:$0xff]  ;;  %v3333_v56 = vadd.f32 %v10202_v42, %v3111_v37 }
 0x77b   :  { %4527 = vmatpush.msra.mxu3 %v7330_v15  ;;  %4397 = vmatpush.msrb.mxu0 %v7309_v58  ;;  %v7396_v15 = vld [vmem:[%s11671_s6 + $0x4f8] sm:$0xff]  ;;  %v3709_v58 = vpop.f32.mrf.mxu2  ;;  %v7375_v42 = vld [vmem:[%s11671_s6 + $0x470] sm:$0xff]  ;;  %v7464_v37 = vld [vmem:[%s11671_s6 + $0x6a8] sm:$0xff] }
 0x77c   :  { %4672 = vmatpush.msra.mxu1 %v7359_v27  ;;  %4692 = vmatpush.msrb.mxu2 %v7360_v3  ;;  %v3738_v19 = vadd.f32 %v10267_v35, %v3721_v24  ;;  %v4699_v27 = vld [vmem:[#allocation3 + $0x22] sm:$0x3]  ;;  %v7425_v24 = vld [vmem:[%s11671_s6 + $0x5b0] sm:$0xff] }
 0x77d   :  { %7317 = vmatmul.msk.f32.vlgmr.msrb.gmra.mxu0 %vm456_vm1, %v4369_v7  ;;  %7338 = vmatmul.msk.f32.vlgmr.msra.gmra.mxu3 %vm456_vm1, %v4479_v48  ;;  %v7405_v7 = vld [vmem:[%s11671_s6 + $0x530] sm:$0xff] }
 0x77e   :  { %4634 = vmatpush.msrb.mxu3 %v7356_v2  ;;  %7367 = vmatmul.msk.f32.vlgmr.msra.gmra.mxu1 %vm456_vm1, %v4644_v16  ;;  %v3751_v32 = vmax.f32 %v3738_v19, 0.0  ;;  %v7426_v2 = vld [vmem:[%s11671_s6 + $0x5b8] sm:$0xff] }
 0x77f   :  { %7368 = vmatmul.msk.f32.vlgmr.msrb.gmra.mxu2 %vm456_vm1, %v4644_v16  ;;  %4504 = vmatpush.msra.mxu0 %v7335_v29  ;;  %v3481_v51 = vpop.f32.mrf.mxu3  ;;  %v7423_v29 = vld [vmem:[%s11671_s6 + $0x5a0] sm:$0xff]  ;;  %v7424_v16 = vld [vmem:[%s11671_s6 + $0x5a8] sm:$0xff] }
 0x780   :  { %3764 = vst.msk [vmem:[#allocation3 + $0x48] sm:$0xff] %vm456_vm1, %v3751_v32  ;;  %4779 = vmatpush.msrb.mxu1 %v7385_v25  ;;  %4799 = vmatpush.msra.mxu2 %v7386_v26  ;;  %v3500_v36 = vadd.f32 %v3481_v51, %v3331_v0  ;;  %v7392_v25 = vld [vmem:[%s11671_s6 + $0x4d8] sm:$0xff]  ;;  %v7371_v26 = vld [vmem:[%s11671_s6 + $0x450] sm:$0xff]  ;;  %v7420_v51 = vld [vmem:[%s11671_s6 + $0x588] sm:$0xff] }
 0x781   :  { %4635 = vmatpush.msrb.mxu3 %v7354_v6  ;;  %4505 = vmatpush.msra.mxu0 %v7333_v47  ;;  %v7421_v32 = vld [vmem:[%s11671_s6 + $0x590] sm:$0xff]  ;;  %v7422_v6 = vld [vmem:[%s11671_s6 + $0x598] sm:$0xff]  ;;  %v7390_v47 = vld [vmem:[%s11671_s6 + $0x4c8] sm:$0xff] }
 0x782   :  { %4780 = vmatpush.msrb.mxu1 %v7383_v28  ;;  %4800 = vmatpush.msra.mxu2 %v7384_v61  ;;  %v3722_v20 = vadd.f32 %v3703_v59, %v3500_v36  ;;  %v7394_v59 = vld [vmem:[%s11671_s6 + $0x4e8] sm:$0xff]  ;;  %v7419_v61 = vld [vmem:[%s11671_s6 + $0x580] sm:$0xff]  ;;  %v7395_v36 = vld [vmem:[%s11671_s6 + $0x4f0] sm:$0xff] }
 0x783   :  { %4636 = vmatpush.msrb.mxu3 %v7352_v8  ;;  %4506 = vmatpush.msra.mxu0 %v7331_v54  ;;  %v7416_v8 = vld [vmem:[%s11671_s6 + $0x578] sm:$0xff]  ;;  %v4809_v54 = vld [vmem:[#allocation3 + $0x26] sm:$0x3] }
 0x784   :  { %4781 = vmatpush.msrb.mxu1 %v7381_v9  ;;  %4801 = vmatpush.msra.mxu2 %v7382_v11  ;;  %v3739_v17 = vadd.f32 %v10267_v35, %v3722_v20  ;;  %v4974_v9 = vld [vmem:[#allocation3 + $0x2c] sm:$0x3]  ;;  %v7443_v20 = vld [vmem:[%s11671_s6 + $0x620] sm:$0xff] }
 0x785   :  { %4637 = vmatpush.msrb.mxu3 %v7350_v4  ;;  %4507 = vmatpush.msra.mxu0 %v7329_v14  ;;  %v7445_v11 = vld [vmem:[%s11671_s6 + $0x630] sm:$0xff]  ;;  %v7414_v4 = vld [vmem:[%s11671_s6 + $0x568] sm:$0xff]  ;;  %v7393_v14 = vld [vmem:[%s11671_s6 + $0x4e0] sm:$0xff] }
 0x786   :  { %4782 = vmatpush.msrb.mxu1 %v7379_v12  ;;  %4802 = vmatpush.msra.mxu2 %v7380_v39  ;;  %v3752_v53 = vmax.f32 %v3739_v17, 0.0  ;;  %v7444_v12 = vld [vmem:[%s11671_s6 + $0x628] sm:$0xff]  ;;  %v7412_v39 = vld [vmem:[%s11671_s6 + $0x558] sm:$0xff]  ;;  %v7391_v17 = vld [vmem:[%s11671_s6 + $0x4d0] sm:$0xff] }
 0x787   :  { %7337 = vmatmul.msk.f32.vlgmr.msra.gmra.mxu0 %vm456_vm1, %v4479_v48  ;;  %7358 = vmatmul.msk.f32.vlgmr.msrb.gmra.mxu3 %vm456_vm1, %v4589_v43  ;;  %v3484_v57 = vpop.f32.mrf.mxu3  ;;  %v7373_v48 = vld [vmem:[%s11671_s6 + $0x460] sm:$0xff] }
 0x788   :  { %4744 = vmatpush.msra.mxu3 %v7376_v18  ;;  %7387 = vmatmul.msk.f32.vlgmr.msrb.gmra.mxu1 %vm456_vm1, %v4754_v44  ;;  %3765 = vst.msk [vmem:[#allocation3 + $0x50] sm:$0xff] %vm456_vm1, %v3752_v53  ;;  %v3501_v38 = vadd.f32 %v3484_v57, %v3332_v46  ;;  %v7441_v18 = vld [vmem:[%s11671_s6 + $0x610] sm:$0xff]  ;;  %v7410_v46 = vld [vmem:[%s11671_s6 + $0x548] sm:$0xff]  ;;  %v7439_v53 = vld [vmem:[%s11671_s6 + $0x600] sm:$0xff] }
 0x789   :  { %7388 = vmatmul.msk.f32.vlgmr.msra.gmra.mxu2 %vm456_vm1, %v4754_v44  ;;  %4614 = vmatpush.msrb.mxu0 %v7355_v50  ;;  %v7440_v50 = vld [vmem:[%s11671_s6 + $0x608] sm:$0xff]  ;;  %v7436_v44 = vld [vmem:[%s11671_s6 + $0x5f8] sm:$0xff] }
 0x78a   :  { %4889 = vmatpush.msra.mxu1 %v7405_v7  ;;  %4909 = vmatpush.msrb.mxu2 %v7406_v22  ;;  %v3723_v34 = vadd.f32 %v3706_v60, %v3501_v38  ;;  %v7442_v60 = vld [vmem:[%s11671_s6 + $0x618] sm:$0xff]  ;;  %v4919_v7 = vld [vmem:[#allocation3 + $0x2a] sm:$0x3]  ;;  %v7434_v38 = vld [vmem:[%s11671_s6 + $0x5e8] sm:$0xff] }
 0x78b   :  { %4745 = vmatpush.msra.mxu3 %v7374_v23  ;;  %4615 = vmatpush.msrb.mxu0 %v7353_v21  ;;  %v7415_v22 = vld [vmem:[%s11671_s6 + $0x570] sm:$0xff]  ;;  %v5084_v57 = vld [vmem:[#allocation3 + $0x30] sm:$0x3] }
 0x78c   :  { %4890 = vmatpush.msra.mxu1 %v7403_v10  ;;  %4910 = vmatpush.msrb.mxu2 %v7404_v62  ;;  %v3740_v40 = vadd.f32 %v10267_v35, %v3723_v34  ;;  %v7465_v23 = vld [vmem:[%s11671_s6 + $0x6b0] sm:$0xff]  ;;  %v7466_v21 = vld [vmem:[%s11671_s6 + $0x6b8] sm:$0xff]  ;;  %v7413_v10 = vld [vmem:[%s11671_s6 + $0x560] sm:$0xff] }
 0x78d   :  { %4746 = vmatpush.msra.mxu3 %v7372_v49  ;;  %4616 = vmatpush.msrb.mxu0 %v7351_v31  ;;  %v7463_v62 = vld [vmem:[%s11671_s6 + $0x6a0] sm:$0xff]  ;;  %v7432_v49 = vld [vmem:[%s11671_s6 + $0x5d8] sm:$0xff]  ;;  %v7411_v31 = vld [vmem:[%s11671_s6 + $0x550] sm:$0xff] }
 0x78e   :  { %4891 = vmatpush.msra.mxu1 %v7401_v30  ;;  %4911 = vmatpush.msrb.mxu2 %v7402_v45  ;;  %v3753_v41 = vmax.f32 %v3740_v40, 0.0  ;;  %v7461_v34 = vld [vmem:[%s11671_s6 + $0x690] sm:$0xff]  ;;  %v7462_v30 = vld [vmem:[%s11671_s6 + $0x698] sm:$0xff]  ;;  %v7430_v45 = vld [vmem:[%s11671_s6 + $0x5c8] sm:$0xff] }
 0x78f   :  { %4747 = vmatpush.msra.mxu3 %v7370_v5  ;;  %4617 = vmatpush.msrb.mxu0 %v7349_v52  ;;  %v3487_v13 = vpop.f32.mrf.mxu3  ;;  %v7409_v5 = vld [vmem:[%s11671_s6 + $0x540] sm:$0xff]  ;;  %v7460_v40 = vld [vmem:[%s11671_s6 + $0x688] sm:$0xff] }
 0x790   :  { %4892 = vmatpush.msra.mxu1 %v7399_v55  ;;  %4912 = vmatpush.msrb.mxu2 %v7400_v33  ;;  %3766 = vst.msk [vmem:[#allocation3 + $0x58] sm:$0xff] %vm456_vm1, %v3753_v41  ;;  %v3502_v3 = vadd.f32 %v3487_v13, %v3333_v56  ;;  %v7459_v52 = vld [vmem:[%s11671_s6 + $0x680] sm:$0xff]  ;;  %v7456_v55 = vld [vmem:[%s11671_s6 + $0x678] sm:$0xff]  ;;  %v5029_v33 = vld [vmem:[#allocation3 + $0x2e] sm:$0x3] }
 0x791   :  { %7357 = vmatmul.msk.f32.vlgmr.msrb.gmra.mxu0 %vm456_vm1, %v4589_v43  ;;  %7378 = vmatmul.msk.f32.vlgmr.msra.gmra.mxu3 %vm456_vm1, %v4699_v27  ;;  %v7389_v43 = vld [vmem:[%s11671_s6 + $0x4c0] sm:$0xff]  ;;  %v7435_v56 = vld [vmem:[%s11671_s6 + $0x5f0] sm:$0xff]  ;;  %v5194_v41 = vld [vmem:[#allocation3 + $0x34] sm:$0x3] }
 0x792   :  { %4854 = vmatpush.msrb.mxu3 %v7396_v15  ;;  %7407 = vmatmul.msk.f32.vlgmr.msra.gmra.mxu1 %vm456_vm1, %v4864_v1  ;;  %v3724_v19 = vadd.f32 %v3709_v58, %v3502_v3  ;;  %v7485_v15 = vld [vmem:[%s11671_s6 + $0x730] sm:$0xff]  ;;  %v7486_v13 = vld [vmem:[%s11671_s6 + $0x738] sm:$0xff]  ;;  %v7454_v58 = vld [vmem:[%s11671_s6 + $0x668] sm:$0xff] }
 0x793   :  { %7408 = vmatmul.msk.f32.vlgmr.msrb.gmra.mxu2 %vm456_vm1, %v4864_v1  ;;  %4724 = vmatpush.msra.mxu0 %v7375_v42  ;;  %v7483_v42 = vld [vmem:[%s11671_s6 + $0x720] sm:$0xff]  ;;  %v7484_v3 = vld [vmem:[%s11671_s6 + $0x728] sm:$0xff]  ;;  %v7452_v1 = vld [vmem:[%s11671_s6 + $0x658] sm:$0xff] }
 0x794   :  { %4999 = vmatpush.msrb.mxu1 %v7425_v24  ;;  %5019 = vmatpush.msra.mxu2 %v7426_v2  ;;  %v3741_v0 = vadd.f32 %v10267_v35, %v3724_v19  ;;  %v7369_v35 = vld [vmem:[%s11671_s6 + $0x440] sm:$0xff]  ;;  %v7431_v24 = vld [vmem:[%s11671_s6 + $0x5d0] sm:$0xff] }
 0x795   :  { %4855 = vmatpush.msrb.mxu3 %v7394_v59  ;;  %4725 = vmatpush.msra.mxu0 %v7373_v48  ;;  %v7481_v2 = vld [vmem:[%s11671_s6 + $0x710] sm:$0xff]  ;;  %v7482_v59 = vld [vmem:[%s11671_s6 + $0x718] sm:$0xff]  ;;  %v7450_v48 = vld [vmem:[%s11671_s6 + $0x648] sm:$0xff] }
 0x796   :  { %5000 = vmatpush.msrb.mxu1 %v7423_v29  ;;  %5020 = vmatpush.msra.mxu2 %v7424_v16  ;;  %v3754_v28 = vmax.f32 %v3741_v0, 0.0  ;;  %v7429_v19 = vld [vmem:[%s11671_s6 + $0x5c0] sm:$0xff]  ;;  %v7480_v16 = vld [vmem:[%s11671_s6 + $0x708] sm:$0xff]  ;;  %v7455_v0 = vld [vmem:[%s11671_s6 + $0x670] sm:$0xff] }
 0x797   :  { %4856 = vmatpush.msrb.mxu3 %v7392_v25  ;;  %4726 = vmatpush.msra.mxu0 %v7371_v26  ;;  %v7479_v29 = vld [vmem:[%s11671_s6 + $0x700] sm:$0xff]  ;;  %v7476_v25 = vld [vmem:[%s11671_s6 + $0x6f8] sm:$0xff] }
 0x798   :  { %5001 = vmatpush.msrb.mxu1 %v7421_v32  ;;  %5021 = vmatpush.msra.mxu2 %v7422_v6  ;;  %3768 = vst.msk [vmem:[#allocation3 + $0x60] sm:$0x3] %vm3767_vm4, %v3754_v28  ;;  %v5139_v26 = vld [vmem:[#allocation3 + $0x32] sm:$0x3]  ;;  %v5304_v32 = vld [vmem:[#allocation3 + $0x38] sm:$0x3] }
 0x799   :  { %4857 = vmatpush.msrb.mxu3 %v7390_v47  ;;  %4727 = vmatpush.msra.mxu0 %v7369_v35  ;;  %v7505_v6 = vld [vmem:[%s11671_s6 + $0x7b0] sm:$0xff]  ;;  %v7506_v47 = vld [vmem:[%s11671_s6 + $0x7b8] sm:$0xff]  ;;  %v7474_v35 = vld [vmem:[%s11671_s6 + $0x6e8] sm:$0xff] }
 0x79a   :  { %5002 = vmatpush.msrb.mxu1 %v7419_v61  ;;  %5022 = vmatpush.msra.mxu2 %v7420_v51  ;;  %v7453_v28 = vld [vmem:[%s11671_s6 + $0x660] sm:$0xff]  ;;  %v7504_v51 = vld [vmem:[%s11671_s6 + $0x7a8] sm:$0xff] }
 0x79b   :  { %7377 = vmatmul.msk.f32.vlgmr.msra.gmra.mxu0 %vm456_vm1, %v4699_v27  ;;  %7398 = vmatmul.msk.f32.vlgmr.msrb.gmra.mxu3 %vm456_vm1, %v4809_v54  ;;  %v7433_v27 = vld [vmem:[%s11671_s6 + $0x5e0] sm:$0xff] }
 0x79c   :  { %4964 = vmatpush.msra.mxu3 %v7416_v8  ;;  %7427 = vmatmul.msk.f32.vlgmr.msrb.gmra.mxu1 %vm456_vm1, %v4974_v9  ;;  %v7503_v61 = vld [vmem:[%s11671_s6 + $0x7a0] sm:$0xff]  ;;  %v7472_v8 = vld [vmem:[%s11671_s6 + $0x6d8] sm:$0xff] }
 0x79d   :  { %7428 = vmatmul.msk.f32.vlgmr.msra.gmra.mxu2 %vm456_vm1, %v4974_v9  ;;  %4834 = vmatpush.msrb.mxu0 %v7395_v36  ;;  %v7501_v36 = vld [vmem:[%s11671_s6 + $0x790] sm:$0xff]  ;;  %v7502_v9 = vld [vmem:[%s11671_s6 + $0x798] sm:$0xff] }
 0x79e   :  { %5109 = vmatpush.msra.mxu1 %v7445_v11  ;;  %5129 = vmatpush.msrb.mxu2 %v7446_v63  ;;  %v7470_v63 = vld [vmem:[%s11671_s6 + $0x6c8] sm:$0xff] }
 0x79f   :  { %4965 = vmatpush.msra.mxu3 %v7414_v4  ;;  %4835 = vmatpush.msrb.mxu0 %v7393_v14  ;;  %v7449_v4 = vld [vmem:[%s11671_s6 + $0x640] sm:$0xff] }
 0x7a0   :  { %5110 = vmatpush.msra.mxu1 %v7443_v20  ;;  %5130 = vmatpush.msrb.mxu2 %v7444_v12  ;;  %v7499_v14 = vld [vmem:[%s11671_s6 + $0x780] sm:$0xff]  ;;  %v7500_v20 = vld [vmem:[%s11671_s6 + $0x788] sm:$0xff]  ;;  %v7496_v12 = vld [vmem:[%s11671_s6 + $0x778] sm:$0xff] }
 0x7a1   :  { %4966 = vmatpush.msra.mxu3 %v7412_v39  ;;  %4836 = vmatpush.msrb.mxu0 %v7391_v17  ;;  %v5249_v39 = vld [vmem:[#allocation3 + $0x36] sm:$0x3]  ;;  %v7475_v17 = vld [vmem:[%s11671_s6 + $0x6f0] sm:$0xff] }
 0x7a2   :  { %5111 = vmatpush.msra.mxu1 %v7441_v18  ;;  %5131 = vmatpush.msrb.mxu2 %v7442_v60  ;;  %v5414_v18 = vld [vmem:[#allocation3 + $0x3c] sm:$0x3]  ;;  %v7525_v60 = vld [vmem:[%s11671_s6 + $0x830] sm:$0xff] }
 0x7a3   :  { %4967 = vmatpush.msra.mxu3 %v7410_v46  ;;  %4837 = vmatpush.msrb.mxu0 %v7389_v43  ;;  %v7526_v46 = vld [vmem:[%s11671_s6 + $0x838] sm:$0xff]  ;;  %v7494_v43 = vld [vmem:[%s11671_s6 + $0x768] sm:$0xff] }
 0x7a4   :  { %5112 = vmatpush.msra.mxu1 %v7439_v53  ;;  %5132 = vmatpush.msrb.mxu2 %v7440_v50  ;;  %v7473_v53 = vld [vmem:[%s11671_s6 + $0x6e0] sm:$0xff] }
 0x7a5   :  { %7397 = vmatmul.msk.f32.vlgmr.msrb.gmra.mxu0 %vm456_vm1, %v4809_v54  ;;  %7418 = vmatmul.msk.f32.vlgmr.msra.gmra.mxu3 %vm456_vm1, %v4919_v7  ;;  %v7451_v54 = vld [vmem:[%s11671_s6 + $0x650] sm:$0xff] }
 0x7a6   :  { %5074 = vmatpush.msrb.mxu3 %v7436_v44  ;;  %7447 = vmatmul.msk.f32.vlgmr.msra.gmra.mxu1 %vm456_vm1, %v5084_v57 }
 0x7a7   :  { %7448 = vmatmul.msk.f32.vlgmr.msrb.gmra.mxu2 %vm456_vm1, %v5084_v57  ;;  %4944 = vmatpush.msra.mxu0 %v7415_v22  ;;  %v7524_v22 = vld [vmem:[%s11671_s6 + $0x828] sm:$0xff] }
 0x7a8   :  { %5219 = vmatpush.msrb.mxu1 %v7465_v23  ;;  %5239 = vmatpush.msra.mxu2 %v7466_v21  ;;  %v7492_v23 = vld [vmem:[%s11671_s6 + $0x758] sm:$0xff]  ;;  %v7471_v21 = vld [vmem:[%s11671_s6 + $0x6d0] sm:$0xff] }
 0x7a9   :  { %5075 = vmatpush.msrb.mxu3 %v7434_v38  ;;  %4945 = vmatpush.msra.mxu0 %v7413_v10  ;;  %v7521_v38 = vld [vmem:[%s11671_s6 + $0x810] sm:$0xff]  ;;  %v7522_v10 = vld [vmem:[%s11671_s6 + $0x818] sm:$0xff] }
 0x7aa   :  { %5220 = vmatpush.msrb.mxu1 %v7463_v62  ;;  %5240 = vmatpush.msra.mxu2 %v7464_v37  ;;  %v7490_v62 = vld [vmem:[%s11671_s6 + $0x748] sm:$0xff]  ;;  %v7469_v37 = vld [vmem:[%s11671_s6 + $0x6c0] sm:$0xff] }
 0x7ab   :  { %5076 = vmatpush.msrb.mxu3 %v7432_v49  ;;  %4946 = vmatpush.msra.mxu0 %v7411_v31  ;;  %v7519_v49 = vld [vmem:[%s11671_s6 + $0x800] sm:$0xff]  ;;  %v7520_v31 = vld [vmem:[%s11671_s6 + $0x808] sm:$0xff] }
 0x7ac   :  { %5221 = vmatpush.msrb.mxu1 %v7461_v34  ;;  %5241 = vmatpush.msra.mxu2 %v7462_v30  ;;  %v7516_v34 = vld [vmem:[%s11671_s6 + $0x7f8] sm:$0xff]  ;;  %v5359_v30 = vld [vmem:[#allocation3 + $0x3a] sm:$0x3] }
 0x7ad   :  { %5077 = vmatpush.msrb.mxu3 %v7430_v45  ;;  %4947 = vmatpush.msra.mxu0 %v7409_v5  ;;  %v7495_v45 = vld [vmem:[%s11671_s6 + $0x770] sm:$0xff] }
 0x7ae   :  { %5222 = vmatpush.msrb.mxu1 %v7459_v52  ;;  %5242 = vmatpush.msra.mxu2 %v7460_v40  ;;  %v5524_v52 = vld [vmem:[#allocation3 + $0x40] sm:$0x3]  ;;  %v7545_v40 = vld [vmem:[%s11671_s6 + $0x8b0] sm:$0xff] }
 0x7af   :  { %7417 = vmatmul.msk.f32.vlgmr.msra.gmra.mxu0 %vm456_vm1, %v4919_v7  ;;  %7438 = vmatmul.msk.f32.vlgmr.msrb.gmra.mxu3 %vm456_vm1, %v5029_v33  ;;  %v7523_v7 = vld [vmem:[%s11671_s6 + $0x820] sm:$0xff] }
 0x7b0   :  { %5184 = vmatpush.msra.mxu3 %v7456_v55  ;;  %7467 = vmatmul.msk.f32.vlgmr.msrb.gmra.mxu1 %vm456_vm1, %v5194_v41  ;;  %v7546_v55 = vld [vmem:[%s11671_s6 + $0x8b8] sm:$0xff] }
 0x7b1   :  { %7468 = vmatmul.msk.f32.vlgmr.msra.gmra.mxu2 %vm456_vm1, %v5194_v41  ;;  %5054 = vmatpush.msrb.mxu0 %v7435_v56  ;;  %v7514_v56 = vld [vmem:[%s11671_s6 + $0x7e8] sm:$0xff]  ;;  %v7493_v41 = vld [vmem:[%s11671_s6 + $0x760] sm:$0xff] }
 0x7b2   :  { %5329 = vmatpush.msra.mxu1 %v7485_v15  ;;  %5349 = vmatpush.msrb.mxu2 %v7486_v13  ;;  %v7543_v13 = vld [vmem:[%s11671_s6 + $0x8a0] sm:$0xff] }
 0x7b3   :  { %5185 = vmatpush.msra.mxu3 %v7454_v58  ;;  %5055 = vmatpush.msrb.mxu0 %v7433_v27  ;;  %v7544_v58 = vld [vmem:[%s11671_s6 + $0x8a8] sm:$0xff]  ;;  %v7512_v27 = vld [vmem:[%s11671_s6 + $0x7d8] sm:$0xff] }
 0x7b4   :  { %5330 = vmatpush.msra.mxu1 %v7483_v42  ;;  %5350 = vmatpush.msrb.mxu2 %v7484_v3  ;;  %v7491_v42 = vld [vmem:[%s11671_s6 + $0x750] sm:$0xff] }
 0x7b5   :  { %5186 = vmatpush.msra.mxu3 %v7452_v1  ;;  %5056 = vmatpush.msrb.mxu0 %v7431_v24  ;;  %v7541_v3 = vld [vmem:[%s11671_s6 + $0x890] sm:$0xff]  ;;  %v7542_v1 = vld [vmem:[%s11671_s6 + $0x898] sm:$0xff] }
 0x7b6   :  { %5331 = vmatpush.msra.mxu1 %v7481_v2  ;;  %5351 = vmatpush.msrb.mxu2 %v7482_v59  ;;  %v7510_v59 = vld [vmem:[%s11671_s6 + $0x7c8] sm:$0xff] }
 0x7b7   :  { %5187 = vmatpush.msra.mxu3 %v7450_v48  ;;  %5057 = vmatpush.msrb.mxu0 %v7429_v19  ;;  %v7489_v48 = vld [vmem:[%s11671_s6 + $0x740] sm:$0xff] }
 0x7b8   :  { %5332 = vmatpush.msra.mxu1 %v7479_v29  ;;  %5352 = vmatpush.msrb.mxu2 %v7480_v16  ;;  %v7539_v29 = vld [vmem:[%s11671_s6 + $0x880] sm:$0xff]  ;;  %v7540_v16 = vld [vmem:[%s11671_s6 + $0x888] sm:$0xff] }
 0x7b9   :  { %7437 = vmatmul.msk.f32.vlgmr.msrb.gmra.mxu0 %vm456_vm1, %v5029_v33  ;;  %7458 = vmatmul.msk.f32.vlgmr.msra.gmra.mxu3 %vm456_vm1, %v5139_v26 }
 0x7ba   :  { %5294 = vmatpush.msrb.mxu3 %v7476_v25  ;;  %7487 = vmatmul.msk.f32.vlgmr.msra.gmra.mxu1 %vm456_vm1, %v5304_v32 }
 0x7bb   :  { %7488 = vmatmul.msk.f32.vlgmr.msrb.gmra.mxu2 %vm456_vm1, %v5304_v32  ;;  %5164 = vmatpush.msra.mxu0 %v7455_v0  ;;  %v7536_v32 = vld [vmem:[%s11671_s6 + $0x878] sm:$0xff] }
 0x7bc   :  { %5439 = vmatpush.msrb.mxu1 %v7505_v6  ;;  %5459 = vmatpush.msra.mxu2 %v7506_v47 }
 0x7bd   :  { %5295 = vmatpush.msrb.mxu3 %v7474_v35  ;;  %5165 = vmatpush.msra.mxu0 %v7453_v28  ;;  %v10998_v11 = vpop.f32.mrf.mxu0  ;;  %v5469_v35 = vld [vmem:[#allocation3 + $0x3e] sm:$0x3]  ;;  %v7515_v28 = vld [vmem:[%s11671_s6 + $0x7f0] sm:$0xff] }
 0x7be   :  { %5440 = vmatpush.msrb.mxu1 %v7503_v61  ;;  %5460 = vmatpush.msra.mxu2 %v7504_v51  ;;  %v5634_v51 = vld [vmem:[#allocation3 + $0x44] sm:$0x3] }
 0x7bf   :  { %5296 = vmatpush.msrb.mxu3 %v7472_v8  ;;  %5166 = vmatpush.msra.mxu0 %v7451_v54  ;;  %v7565_v8 = vld [vmem:[%s11671_s6 + $0x930] sm:$0xff]  ;;  %v7566_v54 = vld [vmem:[%s11671_s6 + $0x938] sm:$0xff] }
 0x7c0   :  { %5441 = vmatpush.msrb.mxu1 %v7501_v36  ;;  %5461 = vmatpush.msra.mxu2 %v7502_v9  ;;  %v7534_v9 = vld [vmem:[%s11671_s6 + $0x868] sm:$0xff] }
 0x7c1   :  { %5297 = vmatpush.msrb.mxu3 %v7470_v63  ;;  %5167 = vmatpush.msra.mxu0 %v7449_v4 }
 0x7c2   :  { %5442 = vmatpush.msrb.mxu1 %v7499_v14  ;;  %5462 = vmatpush.msra.mxu2 %v7500_v20  ;;  %v7563_v14 = vld [vmem:[%s11671_s6 + $0x920] sm:$0xff]  ;;  %v7564_v20 = vld [vmem:[%s11671_s6 + $0x928] sm:$0xff] }
 0x7c3   :  { %7457 = vmatmul.msk.f32.vlgmr.msra.gmra.mxu0 %vm456_vm1, %v5139_v26  ;;  %7478 = vmatmul.msk.f32.vlgmr.msrb.gmra.mxu3 %vm456_vm1, %v5249_v39  ;;  %v3808_v50 = vpop.f32.mrf.mxu2 }
 0x7c4   :  { %5404 = vmatpush.msra.mxu3 %v7496_v12  ;;  %7507 = vmatmul.msk.f32.vlgmr.msrb.gmra.mxu1 %vm456_vm1, %v5414_v18  ;;  %v3871_v44 = vpop.f32.mrf.mxu3  ;;  %v7532_v12 = vld [vmem:[%s11671_s6 + $0x858] sm:$0xff] }
 0x7c5   :  { %7508 = vmatmul.msk.f32.vlgmr.msra.gmra.mxu2 %vm456_vm1, %v5414_v18  ;;  %5274 = vmatpush.msrb.mxu0 %v7475_v17  ;;  %v3851_v57 = vpop.f32.mrf.mxu0  ;;  %v3872_v24 = vadd.f32 %v3871_v44, %v10998_v11  ;;  %v4014_v2 = vpop.f32.mrf.mxu1  ;;  %v7513_v11 = vld [vmem:[%s11671_s6 + $0x7e0] sm:$0xff]  ;;  %v7561_v17 = vld [vmem:[%s11671_s6 + $0x910] sm:$0xff]  ;;  %v7562_v18 = vld [vmem:[%s11671_s6 + $0x918] sm:$0xff] }
 0x7c6   :  { %5549 = vmatpush.msra.mxu1 %v7525_v60  ;;  %5569 = vmatpush.msrb.mxu2 %v7526_v46  ;;  %v3852_v19 = vadd.f32 %v3851_v57, %v3808_v50  ;;  %v7530_v46 = vld [vmem:[%s11671_s6 + $0x848] sm:$0xff]  ;;  %v7559_v50 = vld [vmem:[%s11671_s6 + $0x900] sm:$0xff] }
 0x7c7   :  { %5405 = vmatpush.msra.mxu3 %v7494_v43  ;;  %5275 = vmatpush.msrb.mxu0 %v7473_v53  ;;  %v7509_v43 = vld [vmem:[%s11671_s6 + $0x7c0] sm:$0xff]  ;;  %v7560_v44 = vld [vmem:[%s11671_s6 + $0x908] sm:$0xff] }
 0x7c8   :  { %5550 = vmatpush.msra.mxu1 %v7523_v7  ;;  %5570 = vmatpush.msrb.mxu2 %v7524_v22 }
 0x7c9   :  { %5406 = vmatpush.msra.mxu3 %v7492_v23  ;;  %5276 = vmatpush.msrb.mxu0 %v7471_v21  ;;  %v7556_v23 = vld [vmem:[%s11671_s6 + $0x8f8] sm:$0xff] }
 0x7ca   :  { %5551 = vmatpush.msra.mxu1 %v7521_v38  ;;  %5571 = vmatpush.msrb.mxu2 %v7522_v10  ;;  %v5579_v38 = vld [vmem:[#allocation3 + $0x42] sm:$0x3]  ;;  %v7535_v10 = vld [vmem:[%s11671_s6 + $0x870] sm:$0xff] }
 0x7cb   :  { %5407 = vmatpush.msra.mxu3 %v7490_v62  ;;  %5277 = vmatpush.msrb.mxu0 %v7469_v37  ;;  %v5744_v62 = vld [vmem:[#allocation3 + $0x48] sm:$0x3] }
 0x7cc   :  { %5552 = vmatpush.msra.mxu1 %v7519_v49  ;;  %5572 = vmatpush.msrb.mxu2 %v7520_v31  ;;  %v3924_v5 = vpop.f32.mrf.mxu3  ;;  %v4034_v15 = vpop.f32.mrf.mxu2  ;;  %v7585_v37 = vld [vmem:[%s11671_s6 + $0x9b0] sm:$0xff]  ;;  %v7586_v49 = vld [vmem:[%s11671_s6 + $0x9b8] sm:$0xff] }
 0x7cd   :  { %7477 = vmatmul.msk.f32.vlgmr.msrb.gmra.mxu0 %vm456_vm1, %v5249_v39  ;;  %7498 = vmatmul.msk.f32.vlgmr.msra.gmra.mxu3 %vm456_vm1, %v5359_v30  ;;  %v3904_v33 = vpop.f32.mrf.mxu0  ;;  %v3928_v25 = vadd.f32 %v3924_v5, %v3872_v24  ;;  %v7511_v39 = vld [vmem:[%s11671_s6 + $0x7d0] sm:$0xff]  ;;  %v7583_v5 = vld [vmem:[%s11671_s6 + $0x9a0] sm:$0xff] }
 0x7ce   :  { %5514 = vmatpush.msrb.mxu3 %v7516_v34  ;;  %7527 = vmatmul.msk.f32.vlgmr.msra.gmra.mxu1 %vm456_vm1, %v5524_v52  ;;  %v3927_v26 = vadd.f32 %v3904_v33, %v3852_v19  ;;  %v4124_v60 = vpop.f32.mrf.mxu1  ;;  %v7554_v34 = vld [vmem:[%s11671_s6 + $0x8e8] sm:$0xff]  ;;  %v7555_v19 = vld [vmem:[%s11671_s6 + $0x8f0] sm:$0xff] }
 0x7cf   :  { %7528 = vmatmul.msk.f32.vlgmr.msrb.gmra.mxu2 %vm456_vm1, %v5524_v52  ;;  %5384 = vmatpush.msra.mxu0 %v7495_v45  ;;  %v7584_v52 = vld [vmem:[%s11671_s6 + $0x9a8] sm:$0xff] }
 0x7d0   :  { %5659 = vmatpush.msrb.mxu1 %v7545_v40  ;;  %5679 = vmatpush.msra.mxu2 %v7546_v55  ;;  %v7552_v40 = vld [vmem:[%s11671_s6 + $0x8d8] sm:$0xff]  ;;  %v7531_v55 = vld [vmem:[%s11671_s6 + $0x850] sm:$0xff] }
 0x7d1   :  { %5515 = vmatpush.msrb.mxu3 %v7514_v56  ;;  %5385 = vmatpush.msra.mxu0 %v7493_v41  ;;  %v7581_v56 = vld [vmem:[%s11671_s6 + $0x990] sm:$0xff]  ;;  %v7582_v41 = vld [vmem:[%s11671_s6 + $0x998] sm:$0xff] }
 0x7d2   :  { %5660 = vmatpush.msrb.mxu1 %v7543_v13  ;;  %5680 = vmatpush.msra.mxu2 %v7544_v58  ;;  %v7550_v58 = vld [vmem:[%s11671_s6 + $0x8c8] sm:$0xff] }
 0x7d3   :  { %5516 = vmatpush.msrb.mxu3 %v7512_v27  ;;  %5386 = vmatpush.msra.mxu0 %v7491_v42  ;;  %v7529_v27 = vld [vmem:[%s11671_s6 + $0x840] sm:$0xff] }
 0x7d4   :  { %5661 = vmatpush.msrb.mxu1 %v7541_v3  ;;  %5681 = vmatpush.msra.mxu2 %v7542_v1  ;;  %v3979_v0 = vpop.f32.mrf.mxu3  ;;  %v7579_v3 = vld [vmem:[%s11671_s6 + $0x980] sm:$0xff]  ;;  %v7580_v1 = vld [vmem:[%s11671_s6 + $0x988] sm:$0xff] }
 0x7d5   :  { %5517 = vmatpush.msrb.mxu3 %v7510_v59  ;;  %5387 = vmatpush.msra.mxu0 %v7489_v48  ;;  %v3983_v6 = vadd.f32 %v3979_v0, %v3928_v25  ;;  %v3959_v47 = vpop.f32.mrf.mxu0  ;;  %v4144_v63 = vpop.f32.mrf.mxu2  ;;  %v5689_v48 = vld [vmem:[#allocation3 + $0x46] sm:$0x3]  ;;  %v7606_v25 = vld [vmem:[%s11671_s6 + $0xa38] sm:$0xff] }
 0x7d6   :  { %5662 = vmatpush.msrb.mxu1 %v7539_v29  ;;  %5682 = vmatpush.msra.mxu2 %v7540_v16  ;;  %v3982_v61 = vadd.f32 %v3959_v47, %v3927_v26  ;;  %v5854_v29 = vld [vmem:[#allocation3 + $0x4c] sm:$0x3]  ;;  %v7574_v0 = vld [vmem:[%s11671_s6 + $0x968] sm:$0xff]  ;;  %v7603_v47 = vld [vmem:[%s11671_s6 + $0xa20] sm:$0xff] }
 0x7d7   :  { %7497 = vmatmul.msk.f32.vlgmr.msra.gmra.mxu0 %vm456_vm1, %v5359_v30  ;;  %7518 = vmatmul.msk.f32.vlgmr.msrb.gmra.mxu3 %vm456_vm1, %v5469_v35  ;;  %v4038_v36 = vadd.f32 %v4034_v15, %v3983_v6  ;;  %v7533_v30 = vld [vmem:[%s11671_s6 + $0x860] sm:$0xff]  ;;  %v4234_v15 = vpop.f32.mrf.mxu1  ;;  %v7605_v16 = vld [vmem:[%s11671_s6 + $0xa30] sm:$0xff] }
 0x7d8   :  { %5624 = vmatpush.msra.mxu3 %v7536_v32  ;;  %7547 = vmatmul.msk.f32.vlgmr.msrb.gmra.mxu1 %vm456_vm1, %v5634_v51  ;;  %v4037_v4 = vadd.f32 %v4014_v2, %v3982_v61  ;;  %v7576_v2 = vld [vmem:[%s11671_s6 + $0x978] sm:$0xff]  ;;  %v7553_v32 = vld [vmem:[%s11671_s6 + $0x8e0] sm:$0xff] }
 0x7d9   :  { %7548 = vmatmul.msk.f32.vlgmr.msra.gmra.mxu2 %vm456_vm1, %v5634_v51  ;;  %5494 = vmatpush.msrb.mxu0 %v7515_v28  ;;  %v7572_v61 = vld [vmem:[%s11671_s6 + $0x958] sm:$0xff]  ;;  %v7551_v51 = vld [vmem:[%s11671_s6 + $0x8d0] sm:$0xff] }
 0x7da   :  { %5769 = vmatpush.msra.mxu1 %v7565_v8  ;;  %5789 = vmatpush.msrb.mxu2 %v7566_v54  ;;  %v7601_v54 = vld [vmem:[%s11671_s6 + $0xa10] sm:$0xff] }
 0x7db   :  { %5625 = vmatpush.msra.mxu3 %v7534_v9  ;;  %5495 = vmatpush.msrb.mxu0 %v7513_v11  ;;  %v7570_v11 = vld [vmem:[%s11671_s6 + $0x948] sm:$0xff] }
 0x7dc   :  { %5770 = vmatpush.msra.mxu1 %v7563_v14  ;;  %5790 = vmatpush.msrb.mxu2 %v7564_v20  ;;  %v4089_v53 = vpop.f32.mrf.mxu3  ;;  %v7599_v14 = vld [vmem:[%s11671_s6 + $0xa00] sm:$0xff]  ;;  %v7600_v20 = vld [vmem:[%s11671_s6 + $0xa08] sm:$0xff] }
 0x7dd   :  { %5626 = vmatpush.msra.mxu3 %v7532_v12  ;;  %5496 = vmatpush.msrb.mxu0 %v7511_v39  ;;  %v4093_v7 = vadd.f32 %v4089_v53, %v4038_v36  ;;  %v4069_v22 = vpop.f32.mrf.mxu0  ;;  %v4254_v45 = vpop.f32.mrf.mxu2  ;;  %v7602_v36 = vld [vmem:[%s11671_s6 + $0xa18] sm:$0xff] }
 0x7de   :  { %5771 = vmatpush.msra.mxu1 %v7561_v17  ;;  %5791 = vmatpush.msrb.mxu2 %v7562_v18  ;;  %v4092_v57 = vadd.f32 %v4069_v22, %v4037_v4  ;;  %v7596_v39 = vld [vmem:[%s11671_s6 + $0x9f8] sm:$0xff]  ;;  %v5799_v18 = vld [vmem:[#allocation3 + $0x4a] sm:$0x3] }
 0x7df   :  { %5627 = vmatpush.msra.mxu3 %v7530_v46  ;;  %5497 = vmatpush.msrb.mxu0 %v7509_v43  ;;  %v4148_v21 = vadd.f32 %v4144_v63, %v4093_v7  ;;  %v4344_v9 = vpop.f32.mrf.mxu1  ;;  %v7549_v63 = vld [vmem:[%s11671_s6 + $0x8c0] sm:$0xff]  ;;  %v5964_v46 = vld [vmem:[#allocation3 + $0x50] sm:$0x3]  ;;  %v7625_v43 = vld [vmem:[%s11671_s6 + $0xab0] sm:$0xff] }
 0x7e0   :  { %5772 = vmatpush.msra.mxu1 %v7559_v50  ;;  %5792 = vmatpush.msrb.mxu2 %v7560_v44  ;;  %v4147_v31 = vadd.f32 %v4124_v60, %v4092_v57  ;;  %v7575_v60 = vld [vmem:[%s11671_s6 + $0x970] sm:$0xff]  ;;  %v7626_v53 = vld [vmem:[%s11671_s6 + $0xab8] sm:$0xff]  ;;  %v7594_v44 = vld [vmem:[%s11671_s6 + $0x9e8] sm:$0xff] }
 0x7e1   :  { %7517 = vmatmul.msk.f32.vlgmr.msrb.gmra.mxu0 %vm456_vm1, %v5469_v35  ;;  %7538 = vmatmul.msk.f32.vlgmr.msra.gmra.mxu3 %vm456_vm1, %v5579_v38  ;;  %v7604_v35 = vld [vmem:[%s11671_s6 + $0xa28] sm:$0xff]  ;;  %v7573_v7 = vld [vmem:[%s11671_s6 + $0x960] sm:$0xff] }
 0x7e2   :  { %5734 = vmatpush.msrb.mxu3 %v7556_v23  ;;  %7567 = vmatmul.msk.f32.vlgmr.msra.gmra.mxu1 %vm456_vm1, %v5744_v62  ;;  %v7623_v57 = vld [vmem:[%s11671_s6 + $0xaa0] sm:$0xff]  ;;  %v7624_v23 = vld [vmem:[%s11671_s6 + $0xaa8] sm:$0xff] }
 0x7e3   :  { %7568 = vmatmul.msk.f32.vlgmr.msrb.gmra.mxu2 %vm456_vm1, %v5744_v62  ;;  %5604 = vmatpush.msra.mxu0 %v7535_v10  ;;  %v7571_v10 = vld [vmem:[%s11671_s6 + $0x950] sm:$0xff] }
 0x7e4   :  { %5879 = vmatpush.msrb.mxu1 %v7585_v37  ;;  %5899 = vmatpush.msra.mxu2 %v7586_v49  ;;  %v4199_v33 = vpop.f32.mrf.mxu3  ;;  %v7621_v37 = vld [vmem:[%s11671_s6 + $0xa90] sm:$0xff]  ;;  %v7622_v49 = vld [vmem:[%s11671_s6 + $0xa98] sm:$0xff] }
 0x7e5   :  { %5735 = vmatpush.msrb.mxu3 %v7554_v34  ;;  %5605 = vmatpush.msra.mxu0 %v7533_v30  ;;  %v4203_v13 = vadd.f32 %v4199_v33, %v4148_v21  ;;  %v4179_v42 = vpop.f32.mrf.mxu0  ;;  %v4364_v6 = vpop.f32.mrf.mxu2  ;;  %v7590_v34 = vld [vmem:[%s11671_s6 + $0x9c8] sm:$0xff]  ;;  %v7569_v30 = vld [vmem:[%s11671_s6 + $0x940] sm:$0xff] }
 0x7e6   :  { %5880 = vmatpush.msrb.mxu1 %v7583_v5  ;;  %5900 = vmatpush.msra.mxu2 %v7584_v52  ;;  %v4202_v24 = vadd.f32 %v4179_v42, %v4147_v31  ;;  %v7619_v5 = vld [vmem:[%s11671_s6 + $0xa80] sm:$0xff]  ;;  %v7620_v52 = vld [vmem:[%s11671_s6 + $0xa88] sm:$0xff] }
 0x7e7   :  { %5736 = vmatpush.msrb.mxu3 %v7552_v40  ;;  %5606 = vmatpush.msra.mxu0 %v7531_v55  ;;  %v4258_v59 = vadd.f32 %v4254_v45, %v4203_v13  ;;  %v4454_v31 = vpop.f32.mrf.mxu1  ;;  %v7616_v55 = vld [vmem:[%s11671_s6 + $0xa78] sm:$0xff]  ;;  %v7645_v13 = vld [vmem:[%s11671_s6 + $0xb30] sm:$0xff]  ;;  %v7614_v42 = vld [vmem:[%s11671_s6 + $0xa68] sm:$0xff] }
 0x7e8   :  { %5881 = vmatpush.msrb.mxu1 %v7581_v56  ;;  %5901 = vmatpush.msra.mxu2 %v7582_v41  ;;  %v4257_v26 = vadd.f32 %v4234_v15, %v4202_v24  ;;  %v5909_v56 = vld [vmem:[#allocation3 + $0x4e] sm:$0x3]  ;;  %v6074_v15 = vld [vmem:[#allocation3 + $0x54] sm:$0x3] }
 0x7e9   :  { %5737 = vmatpush.msrb.mxu3 %v7550_v58  ;;  %5607 = vmatpush.msra.mxu0 %v7529_v27  ;;  %v7595_v41 = vld [vmem:[%s11671_s6 + $0x9f0] sm:$0xff]  ;;  %v7646_v58 = vld [vmem:[%s11671_s6 + $0xb38] sm:$0xff] }
 0x7ea   :  { %5882 = vmatpush.msrb.mxu1 %v7579_v3  ;;  %5902 = vmatpush.msra.mxu2 %v7580_v1  ;;  %v7593_v3 = vld [vmem:[%s11671_s6 + $0x9e0] sm:$0xff] }
 0x7eb   :  { %7537 = vmatmul.msk.f32.vlgmr.msra.gmra.mxu0 %vm456_vm1, %v5579_v38  ;;  %7558 = vmatmul.msk.f32.vlgmr.msrb.gmra.mxu3 %vm456_vm1, %v5689_v48  ;;  %v7592_v38 = vld [vmem:[%s11671_s6 + $0x9d8] sm:$0xff] }
 0x7ec   :  { %5844 = vmatpush.msra.mxu3 %v7576_v2  ;;  %7587 = vmatmul.msk.f32.vlgmr.msrb.gmra.mxu1 %vm456_vm1, %v5854_v29  ;;  %v4309_v28 = vpop.f32.mrf.mxu3  ;;  %v7643_v2 = vld [vmem:[%s11671_s6 + $0xb20] sm:$0xff] }
 0x7ed   :  { %7588 = vmatmul.msk.f32.vlgmr.msra.gmra.mxu2 %vm456_vm1, %v5854_v29  ;;  %5714 = vmatpush.msrb.mxu0 %v7555_v19  ;;  %v4313_v8 = vadd.f32 %v4309_v28, %v4258_v59  ;;  %v7644_v59 = vld [vmem:[%s11671_s6 + $0xb28] sm:$0xff]  ;;  %v7612_v19 = vld [vmem:[%s11671_s6 + $0xa58] sm:$0xff]  ;;  %v7591_v29 = vld [vmem:[%s11671_s6 + $0x9d0] sm:$0xff] }
 0x7ee   :  { %5989 = vmatpush.msra.mxu1 %v7605_v16  ;;  %6009 = vmatpush.msrb.mxu2 %v7606_v25  ;;  %v4474_v22 = vpop.f32.mrf.mxu2  ;;  %v7641_v16 = vld [vmem:[%s11671_s6 + $0xb10] sm:$0xff]  ;;  %v7642_v25 = vld [vmem:[%s11671_s6 + $0xb18] sm:$0xff] }
 0x7ef   :  { %5845 = vmatpush.msra.mxu3 %v7574_v0  ;;  %5715 = vmatpush.msrb.mxu0 %v7553_v32  ;;  %v4368_v17 = vadd.f32 %v4364_v6, %v4313_v8  ;;  %v7610_v0 = vld [vmem:[%s11671_s6 + $0xa48] sm:$0xff]  ;;  %v7589_v32 = vld [vmem:[%s11671_s6 + $0x9c0] sm:$0xff] }
 0x7f0   :  { %5990 = vmatpush.msra.mxu1 %v7603_v47  ;;  %6010 = vmatpush.msrb.mxu2 %v7604_v35  ;;  %v4289_v4 = vpop.f32.mrf.mxu0  ;;  %v7639_v47 = vld [vmem:[%s11671_s6 + $0xb00] sm:$0xff]  ;;  %v7640_v35 = vld [vmem:[%s11671_s6 + $0xb08] sm:$0xff] }
 0x7f1   :  { %5846 = vmatpush.msra.mxu3 %v7572_v61  ;;  %5716 = vmatpush.msrb.mxu0 %v7551_v51  ;;  %v4312_v12 = vadd.f32 %v4289_v4, %v4257_v26  ;;  %v4564_v26 = vpop.f32.mrf.mxu1  ;;  %v7636_v51 = vld [vmem:[%s11671_s6 + $0xaf8] sm:$0xff]  ;;  %v7634_v4 = vld [vmem:[%s11671_s6 + $0xae8] sm:$0xff] }
 0x7f2   :  { %5991 = vmatpush.msra.mxu1 %v7601_v54  ;;  %6011 = vmatpush.msrb.mxu2 %v7602_v36  ;;  %v6019_v54 = vld [vmem:[#allocation3 + $0x52] sm:$0x3]  ;;  %v7615_v36 = vld [vmem:[%s11671_s6 + $0xa70] sm:$0xff] }
 0x7f3   :  { %5847 = vmatpush.msra.mxu3 %v7570_v11  ;;  %5717 = vmatpush.msrb.mxu0 %v7549_v63  ;;  %v4367_v50 = vadd.f32 %v4344_v9, %v4312_v12  ;;  %v6184_v9 = vld [vmem:[#allocation3 + $0x58] sm:$0x3]  ;;  %v7665_v11 = vld [vmem:[%s11671_s6 + $0xbb0] sm:$0xff]  ;;  %v7666_v63 = vld [vmem:[%s11671_s6 + $0xbb8] sm:$0xff] }
 0x7f4   :  { %5992 = vmatpush.msra.mxu1 %v7599_v14  ;;  %6012 = vmatpush.msrb.mxu2 %v7600_v20  ;;  %v7613_v14 = vld [vmem:[%s11671_s6 + $0xa60] sm:$0xff] }
 0x7f5   :  { %7557 = vmatmul.msk.f32.vlgmr.msrb.gmra.mxu0 %vm456_vm1, %v5689_v48  ;;  %7578 = vmatmul.msk.f32.vlgmr.msra.gmra.mxu3 %vm456_vm1, %v5799_v18 }
 0x7f6   :  { %5954 = vmatpush.msrb.mxu3 %v7596_v39  ;;  %7607 = vmatmul.msk.f32.vlgmr.msra.gmra.mxu1 %vm456_vm1, %v5964_v46  ;;  %v4419_v21 = vpop.f32.mrf.mxu3  ;;  %v7663_v39 = vld [vmem:[%s11671_s6 + $0xba0] sm:$0xff] }
 0x7f7   :  { %7608 = vmatmul.msk.f32.vlgmr.msrb.gmra.mxu2 %vm456_vm1, %v5964_v46  ;;  %5824 = vmatpush.msra.mxu0 %v7575_v60  ;;  %v4423_v62 = vadd.f32 %v4419_v21, %v4368_v17  ;;  %v7664_v17 = vld [vmem:[%s11671_s6 + $0xba8] sm:$0xff]  ;;  %v7632_v60 = vld [vmem:[%s11671_s6 + $0xad8] sm:$0xff]  ;;  %v7611_v46 = vld [vmem:[%s11671_s6 + $0xa50] sm:$0xff] }
 0x7f8   :  { %6099 = vmatpush.msrb.mxu1 %v7625_v43  ;;  %6119 = vmatpush.msra.mxu2 %v7626_v53  ;;  %v4584_v1 = vpop.f32.mrf.mxu2  ;;  %v7661_v43 = vld [vmem:[%s11671_s6 + $0xb90] sm:$0xff]  ;;  %v7662_v53 = vld [vmem:[%s11671_s6 + $0xb98] sm:$0xff]  ;;  %v7660_v21 = vld [vmem:[%s11671_s6 + $0xb88] sm:$0xff] }
 0x7f9   :  { %5955 = vmatpush.msrb.mxu3 %v7594_v44  ;;  %5825 = vmatpush.msra.mxu0 %v7573_v7  ;;  %v4478_v33 = vadd.f32 %v4474_v22, %v4423_v62  ;;  %v7630_v7 = vld [vmem:[%s11671_s6 + $0xac8] sm:$0xff]  ;;  %v7609_v22 = vld [vmem:[%s11671_s6 + $0xa40] sm:$0xff] }
 0x7fa   :  { %6100 = vmatpush.msrb.mxu1 %v7623_v57  ;;  %6120 = vmatpush.msra.mxu2 %v7624_v23  ;;  %v4399_v45 = vpop.f32.mrf.mxu0  ;;  %v7659_v23 = vld [vmem:[%s11671_s6 + $0xb80] sm:$0xff] }
 0x7fb   :  { %5956 = vmatpush.msrb.mxu3 %v7592_v38  ;;  %5826 = vmatpush.msra.mxu0 %v7571_v10  ;;  %v4422_v40 = vadd.f32 %v4399_v45, %v4367_v50  ;;  %v4674_v50 = vpop.f32.mrf.mxu1  ;;  %v7656_v10 = vld [vmem:[%s11671_s6 + $0xb78] sm:$0xff]  ;;  %v7654_v45 = vld [vmem:[%s11671_s6 + $0xb68] sm:$0xff] }
 0x7fc   :  { %6101 = vmatpush.msrb.mxu1 %v7621_v37  ;;  %6121 = vmatpush.msra.mxu2 %v7622_v49  ;;  %v6129_v37 = vld [vmem:[#allocation3 + $0x56] sm:$0x3]  ;;  %v7635_v49 = vld [vmem:[%s11671_s6 + $0xaf0] sm:$0xff] }
 0x7fd   :  { %5957 = vmatpush.msrb.mxu3 %v7590_v34  ;;  %5827 = vmatpush.msra.mxu0 %v7569_v30  ;;  %v4477_v27 = vadd.f32 %v4454_v31, %v4422_v40  ;;  %v6294_v31 = vld [vmem:[#allocation3 + $0x5c] sm:$0x3]  ;;  %v7685_v34 = vld [vmem:[%s11671_s6 + $0xc30] sm:$0xff]  ;;  %v7686_v30 = vld [vmem:[%s11671_s6 + $0xc38] sm:$0xff] }
 0x7fe   :  { %6102 = vmatpush.msrb.mxu1 %v7619_v5  ;;  %6122 = vmatpush.msra.mxu2 %v7620_v52  ;;  %v7633_v5 = vld [vmem:[%s11671_s6 + $0xae0] sm:$0xff] }
 0x7ff   :  { %7577 = vmatmul.msk.f32.vlgmr.msra.gmra.mxu0 %vm456_vm1, %v5799_v18  ;;  %7598 = vmatmul.msk.f32.vlgmr.msrb.gmra.mxu3 %vm456_vm1, %v5909_v56 }
 0x800   :  { %6064 = vmatpush.msra.mxu3 %v7616_v55  ;;  %7627 = vmatmul.msk.f32.vlgmr.msrb.gmra.mxu1 %vm456_vm1, %v6074_v15  ;;  %v4529_v24 = vpop.f32.mrf.mxu3  ;;  %v7683_v55 = vld [vmem:[%s11671_s6 + $0xc20] sm:$0xff] }
 0x801   :  { %7628 = vmatmul.msk.f32.vlgmr.msra.gmra.mxu2 %vm456_vm1, %v6074_v15  ;;  %5934 = vmatpush.msrb.mxu0 %v7595_v41  ;;  %v4533_v48 = vadd.f32 %v4529_v24, %v4478_v33  ;;  %v7684_v33 = vld [vmem:[%s11671_s6 + $0xc28] sm:$0xff]  ;;  %v7631_v41 = vld [vmem:[%s11671_s6 + $0xad0] sm:$0xff] }
 0x802   :  { %6209 = vmatpush.msra.mxu1 %v7645_v13  ;;  %6229 = vmatpush.msrb.mxu2 %v7646_v58  ;;  %v4694_v20 = vpop.f32.mrf.mxu2  ;;  %v7681_v15 = vld [vmem:[%s11671_s6 + $0xc10] sm:$0xff]  ;;  %v7682_v13 = vld [vmem:[%s11671_s6 + $0xc18] sm:$0xff]  ;;  %v7680_v24 = vld [vmem:[%s11671_s6 + $0xc08] sm:$0xff] }
 0x803   :  { %6065 = vmatpush.msra.mxu3 %v7614_v42  ;;  %5935 = vmatpush.msrb.mxu0 %v7593_v3  ;;  %v4588_v61 = vadd.f32 %v4584_v1, %v4533_v48  ;;  %v7629_v42 = vld [vmem:[%s11671_s6 + $0xac0] sm:$0xff]  ;;  %v7655_v48 = vld [vmem:[%s11671_s6 + $0xb70] sm:$0xff] }
 0x804   :  { %6210 = vmatpush.msra.mxu1 %v7643_v2  ;;  %6230 = vmatpush.msrb.mxu2 %v7644_v59  ;;  %v4509_v6 = vpop.f32.mrf.mxu0  ;;  %v7679_v1 = vld [vmem:[%s11671_s6 + $0xc00] sm:$0xff]  ;;  %v7676_v2 = vld [vmem:[%s11671_s6 + $0xbf8] sm:$0xff] }
 0x805   :  { %6066 = vmatpush.msra.mxu3 %v7612_v19  ;;  %5936 = vmatpush.msrb.mxu0 %v7591_v29  ;;  %v4532_v28 = vadd.f32 %v4509_v6, %v4477_v27  ;;  %v11477_v58 = vpop.f32.mrf.mxu1  ;;  %v7650_v27 = vld [vmem:[%s11671_s6 + $0xb48] sm:$0xff]  ;;  %v6239_v59 = vld [vmem:[#allocation3 + $0x5a] sm:$0x3] }
 0x806   :  { %6211 = vmatpush.msra.mxu1 %v7641_v16  ;;  %6231 = vmatpush.msrb.mxu2 %v7642_v25  ;;  %v6404_v19 = vld [vmem:[#allocation3 + $0x60] sm:$0x3]  ;;  %v7653_v16 = vld [vmem:[%s11671_s6 + $0xb60] sm:$0xff] }
 0x807   :  { %6067 = vmatpush.msra.mxu3 %v7610_v0  ;;  %5937 = vmatpush.msrb.mxu0 %v7589_v32  ;;  %v4587_v8 = vadd.f32 %v4564_v26, %v4532_v28  ;;  %v7674_v29 = vld [vmem:[%s11671_s6 + $0xbe8] sm:$0xff]  ;;  %v7672_v0 = vld [vmem:[%s11671_s6 + $0xbd8] sm:$0xff]  ;;  %v7651_v32 = vld [vmem:[%s11671_s6 + $0xb50] sm:$0xff] }
 0x808   :  { %6212 = vmatpush.msra.mxu1 %v7639_v47  ;;  %6232 = vmatpush.msrb.mxu2 %v7640_v35  ;;  %v7670_v6 = vld [vmem:[%s11671_s6 + $0xbc8] sm:$0xff]  ;;  %v7649_v35 = vld [vmem:[%s11671_s6 + $0xb40] sm:$0xff] }
 0x809   :  { %7597 = vmatmul.msk.f32.vlgmr.msrb.gmra.mxu0 %vm456_vm1, %v5909_v56  ;;  %7618 = vmatmul.msk.f32.vlgmr.msra.gmra.mxu3 %vm456_vm1, %v6019_v54  ;;  %v7652_v56 = vld [vmem:[%s11671_s6 + $0xb58] sm:$0xff] }
 0x80a   :  { %6174 = vmatpush.msrb.mxu3 %v7636_v51  ;;  %7647 = vmatmul.msk.f32.vlgmr.msra.gmra.mxu1 %vm456_vm1, %v6184_v9  ;;  %v4639_v12 = vpop.f32.mrf.mxu3  ;;  %v7675_v51 = vld [vmem:[%s11671_s6 + $0xbf0] sm:$0xff] }
 0x80b   :  { %7648 = vmatmul.msk.f32.vlgmr.msrb.gmra.mxu2 %vm456_vm1, %v6184_v9  ;;  %6044 = vmatpush.msra.mxu0 %v7615_v36  ;;  %v4643_v18 = vadd.f32 %v4639_v12, %v4588_v61  ;;  %v6349_v61 = vld [vmem:[#allocation3 + $0x5e] sm:$0x3] }
 0x80c   :  { %6319 = vmatpush.msrb.mxu1 %v7665_v11  ;;  %6339 = vmatpush.msra.mxu2 %v7666_v63  ;;  %v11454_v52 = vpop.f32.mrf.mxu2  ;;  %v7669_v11 = vld [vmem:[%s11671_s6 + $0xbc0] sm:$0xff] }
 0x80d   :  { %6175 = vmatpush.msrb.mxu3 %v7634_v4  ;;  %6045 = vmatpush.msra.mxu0 %v7613_v14  ;;  %v11417_v44 = vadd.f32 %v4694_v20, %v4643_v18 }
 0x80e   :  { %6320 = vmatpush.msrb.mxu1 %v7663_v39  ;;  %6340 = vmatpush.msra.mxu2 %v7664_v17  ;;  %v4619_v57 = vpop.f32.mrf.mxu0 }
 0x80f   :  { %6176 = vmatpush.msrb.mxu3 %v7632_v60  ;;  %6046 = vmatpush.msra.mxu0 %v7611_v46  ;;  %v4642_v38 = vadd.f32 %v4619_v57, %v4587_v8  ;;  %v4894_v47 = vpop.f32.mrf.mxu1  ;;  %v7673_v8 = vld [vmem:[%s11671_s6 + $0xbe0] sm:$0xff] }
 0x810   :  { %6321 = vmatpush.msrb.mxu1 %v7661_v43  ;;  %6341 = vmatpush.msra.mxu2 %v7662_v53 }
 0x811   :  { %6177 = vmatpush.msrb.mxu3 %v7630_v7  ;;  %6047 = vmatpush.msra.mxu0 %v7609_v22  ;;  %v11434_v62 = vadd.f32 %v4674_v50, %v4642_v38 }
 0x812   :  { %6322 = vmatpush.msrb.mxu1 %v7659_v23  ;;  %6342 = vmatpush.msra.mxu2 %v7660_v21 }
 0x813   :  { %7617 = vmatmul.msk.f32.vlgmr.msra.gmra.mxu0 %vm456_vm1, %v6019_v54  ;;  %7638 = vmatmul.msk.f32.vlgmr.msrb.gmra.mxu3 %vm456_vm1, %v6129_v37  ;;  %v7671_v54 = vld [vmem:[%s11671_s6 + $0xbd0] sm:$0xff] }
 0x814   :  { %6284 = vmatpush.msra.mxu3 %v7656_v10  ;;  %7667 = vmatmul.msk.f32.vlgmr.msrb.gmra.mxu1 %vm456_vm1, %v6294_v31  ;;  %v11456_v40 = vpop.f32.mrf.mxu3 }
 0x815   :  { %7668 = vmatmul.msk.f32.vlgmr.msra.gmra.mxu2 %vm456_vm1, %v6294_v31  ;;  %6154 = vmatpush.msrb.mxu0 %v7635_v49  ;;  %v4753_v22 = vadd.f32 %v11456_v40, %v11417_v44 }
 0x816   :  { %6429 = vmatpush.msra.mxu1 %v7685_v34  ;;  %6449 = vmatpush.msrb.mxu2 %v7686_v30  ;;  %v4914_v25 = vpop.f32.mrf.mxu2 }
 0x817   :  { %6285 = vmatpush.msra.mxu3 %v7654_v45  ;;  %6155 = vmatpush.msrb.mxu0 %v7633_v5  ;;  %v4808_v38 = vadd.f32 %v11454_v52, %v4753_v22 }
 0x818   :  { %6430 = vmatpush.msra.mxu1 %v7683_v55  ;;  %6450 = vmatpush.msrb.mxu2 %v7684_v33  ;;  %v11485_v3 = vpop.f32.mrf.mxu0 }
 0x819   :  { %6286 = vmatpush.msra.mxu3 %v7652_v56  ;;  %6156 = vmatpush.msrb.mxu0 %v7631_v41  ;;  %v5004_v63 = vpop.f32.mrf.mxu1  ;;  %v4752_v21 = vadd.f32 %v11485_v3, %v11434_v62 }
 0x81a   :  { %6431 = vmatpush.msra.mxu1 %v7681_v15  ;;  %6451 = vmatpush.msrb.mxu2 %v7682_v13 }
 0x81b   :  { %6287 = vmatpush.msra.mxu3 %v7650_v27  ;;  %6157 = vmatpush.msrb.mxu0 %v7629_v42  ;;  %v4807_v31 = vadd.f32 %v11477_v58, %v4752_v21  ;;  %v6493_v21 = vld [vmem:[%s11673_s8 + $0xc0] sm:$0xff] }
 0x81c   :  { %6432 = vmatpush.msra.mxu1 %v7679_v1  ;;  %6452 = vmatpush.msrb.mxu2 %v7680_v24 }
 0x81d   :  { %7637 = vmatmul.msk.f32.vlgmr.msrb.gmra.mxu0 %vm456_vm1, %v6129_v37  ;;  %7658 = vmatmul.msk.f32.vlgmr.msra.gmra.mxu3 %vm456_vm1, %v6239_v59 }
 0x81e   :  { %6394 = vmatpush.msrb.mxu3 %v7676_v2  ;;  %7687 = vmatmul.msk.f32.vlgmr.msra.gmra.mxu1 %vm456_vm1, %v6404_v19  ;;  %v4859_v26 = vpop.f32.mrf.mxu3 }
 0x81f   :  { %7688 = vmatmul.msk.f32.vlgmr.msrb.gmra.mxu2 %vm456_vm1, %v6404_v19  ;;  %6264 = vmatpush.msra.mxu0 %v7655_v48  ;;  %v4863_v49 = vadd.f32 %v4859_v26, %v4808_v38 }
 0x820   :  { %6395 = vmatpush.msrb.mxu3 %v7674_v29  ;;  %v5024_v36 = vpop.f32.mrf.mxu2 }
 0x821   :  { %6265 = vmatpush.msra.mxu0 %v7653_v16  ;;  %v4918_v30 = vadd.f32 %v4914_v25, %v4863_v49 }
 0x822   :  { %6396 = vmatpush.msrb.mxu3 %v7672_v0  ;;  %v4839_v28 = vpop.f32.mrf.mxu0 }
 0x823   :  { %6266 = vmatpush.msra.mxu0 %v7651_v32  ;;  %v5114_v12 = vpop.f32.mrf.mxu1  ;;  %v4862_v34 = vadd.f32 %v4839_v28, %v4807_v31  ;;  %v6500_v32 = vld [vmem:[%s11673_s8 + $0xf8] sm:$0xff]  ;;  %v6483_v28 = vld [vmem:[%s11673_s8 + $0x70] sm:$0xff]  ;;  %v6477_v31 = vld [vmem:[%s11673_s8 + $0x40] sm:$0xff] }
 0x824   :  { %6397 = vmatpush.msrb.mxu3 %v7670_v6  ;;  %v6484_v6 = vld [vmem:[%s11673_s8 + $0x78] sm:$0xff] }
 0x825   :  { %6267 = vmatpush.msra.mxu0 %v7649_v35  ;;  %7678 = vmatmul.msk.f32.vlgmr.msrb.gmra.mxu3 %vm456_vm1, %v6349_v61  ;;  %v4917_v33 = vadd.f32 %v4894_v47, %v4862_v34  ;;  %v6499_v47 = vld [vmem:[%s11673_s8 + $0xf0] sm:$0xff]  ;;  %v6492_v34 = vld [vmem:[%s11673_s8 + $0xb8] sm:$0xff] }
 0x826   :  { %7657 = vmatmul.msk.f32.vlgmr.msra.gmra.mxu0 %vm456_vm1, %v6239_v59  ;;  %6525 = vmatpush.msra.mxu3 %v6500_v32  ;;  %v6485_v32 = vld [vmem:[%s11673_s8 + $0x80] sm:$0xff] }
 0x827   :  { %6374 = vmatpush.msrb.mxu0 %v7675_v51  ;;  %v6498_v51 = vld [vmem:[%s11673_s8 + $0xe8] sm:$0xff] }
 0x828   :  { %v4969_v9 = vpop.f32.mrf.mxu3  ;;  %6526 = vmatpush.msra.mxu3 %v6499_v47  ;;  %v6469_v47 = vld [vmem:[%s11673_s8] sm:$0xff] }
 0x829   :  { %6375 = vmatpush.msrb.mxu0 %v7673_v8  ;;  %v4973_v55 = vadd.f32 %v4969_v9, %v4918_v30  ;;  %v6476_v30 = vld [vmem:[%s11673_s8 + $0x38] sm:$0xff] }
 0x82a   :  { %v5134_v14 = vpop.f32.mrf.mxu2  ;;  %6527 = vmatpush.msra.mxu3 %v6498_v51 }
 0x82b   :  { %6376 = vmatpush.msrb.mxu0 %v7671_v54  ;;  %v5028_v41 = vadd.f32 %v5024_v36, %v4973_v55 }
 0x82c   :  { %v4949_v4 = vpop.f32.mrf.mxu0 }
 0x82d   :  { %6377 = vmatpush.msrb.mxu0 %v7669_v11  ;;  %v5224_v60 = vpop.f32.mrf.mxu1  ;;  %v4972_v44 = vadd.f32 %v4949_v4, %v4917_v33  ;;  %v6497_v4 = vld [vmem:[%s11673_s8 + $0xe0] sm:$0xff]  ;;  %v6475_v33 = vld [vmem:[%s11673_s8 + $0x30] sm:$0xff] }
 0x82e   :  { %7677 = vmatmul.msk.f32.vlgmr.msrb.gmra.mxu0 %vm456_vm1, %v6349_v61  ;;  %6528 = vmatpush.msra.mxu3 %v6497_v4 }
 0x82f   :  { %v5027_v13 = vadd.f32 %v5004_v63, %v4972_v44  ;;  %6505 = vmatpush.msra.mxu0 %v6484_v6  ;;  %v6482_v63 = vld [vmem:[%s11673_s8 + $0x68] sm:$0xff] }
 0x831   :  { %6506 = vmatpush.msra.mxu0 %v6483_v28 }
 0x832   :  { %v5079_v20 = vpop.f32.mrf.mxu3 }
 0x833   :  { %v5083_v15 = vadd.f32 %v5079_v20, %v5028_v41  ;;  %6507 = vmatpush.msra.mxu0 %v6482_v63 }
 0x834   :  { %v5244_v17 = vpop.f32.mrf.mxu2 }
 0x835   :  { %v5138_v42 = vadd.f32 %v5134_v14, %v5083_v15 }
 0x836   :  { %v5059_v39 = vpop.f32.mrf.mxu0 }
 0x837   :  { %v5334_v50 = vpop.f32.mrf.mxu1  ;;  %v5082_v62 = vadd.f32 %v5059_v39, %v5027_v13  ;;  %v6481_v39 = vld [vmem:[%s11673_s8 + $0x60] sm:$0xff]  ;;  %v6474_v13 = vld [vmem:[%s11673_s8 + $0x28] sm:$0xff] }
 0x838   :  { %6508 = vmatpush.msra.mxu0 %v6481_v39 }
 0x839   :  { %v5137_v58 = vadd.f32 %v5114_v12, %v5082_v62  ;;  %v6489_v62 = vld [vmem:[%s11673_s8 + $0xa0] sm:$0xff] }
 0x83c   :  { %v5189_v18 = vpop.f32.mrf.mxu3 }
 0x83d   :  { %v5193_v3 = vadd.f32 %v5189_v18, %v5138_v42  ;;  %v6480_v18 = vld [vmem:[%s11673_s8 + $0x58] sm:$0xff] }
 0x83e   :  { %v5354_v43 = vpop.f32.mrf.mxu2  ;;  %6509 = vmatpush.msra.mxu0 %v6480_v18  ;;  %v6488_v42 = vld [vmem:[%s11673_s8 + $0x98] sm:$0xff] }
 0x83f   :  { %v5248_v59 = vadd.f32 %v5244_v17, %v5193_v3  ;;  %v6496_v17 = vld [vmem:[%s11673_s8 + $0xd8] sm:$0xff] }
 0x840   :  { %v5169_v46 = vpop.f32.mrf.mxu0  ;;  %6529 = vmatpush.msra.mxu3 %v6496_v17 }
 0x841   :  { %v5444_v10 = vpop.f32.mrf.mxu1  ;;  %v5192_v2 = vadd.f32 %v5169_v46, %v5137_v58 }
 0x843   :  { %v5247_v19 = vadd.f32 %v5224_v60, %v5192_v2  ;;  %v6487_v2 = vld [vmem:[%s11673_s8 + $0x90] sm:$0xff] }
 0x846   :  { %v5299_v53 = vpop.f32.mrf.mxu3 }
 0x847   :  { %v5303_v48 = vadd.f32 %v5299_v53, %v5248_v59 }
 0x848   :  { %v5464_v57 = vpop.f32.mrf.mxu2 }
 0x849   :  { %v5358_v26 = vadd.f32 %v5354_v43, %v5303_v48  ;;  %v6495_v43 = vld [vmem:[%s11673_s8 + $0xd0] sm:$0xff] }
 0x84a   :  { %v5279_v7 = vpop.f32.mrf.mxu0  ;;  %6530 = vmatpush.msra.mxu3 %v6495_v43 }
 0x84b   :  { %v5554_v56 = vpop.f32.mrf.mxu1  ;;  %v5302_v25 = vadd.f32 %v5279_v7, %v5247_v19  ;;  %v6494_v7 = vld [vmem:[%s11673_s8 + $0xc8] sm:$0xff] }
 0x84c   :  { %6531 = vmatpush.msra.mxu3 %v6494_v7 }
 0x84d   :  { %v5357_v8 = vadd.f32 %v5334_v50, %v5302_v25  ;;  %v6479_v50 = vld [vmem:[%s11673_s8 + $0x50] sm:$0xff] }
 0x84e   :  { %6510 = vmatpush.msra.mxu0 %v6479_v50  ;;  %6532 = vmatpush.msra.mxu3 %v6493_v21  ;;  %v6459_v50 = vld [vmem:[%s11672_s7] sm:$0x3] }
 0x850   :  { %v5409_v23 = vpop.f32.mrf.mxu3  ;;  %6533 = vmatpush.msra.mxu3 %v6492_v34 }
 0x851   :  { %v5413_v61 = vadd.f32 %v5409_v23, %v5358_v26  ;;  %v6478_v23 = vld [vmem:[%s11673_s8 + $0x48] sm:$0xff] }
 0x852   :  { %v5574_v45 = vpop.f32.mrf.mxu2  ;;  %6511 = vmatpush.msra.mxu0 %v6478_v23  ;;  %v6462_v23 = vperm.slane %v6459_v50, 1 }
 0x853   :  { %v5468_v36 = vadd.f32 %v5464_v57, %v5413_v61 }
 0x854   :  { %v5389_v37 = vpop.f32.mrf.mxu0  ;;  %6512 = vmatpush.msra.mxu0 %v6477_v31  ;;  %v6461_v31 = vperm.slane %v6459_v50, 0 }
 0x855   :  { %v11544_v1 = vpop.f32.mrf.mxu1  ;;  %v5412_v54 = vadd.f32 %v5389_v37, %v5357_v8 }
 0x856   :  { %6513 = vmatpush.msra.mxu0 %v6476_v30 }
 0x857   :  { %v5467_v20 = vadd.f32 %v5444_v10, %v5412_v54 }
 0x858   :  { %6514 = vmatpush.msra.mxu0 %v6475_v33 }
 0x85a   :  { %v5519_v5 = vpop.f32.mrf.mxu3  ;;  %6515 = vmatpush.msra.mxu0 %v6474_v13 }
 0x85b   :  { %v5523_v14 = vadd.f32 %v5519_v5, %v5468_v36 }
 0x85c   :  { %v11542_v27 = vpop.f32.mrf.mxu2 }
 0x85d   :  { %v5578_v53 = vadd.f32 %v5574_v45, %v5523_v14  ;;  %v6491_v45 = vld [vmem:[%s11673_s8 + $0xb0] sm:$0xff] }
 0x85e   :  { %v5499_v40 = vpop.f32.mrf.mxu0  ;;  %6534 = vmatpush.msra.mxu3 %v6491_v45 }
 0x85f   :  { %v11548_v0 = vpop.f32.mrf.mxu1  ;;  %v5522_v60 = vadd.f32 %v5499_v40, %v5467_v20 }
 0x861   :  { %v5577_v57 = vadd.f32 %v5554_v56, %v5522_v60  ;;  %v6490_v56 = vld [vmem:[%s11673_s8 + $0xa8] sm:$0xff] }
 0x862   :  { %6535 = vmatpush.msra.mxu3 %v6490_v56  ;;  %v7718_v56 = vld [vmem:[%s11674_s9] ss:$0 sm:$0xff] }
 0x864   :  { %v5629_v52 = vpop.f32.mrf.mxu3  ;;  %6536 = vmatpush.msra.mxu3 %v6489_v62 }
 0x865   :  { %v5633_v22 = vadd.f32 %v5629_v52, %v5578_v53  ;;  %v6473_v52 = vld [vmem:[%s11673_s8 + $0x20] sm:$0xff] }
 0x866   :  { %v11546_v29 = vpop.f32.mrf.mxu2  ;;  %6516 = vmatpush.msra.mxu0 %v6473_v52  ;;  %6537 = vmatpush.msra.mxu3 %v6488_v42 }
 0x867   :  { %v5688_v49 = vadd.f32 %v11542_v27, %v5633_v22 }
 0x868   :  { %v5609_v24 = vpop.f32.mrf.mxu0  ;;  %6538 = vmatpush.msra.mxu3 %v6487_v2 }
 0x869   :  { %v11573_v12 = vpop.f32.mrf.mxu1  ;;  %v5632_v38 = vadd.f32 %v5609_v24, %v5577_v57  ;;  %v6472_v24 = vld [vmem:[%s11673_s8 + $0x18] sm:$0xff] }
 0x86a   :  { %6517 = vmatpush.msra.mxu0 %v6472_v24 }
 0x86b   :  { %v5687_v44 = vadd.f32 %v11544_v1, %v5632_v38 }
 0x86e   :  { %v5739_v16 = vpop.f32.mrf.mxu3 }
 0x86f   :  { %v5743_v5 = vadd.f32 %v5739_v16, %v5688_v49  ;;  %v6486_v16 = vld [vmem:[%s11673_s8 + $0x88] sm:$0xff] }
 0x870   :  { %v11565_v9 = vpop.f32.mrf.mxu2  ;;  %6539 = vmatpush.msra.mxu3 %v6486_v16 }
 0x871   :  { %v5798_v15 = vadd.f32 %v11546_v29, %v5743_v5  ;;  %v6471_v29 = vld [vmem:[%s11673_s8 + $0x10] sm:$0xff] }
 0x872   :  { %v5719_v35 = vpop.f32.mrf.mxu0  ;;  %6518 = vmatpush.msra.mxu0 %v6471_v29  ;;  %6540 = vmatpush.msra.mxu3 %v6485_v32 }
 0x873   :  { %v5994_v55 = vpop.f32.mrf.mxu1  ;;  %v5742_v41 = vadd.f32 %v5719_v35, %v5687_v44 }
 0x875   :  { %v5797_v3 = vadd.f32 %v11548_v0, %v5742_v41  ;;  %v6470_v0 = vld [vmem:[%s11673_s8 + $0x8] sm:$0xff] }
 0x876   :  { %6519 = vmatpush.msra.mxu0 %v6470_v0 }
 0x878   :  { %v5849_v11 = vpop.f32.mrf.mxu3  ;;  %6520 = vmatpush.msra.mxu0 %v6469_v47 }
 0x879   :  { %v5853_v27 = vadd.f32 %v5849_v11, %v5798_v15 }
 0x87a   :  { %v6014_v10 = vpop.f32.mrf.mxu2 }
 0x87b   :  { %v5908_v19 = vadd.f32 %v11565_v9, %v5853_v27 }
 0x87c   :  { %v5829_v46 = vpop.f32.mrf.mxu0 }
 0x87d   :  { %v5852_v59 = vadd.f32 %v5829_v46, %v5797_v3  ;;  %v6104_v48 = vpop.f32.mrf.mxu1 }
 0x87f   :  { %v5907_v6 = vadd.f32 %v11573_v12, %v5852_v59 }
 0x882   :  { %v5959_v37 = vpop.f32.mrf.mxu3 }
 0x883   :  { %v5963_v26 = vadd.f32 %v5959_v37, %v5908_v19 }
 0x884   :  { %v6124_v1 = vpop.f32.mrf.mxu2 }
 0x885   :  { %v6018_v28 = vadd.f32 %v6014_v10, %v5963_v26 }
 0x886   :  { %v5939_v40 = vpop.f32.mrf.mxu0 }
 0x887   :  { %v5962_v35 = vadd.f32 %v5939_v40, %v5907_v6  ;;  %v6214_v36 = vpop.f32.mrf.mxu1 }
 0x889   :  { %v6017_v54 = vadd.f32 %v5994_v55, %v5962_v35 }
 0x88c   :  { %v6069_v58 = vpop.f32.mrf.mxu3 }
 0x88d   :  { %v6073_v8 = vadd.f32 %v6069_v58, %v6018_v28 }
 0x88e   :  { %v6234_v61 = vpop.f32.mrf.mxu2 }
 0x88f   :  { %v6128_v63 = vadd.f32 %v6124_v1, %v6073_v8 }
 0x890   :  { %v6049_v25 = vpop.f32.mrf.mxu0 }
 0x891   :  { %v6072_v9 = vadd.f32 %v6049_v25, %v6017_v54  ;;  %v6324_v18 = vpop.f32.mrf.mxu1 }
 0x893   :  { %v6127_v14 = vadd.f32 %v6104_v48, %v6072_v9 }
 0x896   :  { %v6179_v51 = vpop.f32.mrf.mxu3 }
 0x897   :  { %v6183_v4 = vadd.f32 %v6179_v51, %v6128_v63 }
 0x898   :  { %v6344_v20 = vpop.f32.mrf.mxu2 }
 0x899   :  { %v6238_v17 = vadd.f32 %v6234_v61, %v6183_v4 }
 0x89a   :  { %v6159_v11 = vpop.f32.mrf.mxu0 }
 0x89b   :  { %v6182_v12 = vadd.f32 %v6159_v11, %v6127_v14  ;;  %v6434_v34 = vpop.f32.mrf.mxu1 }
 0x89d   :  { %v6237_v43 = vadd.f32 %v6214_v36, %v6182_v12 }
 0x8a0   :  { %v6289_v39 = vpop.f32.mrf.mxu3 }
 0x8a1   :  { %v6293_v60 = vadd.f32 %v6289_v39, %v6238_v17 }
 0x8a2   :  { %v6454_v21 = vpop.f32.mrf.mxu2 }
 0x8a3   :  { %v6269_v46 = vpop.f32.mrf.mxu0  ;;  %v6348_v7 = vadd.f32 %v6344_v20, %v6293_v60 }
 0x8a4   :  { %v6292_v53 = vadd.f32 %v6269_v46, %v6237_v43 }
 0x8a6   :  { %v6347_v38 = vadd.f32 %v6324_v18, %v6292_v53 }
 0x8a8   :  { %v6399_v22 = vpop.f32.mrf.mxu3 }
 0x8a9   :  { %v6403_v57 = vadd.f32 %v6399_v22, %v6348_v7 }
 0x8ab   :  { %v6458_v10 = vadd.f32 %v6454_v21, %v6403_v57  ;;  %v6379_v37 = vpop.f32.mrf.mxu0 }
 0x8ac   :  { %v6402_v49 = vadd.f32 %v6379_v37, %v6347_v38 }
 0x8ad   :  { %v6466_v30 = vadd.f32 %v6462_v23, %v6458_v10 }
 0x8ae   :  { %v6457_v45 = vadd.f32 %v6434_v34, %v6402_v49 }
 0x8af   :  { %v6468_v5 = vmax.f32 %v6466_v30, 0.0 }
 0x8b0   :  { %v6465_v55 = vadd.f32 %v6461_v31, %v6457_v45 }
 0x8b1   :  { %6541 = vmatmul.f32.vlgmr.msra.gmra.mxu3 %v6468_v5 }
 0x8b2   :  { %v6467_v33 = vmax.f32 %v6465_v55, 0.0 }
 0x8b4   :  { %6521 = vmatmul.f32.vlgmr.msra.gmra.mxu0 %v6467_v33 }
 0x931   :  { %v6522_v44 = vpop.f32.mrf.mxu0 }
 0x932   :  { %v6523_v40 = vadd.f32 %v7718_v56, %v6522_v44 }
 0x934   :  { %v6542_v41 = vpop.f32.mrf.mxu3 }
 0x935   :  { %v6543_v15 = vadd.f32 %v6542_v41, %v6523_v40 }
 0x937   :  { %6545 = vst [vmem:[#allocation4] sm:$0x3] %v6543_v15 }
 0x938   :  { %6556 = dma.vmem_to_hbm [thread:$0]  %s6552_s27, 32, %s6554_s30, [#allocation5]  }
 0x939   :  { %7781 = dma.done.wait [#allocation5], 32  }
 0x93a   :  { %7782 = vsyncadd [#allocation5], 4294967264 }
 0x93b   :  { %6561 = vsyncpa [#allocation5], 1 }

</bundles_post_ra>
